<compile_context>
chip_gen: v7x
topology: tpu7x:2x2x1
jax: 0.10.0
libtpu: 0.0.40
codegen_flags: <defaults>
</compile_context>

<pallas_src>
import math
import jax
import jax.numpy as jnp
from jax.experimental import pallas as pl
from jax.experimental.pallas import tpu as pltpu

IN_FEATS = 784
IN_PAD = 896      # 784 rounded up to a multiple of 128
OUT_FEATS = 10
OUT_PAD = 128     # lane-dense decoder output width


def _round_up(x, m):
    return ((x + m - 1) // m) * m


# ---------------------------------------------------------------------------
# Pallas kernel: full ToyNet forward for one batch tile (num_sample == 1 path)
# ---------------------------------------------------------------------------
def toynet_kernel(x_ref, w1_ref, b1_ref, w2_ref, b2_ref,
                  w3mu_ref, b3mu_ref, w3std_ref, b3std_ref,
                  wd_ref, bd_ref, eps_ref,
                  mu_ref, std_ref, logit_ref):
    # encode: Linear(896(=784 padded), 1024) + ReLU  (bf16 operands, f32 acc)
    x = x_ref[...].astype(jnp.bfloat16)                               # (TB, 896)
    h1 = jnp.dot(x, w1_ref[...], preferred_element_type=jnp.float32) + b1_ref[...]
    h1 = jnp.maximum(h1, 0.0)                                         # f32

    # encode: Linear(1024, 1024) + ReLU
    h2 = jnp.dot(h1.astype(jnp.bfloat16), w2_ref[...],
                 preferred_element_type=jnp.float32) + b2_ref[...]
    h2 = jnp.maximum(h2, 0.0)                                         # f32
    h2b = h2.astype(jnp.bfloat16)

    # encode: Linear(1024, 2K) split into mu / std heads (no lane-slice copies)
    mu = jnp.dot(h2b, w3mu_ref[...],
                 preferred_element_type=jnp.float32) + b3mu_ref[...]   # (TB, K)
    pre = jnp.dot(h2b, w3std_ref[...],
                  preferred_element_type=jnp.float32) + b3std_ref[...]  # (TB, K)

    # std = softplus(statistics[:, K:] - 5, beta=1)   (f32 elementwise)
    std = jax.nn.softplus(pre - 5.0)

    # reparametrize_n with n == 1: encoding = mu + eps * std
    enc = mu + eps_ref[...] * std

    # decode: Linear(K, 10) padded to 128 output lanes (lane-dense store)
    logit = jnp.dot(enc.astype(jnp.bfloat16), wd_ref[...],
                    preferred_element_type=jnp.float32) + bd_ref[...]  # (TB, 128)

    mu_ref[...] = mu
    std_ref[...] = std
    logit_ref[...] = logit


# ---------------------------------------------------------------------------
# One-time parameter preparation (bf16 weights, padding, w3 split)
# ---------------------------------------------------------------------------
def prepare_params(params):
    """Convert f32 (in, out) params to the kernel-ready layout."""
    K = params["w3"].shape[1] // 2

    w1 = jnp.pad(params["w1"], ((0, IN_PAD - IN_FEATS), (0, 0)))
    wd = jnp.pad(params["wd"], ((0, 0), (0, OUT_PAD - OUT_FEATS)))
    bd = jnp.pad(params["bd"], ((0, 0), (0, OUT_PAD - OUT_FEATS)))

    return {
        "K": K,
        "w1": w1.astype(jnp.bfloat16),
        "b1": params["b1"],
        "w2": params["w2"].astype(jnp.bfloat16),
        "b2": params["b2"],
        "w3_mu": params["w3"][:, :K].astype(jnp.bfloat16),
        "b3_mu": params["b3"][:, :K],
        "w3_std": params["w3"][:, K:].astype(jnp.bfloat16),
        "b3_std": params["b3"][:, K:],
        "wd": wd.astype(jnp.bfloat16),
        "bd": bd,
    }


# ---------------------------------------------------------------------------
# Wrapper
# ---------------------------------------------------------------------------
def toynet_forward(x, p, eps, *, block_b=256):
    """x: (B, 784) f32, eps: (B, K) f32. Returns ((mu, std), logit)."""
    if x.ndim > 2:
        x = x.reshape(x.shape[0], -1)
    x = x.astype(jnp.float32)

    B = x.shape[0]
    K = p["w3_mu"].shape[1]

    # Batch tile: multiple of 8 sublanes, capped by block_b; weights stay
    # resident in VMEM while batch tiles stream through the grid.
    block_b = _round_up(block_b, 8)
    TB = min(block_b, _round_up(B, 8))
    B_pad = _round_up(B, TB)

    x_pad = jnp.pad(x, ((0, B_pad - B), (0, IN_PAD - x.shape[1])))
    eps_pad = jnp.pad(eps.astype(jnp.float32), ((0, B_pad - B), (0, 0)))

    grid = (B_pad // TB,)

    in_specs = [
        pl.BlockSpec((TB, IN_PAD), lambda i: (i, 0)),       # x       (streamed)
        pl.BlockSpec((IN_PAD, 1024), lambda i: (0, 0)),     # w1      (resident)
        pl.BlockSpec((1, 1024), lambda i: (0, 0)),          # b1
        pl.BlockSpec((1024, 1024), lambda i: (0, 0)),       # w2
        pl.BlockSpec((1, 1024), lambda i: (0, 0)),          # b2
        pl.BlockSpec((1024, K), lambda i: (0, 0)),          # w3_mu
        pl.BlockSpec((1, K), lambda i: (0, 0)),             # b3_mu
        pl.BlockSpec((1024, K), lambda i: (0, 0)),          # w3_std
        pl.BlockSpec((1, K), lambda i: (0, 0)),              # b3_std
        pl.BlockSpec((K, OUT_PAD), lambda i: (0, 0)),        # wd
        pl.BlockSpec((1, OUT_PAD), lambda i: (0, 0)),        # bd
        pl.BlockSpec((TB, K), lambda i: (i, 0)),             # eps     (streamed)
    ]
    out_specs = (
        pl.BlockSpec((TB, K), lambda i: (i, 0)),             # mu
        pl.BlockSpec((TB, K), lambda i: (i, 0)),             # std
        pl.BlockSpec((TB, OUT_PAD), lambda i: (i, 0)),       # logit (lane-dense)
    )
    out_shape = (
        jax.ShapeDtypeStruct((B_pad, K), jnp.float32),
        jax.ShapeDtypeStruct((B_pad, K), jnp.float32),
        jax.ShapeDtypeStruct((B_pad, OUT_PAD), jnp.float32),
    )

    mu_pad, std_pad, logit_pad = pl.pallas_call(
        toynet_kernel,
        out_shape=out_shape,
        grid=grid,
        in_specs=in_specs,
        out_specs=out_specs,
        compiler_params=pltpu.CompilerParams(
            dimension_semantics=("parallel",),   # shard batch tiles across TCs (v7x)
            vmem_limit_bytes=32 << 20,           # bf16 weights ~5 MB + buffers
        ),
    )(x_pad,
      p["w1"], p["b1"],
      p["w2"], p["b2"],
      p["w3_mu"], p["b3_mu"],
      p["w3_std"], p["b3_std"],
      p["wd"], p["bd"],
      eps_pad)

    mu = mu_pad[:B]
    std = std_pad[:B]
    logit = logit_pad[:B, :OUT_FEATS]
    return (mu, std), logit


# ---------------------------------------------------------------------------
# Deterministic parameter init (xavier_uniform with gain = sqrt(2), bias = 0)
# ---------------------------------------------------------------------------
def xavier_uniform(key, fan_in, fan_out, gain):
    bound = gain * math.sqrt(6.0 / (fan_in + fan_out))
    # stored as (in, out) so kernel computes x @ W
    return jax.random.uniform(key, (fan_in, fan_out), jnp.float32,
                              minval=-bound, maxval=bound)


def init_params(key, K=256):
    gain = math.sqrt(2.0)  # nn.init.calculate_gain('relu')
    k1, k2, k3, k4 = jax.random.split(key, 4)
    return {
        "w1": xavier_uniform(k1, IN_FEATS, 1024, gain),
        "b1": jnp.zeros((1, 1024), jnp.float32),
        "w2": xavier_uniform(k2, 1024, 1024, gain),
        "b2": jnp.zeros((1, 1024), jnp.float32),
        "w3": xavier_uniform(k3, 1024, 2 * K, gain),
        "b3": jnp.zeros((1, 2 * K), jnp.float32),
        "wd": xavier_uniform(k4, K, OUT_FEATS, gain),
        "bd": jnp.zeros((1, OUT_FEATS), jnp.float32),
    }


# ---------------------------------------------------------------------------
if __name__ == "__main__":
    K = 256
    B = 16  # small batch; feature dims (784 / 1024 / 2K / 10) fixed by the module

    root = jax.random.PRNGKey(0)
    k_params, k_x, k_eps = jax.random.split(root, 3)

    params = init_params(k_params, K=K)
    prepped = prepare_params(params)          # bf16 weights, padding, w3 split

    x = jax.random.uniform(k_x, (B, 784), jnp.float32)    # MNIST-like, flattened
    eps = jax.random.normal(k_eps, (B, K), jnp.float32)   # reparam noise (num_sample=1)

    # block_b=8 so the small demo batch exercises the streaming batch grid
    # (production would use block_b=256..512).
    (mu, std), logit = toynet_forward(x, prepped, eps, block_b=8)
    jax.block_until_ready((mu, std, logit))

    assert mu.shape == (B, K) and std.shape == (B, K) and logit.shape == (B, 10)
    assert bool(jnp.all(std > 0.0))
    # TODO(synk): num_sample > 1 path (softmax over samples then mean) not
    # implemented; only the default num_sample == 1 forward is kernelized.
    print("KERNEL_OK")
</pallas_src>

<mosaic_0001>
module attributes {stable_mosaic.version = 11 : i64} {
  func.func @toynet_kernel(%arg0: i32, %arg1: memref<8x896xf32, #tpu.memory_space<vmem>>, %arg2: memref<896x1024xbf16, #tpu.memory_space<vmem>>, %arg3: memref<1x1024xf32, #tpu.memory_space<vmem>>, %arg4: memref<1024x1024xbf16, #tpu.memory_space<vmem>>, %arg5: memref<1x1024xf32, #tpu.memory_space<vmem>>, %arg6: memref<1024x256xbf16, #tpu.memory_space<vmem>>, %arg7: memref<1x256xf32, #tpu.memory_space<vmem>>, %arg8: memref<1024x256xbf16, #tpu.memory_space<vmem>>, %arg9: memref<1x256xf32, #tpu.memory_space<vmem>>, %arg10: memref<256x128xbf16, #tpu.memory_space<vmem>>, %arg11: memref<1x128xf32, #tpu.memory_space<vmem>>, %arg12: memref<8x256xf32, #tpu.memory_space<vmem>>, %arg13: memref<8x256xf32, #tpu.memory_space<vmem>>, %arg14: memref<8x256xf32, #tpu.memory_space<vmem>>, %arg15: memref<8x128xf32, #tpu.memory_space<vmem>>) attributes {dimension_semantics = [#tpu.dimension_semantics<parallel>], iteration_bounds = array<i64: 2>, scalar_prefetch = 0 : i64, scratch_operands = 0 : i64, tpu.core_type = #tpu.core_type<tc>, window_params = [{transform_indices = @transform_0, window_bounds = array<i64: 8, 896>}, {pipeline_mode = #tpu.pipeline_mode<synchronous>, transform_indices = @transform_1, window_bounds = array<i64: 896, 1024>}, {pipeline_mode = #tpu.pipeline_mode<synchronous>, transform_indices = @transform_2, window_bounds = array<i64: 1, 1024>}, {pipeline_mode = #tpu.pipeline_mode<synchronous>, transform_indices = @transform_3, window_bounds = array<i64: 1024, 1024>}, {pipeline_mode = #tpu.pipeline_mode<synchronous>, transform_indices = @transform_4, window_bounds = array<i64: 1, 1024>}, {pipeline_mode = #tpu.pipeline_mode<synchronous>, transform_indices = @transform_5, window_bounds = array<i64: 1024, 256>}, {pipeline_mode = #tpu.pipeline_mode<synchronous>, transform_indices = @transform_6, window_bounds = array<i64: 1, 256>}, {pipeline_mode = #tpu.pipeline_mode<synchronous>, transform_indices = @transform_7, window_bounds = array<i64: 1024, 256>}, {pipeline_mode = #tpu.pipeline_mode<synchronous>, transform_indices = @transform_8, window_bounds = array<i64: 1, 256>}, {pipeline_mode = #tpu.pipeline_mode<synchronous>, transform_indices = @transform_9, window_bounds = array<i64: 256, 128>}, {pipeline_mode = #tpu.pipeline_mode<synchronous>, transform_indices = @transform_10, window_bounds = array<i64: 1, 128>}, {transform_indices = @transform_11, window_bounds = array<i64: 8, 256>}, {transform_indices = @transform_12, window_bounds = array<i64: 8, 256>}, {transform_indices = @transform_13, window_bounds = array<i64: 8, 256>}, {transform_indices = @transform_14, window_bounds = array<i64: 8, 128>}]} {
    %c0 = arith.constant 0 : index
    %c0_0 = arith.constant 0 : index
    %0 = vector.load %arg1[%c0, %c0_0] : memref<8x896xf32, #tpu.memory_space<vmem>>, vector<8x896xf32>
    %1 = arith.truncf %0 : vector<8x896xf32> to vector<8x896xbf16>
    %c0_1 = arith.constant 0 : index
    %c0_2 = arith.constant 0 : index
    %2 = vector.load %arg2[%c0_1, %c0_2] : memref<896x1024xbf16, #tpu.memory_space<vmem>>, vector<896x1024xbf16>
    %cst = arith.constant dense<0.000000e+00> : vector<8x1024xf32>
    %3 = tpu.matmul %1, %2, %cst {dimension_numbers = #tpu.dot_dimension_numbers<[1], [0], [0], [1], [0, 0, 1, 1], [], []>} : vector<8x896xbf16>, vector<896x1024xbf16>, vector<8x1024xf32> -> vector<8x1024xf32>
    %c0_3 = arith.constant 0 : index
    %c0_4 = arith.constant 0 : index
    %4 = vector.load %arg3[%c0_3, %c0_4] : memref<1x1024xf32, #tpu.memory_space<vmem>>, vector<1x1024xf32>
    %5 = vector.broadcast %4 : vector<1x1024xf32> to vector<8x1024xf32>
    %6 = arith.addf %3, %5 : vector<8x1024xf32>
    %cst_5 = arith.constant 0.000000e+00 : f32
    %7 = vector.broadcast %cst_5 : f32 to vector<8x1024xf32>
    %8 = arith.maximumf %6, %7 : vector<8x1024xf32>
    %9 = arith.truncf %8 : vector<8x1024xf32> to vector<8x1024xbf16>
    %c0_6 = arith.constant 0 : index
    %c0_7 = arith.constant 0 : index
    %10 = vector.load %arg4[%c0_6, %c0_7] : memref<1024x1024xbf16, #tpu.memory_space<vmem>>, vector<1024x1024xbf16>
    %cst_8 = arith.constant dense<0.000000e+00> : vector<8x1024xf32>
    %11 = tpu.matmul %9, %10, %cst_8 {dimension_numbers = #tpu.dot_dimension_numbers<[1], [0], [0], [1], [0, 0, 1, 1], [], []>} : vector<8x1024xbf16>, vector<1024x1024xbf16>, vector<8x1024xf32> -> vector<8x1024xf32>
    %c0_9 = arith.constant 0 : index
    %c0_10 = arith.constant 0 : index
    %12 = vector.load %arg5[%c0_9, %c0_10] : memref<1x1024xf32, #tpu.memory_space<vmem>>, vector<1x1024xf32>
    %13 = vector.broadcast %12 : vector<1x1024xf32> to vector<8x1024xf32>
    %14 = arith.addf %11, %13 : vector<8x1024xf32>
    %cst_11 = arith.constant 0.000000e+00 : f32
    %15 = vector.broadcast %cst_11 : f32 to vector<8x1024xf32>
    %16 = arith.maximumf %14, %15 : vector<8x1024xf32>
    %17 = arith.truncf %16 : vector<8x1024xf32> to vector<8x1024xbf16>
    %c0_12 = arith.constant 0 : index
    %c0_13 = arith.constant 0 : index
    %18 = vector.load %arg6[%c0_12, %c0_13] : memref<1024x256xbf16, #tpu.memory_space<vmem>>, vector<1024x256xbf16>
    %cst_14 = arith.constant dense<0.000000e+00> : vector<8x256xf32>
    %19 = tpu.matmul %17, %18, %cst_14 {dimension_numbers = #tpu.dot_dimension_numbers<[1], [0], [0], [1], [0, 0, 1, 1], [], []>} : vector<8x1024xbf16>, vector<1024x256xbf16>, vector<8x256xf32> -> vector<8x256xf32>
    %c0_15 = arith.constant 0 : index
    %c0_16 = arith.constant 0 : index
    %20 = vector.load %arg7[%c0_15, %c0_16] : memref<1x256xf32, #tpu.memory_space<vmem>>, vector<1x256xf32>
    %21 = vector.broadcast %20 : vector<1x256xf32> to vector<8x256xf32>
    %22 = arith.addf %19, %21 : vector<8x256xf32>
    %c0_17 = arith.constant 0 : index
    %c0_18 = arith.constant 0 : index
    %23 = vector.load %arg8[%c0_17, %c0_18] : memref<1024x256xbf16, #tpu.memory_space<vmem>>, vector<1024x256xbf16>
    %cst_19 = arith.constant dense<0.000000e+00> : vector<8x256xf32>
    %24 = tpu.matmul %17, %23, %cst_19 {dimension_numbers = #tpu.dot_dimension_numbers<[1], [0], [0], [1], [0, 0, 1, 1], [], []>} : vector<8x1024xbf16>, vector<1024x256xbf16>, vector<8x256xf32> -> vector<8x256xf32>
    %c0_20 = arith.constant 0 : index
    %c0_21 = arith.constant 0 : index
    %25 = vector.load %arg9[%c0_20, %c0_21] : memref<1x256xf32, #tpu.memory_space<vmem>>, vector<1x256xf32>
    %26 = vector.broadcast %25 : vector<1x256xf32> to vector<8x256xf32>
    %27 = arith.addf %24, %26 : vector<8x256xf32>
    %cst_22 = arith.constant 5.000000e+00 : f32
    %28 = vector.broadcast %cst_22 : f32 to vector<8x256xf32>
    %29 = arith.subf %27, %28 : vector<8x256xf32>
    %cst_23 = arith.constant 0.000000e+00 : f32
    %30 = vector.broadcast %cst_23 : f32 to vector<8x256xf32>
    %31 = arith.maximumf %29, %30 : vector<8x256xf32>
    %32 = vector.broadcast %cst_23 : f32 to vector<8x256xf32>
    %33 = arith.subf %29, %32 : vector<8x256xf32>
    %34 = arith.cmpf one, %33, %33 : vector<8x256xf32>
    %35 = vector.broadcast %cst_23 : f32 to vector<8x256xf32>
    %36 = arith.addf %29, %35 : vector<8x256xf32>
    %37 = math.absf %33 : vector<8x256xf32>
    %cst_24 = arith.constant 0.000000e+00 : f32
    %38 = vector.broadcast %cst_24 : f32 to vector<8x256xf32>
    %39 = arith.subf %38, %37 : vector<8x256xf32>
    %40 = math.exp %39 : vector<8x256xf32>
    %41 = math.log1p %40 : vector<8x256xf32>
    %42 = arith.addf %31, %41 : vector<8x256xf32>
    %43 = arith.select %34, %36, %42 : vector<8x256xi1>, vector<8x256xf32>
    %c0_25 = arith.constant 0 : index
    %c0_26 = arith.constant 0 : index
    %44 = vector.load %arg12[%c0_25, %c0_26] : memref<8x256xf32, #tpu.memory_space<vmem>>, vector<8x256xf32>
    %45 = arith.mulf %44, %43 : vector<8x256xf32>
    %46 = arith.addf %22, %45 : vector<8x256xf32>
    %47 = arith.truncf %46 : vector<8x256xf32> to vector<8x256xbf16>
    %c0_27 = arith.constant 0 : index
    %c0_28 = arith.constant 0 : index
    %48 = vector.load %arg10[%c0_27, %c0_28] : memref<256x128xbf16, #tpu.memory_space<vmem>>, vector<256x128xbf16>
    %cst_29 = arith.constant dense<0.000000e+00> : vector<8x128xf32>
    %49 = tpu.matmul %47, %48, %cst_29 {dimension_numbers = #tpu.dot_dimension_numbers<[1], [0], [0], [1], [0, 0, 1, 1], [], []>} : vector<8x256xbf16>, vector<256x128xbf16>, vector<8x128xf32> -> vector<8x128xf32>
    %c0_30 = arith.constant 0 : index
    %c0_31 = arith.constant 0 : index
    %50 = vector.load %arg11[%c0_30, %c0_31] : memref<1x128xf32, #tpu.memory_space<vmem>>, vector<1x128xf32>
    %51 = vector.broadcast %50 : vector<1x128xf32> to vector<8x128xf32>
    %52 = arith.addf %49, %51 : vector<8x128xf32>
    %c0_32 = arith.constant 0 : index
    %c0_33 = arith.constant 0 : index
    %53 = vector.load %arg13[%c0_32, %c0_33] : memref<8x256xf32, #tpu.memory_space<vmem>>, vector<8x256xf32>
    tpu.vector_store %arg13[%c0_32, %c0_33], %22 {strides = array<i32>} : memref<8x256xf32, #tpu.memory_space<vmem>>, vector<8x256xf32>,
    %c0_34 = arith.constant 0 : index
    %c0_35 = arith.constant 0 : index
    %54 = vector.load %arg14[%c0_34, %c0_35] : memref<8x256xf32, #tpu.memory_space<vmem>>, vector<8x256xf32>
    tpu.vector_store %arg14[%c0_34, %c0_35], %43 {strides = array<i32>} : memref<8x256xf32, #tpu.memory_space<vmem>>, vector<8x256xf32>,
    %c0_36 = arith.constant 0 : index
    %c0_37 = arith.constant 0 : index
    %55 = vector.load %arg15[%c0_36, %c0_37] : memref<8x128xf32, #tpu.memory_space<vmem>>, vector<8x128xf32>
    tpu.vector_store %arg15[%c0_36, %c0_37], %52 {strides = array<i32>} : memref<8x128xf32, #tpu.memory_space<vmem>>, vector<8x128xf32>,
    return
  }
  func.func @transform_0(%arg0: i32) -> (i32, i32) {
    %c0_i32 = arith.constant 0 : i32
    %c0_i32_0 = arith.constant 0 : i32
    return %arg0, %c0_i32 : i32, i32
  }
  func.func @transform_1(%arg0: i32) -> (i32, i32) {
    %c0_i32 = arith.constant 0 : i32
    %c0_i32_0 = arith.constant 0 : i32
    %c0_i32_1 = arith.constant 0 : i32
    return %c0_i32, %c0_i32_0 : i32, i32
  }
  func.func @transform_2(%arg0: i32) -> (i32, i32) {
    %c0_i32 = arith.constant 0 : i32
    %c0_i32_0 = arith.constant 0 : i32
    %c0_i32_1 = arith.constant 0 : i32
    return %c0_i32, %c0_i32_0 : i32, i32
  }
  func.func @transform_3(%arg0: i32) -> (i32, i32) {
    %c0_i32 = arith.constant 0 : i32
    %c0_i32_0 = arith.constant 0 : i32
    %c0_i32_1 = arith.constant 0 : i32
    return %c0_i32, %c0_i32_0 : i32, i32
  }
  func.func @transform_4(%arg0: i32) -> (i32, i32) {
    %c0_i32 = arith.constant 0 : i32
    %c0_i32_0 = arith.constant 0 : i32
    %c0_i32_1 = arith.constant 0 : i32
    return %c0_i32, %c0_i32_0 : i32, i32
  }
  func.func @transform_5(%arg0: i32) -> (i32, i32) {
    %c0_i32 = arith.constant 0 : i32
    %c0_i32_0 = arith.constant 0 : i32
    %c0_i32_1 = arith.constant 0 : i32
    return %c0_i32, %c0_i32_0 : i32, i32
  }
  func.func @transform_6(%arg0: i32) -> (i32, i32) {
    %c0_i32 = arith.constant 0 : i32
    %c0_i32_0 = arith.constant 0 : i32
    %c0_i32_1 = arith.constant 0 : i32
    return %c0_i32, %c0_i32_0 : i32, i32
  }
  func.func @transform_7(%arg0: i32) -> (i32, i32) {
    %c0_i32 = arith.constant 0 : i32
    %c0_i32_0 = arith.constant 0 : i32
    %c0_i32_1 = arith.constant 0 : i32
    return %c0_i32, %c0_i32_0 : i32, i32
  }
  func.func @transform_8(%arg0: i32) -> (i32, i32) {
    %c0_i32 = arith.constant 0 : i32
    %c0_i32_0 = arith.constant 0 : i32
    %c0_i32_1 = arith.constant 0 : i32
    return %c0_i32, %c0_i32_0 : i32, i32
  }
  func.func @transform_9(%arg0: i32) -> (i32, i32) {
    %c0_i32 = arith.constant 0 : i32
    %c0_i32_0 = arith.constant 0 : i32
    %c0_i32_1 = arith.constant 0 : i32
    return %c0_i32, %c0_i32_0 : i32, i32
  }
  func.func @transform_10(%arg0: i32) -> (i32, i32) {
    %c0_i32 = arith.constant 0 : i32
    %c0_i32_0 = arith.constant 0 : i32
    %c0_i32_1 = arith.constant 0 : i32
    return %c0_i32, %c0_i32_0 : i32, i32
  }
  func.func @transform_11(%arg0: i32) -> (i32, i32) {
    %c0_i32 = arith.constant 0 : i32
    %c0_i32_0 = arith.constant 0 : i32
    return %arg0, %c0_i32 : i32, i32
  }
  func.func @transform_12(%arg0: i32) -> (i32, i32) {
    %c0_i32 = arith.constant 0 : i32
    %c0_i32_0 = arith.constant 0 : i32
    return %arg0, %c0_i32 : i32, i32
  }
  func.func @transform_13(%arg0: i32) -> (i32, i32) {
    %c0_i32 = arith.constant 0 : i32
    %c0_i32_0 = arith.constant 0 : i32
    return %arg0, %c0_i32 : i32, i32
  }
  func.func @transform_14(%arg0: i32) -> (i32, i32) {
    %c0_i32 = arith.constant 0 : i32
    %c0_i32_0 = arith.constant 0 : i32
    return %arg0, %c0_i32 : i32, i32
  }
}

</mosaic_0001>

<bundles_post_ra>
// kernel: tpu_custom_call.1
= control target key start
LH: loop header
LB: loop body
LE: loop exit
PB: predicated region body
PF: predicated region fallthrough
CT: control target
= control target key end

     0   :  { %s13589_s0 = inlined_call_operand.hbm [shape: f32[16,896], index: 0, kind: input, shape index: {}]   ;;  %s13590_s1 = inlined_call_operand.hbm [shape: bf16[896,1024], index: 1, kind: input, shape index: {}]   ;;  %s13591_s2 = inlined_call_operand.hbm [shape: f32[1,1024], index: 2, kind: input, shape index: {}]   ;;  %s13592_s3 = inlined_call_operand.hbm [shape: bf16[1024,1024], index: 3, kind: input, shape index: {}]   ;;  %s13593_s4 = inlined_call_operand.hbm [shape: f32[1,1024], index: 4, kind: input, shape index: {}]   ;;  %s13594_s5 = inlined_call_operand.hbm [shape: bf16[1024,256], index: 5, kind: input, shape index: {}]   ;;  %s13595_s6 = inlined_call_operand.hbm [shape: f32[1,256], index: 6, kind: input, shape index: {}]   ;;  %s13596_s7 = inlined_call_operand.hbm [shape: bf16[1024,256], index: 7, kind: input, shape index: {}]   ;;  %s13597_s8 = inlined_call_operand.hbm [shape: f32[1,256], index: 8, kind: input, shape index: {}]   ;;  %s13598_s9 = inlined_call_operand.hbm [shape: bf16[256,128], index: 9, kind: input, shape index: {}]   ;;  %s13599_s10 = inlined_call_operand.hbm [shape: f32[1,128], index: 10, kind: input, shape index: {}]   ;;  %s13600_s11 = inlined_call_operand.hbm [shape: f32[16,256], index: 11, kind: input, shape index: {}]   ;;  %s13601_s12 = inlined_call_operand.hbm [shape: f32[16,256], index: 12, kind: output, shape index: {0}]   ;;  %s13602_s13 = inlined_call_operand.hbm [shape: f32[16,256], index: 13, kind: output, shape index: {1}]   ;;  %s13603_s14 = inlined_call_operand.hbm [shape: f32[16,128], index: 14, kind: output, shape index: {2}]  }
   0x1   :  { %13615 = sst [smem:[#allocation36_spill]] %s13589_s0 }
   0x2   :  { %13616 = sst [smem:[#allocation37_spill]] %s13590_s1 }
   0x3   :  { %13617 = sst [smem:[#allocation38_spill]] %s13591_s2 }
   0x4   :  { %13618 = sst [smem:[#allocation39_spill]] %s13592_s3 }
   0x5   :  { %13619 = sst [smem:[#allocation40_spill]] %s13593_s4 }
   0x6   :  { %13620 = sst [smem:[#allocation41_spill]] %s13594_s5 }
   0x7   :  { %13621 = sst [smem:[#allocation42_spill]] %s13595_s6 }
   0x8   :  { %13622 = sst [smem:[#allocation43_spill]] %s13600_s11 }
   0x9   :  { %13623 = sst [smem:[#allocation44_spill]] %s13601_s12 }
   0xa   :  { %13624 = sst [smem:[#allocation45_spill]] %s13602_s13 }
   0xb   :  { %13625 = sst [smem:[#allocation46_spill]] %s13603_s14 }
   0xc   :  { %20 = vsyncpa [#allocation3], 0 }
   0xd   :  { %22 = vsyncpa [#allocation3 + $0x1], 0 }
   0xe   :  { %23 = vsyncpa [#allocation6], 0 }
   0xf   :  { %24 = vsyncpa [#allocation9], 0 }
  0x10   :  { %25 = vsyncpa [#allocation12], 0 }
  0x11   :  { %26 = vsyncpa [#allocation15], 0 }
  0x12   :  { %27 = vsyncpa [#allocation18], 0 }
  0x13   :  { %28 = vsyncpa [#allocation21], 0 }
  0x14   :  { %30 = vsyncpa [#allocation21 + $0x1], 0 }
  0x15   :  { %31 = vsyncpa [#allocation4], 0 }
  0x16   :  { %33 = vsyncpa [#allocation4 + $0x1], 0 }
  0x17   :  { %34 = vsyncpa [#allocation24], 0 }
  0x18   :  { %36 = vsyncpa [#allocation24 + $0x1], 0  ;;  %s12892_s29 = smov 0   ;;  %s12894_s30 = smov 0  }
  0x19   :  { %s12896_s15 = smov 0   ;;  %s12898_s16 = smov 0  }
  0x1a LB: > { %s12795_s17 = smov [#allocation5]   ;;  %s12913_s19 = sadd.s32 4294967295, %s12793_s16   ;;  %s12793_s16 = sphi %s12898_s16, %s13666_s16   ;;  %s12789_s15 = sphi %s12896_s15, %s13665_s15   ;;  %s12785_s30 = sphi %s12894_s30, %s13664_s30   ;;  %s12781_s29 = sphi %s12892_s29, %s13663_s29  }
  0x1b   : > { %s399_s18 = sshll.u32 %s12795_s17, 4  ;;  %p10294_p0 = scmp.ge.s32.totalorder %s12793_s16, 1  ;;  %s12918_s18 = int_to_ptr.vmem [resolvable:$true] %s399_s18 }
  0x1c   : > { %p13610_p1 = scmp.eq.s32.totalorder %s12913_s19, 0  ;;  %p387_p2 = scmp.lt.s32.totalorder %s12793_s16, 3 }
  0x1d   : > { %s12796_s21 = smov [#allocation8]   ;;  %s12797_s24 = smov [#allocation11]  }
  0x1e   : > { %p12920_p3 = pnand %p10294_p0, %p387_p2  ;;  %s423_s22 = sshll.u32 %s12796_s21, 4  ;;  %s12933_s22 = int_to_ptr.vmem [resolvable:$true] %s423_s22 }
  0x1f   : > { %s447_s25 = sshll.u32 %s12797_s24, 4  ;;  %s13629_s1 = sld [smem:[#allocation37_spill]]  ;;  %s12935_s25 = int_to_ptr.vmem [resolvable:$true] %s447_s25 }
  0x20   : > { %s13626_s20 = scalar_select %p12920_p3, 1, 0 }
  0x21   : > { %p11774_p5 = pneg %p12920_p3 }
  0x22   : > { %13627 = sst [smem:[#allocation35_spill]] %s13626_s20 }
  0x23   : > { %p12929_p6 = pnand %p11774_p5, %p13610_p1 }
  0x25   : > { %s12303_s28 = scalar_lea.hbm %s13629_s1, 57344  ;;  %p12945_p8 = pneg %p12929_p6 }
  0x26   : > { %p12304_p7 = scmp.ne.s32.totalorder %s13629_s1, %s12303_s28  ;;  %p12310_p11 = scmp.lt.u32.totalorder %s12303_s28, %s13629_s1 }
  0x28   : > { %p12306_p9 = pnand %p12945_p8, %p12304_p7 }
  0x2a   : > { %p12307_p10 = pneg %p12306_p9 }
  0x2c   : > { %p12312_p12 = pnand %p12310_p11, %p12307_p10 }
  0x2e   : > { %12315 = shalt.err (!%p12312_p12)
}
  0x2f   : > { %s12316_s14 = scalar_lea.vmem %s12918_s18, 57344  ;;  %p12324_p5 = scmp.lt.s32.totalorder %s12918_s18, %s12918_s18 }
  0x30   : > { %p12317_p13 = scmp.ne.s32.totalorder %s12918_s18, %s12316_s14  ;;  %p12325_p4 = scmp.lt.s32.totalorder %s12316_s14, %s12316_s14 }
  0x32   : > { %p12319_p0 = pnand %p12317_p13, %p12945_p8  ;;  %p12326_p7 = por %p12325_p4, %p12324_p5 }
  0x34   : > { %p12320_p2 = pneg %p12319_p0 }
  0x36   : > { %p12327_p9 = pnand %p12326_p7, %p12320_p2 }
  0x38   : > { %12330 = shalt.err (!%p12327_p9)
}
  0x39   : > { %s12798_s26 = smov 512   ;;  %s12799_s12 = smov 32  }
  0x3a   : > { %11777 = dma.hbm_to_vmem [thread:$0]  (!%p12929_p6), %s13629_s1, 57344, %s12918_s18, [#allocation6], %s12798_s26, %s12798_s26, %s12799_s12  }
  0x3b   : > { %s13631_s3 = sld [smem:[#allocation39_spill]] }
  0x41   : > { %s12331_s13 = scalar_lea.hbm %s13631_s3, 65536 }
  0x42   : > { %p12332_p4 = scmp.ne.s32.totalorder %s13631_s3, %s12331_s13  ;;  %p12338_p12 = scmp.lt.u32.totalorder %s12331_s13, %s13631_s3 }
  0x44   : > { %p12334_p10 = pnand %p12332_p4, %p12945_p8 }
  0x46   : > { %p12335_p11 = pneg %p12334_p10 }
  0x48   : > { %p12340_p13 = pnand %p12338_p12, %p12335_p11 }
  0x4a   : > { %12343 = shalt.err (!%p12340_p13)
}
  0x4b   : > { %s12344_s18 = scalar_lea.vmem %s12933_s22, 65536  ;;  %p12352_p7 = scmp.lt.s32.totalorder %s12933_s22, %s12933_s22 }
  0x4c   : > { %p12345_p0 = scmp.ne.s32.totalorder %s12933_s22, %s12344_s18  ;;  %p12353_p9 = scmp.lt.s32.totalorder %s12344_s18, %s12344_s18 }
  0x4e   : > { %p12347_p2 = pnand %p12345_p0, %p12945_p8  ;;  %p12354_p4 = por %p12353_p9, %p12352_p7 }
  0x50   : > { %p12348_p5 = pneg %p12347_p2 }
  0x52   : > { %p12355_p10 = pnand %p12354_p4, %p12348_p5 }
  0x54   : > { %12358 = shalt.err (!%p12355_p10)
}
  0x55   : > { %11783 = dma.hbm_to_vmem [thread:$0]  (!%p12929_p6), %s13631_s3, 65536, %s12933_s22, [#allocation9], %s12798_s26, %s12798_s26, %s12799_s12  }
  0x56   : > { %s13632_s5 = sld [smem:[#allocation41_spill]] }
  0x5c   : > { %s12359_s27 = scalar_lea.hbm %s13632_s5, 16384 }
  0x5d   : > { %p12360_p11 = scmp.ne.s32.totalorder %s13632_s5, %s12359_s27  ;;  %p12366_p0 = scmp.lt.u32.totalorder %s12359_s27, %s13632_s5 }
  0x5f   : > { %p12362_p12 = pnand %p12360_p11, %p12945_p8 }
  0x61   : > { %p12363_p13 = pneg %p12362_p12 }
  0x63   : > { %p12368_p2 = pnand %p12366_p0, %p12363_p13 }
  0x65   : > { %12371 = shalt.err (!%p12368_p2)
}
  0x66   : > { %s12372_s22 = scalar_lea.vmem %s12935_s25, 16384  ;;  %p12380_p4 = scmp.lt.s32.totalorder %s12935_s25, %s12935_s25 }
  0x67   : > { %p12373_p5 = scmp.ne.s32.totalorder %s12935_s25, %s12372_s22  ;;  %p12381_p10 = scmp.lt.s32.totalorder %s12372_s22, %s12372_s22 }
  0x69   : > { %p12375_p7 = pnand %p12373_p5, %p12945_p8  ;;  %p12382_p11 = por %p12381_p10, %p12380_p4 }
  0x6b   : > { %p12376_p9 = pneg %p12375_p7 }
  0x6d   : > { %p12383_p12 = pnand %p12382_p11, %p12376_p9 }
  0x6f   : > { %12386 = shalt.err (!%p12383_p12)
}
  0x70   : > { %s12800_s26 = smov 128   ;;  %s12801_s12 = smov 8  }
  0x71   : > { %11789 = dma.hbm_to_vmem [thread:$0]  (!%p12929_p6), %s13632_s5, 16384, %s12935_s25, [#allocation12], %s12800_s26, %s12800_s26, %s12801_s12  }
  0x72   : > { %s12802_s11 = smov [#allocation14]   ;;  %s12803_s20 = smov [#allocation17]  }
  0x73   : > { %s471_s13 = sshll.u32 %s12802_s11, 4  ;;  %s495_s27 = sshll.u32 %s12803_s20, 4  ;;  %s472_s13 = int_to_ptr.vmem [resolvable:$true] %s471_s13  ;;  %s496_s27 = int_to_ptr.vmem [resolvable:$true] %s495_s27 }
  0x74   : > { %s12387_s24 = scalar_lea.hbm %s13596_s7, 16384 }
  0x75   : > { %p12388_p13 = scmp.ne.s32.totalorder %s13596_s7, %s12387_s24  ;;  %p12394_p5 = scmp.lt.u32.totalorder %s12387_s24, %s13596_s7 }
  0x77   : > { %p12390_p0 = pnand %p12388_p13, %p12945_p8 }
  0x79   : > { %p12391_p2 = pneg %p12390_p0 }
  0x7b   : > { %p12396_p7 = pnand %p12394_p5, %p12391_p2 }
  0x7d   : > { %12399 = shalt.err (!%p12396_p7)
}
  0x7e   : > { %s12400_s25 = scalar_lea.vmem %s472_s13, 16384  ;;  %p12408_p11 = scmp.lt.s32.totalorder %s472_s13, %s472_s13 }
  0x7f   : > { %p12401_p9 = scmp.ne.s32.totalorder %s472_s13, %s12400_s25  ;;  %p12409_p12 = scmp.lt.s32.totalorder %s12400_s25, %s12400_s25 }
  0x81   : > { %p12403_p4 = pnand %p12401_p9, %p12945_p8  ;;  %p12410_p1 = por %p12409_p12, %p12408_p11 }
  0x83   : > { %p12404_p10 = pneg %p12403_p4 }
  0x85   : > { %p12411_p3 = pnand %p12410_p1, %p12404_p10 }
  0x87   : > { %12414 = shalt.err (!%p12411_p3)
}
  0x88   : > { %11795 = dma.hbm_to_vmem [thread:$0]  (!%p12929_p6), %s13596_s7, 16384, %s472_s13, [#allocation15], %s12800_s26, %s12800_s26, %s12801_s12  }
  0x89   : > { %s12415_s11 = scalar_lea.hbm %s13598_s9, 2048 }
  0x8a   : > { %p12416_p13 = scmp.ne.s32.totalorder %s13598_s9, %s12415_s11  ;;  %p12422_p3 = scmp.lt.u32.totalorder %s12415_s11, %s13598_s9 }
  0x8c   : > { %p12418_p0 = pnand %p12416_p13, %p12945_p8 }
  0x8e   : > { %p12419_p1 = pneg %p12418_p0 }
  0x90   : > { %p12424_p2 = pnand %p12422_p3, %p12419_p1 }
  0x92   : > { %12427 = shalt.err (!%p12424_p2)
}
  0x93   : > { %s12428_s14 = scalar_lea.vmem %s496_s27, 2048  ;;  %p12436_p4 = scmp.lt.s32.totalorder %s496_s27, %s496_s27 }
  0x94   : > { %p12429_p5 = scmp.ne.s32.totalorder %s496_s27, %s12428_s14  ;;  %p12437_p10 = scmp.lt.s32.totalorder %s12428_s14, %s12428_s14 }
  0x96   : > { %p12431_p7 = pnand %p12429_p5, %p12945_p8  ;;  %p12438_p11 = por %p12437_p10, %p12436_p4 }
  0x98   : > { %p12432_p9 = pneg %p12431_p7 }
  0x9a   : > { %p12439_p12 = pnand %p12438_p11, %p12432_p9 }
  0x9c   : > { %12442 = shalt.err (!%p12439_p12)
}
  0x9d   : > { %s12804_s26 = smov 64   ;;  %s12805_s12 = smov 4  }
  0x9e   : > { %11801 = dma.hbm_to_vmem [thread:$0]  (!%p12929_p6), %s13598_s9, 2048, %s496_s27, [#allocation18], %s12804_s26, %s12804_s26, %s12805_s12  }
  0x9f   : > { %s12806_s25 = smov [#allocation7]   ;;  %s12807_s0 = smov [#allocation10]  }
  0xa0   : > { %s413_s18 = sshll.u32 %s12806_s25, 4  ;;  %s437_s1 = sshll.u32 %s12807_s0, 4  ;;  %s414_s18 = int_to_ptr.vmem [resolvable:$true] %s413_s18  ;;  %s438_s1 = int_to_ptr.vmem [resolvable:$true] %s437_s1 }
  0xa1   : > { %s13633_s2 = sld [smem:[#allocation38_spill]] }
  0xa7   : > { %s12443_s20 = scalar_lea.hbm %s13633_s2, 128 }
  0xa8   : > { %p12444_p13 = scmp.ne.s32.totalorder %s13633_s2, %s12443_s20  ;;  %p12450_p3 = scmp.lt.u32.totalorder %s12443_s20, %s13633_s2 }
  0xaa   : > { %p12446_p0 = pnand %p12444_p13, %p12945_p8 }
  0xac   : > { %p12447_p1 = pneg %p12446_p0 }
  0xae   : > { %p12452_p2 = pnand %p12450_p3, %p12447_p1 }
  0xb0   : > { %12455 = shalt.err (!%p12452_p2)
}
  0xb1   : > { %s12456_s27 = scalar_lea.vmem %s414_s18, 128  ;;  %p12464_p4 = scmp.lt.s32.totalorder %s414_s18, %s414_s18 }
  0xb2   : > { %p12457_p5 = scmp.ne.s32.totalorder %s414_s18, %s12456_s27  ;;  %p12465_p10 = scmp.lt.s32.totalorder %s12456_s27, %s12456_s27 }
  0xb4   : > { %p12459_p7 = pnand %p12457_p5, %p12945_p8  ;;  %p12466_p11 = por %p12465_p10, %p12464_p4 }
  0xb6   : > { %p12460_p9 = pneg %p12459_p7 }
  0xb8   : > { %p12467_p12 = pnand %p12466_p11, %p12460_p9 }
  0xba   : > { %12470 = shalt.err (!%p12467_p12)
}
  0xbb   : > { %11780 = dma.hbm_to_vmem [thread:$0]  (!%p12929_p6), %s13633_s2, 128, %s414_s18, [#allocation6]  }
  0xbc   : > { %s13634_s4 = sld [smem:[#allocation40_spill]] }
  0xc2   : > { %s12471_s25 = scalar_lea.hbm %s13634_s4, 128 }
  0xc3   : > { %p12472_p13 = scmp.ne.s32.totalorder %s13634_s4, %s12471_s25  ;;  %p12478_p3 = scmp.lt.u32.totalorder %s12471_s25, %s13634_s4 }
  0xc5   : > { %p12474_p0 = pnand %p12472_p13, %p12945_p8 }
  0xc7   : > { %p12475_p1 = pneg %p12474_p0 }
  0xc9   : > { %p12480_p2 = pnand %p12478_p3, %p12475_p1 }
  0xcb   : > { %12483 = shalt.err (!%p12480_p2)
}
  0xcc   : > { %s12484_s28 = scalar_lea.vmem %s438_s1, 128  ;;  %p12492_p4 = scmp.lt.s32.totalorder %s438_s1, %s438_s1 }
  0xcd   : > { %p12485_p5 = scmp.ne.s32.totalorder %s438_s1, %s12484_s28  ;;  %p12493_p10 = scmp.lt.s32.totalorder %s12484_s28, %s12484_s28 }
  0xcf   : > { %p12487_p7 = pnand %p12485_p5, %p12945_p8  ;;  %p12494_p11 = por %p12493_p10, %p12492_p4 }
  0xd1   : > { %p12488_p9 = pneg %p12487_p7 }
  0xd3   : > { %p12495_p12 = pnand %p12494_p11, %p12488_p9 }
  0xd5   : > { %12498 = shalt.err (!%p12495_p12)
}
  0xd6   : > { %11786 = dma.hbm_to_vmem [thread:$0]  (!%p12929_p6), %s13634_s4, 128, %s438_s1, [#allocation9]  }
  0xd7   : > { %s12808_s24 = smov [#allocation13]   ;;  %s12809_s27 = smov [#allocation16]  }
  0xd8   : > { %s461_s14 = sshll.u32 %s12808_s24, 4  ;;  %s485_s26 = sshll.u32 %s12809_s27, 4  ;;  %s462_s14 = int_to_ptr.vmem [resolvable:$true] %s461_s14  ;;  %s486_s26 = int_to_ptr.vmem [resolvable:$true] %s485_s26 }
  0xd9   : > { %s13635_s6 = sld [smem:[#allocation42_spill]] }
  0xdf   : > { %s12499_s22 = scalar_lea.hbm %s13635_s6, 32 }
  0xe0   : > { %p12500_p13 = scmp.ne.s32.totalorder %s13635_s6, %s12499_s22  ;;  %p12506_p3 = scmp.lt.u32.totalorder %s12499_s22, %s13635_s6 }
  0xe2   : > { %p12502_p0 = pnand %p12500_p13, %p12945_p8 }
  0xe4   : > { %p12503_p1 = pneg %p12502_p0 }
  0xe6   : > { %p12508_p2 = pnand %p12506_p3, %p12503_p1 }
  0xe8   : > { %12511 = shalt.err (!%p12508_p2)
}
  0xe9   : > { %s12512_s1 = scalar_lea.vmem %s462_s14, 32  ;;  %p12520_p4 = scmp.lt.s32.totalorder %s462_s14, %s462_s14 }
  0xea   : > { %p12513_p5 = scmp.ne.s32.totalorder %s462_s14, %s12512_s1  ;;  %p12521_p10 = scmp.lt.s32.totalorder %s12512_s1, %s12512_s1 }
  0xec   : > { %p12515_p7 = pnand %p12513_p5, %p12945_p8  ;;  %p12522_p11 = por %p12521_p10, %p12520_p4 }
  0xee   : > { %p12516_p9 = pneg %p12515_p7 }
  0xf0   : > { %p12523_p12 = pnand %p12522_p11, %p12516_p9 }
  0xf2   : > { %12526 = shalt.err (!%p12523_p12)
}
  0xf3   : > { %11792 = dma.hbm_to_vmem [thread:$0]  (!%p12929_p6), %s13635_s6, 32, %s462_s14, [#allocation12]  }
  0xf4   : > { %s12527_s24 = scalar_lea.hbm %s13597_s8, 32 }
  0xf5   : > { %p12528_p13 = scmp.ne.s32.totalorder %s13597_s8, %s12527_s24  ;;  %p12534_p3 = scmp.lt.u32.totalorder %s12527_s24, %s13597_s8 }
  0xf7   : > { %p12530_p0 = pnand %p12528_p13, %p12945_p8 }
  0xf9   : > { %p12531_p1 = pneg %p12530_p0 }
  0xfb   : > { %p12536_p2 = pnand %p12534_p3, %p12531_p1 }
  0xfd   : > { %12539 = shalt.err (!%p12536_p2)
}
  0xfe   : > { %s12540_s25 = scalar_lea.vmem %s486_s26, 32  ;;  %p12548_p4 = scmp.lt.s32.totalorder %s486_s26, %s486_s26 }
  0xff   : > { %p12541_p5 = scmp.ne.s32.totalorder %s486_s26, %s12540_s25  ;;  %p12549_p10 = scmp.lt.s32.totalorder %s12540_s25, %s12540_s25 }
 0x101   : > { %p12543_p7 = pnand %p12541_p5, %p12945_p8  ;;  %p12550_p11 = por %p12549_p10, %p12548_p4 }
 0x103   : > { %p12544_p9 = pneg %p12543_p7 }
 0x105   : > { %p12551_p12 = pnand %p12550_p11, %p12544_p9 }
 0x107   : > { %12554 = shalt.err (!%p12551_p12)
}
 0x108   : > { %11798 = dma.hbm_to_vmem [thread:$0]  (!%p12929_p6), %s13597_s8, 32, %s486_s26, [#allocation15]  }
 0x109   : > { %s12810_s3 = smov [#allocation19]   ;;  %s12555_s28 = scalar_lea.hbm %s13599_s10, 16 }
 0x10a   : > { %s509_s11 = sshll.u32 %s12810_s3, 4  ;;  %p12556_p13 = scmp.ne.s32.totalorder %s13599_s10, %s12555_s28  ;;  %s510_s11 = int_to_ptr.vmem [resolvable:$true] %s509_s11 }
 0x10b   : > { %p12562_p3 = scmp.lt.u32.totalorder %s12555_s28, %s13599_s10 }
 0x10c   : > { %p12558_p0 = pnand %p12556_p13, %p12945_p8 }
 0x10e   : > { %p12559_p1 = pneg %p12558_p0 }
 0x110   : > { %p12564_p2 = pnand %p12562_p3, %p12559_p1 }
 0x112   : > { %12567 = shalt.err (!%p12564_p2)
}
 0x113   : > { %s12568_s26 = scalar_lea.vmem %s510_s11, 16  ;;  %s12575_s12 = scalar_lea.vmem %s510_s11, 32 }
 0x114   : > { %p12569_p5 = scmp.ne.s32.totalorder %s510_s11, %s12568_s26  ;;  %p12576_p4 = scmp.lt.s32.totalorder %s510_s11, %s510_s11 }
 0x115   : > { %p12577_p10 = scmp.lt.s32.totalorder %s12575_s12, %s12568_s26 }
 0x116   : > { %p12571_p7 = pnand %p12569_p5, %p12945_p8 }
 0x117   : > { %p12578_p11 = por %p12577_p10, %p12576_p4 }
 0x118   : > { %p12572_p9 = pneg %p12571_p7 }
 0x11a   : > { %p12579_p12 = pnand %p12578_p11, %p12572_p9 }
 0x11c   : > { %12582 = shalt.err (!%p12579_p12)
}
 0x11d   : > { %11804 = dma.hbm_to_vmem [thread:$0]  (!%p12929_p6), %s13599_s10, 16, %s510_s11, [#allocation18]  }
 0x11e   : > { %s13612_s23 = sadd.s32 4294967294, %s12793_s16   ;;  %s13140_s21 = sadd.s32 1, %s12793_s16  }
 0x11f   : > { %s46_s25 = ssub.s32 %s12793_s16, %s13140_s21  ;;  %s49_s14 = sadd.s32 1, %s12789_s15 }
 0x120   : > { %p47_p8 = scmp.eq.s32.totalorder %s46_s25, 0  ;;  %p56_p13 = scmp.ne.s32.totalorder %s12789_s15, %s12785_s30 }
 0x121   : > { %p57_p0 = scmp.eq.s32.totalorder %s12793_s16, 0  ;;  %p62_p1 = scmp.ne.s32.totalorder %s12785_s30, %s12781_s29 }
 0x122   : > { %s13151_s0 = scalar_select %p47_p8, %s12789_s15, %s49_s14  }
 0x123   : > { %p58_p3 = por %p57_p0, %p56_p13  ;;  %p13636_p2 = scmp.eq.s32.totalorder %s12913_s19, 0 }
 0x124   : > { %p322_p6 = scmp.eq.s32.totalorder %s12913_s19, 1  ;;  %p328_p7 = scmp.eq.s32.totalorder %s13612_s23, 1 }
 0x125   : > { %p13155_p5 = por %p13636_p2, %p62_p1  ;;  %p11832_p9 = scmp.lt.s32.totalorder %s12793_s16, 2 }
 0x126   : > { %s13164_s11 = sand.u32 1, %s12789_s15   ;;  %p13166_p4 = por %p322_p6, %p56_p13 }
 0x127   : > { %s13637_s3 = scalar_select %p13155_p5, 1, 0 }
 0x128   : > { %s13638_s1 = scalar_select %p13166_p4, 1, 0 }
 0x129   : > { %p13170_p10 = por %p328_p7, %p62_p1  ;;  %s11721_s28 = smul.u32 56, %s13164_s11 }
 0x12a   : > { %s11722_s18 = smul.u32 896, %s12793_s16  ;;  %p13176_p11 = pnand %p11832_p9, %p58_p3 }
 0x12b   : > { %s13639_s20 = scalar_select %p13170_p10, 1, 0 }
 0x12c   : > { %s13641_s26 = sld [smem:[#allocation36_spill]]  ;;  %s524_s13 = scalar_lea.vmem [#allocation2], %s11721_s28 }
 0x12d   : > { %s532_s22 = sshll.u32 %s524_s13, 4  ;;  %s521_s25 = scalar_lea.sflag [#allocation3], %s13164_s11  ;;  %s13185_s22 = int_to_ptr.vmem [resolvable:$true] %s532_s22 }
 0x12e   : > { %p12585_p8 = pneg %p13176_p11 }
 0x132   : > { %s13183_s12 = scalar_lea.hbm %s13641_s26, %s11722_s18  ;;  %s12588_s27 = scalar_lea.hbm %s13641_s26, 1792 }
 0x133   : > { %s12583_s14 = scalar_lea.hbm %s13183_s12, 896  ;;  %p12589_p1 = scmp.lt.u32.totalorder %s13183_s12, %s13641_s26 }
 0x134   : > { %p12584_p12 = scmp.ne.s32.totalorder %s13183_s12, %s12583_s14  ;;  %p12590_p3 = scmp.lt.u32.totalorder %s12588_s27, %s12583_s14 }
 0x135   : > { %p12592_p6 = scmp.lt.u32.totalorder %s12583_s14, %s13183_s12 }
 0x136   : > { %p12586_p13 = pnand %p12585_p8, %p12584_p12  ;;  %p12591_p2 = por %p12590_p3, %p12589_p1 }
 0x138   : > { %p12587_p0 = pneg %p12586_p13  ;;  %p12593_p7 = por %p12592_p6, %p12591_p2 }
 0x13a   : > { %p12594_p9 = pnand %p12593_p7, %p12587_p0 }
 0x13c   : > { %12597 = shalt.err (!%p12594_p9)
}
 0x13d   : > { %s12598_s28 = scalar_lea.vmem %s13185_s22, 896  ;;  %s12811_s13 = smov [#allocation2]  }
 0x13e   : > { %p12599_p12 = scmp.ne.s32.totalorder %s13185_s22, %s12598_s28  ;;  %s12603_s24 = sshll.u32 %s12811_s13, 4  ;;  %s12604_s24 = int_to_ptr.vmem [resolvable:$false] %s12603_s24 }
 0x13f   : > { %s12605_s2 = scalar_lea.vmem %s12604_s24, 1792  ;;  %p12606_p4 = scmp.lt.s32.totalorder %s13185_s22, %s12604_s24 }
 0x140   : > { %p12601_p13 = pnand %p12599_p12, %p12585_p8  ;;  %p12607_p1 = scmp.lt.s32.totalorder %s12605_s2, %s12598_s28 }
 0x142   : > { %p12602_p10 = pneg %p12601_p13  ;;  %p12608_p3 = por %p12607_p1, %p12606_p4 }
 0x144   : > { %p12609_p2 = pnand %p12608_p3, %p12602_p10 }
 0x146   : > { %12612 = shalt.err (!%p12609_p2)
}
 0x147   : > { %11808 = dma.hbm_to_vmem [thread:$0]  (!%p13176_p11), %s13183_s12, 896, %s13185_s22, %s521_s25  }
 0x148   : > { %s10307_s23 = sshll.u32 %s13164_s11, 4  ;;  %s11570_s14 = sshll.u32 %s12793_s16, 8 }
 0x149   : > { %s13642_s13 = sld [smem:[#allocation43_spill]]  ;;  %s543_s28 = scalar_lea.vmem [#allocation20], %s10307_s23 }
 0x14a   : > { %s551_s24 = sshll.u32 %s543_s28, 4  ;;  %s540_s2 = scalar_lea.sflag [#allocation21], %s13164_s11  ;;  %s552_s24 = int_to_ptr.vmem [resolvable:$true] %s551_s24 }
 0x14f   : > { %s13218_s4 = scalar_lea.hbm %s13642_s13, %s11570_s14  ;;  %s12618_s25 = scalar_lea.hbm %s13642_s13, 512 }
 0x150   : > { %s12613_s5 = scalar_lea.hbm %s13218_s4, 256  ;;  %p12619_p6 = scmp.lt.u32.totalorder %s13218_s4, %s13642_s13 }
 0x151   : > { %p12614_p4 = scmp.ne.s32.totalorder %s13218_s4, %s12613_s5  ;;  %p12620_p7 = scmp.lt.u32.totalorder %s12618_s25, %s12613_s5 }
 0x152   : > { %p12622_p12 = scmp.lt.u32.totalorder %s12613_s5, %s13218_s4 }
 0x153   : > { %p12616_p10 = pnand %p12614_p4, %p12585_p8  ;;  %p12621_p9 = por %p12620_p7, %p12619_p6 }
 0x155   : > { %p12617_p0 = pneg %p12616_p10  ;;  %p12623_p13 = por %p12622_p12, %p12621_p9 }
 0x157   : > { %p12624_p1 = pnand %p12623_p13, %p12617_p0 }
 0x159   : > { %12627 = shalt.err (!%p12624_p1)
}
 0x15a   : > { %s12628_s11 = scalar_lea.vmem %s552_s24, 256  ;;  %s12812_s23 = smov [#allocation20]  }
 0x15b   : > { %p12629_p3 = scmp.ne.s32.totalorder %s552_s24, %s12628_s11  ;;  %s12633_s27 = sshll.u32 %s12812_s23, 4  ;;  %s12634_s27 = int_to_ptr.vmem [resolvable:$false] %s12633_s27 }
 0x15c   : > { %s12635_s28 = scalar_lea.vmem %s12634_s27, 512  ;;  %p12636_p10 = scmp.lt.s32.totalorder %s552_s24, %s12634_s27 }
 0x15d   : > { %p12631_p2 = pnand %p12629_p3, %p12585_p8  ;;  %p12637_p5 = scmp.lt.s32.totalorder %s12635_s28, %s12628_s11 }
 0x15f   : > { %p12632_p4 = pneg %p12631_p2  ;;  %p12638_p6 = por %p12637_p5, %p12636_p10 }
 0x161   : > { %p12639_p7 = pnand %p12638_p6, %p12632_p4 }
 0x163   : > { %12642 = shalt.err (!%p12639_p7)
}
 0x164   : > { %11811 = dma.hbm_to_vmem [thread:$0]  (!%p13176_p11), %s13218_s4, 256, %s552_s24, %s540_s2  }
 0x165   : > { %s13643_s5 = sld [smem:[#allocation35_spill]] }
 0x16b   : > { %p13644_p0 = scmp.ne.s32.totalorder %s13643_s5, 0 }
 0x16c   : > { %s13243_s12 = sand.u32 (!%p13644_p0), 1, %s12785_s30   ;;  %p13645_p5 = scmp.ne.s32.totalorder (!%p13644_p0), %s13637_s3, 0 }
 0x16d   : > { %560 = sbr.rel (%p13644_p0) target bundleno = 2159 (0x86f), region = 68  ;;  %s563_s25 = scalar_lea.sflag (!%p13644_p0), [#allocation3], %s13243_s12 }
 0x16e   : > { %s11723_s22 = smul.u32 (!%p13644_p0), 56, %s13243_s12 }
 0x170   : > { %s13247_s14 = scalar_lea.vmem (!%p13644_p0), [#allocation2], %s11723_s22 }
 0x174   : > { %12744 = dma.done.wait (%p13645_p5), %s563_s25, 896  }
 0x175   : > { %12746 = vsyncadd (%p13645_p5), %s563_s25, 4294966400  ;;  %p13646_p11 = scmp.eq.s32.totalorder %s12913_s19, 0 }
 0x177   : > { %12748 = dma.done.wait (%p13646_p11), [#allocation6], 57472   ;;  %p13647_p8 = pmov %p13646_p11 }
 0x179   : > { %12750 = vsyncadd (%p13647_p8), [#allocation6], 4294909824  ;;  %p13648_p9 = pmov %p13647_p8 }
 0x17a   : > { %p13649_p12 = pmov %p13647_p8 }
 0x17b   : > { %12752 = dma.done.wait (%p13648_p9), [#allocation9], 65664  }
 0x17c   : > { %12754 = vsyncadd (%p13649_p12), [#allocation9], 4294901632  ;;  %p13650_p13 = pmov %p13647_p8 }
 0x17d   : > { %p13651_p1 = pmov %p13647_p8 }
 0x17e   : > { %12756 = dma.done.wait (%p13650_p13), [#allocation12], 16416  }
 0x17f   : > { %12758 = vsyncadd (%p13651_p1), [#allocation12], 4294950880  ;;  %p13652_p3 = pmov %p13651_p1 }
 0x180   : > { %p13653_p2 = pmov %p13651_p1 }
 0x181   : > { %12760 = dma.done.wait (%p13652_p3), [#allocation15], 16416  }
 0x182   : > { %12762 = vsyncadd (%p13653_p2), [#allocation15], 4294950880  ;;  %p13654_p4 = pmov %p13651_p1 }
 0x183   : > { %p13655_p10 = pmov %p13651_p1 }
 0x184   : > { %12764 = dma.done.wait (%p13654_p4), [#allocation18], 2064  }
 0x185   : > { %12766 = vsyncadd (%p13655_p10), [#allocation18], 4294965232  ;;  %s13274_s4 = sshll.u32 %s13243_s12, 4  ;;  %s612_s17 = scalar_lea.sflag [#allocation21], %s13243_s12 }
 0x186   : > { %s615_s24 = scalar_lea.vmem [#allocation20], %s13274_s4 }
 0x187   : > { %12768 = dma.done.wait (%p13645_p5), %s612_s17, 256  }
 0x188   : > { %12770 = vsyncadd (%p13645_p5), %s612_s17, 4294967040  ;;  %v690_v0 = vld [vmem:[#allocation5] sm:$0xff]  ;;  %v691_v2 = vld [vmem:[#allocation5 + $0x8] sm:$0xff]  ;;  %s13478_s3 = scalar_lea.vmem [#allocation22], %s13274_s4  ;;  %s667_s2 = scalar_lea.vmem [#allocation23], %s13274_s4 }
 0x189   : > { %v694_v1 = vld [vmem:[#allocation5 + $0x20] sm:$0xff]  ;;  %v695_v4 = vld [vmem:[#allocation5 + $0x28] sm:$0xff]  ;;  %v677_v53 = vld [vmem:[%s13247_s14 + $0x8] sm:$0xff]  ;;  %s9997_s18 = sand.u32 1, %s12913_s19   ;;  %s11571_s11 = sshll.u32 %s12913_s19, 8 }
 0x18a   : > { %v10326_v3 = vcombine.high %v690_v0, %v694_v1  ;;  %v10325_v5 = vcombine.low %v690_v0, %v694_v1  ;;  %v698_v6 = vld [vmem:[#allocation5 + $0x40] sm:$0xff]  ;;  %v10328_v8 = vcombine.high %v691_v2, %v695_v4  ;;  %v10327_v9 = vcombine.low %v691_v2, %v695_v4  ;;  %v699_v11 = vld [vmem:[#allocation5 + $0x48] sm:$0xff]  ;;  %s13656_s28 = sld [smem:[#allocation45_spill]]  ;;  %s10031_s22 = sshll.u32 %s667_s2, 4  ;;  %s13494_s22 = int_to_ptr.vmem [resolvable:$true] %s10031_s22 }
 0x18b   : > { %v702_v7 = vld [vmem:[#allocation5 + $0x60] sm:$0xff]  ;;  %v703_v12 = vld [vmem:[#allocation5 + $0x68] sm:$0xff]  ;;  %v13283_v57 = vpack.c.bf16 %v677_v53, %v677_v53  ;;  %s13657_s4 = sld [smem:[#allocation44_spill]]  ;;  %s12643_s6 = scalar_lea.vmem %s13494_s22, 256 }
 0x18c   : > { %v10334_v10 = vcombine.high %v698_v6, %v702_v7  ;;  %v706_v13 = vld [vmem:[#allocation5 + $0x80] sm:$0xff]  ;;  %3420 = vmatprep.subr.bf16.mxu0 %v10326_v3  ;;  %v10336_v14 = vcombine.high %v699_v11, %v703_v12  ;;  %v707_v16 = vld [vmem:[#allocation5 + $0x88] sm:$0xff]  ;;  %3584 = vmatprep.subr.bf16.mxu1 %v10328_v8  ;;  %v10333_v18 = vcombine.low %v698_v6, %v702_v7  ;;  %p12644_p6 = scmp.ne.s32.totalorder %s13494_s22, %s12643_s6  ;;  %p13658_p7 = scmp.ne.s32.totalorder %s13638_s1, 0 }
 0x18d   : > { %v710_v15 = vld [vmem:[#allocation5 + $0xa0] sm:$0xff]  ;;  %v711_v17 = vld [vmem:[#allocation5 + $0xa8] sm:$0xff]  ;;  %3421 = vmatpush1.bf16.msra.mxu0 %v10325_v5  ;;  %3585 = vmatpush1.bf16.msra.mxu1 %v10327_v9  ;;  %v10335_v19 = vcombine.low %v699_v11, %v703_v12  ;;  %s12814_s23 = smov [#allocation23]  }
 0x18e   : > { %3422 = vmatprep.subr.bf16.mxu0 %v10334_v10  ;;  %v10342_v20 = vcombine.high %v706_v13, %v710_v15  ;;  %3586 = vmatprep.subr.bf16.mxu1 %v10336_v14  ;;  %v10344_v21 = vcombine.high %v707_v16, %v711_v17  ;;  %v714_v22 = vld [vmem:[#allocation5 + $0xc0] sm:$0xff]  ;;  %v715_v24 = vld [vmem:[#allocation5 + $0xc8] sm:$0xff]  ;;  %v10341_v26 = vcombine.low %v706_v13, %v710_v15  ;;  %p12645_p0 = pnand %p12644_p6, %p13658_p7  ;;  %s12647_s27 = sshll.u32 %s12814_s23, 4  ;;  %s12648_s27 = int_to_ptr.vmem [resolvable:$false] %s12647_s27 }
 0x18f   : > { %v718_v23 = vld [vmem:[#allocation5 + $0xe0] sm:$0xff]  ;;  %v719_v25 = vld [vmem:[#allocation5 + $0xe8] sm:$0xff]  ;;  %v10343_v27 = vcombine.low %v707_v16, %v711_v17  ;;  %3452 = vmatprep.mubr.bf16.mxu0 %v13283_v57  ;;  %3616 = vmatprep.mubr.bf16.mxu1 %v13283_v57  ;;  %p12650_p11 = scmp.lt.s32.totalorder %s13494_s22, %s12648_s27 }
 0x190   : > { %v10350_v28 = vcombine.high %v714_v22, %v718_v23  ;;  %v10352_v29 = vcombine.high %v715_v24, %v719_v25  ;;  %v722_v30 = vld [vmem:[#allocation5 + $0x100] sm:$0xff]  ;;  %v723_v32 = vld [vmem:[#allocation5 + $0x108] sm:$0xff]  ;;  %v10349_v34 = vcombine.low %v714_v22, %v718_v23  ;;  %v10351_v35 = vcombine.low %v715_v24, %v719_v25  ;;  %s13492_s5 = scalar_lea.hbm %s13656_s28, %s11571_s11  ;;  %p12646_p5 = pneg %p12645_p0 }
 0x191   : > { %3423 = vmatpush1.bf16.msra.mxu0 %v10333_v18  ;;  %3587 = vmatpush1.bf16.msra.mxu1 %v10335_v19  ;;  %v726_v31 = vld [vmem:[#allocation5 + $0x120] sm:$0xff]  ;;  %v727_v33 = vld [vmem:[#allocation5 + $0x128] sm:$0xff]  ;;  %s13499_s17 = scalar_lea.hbm %s13657_s4, %s11571_s11 }
 0x192   : > { %3424 = vmatprep.subr.bf16.mxu0 %v10342_v20  ;;  %3588 = vmatprep.subr.bf16.mxu1 %v10344_v21  ;;  %v10358_v36 = vcombine.high %v722_v30, %v726_v31  ;;  %v10360_v37 = vcombine.high %v723_v32, %v727_v33  ;;  %v730_v38 = vld [vmem:[#allocation5 + $0x140] sm:$0xff]  ;;  %v731_v40 = vld [vmem:[#allocation5 + $0x148] sm:$0xff]  ;;  %v10357_v42 = vcombine.low %v722_v30, %v726_v31 }
 0x193   : > { %v734_v39 = vld [vmem:[#allocation5 + $0x160] sm:$0xff]  ;;  %v735_v41 = vld [vmem:[#allocation5 + $0x168] sm:$0xff]  ;;  %v10359_v43 = vcombine.low %v723_v32, %v727_v33 }
 0x194   : > { %v10366_v44 = vcombine.high %v730_v38, %v734_v39  ;;  %v10368_v45 = vcombine.high %v731_v40, %v735_v41  ;;  %v738_v46 = vld [vmem:[#allocation5 + $0x180] sm:$0xff]  ;;  %v739_v48 = vld [vmem:[#allocation5 + $0x188] sm:$0xff]  ;;  %v10365_v50 = vcombine.low %v730_v38, %v734_v39  ;;  %v10367_v51 = vcombine.low %v731_v40, %v735_v41 }
 0x195   : > { %3425 = vmatpush1.bf16.msra.mxu0 %v10341_v26  ;;  %3589 = vmatpush1.bf16.msra.mxu1 %v10343_v27  ;;  %v742_v47 = vld [vmem:[#allocation5 + $0x1a0] sm:$0xff]  ;;  %v743_v49 = vld [vmem:[#allocation5 + $0x1a8] sm:$0xff] }
 0x196   : > { %3426 = vmatprep.subr.bf16.mxu0 %v10350_v28  ;;  %3590 = vmatprep.subr.bf16.mxu1 %v10352_v29  ;;  %v10374_v52 = vcombine.high %v738_v46, %v742_v47  ;;  %v10376_v54 = vcombine.high %v739_v48, %v743_v49  ;;  %v746_v55 = vld [vmem:[#allocation5 + $0x1c0] sm:$0xff]  ;;  %v747_v58 = vld [vmem:[#allocation5 + $0x1c8] sm:$0xff]  ;;  %v10373_v60 = vcombine.low %v738_v46, %v742_v47 }
 0x197   : > { %v750_v56 = vld [vmem:[#allocation5 + $0x1e0] sm:$0xff]  ;;  %v751_v59 = vld [vmem:[#allocation5 + $0x1e8] sm:$0xff]  ;;  %v10375_v61 = vcombine.low %v739_v48, %v743_v49 }
 0x198   : > { %v10382_v62 = vcombine.high %v746_v55, %v750_v56  ;;  %v10384_v63 = vcombine.high %v747_v58, %v751_v59  ;;  %v754_v0 = vld [vmem:[#allocation5 + $0x200] sm:$0xff]  ;;  %v755_v2 = vld [vmem:[#allocation5 + $0x208] sm:$0xff]  ;;  %v10381_v4 = vcombine.low %v746_v55, %v750_v56  ;;  %v10383_v5 = vcombine.low %v747_v58, %v751_v59 }
 0x199   : > { %3427 = vmatpush1.bf16.msra.mxu0 %v10349_v34  ;;  %3591 = vmatpush1.bf16.msra.mxu1 %v10351_v35  ;;  %v758_v1 = vld [vmem:[#allocation5 + $0x220] sm:$0xff]  ;;  %v759_v3 = vld [vmem:[#allocation5 + $0x228] sm:$0xff] }
 0x19a   : > { %3428 = vmatprep.subr.bf16.mxu0 %v10358_v36  ;;  %3592 = vmatprep.subr.bf16.mxu1 %v10360_v37  ;;  %v10390_v6 = vcombine.high %v754_v0, %v758_v1  ;;  %v10392_v7 = vcombine.high %v755_v2, %v759_v3  ;;  %v762_v8 = vld [vmem:[#allocation5 + $0x240] sm:$0xff]  ;;  %v763_v10 = vld [vmem:[#allocation5 + $0x248] sm:$0xff]  ;;  %v10389_v12 = vcombine.low %v754_v0, %v758_v1 }
 0x19b   : > { %v766_v9 = vld [vmem:[#allocation5 + $0x260] sm:$0xff]  ;;  %v767_v11 = vld [vmem:[#allocation5 + $0x268] sm:$0xff]  ;;  %v10391_v13 = vcombine.low %v755_v2, %v759_v3 }
 0x19c   : > { %v10398_v14 = vcombine.high %v762_v8, %v766_v9  ;;  %v10400_v15 = vcombine.high %v763_v10, %v767_v11  ;;  %v770_v16 = vld [vmem:[#allocation5 + $0x280] sm:$0xff]  ;;  %v771_v18 = vld [vmem:[#allocation5 + $0x288] sm:$0xff]  ;;  %v10397_v20 = vcombine.low %v762_v8, %v766_v9  ;;  %v10399_v21 = vcombine.low %v763_v10, %v767_v11 }
 0x19d   : > { %3429 = vmatpush1.bf16.msra.mxu0 %v10357_v42  ;;  %3593 = vmatpush1.bf16.msra.mxu1 %v10359_v43  ;;  %v774_v17 = vld [vmem:[#allocation5 + $0x2a0] sm:$0xff]  ;;  %v775_v19 = vld [vmem:[#allocation5 + $0x2a8] sm:$0xff] }
 0x19e   : > { %3430 = vmatprep.subr.bf16.mxu0 %v10366_v44  ;;  %3594 = vmatprep.subr.bf16.mxu1 %v10368_v45  ;;  %v10406_v22 = vcombine.high %v770_v16, %v774_v17  ;;  %v10408_v23 = vcombine.high %v771_v18, %v775_v19  ;;  %v778_v24 = vld [vmem:[#allocation5 + $0x2c0] sm:$0xff]  ;;  %v779_v26 = vld [vmem:[#allocation5 + $0x2c8] sm:$0xff]  ;;  %v10405_v28 = vcombine.low %v770_v16, %v774_v17 }
 0x19f   : > { %v782_v25 = vld [vmem:[#allocation5 + $0x2e0] sm:$0xff]  ;;  %v783_v27 = vld [vmem:[#allocation5 + $0x2e8] sm:$0xff]  ;;  %v10407_v29 = vcombine.low %v771_v18, %v775_v19 }
 0x1a0   : > { %v10414_v30 = vcombine.high %v778_v24, %v782_v25  ;;  %v10416_v31 = vcombine.high %v779_v26, %v783_v27  ;;  %v786_v32 = vld [vmem:[#allocation5 + $0x300] sm:$0xff]  ;;  %v787_v34 = vld [vmem:[#allocation5 + $0x308] sm:$0xff]  ;;  %v10413_v36 = vcombine.low %v778_v24, %v782_v25  ;;  %v10415_v37 = vcombine.low %v779_v26, %v783_v27 }
 0x1a1   : > { %3431 = vmatpush1.bf16.msra.mxu0 %v10365_v50  ;;  %3595 = vmatpush1.bf16.msra.mxu1 %v10367_v51  ;;  %v790_v33 = vld [vmem:[#allocation5 + $0x320] sm:$0xff]  ;;  %v791_v35 = vld [vmem:[#allocation5 + $0x328] sm:$0xff] }
 0x1a2   : > { %3432 = vmatprep.subr.bf16.mxu0 %v10374_v52  ;;  %3596 = vmatprep.subr.bf16.mxu1 %v10376_v54  ;;  %v10422_v38 = vcombine.high %v786_v32, %v790_v33  ;;  %v10424_v39 = vcombine.high %v787_v34, %v791_v35  ;;  %v794_v40 = vld [vmem:[#allocation5 + $0x340] sm:$0xff]  ;;  %v795_v42 = vld [vmem:[#allocation5 + $0x348] sm:$0xff]  ;;  %v10421_v44 = vcombine.low %v786_v32, %v790_v33 }
 0x1a3   : > { %v798_v41 = vld [vmem:[#allocation5 + $0x360] sm:$0xff]  ;;  %v799_v43 = vld [vmem:[#allocation5 + $0x368] sm:$0xff]  ;;  %v10423_v45 = vcombine.low %v787_v34, %v791_v35 }
 0x1a4   : > { %v10430_v46 = vcombine.high %v794_v40, %v798_v41  ;;  %v10432_v47 = vcombine.high %v795_v42, %v799_v43  ;;  %v802_v48 = vld [vmem:[#allocation5 + $0x380] sm:$0xff]  ;;  %v803_v50 = vld [vmem:[#allocation5 + $0x388] sm:$0xff]  ;;  %v10429_v52 = vcombine.low %v794_v40, %v798_v41  ;;  %v10431_v53 = vcombine.low %v795_v42, %v799_v43 }
 0x1a5   : > { %3433 = vmatpush1.bf16.msra.mxu0 %v10373_v60  ;;  %3597 = vmatpush1.bf16.msra.mxu1 %v10375_v61  ;;  %v806_v49 = vld [vmem:[#allocation5 + $0x3a0] sm:$0xff]  ;;  %v807_v51 = vld [vmem:[#allocation5 + $0x3a8] sm:$0xff] }
 0x1a6   : > { %3434 = vmatprep.subr.bf16.mxu0 %v10382_v62  ;;  %3598 = vmatprep.subr.bf16.mxu1 %v10384_v63  ;;  %v10438_v54 = vcombine.high %v802_v48, %v806_v49  ;;  %v10440_v55 = vcombine.high %v803_v50, %v807_v51  ;;  %v810_v56 = vld [vmem:[#allocation5 + $0x3c0] sm:$0xff]  ;;  %v811_v59 = vld [vmem:[#allocation5 + $0x3c8] sm:$0xff]  ;;  %v10437_v61 = vcombine.low %v802_v48, %v806_v49 }
 0x1a7   : > { %v814_v58 = vld [vmem:[#allocation5 + $0x3e0] sm:$0xff]  ;;  %v815_v60 = vld [vmem:[#allocation5 + $0x3e8] sm:$0xff]  ;;  %v10439_v62 = vcombine.low %v803_v50, %v807_v51 }
 0x1a8   : > { %v10446_v63 = vcombine.high %v810_v56, %v814_v58  ;;  %v10448_v0 = vcombine.high %v811_v59, %v815_v60  ;;  %v818_v1 = vld [vmem:[#allocation5 + $0x400] sm:$0xff]  ;;  %v819_v3 = vld [vmem:[#allocation5 + $0x408] sm:$0xff] }
 0x1a9   : > { %3435 = vmatpush1.bf16.msra.mxu0 %v10381_v4  ;;  %3599 = vmatpush1.bf16.msra.mxu1 %v10383_v5  ;;  %v822_v2 = vld [vmem:[#allocation5 + $0x420] sm:$0xff]  ;;  %v823_v4 = vld [vmem:[#allocation5 + $0x428] sm:$0xff]  ;;  %v10445_v5 = vcombine.low %v810_v56, %v814_v58 }
 0x1aa   : > { %3436 = vmatprep.subr.bf16.mxu0 %v10390_v6  ;;  %3600 = vmatprep.subr.bf16.mxu1 %v10392_v7  ;;  %v676_v6 = vld [vmem:[%s13247_s14] sm:$0xff]  ;;  %v10447_v7 = vcombine.low %v811_v59, %v815_v60  ;;  %v10454_v8 = vcombine.high %v818_v1, %v822_v2  ;;  %v10456_v9 = vcombine.high %v819_v3, %v823_v4  ;;  %v826_v10 = vld [vmem:[#allocation5 + $0x440] sm:$0xff] }
 0x1ab   : > { %v830_v11 = vld [vmem:[#allocation5 + $0x460] sm:$0xff]  ;;  %v10453_v16 = vcombine.low %v818_v1, %v822_v2  ;;  %v10455_v17 = vcombine.low %v819_v3, %v823_v4  ;;  %v839_v24 = vld [vmem:[#allocation5 + $0x4a8] sm:$0xff] }
 0x1ac   : > { %v10462_v18 = vcombine.high %v826_v10, %v830_v11  ;;  %v10461_v25 = vcombine.low %v826_v10, %v830_v11  ;;  %v847_v32 = vld [vmem:[#allocation5 + $0x4e8] sm:$0xff] }
 0x1ad   : > { %3437 = vmatpush1.bf16.msra.mxu0 %v10389_v12  ;;  %3601 = vmatpush1.bf16.msra.mxu1 %v10391_v13  ;;  %v13288_v12 = vpack.c.bf16 %v676_v6, %v676_v6  ;;  %v827_v13 = vld [vmem:[#allocation5 + $0x448] sm:$0xff]  ;;  %v886_v6 = vld [vmem:[#allocation5 + $0x620] sm:$0xff] }
 0x1ae   : > { %3438 = vmatprep.subr.bf16.mxu0 %v10398_v14  ;;  %3602 = vmatprep.subr.bf16.mxu1 %v10400_v15  ;;  %v831_v14 = vld [vmem:[#allocation5 + $0x468] sm:$0xff] }
 0x1af   : > { %v679_v15 = vld [vmem:[%s13247_s14 + $0x18] sm:$0xff]  ;;  %v10464_v19 = vcombine.high %v827_v13, %v831_v14  ;;  %v10463_v26 = vcombine.low %v827_v13, %v831_v14 }
 0x1b0   : > { %v855_v40 = vld [vmem:[#allocation5 + $0x528] sm:$0xff]  ;;  %v890_v14 = vld [vmem:[#allocation5 + $0x640] sm:$0xff] }
 0x1b1   : > { %3439 = vmatpush1.bf16.msra.mxu0 %v10397_v20  ;;  %3603 = vmatpush1.bf16.msra.mxu1 %v10399_v21  ;;  %v834_v20 = vld [vmem:[#allocation5 + $0x480] sm:$0xff]  ;;  %v863_v48 = vld [vmem:[#allocation5 + $0x568] sm:$0xff] }
 0x1b2   : > { %3440 = vmatprep.subr.bf16.mxu0 %v10406_v22  ;;  %3604 = vmatprep.subr.bf16.mxu1 %v10408_v23  ;;  %v838_v21 = vld [vmem:[#allocation5 + $0x4a0] sm:$0xff]  ;;  %v835_v22 = vld [vmem:[#allocation5 + $0x488] sm:$0xff]  ;;  %v13291_v23 = vpack.c.bf16 %v679_v15, %v679_v15 }
 0x1b3   : > { %v10470_v27 = vcombine.high %v834_v20, %v838_v21  ;;  %v10469_v33 = vcombine.low %v834_v20, %v838_v21  ;;  %v10471_v34 = vcombine.low %v835_v22, %v839_v24  ;;  %v871_v56 = vld [vmem:[#allocation5 + $0x5a8] sm:$0xff]  ;;  %v894_v15 = vld [vmem:[#allocation5 + $0x660] sm:$0xff] }
 0x1b4   : > { %v879_v1 = vld [vmem:[#allocation5 + $0x5e8] sm:$0xff]  ;;  %v10526_v21 = vcombine.high %v890_v14, %v894_v15 }
 0x1b5   : > { %3441 = vmatpush1.bf16.msra.mxu0 %v10405_v28  ;;  %3605 = vmatpush1.bf16.msra.mxu1 %v10407_v29  ;;  %v842_v28 = vld [vmem:[#allocation5 + $0x4c0] sm:$0xff] }
 0x1b6   : > { %3442 = vmatprep.subr.bf16.mxu0 %v10414_v30  ;;  %3606 = vmatprep.subr.bf16.mxu1 %v10416_v31  ;;  %v846_v29 = vld [vmem:[#allocation5 + $0x4e0] sm:$0xff]  ;;  %v843_v30 = vld [vmem:[#allocation5 + $0x4c8] sm:$0xff]  ;;  %v10472_v31 = vcombine.high %v835_v22, %v839_v24 }
 0x1b7   : > { %v10478_v35 = vcombine.high %v842_v28, %v846_v29  ;;  %v10477_v41 = vcombine.low %v842_v28, %v846_v29  ;;  %v10479_v42 = vcombine.low %v843_v30, %v847_v32  ;;  %v898_v22 = vld [vmem:[#allocation5 + $0x680] sm:$0xff]  ;;  %v10525_v28 = vcombine.low %v890_v14, %v894_v15 }
 0x1b8   : > { %v902_v24 = vld [vmem:[#allocation5 + $0x6a0] sm:$0xff] }
 0x1b9   : > { %3443 = vmatpush1.bf16.msra.mxu0 %v10413_v36  ;;  %3607 = vmatpush1.bf16.msra.mxu1 %v10415_v37  ;;  %v850_v36 = vld [vmem:[#allocation5 + $0x500] sm:$0xff] }
 0x1ba   : > { %3444 = vmatprep.subr.bf16.mxu0 %v10422_v38  ;;  %3608 = vmatprep.subr.bf16.mxu1 %v10424_v39  ;;  %v854_v37 = vld [vmem:[#allocation5 + $0x520] sm:$0xff]  ;;  %v851_v38 = vld [vmem:[#allocation5 + $0x508] sm:$0xff]  ;;  %v10480_v39 = vcombine.high %v843_v30, %v847_v32  ;;  %v10534_v30 = vcombine.high %v898_v22, %v902_v24 }
 0x1bb   : > { %v10486_v43 = vcombine.high %v850_v36, %v854_v37  ;;  %v10485_v49 = vcombine.low %v850_v36, %v854_v37  ;;  %v10487_v50 = vcombine.low %v851_v38, %v855_v40  ;;  %v910_v32 = vld [vmem:[#allocation5 + $0x6e0] sm:$0xff]  ;;  %v10533_v36 = vcombine.low %v898_v22, %v902_v24  ;;  %v681_v24 = vld [vmem:[%s13247_s14 + $0x28] sm:$0xff] }
 0x1bc   : > { %v678_v14 = vld [vmem:[%s13247_s14 + $0x10] sm:$0xff] }
 0x1bd   : > { %3445 = vmatpush1.bf16.msra.mxu0 %v10421_v44  ;;  %3609 = vmatpush1.bf16.msra.mxu1 %v10423_v45  ;;  %v858_v44 = vld [vmem:[#allocation5 + $0x540] sm:$0xff] }
 0x1be   : > { %3446 = vmatprep.subr.bf16.mxu0 %v10430_v46  ;;  %3610 = vmatprep.subr.bf16.mxu1 %v10432_v47  ;;  %v862_v45 = vld [vmem:[#allocation5 + $0x560] sm:$0xff]  ;;  %v859_v46 = vld [vmem:[#allocation5 + $0x548] sm:$0xff]  ;;  %v10488_v47 = vcombine.high %v851_v38, %v855_v40 }
 0x1bf   : > { %v10494_v51 = vcombine.high %v858_v44, %v862_v45  ;;  %v10493_v58 = vcombine.low %v858_v44, %v862_v45  ;;  %v10495_v59 = vcombine.low %v859_v46, %v863_v48  ;;  %v918_v40 = vld [vmem:[#allocation5 + $0x720] sm:$0xff] }
 0x1c1   : > { %3447 = vmatpush1.bf16.msra.mxu0 %v10429_v52  ;;  %3611 = vmatpush1.bf16.msra.mxu1 %v10431_v53  ;;  %v866_v52 = vld [vmem:[#allocation5 + $0x580] sm:$0xff] }
 0x1c2   : > { %3448 = vmatprep.subr.bf16.mxu0 %v10438_v54  ;;  %3612 = vmatprep.subr.bf16.mxu1 %v10440_v55  ;;  %v870_v53 = vld [vmem:[#allocation5 + $0x5a0] sm:$0xff]  ;;  %v867_v54 = vld [vmem:[#allocation5 + $0x588] sm:$0xff]  ;;  %v10496_v55 = vcombine.high %v859_v46, %v863_v48 }
 0x1c3   : > { %v10502_v60 = vcombine.high %v866_v52, %v870_v53  ;;  %v10501_v2 = vcombine.low %v866_v52, %v870_v53  ;;  %v10503_v3 = vcombine.low %v867_v54, %v871_v56  ;;  %v926_v48 = vld [vmem:[#allocation5 + $0x760] sm:$0xff] }
 0x1c5   : > { %3449 = vmatpush1.bf16.msra.mxu0 %v10437_v61  ;;  %3613 = vmatpush1.bf16.msra.mxu1 %v10439_v62  ;;  %v874_v61 = vld [vmem:[#allocation5 + $0x5c0] sm:$0xff] }
 0x1c6   : > { %3450 = vmatprep.subr.bf16.mxu0 %v10446_v63  ;;  %3614 = vmatprep.subr.bf16.mxu1 %v10448_v0  ;;  %v878_v62 = vld [vmem:[#allocation5 + $0x5e0] sm:$0xff]  ;;  %v875_v63 = vld [vmem:[#allocation5 + $0x5c8] sm:$0xff]  ;;  %v10504_v0 = vcombine.high %v867_v54, %v871_v56 }
 0x1c7   : > { %v10510_v4 = vcombine.high %v874_v61, %v878_v62  ;;  %v10509_v10 = vcombine.low %v874_v61, %v878_v62  ;;  %v10511_v11 = vcombine.low %v875_v63, %v879_v1  ;;  %v934_v56 = vld [vmem:[#allocation5 + $0x7a0] sm:$0xff] }
 0x1c9   : > { %3451 = vmatpush1.bf16.msra.mxu0 %v10445_v5  ;;  %3615 = vmatpush1.bf16.msra.mxu1 %v10447_v7  ;;  %v882_v5 = vld [vmem:[#allocation5 + $0x600] sm:$0xff]  ;;  %v883_v7 = vld [vmem:[#allocation5 + $0x608] sm:$0xff] }
 0x1ca   : > { %3461 = vmatprep.subr.bf16.mxu0 %v10454_v8  ;;  %3625 = vmatprep.subr.bf16.mxu1 %v10456_v9  ;;  %v10512_v8 = vcombine.high %v875_v63, %v879_v1  ;;  %v887_v9 = vld [vmem:[#allocation5 + $0x628] sm:$0xff]  ;;  %v10518_v13 = vcombine.high %v882_v5, %v886_v6  ;;  %v942_v1 = vld [vmem:[#allocation5 + $0x7e0] sm:$0xff] }
 0x1cb   : > { %v10519_v20 = vcombine.low %v883_v7, %v887_v9 }
 0x1cc   : > { %3453 = vmatmul.mubr.bf16.vlgmr.msra.gmra.mrb[0].mxu0 %v13288_v12  ;;  %3617 = vmatmul.mubr.bf16.vlgmr.msra.gmra.mrb[0].mxu1 %v13288_v12 }
 0x1cd   : > { %3462 = vmatpush1.bf16.msra.mxu0 %v10453_v16  ;;  %3626 = vmatpush1.bf16.msra.mxu1 %v10455_v17  ;;  %v891_v16 = vld [vmem:[#allocation5 + $0x648] sm:$0xff]  ;;  %v10520_v17 = vcombine.high %v883_v7, %v887_v9  ;;  %v950_v9 = vld [vmem:[#allocation5 + $0x820] sm:$0xff] }
 0x1ce   : > { %3463 = vmatprep.subr.bf16.mxu0 %v10462_v18  ;;  %3627 = vmatprep.subr.bf16.mxu1 %v10464_v19  ;;  %v895_v18 = vld [vmem:[#allocation5 + $0x668] sm:$0xff]  ;;  %v10517_v19 = vcombine.low %v882_v5, %v886_v6  ;;  %v946_v6 = vld [vmem:[#allocation5 + $0x800] sm:$0xff] }
 0x1cf   : > { %3493 = vmatprep.mubr.bf16.mxu0 %v13291_v23  ;;  %3657 = vmatprep.mubr.bf16.mxu1 %v13291_v23  ;;  %v10527_v29 = vcombine.low %v891_v16, %v895_v18 }
 0x1d1   : > { %3464 = vmatpush1.bf16.msra.mxu0 %v10461_v25  ;;  %3628 = vmatpush1.bf16.msra.mxu1 %v10463_v26  ;;  %v10528_v25 = vcombine.high %v891_v16, %v895_v18  ;;  %v899_v26 = vld [vmem:[#allocation5 + $0x688] sm:$0xff]  ;;  %v954_v16 = vld [vmem:[#allocation5 + $0x840] sm:$0xff]  ;;  %v10582_v18 = vcombine.high %v946_v6, %v950_v9 }
 0x1d2   : > { %3465 = vmatprep.subr.bf16.mxu0 %v10470_v27  ;;  %3629 = vmatprep.subr.bf16.mxu1 %v10472_v31  ;;  %v903_v27 = vld [vmem:[#allocation5 + $0x6a8] sm:$0xff]  ;;  %v906_v31 = vld [vmem:[#allocation5 + $0x6c0] sm:$0xff] }
 0x1d3   : > { %v10535_v37 = vcombine.low %v899_v26, %v903_v27  ;;  %v10542_v38 = vcombine.high %v906_v31, %v910_v32  ;;  %v10541_v44 = vcombine.low %v906_v31, %v910_v32  ;;  %v963_v31 = vld [vmem:[#allocation5 + $0x888] sm:$0xff] }
 0x1d5   : > { %3466 = vmatpush1.bf16.msra.mxu0 %v10469_v33  ;;  %3630 = vmatpush1.bf16.msra.mxu1 %v10471_v34  ;;  %v907_v33 = vld [vmem:[#allocation5 + $0x6c8] sm:$0xff]  ;;  %v10536_v34 = vcombine.high %v899_v26, %v903_v27  ;;  %v10581_v26 = vcombine.low %v946_v6, %v950_v9 }
 0x1d6   : > { %3467 = vmatprep.subr.bf16.mxu0 %v10478_v35  ;;  %3631 = vmatprep.subr.bf16.mxu1 %v10480_v39  ;;  %v911_v35 = vld [vmem:[#allocation5 + $0x6e8] sm:$0xff]  ;;  %v914_v39 = vld [vmem:[#allocation5 + $0x700] sm:$0xff] }
 0x1d7   : > { %v10543_v45 = vcombine.low %v907_v33, %v911_v35  ;;  %v10550_v46 = vcombine.high %v914_v39, %v918_v40  ;;  %v10549_v52 = vcombine.low %v914_v39, %v918_v40  ;;  %v974_v39 = vld [vmem:[#allocation5 + $0x8e0] sm:$0xff]  ;;  %v971_v40 = vld [vmem:[#allocation5 + $0x8c8] sm:$0xff] }
 0x1d8   : > { %v1003_v9 = vld [vmem:[#allocation5 + $0x9c8] sm:$0xff] }
 0x1d9   : > { %3468 = vmatpush1.bf16.msra.mxu0 %v10477_v41  ;;  %3632 = vmatpush1.bf16.msra.mxu1 %v10479_v42  ;;  %v915_v41 = vld [vmem:[#allocation5 + $0x708] sm:$0xff]  ;;  %v10544_v42 = vcombine.high %v907_v33, %v911_v35 }
 0x1da   : > { %3469 = vmatprep.subr.bf16.mxu0 %v10486_v43  ;;  %3633 = vmatprep.subr.bf16.mxu1 %v10488_v47  ;;  %v919_v43 = vld [vmem:[#allocation5 + $0x728] sm:$0xff]  ;;  %v922_v47 = vld [vmem:[#allocation5 + $0x740] sm:$0xff] }
 0x1db   : > { %v10551_v53 = vcombine.low %v915_v41, %v919_v43  ;;  %v10558_v54 = vcombine.high %v922_v47, %v926_v48  ;;  %v10557_v61 = vcombine.low %v922_v47, %v926_v48  ;;  %v967_v33 = vld [vmem:[#allocation5 + $0x8a8] sm:$0xff]  ;;  %v982_v47 = vld [vmem:[#allocation5 + $0x920] sm:$0xff] }
 0x1dc   : > { %v979_v48 = vld [vmem:[#allocation5 + $0x908] sm:$0xff] }
 0x1dd   : > { %3470 = vmatpush1.bf16.msra.mxu0 %v10485_v49  ;;  %3634 = vmatpush1.bf16.msra.mxu1 %v10487_v50  ;;  %v923_v49 = vld [vmem:[#allocation5 + $0x748] sm:$0xff]  ;;  %v10552_v50 = vcombine.high %v915_v41, %v919_v43  ;;  %v10600_v41 = vcombine.high %v963_v31, %v967_v33 }
 0x1de   : > { %3471 = vmatprep.subr.bf16.mxu0 %v10494_v51  ;;  %3635 = vmatprep.subr.bf16.mxu1 %v10496_v55  ;;  %v927_v51 = vld [vmem:[#allocation5 + $0x768] sm:$0xff]  ;;  %v930_v55 = vld [vmem:[#allocation5 + $0x780] sm:$0xff] }
 0x1df   : > { %v10559_v62 = vcombine.low %v923_v49, %v927_v51  ;;  %v10566_v63 = vcombine.high %v930_v55, %v934_v56  ;;  %v10565_v5 = vcombine.low %v930_v55, %v934_v56  ;;  %v990_v55 = vld [vmem:[#allocation5 + $0x960] sm:$0xff]  ;;  %v987_v56 = vld [vmem:[#allocation5 + $0x948] sm:$0xff] }
 0x1e1   : > { %3472 = vmatpush1.bf16.msra.mxu0 %v10493_v58  ;;  %3636 = vmatpush1.bf16.msra.mxu1 %v10495_v59  ;;  %v931_v58 = vld [vmem:[#allocation5 + $0x788] sm:$0xff]  ;;  %v10560_v59 = vcombine.high %v923_v49, %v927_v51 }
 0x1e2   : > { %3473 = vmatprep.subr.bf16.mxu0 %v10502_v60  ;;  %3637 = vmatprep.subr.bf16.mxu1 %v10504_v0  ;;  %v935_v60 = vld [vmem:[#allocation5 + $0x7a8] sm:$0xff]  ;;  %v938_v0 = vld [vmem:[#allocation5 + $0x7c0] sm:$0xff] }
 0x1e3   : > { %v10567_v7 = vcombine.low %v931_v58, %v935_v60  ;;  %v10573_v15 = vcombine.low %v938_v0, %v942_v1 }
 0x1e5   : > { %3474 = vmatpush1.bf16.msra.mxu0 %v10501_v2  ;;  %3638 = vmatpush1.bf16.msra.mxu1 %v10503_v3  ;;  %v939_v2 = vld [vmem:[#allocation5 + $0x7c8] sm:$0xff]  ;;  %v10568_v3 = vcombine.high %v931_v58, %v935_v60 }
 0x1e6   : > { %3475 = vmatprep.subr.bf16.mxu0 %v10510_v4  ;;  %3639 = vmatprep.subr.bf16.mxu1 %v10512_v8  ;;  %v943_v4 = vld [vmem:[#allocation5 + $0x7e8] sm:$0xff]  ;;  %v10574_v8 = vcombine.high %v938_v0, %v942_v1  ;;  %v998_v0 = vld [vmem:[#allocation5 + $0x9a0] sm:$0xff] }
 0x1e7   : > { %v995_v1 = vld [vmem:[#allocation5 + $0x988] sm:$0xff] }
 0x1e9   : > { %3476 = vmatpush1.bf16.msra.mxu0 %v10509_v10  ;;  %3640 = vmatpush1.bf16.msra.mxu1 %v10511_v11  ;;  %v947_v10 = vld [vmem:[#allocation5 + $0x808] sm:$0xff] }
 0x1ea   : > { %3477 = vmatprep.subr.bf16.mxu0 %v10518_v13  ;;  %3641 = vmatprep.subr.bf16.mxu1 %v10520_v17  ;;  %v951_v11 = vld [vmem:[#allocation5 + $0x828] sm:$0xff]  ;;  %v10576_v13 = vcombine.high %v939_v2, %v943_v4  ;;  %v10575_v17 = vcombine.low %v939_v2, %v943_v4 }
 0x1eb   : > { %v10584_v22 = vcombine.high %v947_v10, %v951_v11  ;;  %v10583_v27 = vcombine.low %v947_v10, %v951_v11  ;;  %v1007_v11 = vld [vmem:[#allocation5 + $0x9e8] sm:$0xff] }
 0x1ed   : > { %3478 = vmatpush1.bf16.msra.mxu0 %v10517_v19  ;;  %3642 = vmatpush1.bf16.msra.mxu1 %v10519_v20  ;;  %v958_v19 = vld [vmem:[#allocation5 + $0x860] sm:$0xff]  ;;  %v955_v20 = vld [vmem:[#allocation5 + $0x848] sm:$0xff] }
 0x1ee   : > { %3479 = vmatprep.subr.bf16.mxu0 %v10526_v21  ;;  %3643 = vmatprep.subr.bf16.mxu1 %v10528_v25  ;;  %v959_v21 = vld [vmem:[#allocation5 + $0x868] sm:$0xff]  ;;  %v13299_v25 = vpack.c.bf16 %v678_v14, %v678_v14  ;;  %v10589_v35 = vcombine.low %v954_v16, %v958_v19 }
 0x1ef   : > { %v10592_v32 = vcombine.high %v955_v20, %v959_v21 }
 0x1f1   : > { %3480 = vmatpush1.bf16.msra.mxu0 %v10525_v28  ;;  %3644 = vmatpush1.bf16.msra.mxu1 %v10527_v29  ;;  %v10590_v28 = vcombine.high %v954_v16, %v958_v19  ;;  %v962_v29 = vld [vmem:[#allocation5 + $0x880] sm:$0xff]  ;;  %v10640_v19 = vcombine.high %v1003_v9, %v1007_v11 }
 0x1f2   : > { %3481 = vmatprep.subr.bf16.mxu0 %v10534_v30  ;;  %3645 = vmatprep.subr.bf16.mxu1 %v10536_v34  ;;  %v966_v30 = vld [vmem:[#allocation5 + $0x8a0] sm:$0xff]  ;;  %v13301_v34 = vpack.c.bf16 %v681_v24, %v681_v24 }
 0x1f3   : > { %v10597_v43 = vcombine.low %v962_v29, %v966_v30  ;;  %v1010_v16 = vld [vmem:[#allocation5 + $0xa00] sm:$0xff] }
 0x1f5   : > { %3482 = vmatpush1.bf16.msra.mxu0 %v10533_v36  ;;  %3646 = vmatpush1.bf16.msra.mxu1 %v10535_v37  ;;  %v10591_v36 = vcombine.low %v955_v20, %v959_v21  ;;  %v10598_v37 = vcombine.high %v962_v29, %v966_v30  ;;  %v1015_v20 = vld [vmem:[#allocation5 + $0xa28] sm:$0xff] }
 0x1f6   : > { %3483 = vmatprep.subr.bf16.mxu0 %v10542_v38  ;;  %3647 = vmatprep.subr.bf16.mxu1 %v10544_v42  ;;  %v970_v38 = vld [vmem:[#allocation5 + $0x8c0] sm:$0xff]  ;;  %v975_v42 = vld [vmem:[#allocation5 + $0x8e8] sm:$0xff] }
 0x1f7   : > { %v10608_v49 = vcombine.high %v971_v40, %v975_v42  ;;  %v10605_v51 = vcombine.low %v970_v38, %v974_v39  ;;  %v1023_v30 = vld [vmem:[#allocation5 + $0xa68] sm:$0xff] }
 0x1f9   : > { %3484 = vmatpush1.bf16.msra.mxu0 %v10541_v44  ;;  %3648 = vmatpush1.bf16.msra.mxu1 %v10543_v45  ;;  %v10599_v44 = vcombine.low %v963_v31, %v967_v33  ;;  %v10606_v45 = vcombine.high %v970_v38, %v974_v39  ;;  %v1031_v39 = vld [vmem:[#allocation5 + $0xaa8] sm:$0xff] }
 0x1fa   : > { %3485 = vmatprep.subr.bf16.mxu0 %v10550_v46  ;;  %3649 = vmatprep.subr.bf16.mxu1 %v10552_v50  ;;  %v978_v46 = vld [vmem:[#allocation5 + $0x900] sm:$0xff]  ;;  %v983_v50 = vld [vmem:[#allocation5 + $0x928] sm:$0xff] }
 0x1fb   : > { %v10616_v58 = vcombine.high %v979_v48, %v983_v50  ;;  %v10613_v60 = vcombine.low %v978_v46, %v982_v47 }
 0x1fd   : > { %3486 = vmatpush1.bf16.msra.mxu0 %v10549_v52  ;;  %3650 = vmatpush1.bf16.msra.mxu1 %v10551_v53  ;;  %v10607_v52 = vcombine.low %v971_v40, %v975_v42  ;;  %v10614_v53 = vcombine.high %v978_v46, %v982_v47  ;;  %v1039_v47 = vld [vmem:[#allocation5 + $0xae8] sm:$0xff] }
 0x1fe   : > { %3487 = vmatprep.subr.bf16.mxu0 %v10558_v54  ;;  %3651 = vmatprep.subr.bf16.mxu1 %v10560_v59  ;;  %v986_v54 = vld [vmem:[#allocation5 + $0x940] sm:$0xff]  ;;  %v991_v59 = vld [vmem:[#allocation5 + $0x968] sm:$0xff] }
 0x1ff   : > { %v10624_v2 = vcombine.high %v987_v56, %v991_v59  ;;  %v10621_v4 = vcombine.low %v986_v54, %v990_v55 }
 0x201   : > { %3488 = vmatpush1.bf16.msra.mxu0 %v10557_v61  ;;  %3652 = vmatpush1.bf16.msra.mxu1 %v10559_v62  ;;  %v10615_v61 = vcombine.low %v979_v48, %v983_v50  ;;  %v10622_v62 = vcombine.high %v986_v54, %v990_v55  ;;  %v1047_v55 = vld [vmem:[#allocation5 + $0xb28] sm:$0xff] }
 0x202   : > { %3489 = vmatprep.subr.bf16.mxu0 %v10566_v63  ;;  %3653 = vmatprep.subr.bf16.mxu1 %v10568_v3  ;;  %v994_v63 = vld [vmem:[#allocation5 + $0x980] sm:$0xff]  ;;  %v999_v3 = vld [vmem:[#allocation5 + $0x9a8] sm:$0xff] }
 0x203   : > { %v10630_v6 = vcombine.high %v994_v63, %v998_v0  ;;  %v10632_v10 = vcombine.high %v995_v1, %v999_v3  ;;  %v10631_v14 = vcombine.low %v995_v1, %v999_v3 }
 0x205   : > { %3490 = vmatpush1.bf16.msra.mxu0 %v10565_v5  ;;  %3654 = vmatpush1.bf16.msra.mxu1 %v10567_v7  ;;  %v10623_v5 = vcombine.low %v987_v56, %v991_v59  ;;  %v1002_v7 = vld [vmem:[#allocation5 + $0x9c0] sm:$0xff] }
 0x206   : > { %3491 = vmatprep.subr.bf16.mxu0 %v10574_v8  ;;  %3655 = vmatprep.subr.bf16.mxu1 %v10576_v13  ;;  %v1006_v8 = vld [vmem:[#allocation5 + $0x9e0] sm:$0xff]  ;;  %v10629_v13 = vcombine.low %v994_v63, %v998_v0  ;;  %v1055_v0 = vld [vmem:[#allocation5 + $0xb68] sm:$0xff] }
 0x207   : > { %v10637_v21 = vcombine.low %v1002_v7, %v1006_v8 }
 0x209   : > { %3492 = vmatpush1.bf16.msra.mxu0 %v10573_v15  ;;  %3656 = vmatpush1.bf16.msra.mxu1 %v10575_v17  ;;  %v10638_v15 = vcombine.high %v1002_v7, %v1006_v8  ;;  %v1014_v17 = vld [vmem:[#allocation5 + $0xa20] sm:$0xff]  ;;  %v1063_v8 = vld [vmem:[#allocation5 + $0xba8] sm:$0xff] }
 0x20a   : > { %3502 = vmatprep.subr.bf16.mxu0 %v10582_v18  ;;  %3666 = vmatprep.subr.bf16.mxu1 %v10584_v22  ;;  %v1011_v18 = vld [vmem:[#allocation5 + $0xa08] sm:$0xff]  ;;  %v10639_v22 = vcombine.low %v1003_v9, %v1007_v11  ;;  %v10646_v24 = vcombine.high %v1010_v16, %v1014_v17  ;;  %v10645_v31 = vcombine.low %v1010_v16, %v1014_v17 }
 0x20b   : > { %v10648_v29 = vcombine.high %v1011_v18, %v1015_v20  ;;  %v1071_v17 = vld [vmem:[#allocation5 + $0xbe8] sm:$0xff] }
 0x20c   : > { %3494 = vmatmul.mubr.bf16.vlgmr.msra.gmra.mrb[0].mxu0 %v13299_v25  ;;  %3658 = vmatmul.mubr.bf16.vlgmr.msra.gmra.mrb[0].mxu1 %v13299_v25 }
 0x20d   : > { %3503 = vmatpush1.bf16.msra.mxu0 %v10581_v26  ;;  %3667 = vmatpush1.bf16.msra.mxu1 %v10583_v27  ;;  %v1018_v26 = vld [vmem:[#allocation5 + $0xa40] sm:$0xff] }
 0x20e   : > { %3504 = vmatprep.subr.bf16.mxu0 %v10590_v28  ;;  %3668 = vmatprep.subr.bf16.mxu1 %v10592_v32  ;;  %v1022_v27 = vld [vmem:[#allocation5 + $0xa60] sm:$0xff]  ;;  %v1019_v28 = vld [vmem:[#allocation5 + $0xa48] sm:$0xff]  ;;  %v10647_v32 = vcombine.low %v1011_v18, %v1015_v20 }
 0x20f   : > { %3534 = vmatprep.mubr.bf16.mxu0 %v13301_v34  ;;  %3698 = vmatprep.mubr.bf16.mxu1 %v13301_v34  ;;  %v10654_v33 = vcombine.high %v1018_v26, %v1022_v27  ;;  %v10656_v38 = vcombine.high %v1019_v28, %v1023_v30  ;;  %v10653_v40 = vcombine.low %v1018_v26, %v1022_v27  ;;  %v1079_v26 = vld [vmem:[#allocation5 + $0xc28] sm:$0xff] }
 0x211   : > { %3505 = vmatpush1.bf16.msra.mxu0 %v10589_v35  ;;  %3669 = vmatpush1.bf16.msra.mxu1 %v10591_v36  ;;  %v1026_v35 = vld [vmem:[#allocation5 + $0xa80] sm:$0xff] }
 0x212   : > { %3506 = vmatprep.subr.bf16.mxu0 %v10598_v37  ;;  %3670 = vmatprep.subr.bf16.mxu1 %v10600_v41  ;;  %v1030_v36 = vld [vmem:[#allocation5 + $0xaa0] sm:$0xff]  ;;  %v1027_v37 = vld [vmem:[#allocation5 + $0xa88] sm:$0xff]  ;;  %v10655_v41 = vcombine.low %v1019_v28, %v1023_v30 }
 0x213   : > { %v10662_v42 = vcombine.high %v1026_v35, %v1030_v36  ;;  %v10664_v46 = vcombine.high %v1027_v37, %v1031_v39  ;;  %v10661_v48 = vcombine.low %v1026_v35, %v1030_v36  ;;  %v680_v28 = vld [vmem:[%s13247_s14 + $0x20] sm:$0xff] }
 0x214   : > { %v1083_v35 = vld [vmem:[#allocation5 + $0xc48] sm:$0xff] }
 0x215   : > { %3507 = vmatpush1.bf16.msra.mxu0 %v10597_v43  ;;  %3671 = vmatpush1.bf16.msra.mxu1 %v10599_v44  ;;  %v1034_v43 = vld [vmem:[#allocation5 + $0xac0] sm:$0xff] }
 0x216   : > { %3508 = vmatprep.subr.bf16.mxu0 %v10606_v45  ;;  %3672 = vmatprep.subr.bf16.mxu1 %v10608_v49  ;;  %v1038_v44 = vld [vmem:[#allocation5 + $0xae0] sm:$0xff]  ;;  %v1035_v45 = vld [vmem:[#allocation5 + $0xac8] sm:$0xff]  ;;  %v10663_v49 = vcombine.low %v1027_v37, %v1031_v39 }
 0x217   : > { %v10670_v50 = vcombine.high %v1034_v43, %v1038_v44  ;;  %v10672_v54 = vcombine.high %v1035_v45, %v1039_v47  ;;  %v10669_v56 = vcombine.low %v1034_v43, %v1038_v44  ;;  %v1087_v37 = vld [vmem:[#allocation5 + $0xc68] sm:$0xff]  ;;  %v1094_v43 = vld [vmem:[#allocation5 + $0xca0] sm:$0xff] }
 0x218   : > { %v1091_v44 = vld [vmem:[#allocation5 + $0xc88] sm:$0xff] }
 0x219   : > { %3509 = vmatpush1.bf16.msra.mxu0 %v10605_v51  ;;  %3673 = vmatpush1.bf16.msra.mxu1 %v10607_v52  ;;  %v1042_v51 = vld [vmem:[#allocation5 + $0xb00] sm:$0xff] }
 0x21a   : > { %3510 = vmatprep.subr.bf16.mxu0 %v10614_v53  ;;  %3674 = vmatprep.subr.bf16.mxu1 %v10616_v58  ;;  %v1046_v52 = vld [vmem:[#allocation5 + $0xb20] sm:$0xff]  ;;  %v1043_v53 = vld [vmem:[#allocation5 + $0xb08] sm:$0xff]  ;;  %v10671_v58 = vcombine.low %v1035_v45, %v1039_v47  ;;  %v10720_v45 = vcombine.high %v1083_v35, %v1087_v37 }
 0x21b   : > { %v10678_v59 = vcombine.high %v1042_v51, %v1046_v52  ;;  %v10680_v63 = vcombine.high %v1043_v53, %v1047_v55  ;;  %v10677_v1 = vcombine.low %v1042_v51, %v1046_v52  ;;  %v1102_v51 = vld [vmem:[#allocation5 + $0xce0] sm:$0xff]  ;;  %v1099_v52 = vld [vmem:[#allocation5 + $0xcc8] sm:$0xff] }
 0x21d   : > { %3511 = vmatpush1.bf16.msra.mxu0 %v10613_v60  ;;  %3675 = vmatpush1.bf16.msra.mxu1 %v10615_v61  ;;  %v1050_v60 = vld [vmem:[#allocation5 + $0xb40] sm:$0xff] }
 0x21e   : > { %3512 = vmatprep.subr.bf16.mxu0 %v10622_v62  ;;  %3676 = vmatprep.subr.bf16.mxu1 %v10624_v2  ;;  %v1054_v61 = vld [vmem:[#allocation5 + $0xb60] sm:$0xff]  ;;  %v1051_v62 = vld [vmem:[#allocation5 + $0xb48] sm:$0xff]  ;;  %v10679_v2 = vcombine.low %v1043_v53, %v1047_v55  ;;  %v12813_v55 = vmov 0  }
 0x21f   : > { %v10686_v3 = vcombine.high %v1050_v60, %v1054_v61  ;;  %v10688_v7 = vcombine.high %v1051_v62, %v1055_v0  ;;  %v10685_v9 = vcombine.low %v1050_v60, %v1054_v61  ;;  %v1106_v60 = vld [vmem:[#allocation5 + $0xd00] sm:$0xff] }
 0x220   : > { %v1110_v61 = vld [vmem:[#allocation5 + $0xd20] sm:$0xff] }
 0x221   : > { %3513 = vmatpush1.bf16.msra.mxu0 %v10621_v4  ;;  %3677 = vmatpush1.bf16.msra.mxu1 %v10623_v5  ;;  %v1058_v4 = vld [vmem:[#allocation5 + $0xb80] sm:$0xff] }
 0x222   : > { %3514 = vmatprep.subr.bf16.mxu0 %v10630_v6  ;;  %3678 = vmatprep.subr.bf16.mxu1 %v10632_v10  ;;  %v1062_v5 = vld [vmem:[#allocation5 + $0xba0] sm:$0xff]  ;;  %v1059_v6 = vld [vmem:[#allocation5 + $0xb88] sm:$0xff]  ;;  %v10687_v10 = vcombine.low %v1051_v62, %v1055_v0 }
 0x223   : > { %v10694_v11 = vcombine.high %v1058_v4, %v1062_v5  ;;  %v10696_v16 = vcombine.high %v1059_v6, %v1063_v8  ;;  %v10693_v18 = vcombine.low %v1058_v4, %v1062_v5  ;;  %v10695_v20 = vcombine.low %v1059_v6, %v1063_v8  ;;  %v1107_v62 = vld [vmem:[#allocation5 + $0xd08] sm:$0xff]  ;;  %v1114_v4 = vld [vmem:[#allocation5 + $0xd40] sm:$0xff] }
 0x224   : > { %v1111_v0 = vld [vmem:[#allocation5 + $0xd28] sm:$0xff]  ;;  %v1118_v5 = vld [vmem:[#allocation5 + $0xd60] sm:$0xff] }
 0x225   : > { %3515 = vmatpush1.bf16.msra.mxu0 %v10629_v13  ;;  %3679 = vmatpush1.bf16.msra.mxu1 %v10631_v14  ;;  %v1066_v13 = vld [vmem:[#allocation5 + $0xbc0] sm:$0xff]  ;;  %v1115_v6 = vld [vmem:[#allocation5 + $0xd48] sm:$0xff] }
 0x226   : > { %3516 = vmatprep.subr.bf16.mxu0 %v10638_v15  ;;  %3680 = vmatprep.subr.bf16.mxu1 %v10640_v19  ;;  %v1070_v14 = vld [vmem:[#allocation5 + $0xbe0] sm:$0xff]  ;;  %v1067_v15 = vld [vmem:[#allocation5 + $0xbc8] sm:$0xff] }
 0x227   : > { %v1074_v19 = vld [vmem:[#allocation5 + $0xc00] sm:$0xff]  ;;  %v10704_v27 = vcombine.high %v1067_v15, %v1071_v17  ;;  %v10703_v30 = vcombine.low %v1067_v15, %v1071_v17  ;;  %v1119_v8 = vld [vmem:[#allocation5 + $0xd68] sm:$0xff] }
 0x228   : > { %v10752_v15 = vcombine.high %v1115_v6, %v1119_v8  ;;  %v1127_v17 = vld [vmem:[#allocation5 + $0xda8] sm:$0xff] }
 0x229   : > { %3517 = vmatpush1.bf16.msra.mxu0 %v10637_v21  ;;  %3681 = vmatpush1.bf16.msra.mxu1 %v10639_v22  ;;  %v10702_v21 = vcombine.high %v1066_v13, %v1070_v14  ;;  %v1078_v22 = vld [vmem:[#allocation5 + $0xc20] sm:$0xff] }
 0x22a   : > { %3518 = vmatprep.subr.bf16.mxu0 %v10646_v24  ;;  %3682 = vmatprep.subr.bf16.mxu1 %v10648_v29  ;;  %v1075_v24 = vld [vmem:[#allocation5 + $0xc08] sm:$0xff]  ;;  %v10701_v29 = vcombine.low %v1066_v13, %v1070_v14  ;;  %v10709_v39 = vcombine.low %v1074_v19, %v1078_v22  ;;  %v1122_v13 = vld [vmem:[#allocation5 + $0xd80] sm:$0xff] }
 0x22b   : > { %v10712_v36 = vcombine.high %v1075_v24, %v1079_v26  ;;  %v1126_v14 = vld [vmem:[#allocation5 + $0xda0] sm:$0xff] }
 0x22d   : > { %3519 = vmatpush1.bf16.msra.mxu0 %v10645_v31  ;;  %3683 = vmatpush1.bf16.msra.mxu1 %v10647_v32  ;;  %v10710_v31 = vcombine.high %v1074_v19, %v1078_v22  ;;  %v1082_v32 = vld [vmem:[#allocation5 + $0xc40] sm:$0xff]  ;;  %v10751_v19 = vcombine.low %v1115_v6, %v1119_v8  ;;  %v724_v6 = vld [vmem:[#allocation5 + $0x110] sm:$0xff]  ;;  %v725_v8 = vld [vmem:[#allocation5 + $0x118] sm:$0xff] }
 0x22e   : > { %3520 = vmatprep.subr.bf16.mxu0 %v10654_v33  ;;  %3684 = vmatprep.subr.bf16.mxu1 %v10656_v38  ;;  %v1086_v33 = vld [vmem:[#allocation5 + $0xc60] sm:$0xff]  ;;  %v13308_v38 = vpack.c.bf16 %v680_v28, %v680_v28  ;;  %v10757_v28 = vcombine.low %v1122_v13, %v1126_v14 }
 0x22f   : > { %v10717_v47 = vcombine.low %v1082_v32, %v1086_v33  ;;  %v1130_v22 = vld [vmem:[#allocation5 + $0xdc0] sm:$0xff] }
 0x231   : > { %3521 = vmatpush1.bf16.msra.mxu0 %v10653_v40  ;;  %3685 = vmatpush1.bf16.msra.mxu1 %v10655_v41  ;;  %v10711_v40 = vcombine.low %v1075_v24, %v1079_v26  ;;  %v10718_v41 = vcombine.high %v1082_v32, %v1086_v33  ;;  %v1134_v24 = vld [vmem:[#allocation5 + $0xde0] sm:$0xff]  ;;  %v1131_v26 = vld [vmem:[#allocation5 + $0xdc8] sm:$0xff]  ;;  %v692_v32 = vld [vmem:[#allocation5 + $0x10] sm:$0xff] }
 0x232   : > { %3522 = vmatprep.subr.bf16.mxu0 %v10662_v42  ;;  %3686 = vmatprep.subr.bf16.mxu1 %v10664_v46  ;;  %v1090_v42 = vld [vmem:[#allocation5 + $0xc80] sm:$0xff]  ;;  %v1095_v46 = vld [vmem:[#allocation5 + $0xca8] sm:$0xff]  ;;  %v696_v33 = vld [vmem:[#allocation5 + $0x30] sm:$0xff] }
 0x233   : > { %v10728_v53 = vcombine.high %v1091_v44, %v1095_v46 }
 0x235   : > { %3523 = vmatpush1.bf16.msra.mxu0 %v10661_v48  ;;  %3687 = vmatpush1.bf16.msra.mxu1 %v10663_v49  ;;  %v10719_v48 = vcombine.low %v1083_v35, %v1087_v37  ;;  %v10726_v49 = vcombine.high %v1090_v42, %v1094_v43  ;;  %v693_v35 = vld [vmem:[#allocation5 + $0x18] sm:$0xff]  ;;  %v10765_v37 = vcombine.low %v1130_v22, %v1134_v24 }
 0x236   : > { %3524 = vmatprep.subr.bf16.mxu0 %v10670_v50  ;;  %3688 = vmatprep.subr.bf16.mxu1 %v10672_v54  ;;  %v1098_v50 = vld [vmem:[#allocation5 + $0xcc0] sm:$0xff]  ;;  %v1103_v54 = vld [vmem:[#allocation5 + $0xce8] sm:$0xff] }
 0x239   : > { %3525 = vmatpush1.bf16.msra.mxu0 %v10669_v56  ;;  %3689 = vmatpush1.bf16.msra.mxu1 %v10671_v58  ;;  %v10725_v56 = vcombine.low %v1090_v42, %v1094_v43  ;;  %v10727_v58 = vcombine.low %v1091_v44, %v1095_v46  ;;  %v700_v43 = vld [vmem:[#allocation5 + $0x50] sm:$0xff]  ;;  %v701_v46 = vld [vmem:[#allocation5 + $0x58] sm:$0xff] }
 0x23a   : > { %3526 = vmatprep.subr.bf16.mxu0 %v10678_v59  ;;  %3690 = vmatprep.subr.bf16.mxu1 %v10680_v63  ;;  %v10734_v59 = vcombine.high %v1098_v50, %v1102_v51  ;;  %v10736_v63 = vcombine.high %v1099_v52, %v1103_v54  ;;  %v704_v44 = vld [vmem:[#allocation5 + $0x70] sm:$0xff] }
 0x23d   : > { %3527 = vmatpush1.bf16.msra.mxu0 %v10677_v1  ;;  %3691 = vmatpush1.bf16.msra.mxu1 %v10679_v2  ;;  %v10733_v1 = vcombine.low %v1098_v50, %v1102_v51  ;;  %v10735_v2 = vcombine.low %v1099_v52, %v1103_v54  ;;  %v10338_v50 = vcombine.high %v700_v43, %v704_v44  ;;  %v708_v52 = vld [vmem:[#allocation5 + $0x90] sm:$0xff]  ;;  %v709_v54 = vld [vmem:[#allocation5 + $0x98] sm:$0xff] }
 0x23e   : > { %3528 = vmatprep.subr.bf16.mxu0 %v10686_v3  ;;  %3692 = vmatprep.subr.bf16.mxu1 %v10688_v7  ;;  %v10742_v3 = vcombine.high %v1106_v60, %v1110_v61  ;;  %v10744_v7 = vcombine.high %v1107_v62, %v1111_v0 }
 0x241   : > { %3529 = vmatpush1.bf16.msra.mxu0 %v10685_v9  ;;  %3693 = vmatpush1.bf16.msra.mxu1 %v10687_v10  ;;  %v10741_v9 = vcombine.low %v1106_v60, %v1110_v61  ;;  %v10743_v10 = vcombine.low %v1107_v62, %v1111_v0  ;;  %v716_v62 = vld [vmem:[#allocation5 + $0xd0] sm:$0xff]  ;;  %v717_v0 = vld [vmem:[#allocation5 + $0xd8] sm:$0xff] }
 0x242   : > { %3530 = vmatprep.subr.bf16.mxu0 %v10694_v11  ;;  %3694 = vmatprep.subr.bf16.mxu1 %v10696_v16  ;;  %v10750_v11 = vcombine.high %v1114_v4, %v1118_v5  ;;  %v1123_v16 = vld [vmem:[#allocation5 + $0xd88] sm:$0xff] }
 0x245   : > { %3531 = vmatpush1.bf16.msra.mxu0 %v10693_v18  ;;  %3695 = vmatpush1.bf16.msra.mxu1 %v10695_v20  ;;  %v10749_v18 = vcombine.low %v1114_v4, %v1118_v5  ;;  %v10758_v20 = vcombine.high %v1122_v13, %v1126_v14  ;;  %v732_v14 = vld [vmem:[#allocation5 + $0x150] sm:$0xff] }
 0x246   : > { %3532 = vmatprep.subr.bf16.mxu0 %v10702_v21  ;;  %3696 = vmatprep.subr.bf16.mxu1 %v10704_v27  ;;  %v10760_v21 = vcombine.high %v1123_v16, %v1127_v17  ;;  %v1135_v27 = vld [vmem:[#allocation5 + $0xde8] sm:$0xff] }
 0x249   : > { %3533 = vmatpush1.bf16.msra.mxu0 %v10701_v29  ;;  %3697 = vmatpush1.bf16.msra.mxu1 %v10703_v30  ;;  %v10759_v29 = vcombine.low %v1123_v16, %v1127_v17  ;;  %v10766_v30 = vcombine.high %v1130_v22, %v1134_v24  ;;  %v733_v16 = vld [vmem:[#allocation5 + $0x158] sm:$0xff]  ;;  %v740_v22 = vld [vmem:[#allocation5 + $0x190] sm:$0xff] }
 0x24a   : > { %3543 = vmatprep.subr.bf16.mxu0 %v10710_v31  ;;  %3707 = vmatprep.subr.bf16.mxu1 %v10712_v36  ;;  %v10768_v31 = vcombine.high %v1131_v26, %v1135_v27  ;;  %v697_v36 = vld [vmem:[#allocation5 + $0x38] sm:$0xff]  ;;  %v744_v24 = vld [vmem:[#allocation5 + $0x1b0] sm:$0xff] }
 0x24b   : > { %v10332_v42 = vcombine.high %v693_v35, %v697_v36  ;;  %v737_v17 = vld [vmem:[#allocation5 + $0x178] sm:$0xff] }
 0x24c   : > { %3535 = vmatmul.mubr.bf16.vlgmr.msra.gmra.mrb[0].mxu0 %v13308_v38  ;;  %3699 = vmatmul.mubr.bf16.vlgmr.msra.gmra.mrb[0].mxu1 %v13308_v38 }
 0x24d   : > { %3544 = vmatpush1.bf16.msra.mxu0 %v10709_v39  ;;  %3708 = vmatpush1.bf16.msra.mxu1 %v10711_v40  ;;  %v682_v39 = vld [vmem:[%s13247_s14 + $0x30] sm:$0xff]  ;;  %v10767_v40 = vcombine.low %v1131_v26, %v1135_v27 }
 0x24e   : > { %3545 = vmatprep.subr.bf16.mxu0 %v10718_v41  ;;  %3709 = vmatprep.subr.bf16.mxu1 %v10720_v45  ;;  %v10330_v41 = vcombine.high %v692_v32, %v696_v33  ;;  %v13315_v45 = vpack.c.bf16 %v682_v39, %v682_v39  ;;  %v741_v26 = vld [vmem:[#allocation5 + $0x198] sm:$0xff] }
 0x24f   : > { %3575 = vmatprep.mubr.bf16.mxu0 %v12813_v55  ;;  %3739 = vmatprep.mubr.bf16.mxu1 %v12813_v55  ;;  %v745_v27 = vld [vmem:[#allocation5 + $0x1b8] sm:$0xff] }
 0x250   : > { %v10379_v39 = vcombine.low %v741_v26, %v745_v27 }
 0x251   : > { %3546 = vmatpush1.bf16.msra.mxu0 %v10717_v47  ;;  %3710 = vmatpush1.bf16.msra.mxu1 %v10719_v48  ;;  %v705_v47 = vld [vmem:[#allocation5 + $0x78] sm:$0xff]  ;;  %v10329_v48 = vcombine.low %v692_v32, %v696_v33  ;;  %v748_v32 = vld [vmem:[#allocation5 + $0x1d0] sm:$0xff] }
 0x252   : > { %3547 = vmatprep.subr.bf16.mxu0 %v10726_v49  ;;  %3711 = vmatprep.subr.bf16.mxu1 %v10728_v53  ;;  %v10331_v49 = vcombine.low %v693_v35, %v697_v36  ;;  %v10340_v51 = vcombine.high %v701_v46, %v705_v47  ;;  %v712_v53 = vld [vmem:[#allocation5 + $0xb0] sm:$0xff]  ;;  %v749_v35 = vld [vmem:[#allocation5 + $0x1d8] sm:$0xff] }
 0x253   : > { %v10346_v60 = vcombine.high %v708_v52, %v712_v53  ;;  %v752_v33 = vld [vmem:[#allocation5 + $0x1f0] sm:$0xff]  ;;  %v753_v36 = vld [vmem:[#allocation5 + $0x1f8] sm:$0xff] }
 0x255   : > { %3548 = vmatpush1.bf16.msra.mxu0 %v10725_v56  ;;  %3712 = vmatpush1.bf16.msra.mxu1 %v10727_v58  ;;  %v713_v56 = vld [vmem:[#allocation5 + $0xb8] sm:$0xff]  ;;  %v10337_v58 = vcombine.low %v700_v43, %v704_v44  ;;  %v760_v43 = vld [vmem:[#allocation5 + $0x230] sm:$0xff] }
 0x256   : > { %3549 = vmatprep.subr.bf16.mxu0 %v10734_v59  ;;  %3713 = vmatprep.subr.bf16.mxu1 %v10736_v63  ;;  %v10339_v59 = vcombine.low %v701_v46, %v705_v47  ;;  %v10348_v61 = vcombine.high %v709_v54, %v713_v56  ;;  %v720_v63 = vld [vmem:[#allocation5 + $0xf0] sm:$0xff]  ;;  %v757_v44 = vld [vmem:[#allocation5 + $0x218] sm:$0xff]  ;;  %v10385_v47 = vcombine.low %v748_v32, %v752_v33 }
 0x257   : > { %v10354_v4 = vcombine.high %v716_v62, %v720_v63  ;;  %v761_v46 = vld [vmem:[#allocation5 + $0x238] sm:$0xff] }
 0x259   : > { %3550 = vmatpush1.bf16.msra.mxu0 %v10733_v1  ;;  %3714 = vmatpush1.bf16.msra.mxu1 %v10735_v2  ;;  %v721_v1 = vld [vmem:[#allocation5 + $0xf8] sm:$0xff]  ;;  %v10345_v2 = vcombine.low %v708_v52, %v712_v53  ;;  %v768_v52 = vld [vmem:[#allocation5 + $0x270] sm:$0xff] }
 0x25a   : > { %3551 = vmatprep.subr.bf16.mxu0 %v10742_v3  ;;  %3715 = vmatprep.subr.bf16.mxu1 %v10744_v7  ;;  %v10347_v3 = vcombine.low %v709_v54, %v713_v56  ;;  %v10356_v5 = vcombine.high %v717_v0, %v721_v1  ;;  %v728_v7 = vld [vmem:[#allocation5 + $0x130] sm:$0xff]  ;;  %v765_v53 = vld [vmem:[#allocation5 + $0x258] sm:$0xff] }
 0x25b   : > { %v10362_v13 = vcombine.high %v724_v6, %v728_v7  ;;  %v769_v54 = vld [vmem:[#allocation5 + $0x278] sm:$0xff] }
 0x25d   : > { %3552 = vmatpush1.bf16.msra.mxu0 %v10741_v9  ;;  %3716 = vmatpush1.bf16.msra.mxu1 %v10743_v10  ;;  %v729_v9 = vld [vmem:[#allocation5 + $0x138] sm:$0xff]  ;;  %v10353_v10 = vcombine.low %v716_v62, %v720_v63  ;;  %v776_v62 = vld [vmem:[#allocation5 + $0x2b0] sm:$0xff] }
 0x25e   : > { %3553 = vmatprep.subr.bf16.mxu0 %v10750_v11  ;;  %3717 = vmatprep.subr.bf16.mxu1 %v10752_v15  ;;  %v10355_v11 = vcombine.low %v717_v0, %v721_v1  ;;  %v736_v15 = vld [vmem:[#allocation5 + $0x170] sm:$0xff]  ;;  %v773_v63 = vld [vmem:[#allocation5 + $0x298] sm:$0xff] }
 0x25f   : > { %v777_v0 = vld [vmem:[#allocation5 + $0x2b8] sm:$0xff] }
 0x261   : > { %3554 = vmatpush1.bf16.msra.mxu0 %v10749_v18  ;;  %3718 = vmatpush1.bf16.msra.mxu1 %v10751_v19  ;;  %v10361_v18 = vcombine.low %v724_v6, %v728_v7  ;;  %v10363_v19 = vcombine.low %v725_v8, %v729_v9  ;;  %v784_v6 = vld [vmem:[#allocation5 + $0x2f0] sm:$0xff]  ;;  %v781_v7 = vld [vmem:[#allocation5 + $0x2d8] sm:$0xff] }
 0x262   : > { %3555 = vmatprep.subr.bf16.mxu0 %v10758_v20  ;;  %3719 = vmatprep.subr.bf16.mxu1 %v10760_v21  ;;  %v10370_v20 = vcombine.high %v732_v14, %v736_v15  ;;  %v10372_v21 = vcombine.high %v733_v16, %v737_v17 }
 0x265   : > { %3556 = vmatpush1.bf16.msra.mxu0 %v10757_v28  ;;  %3720 = vmatpush1.bf16.msra.mxu1 %v10759_v29  ;;  %v10369_v28 = vcombine.low %v732_v14, %v736_v15  ;;  %v10371_v29 = vcombine.low %v733_v16, %v737_v17  ;;  %v792_v14 = vld [vmem:[#allocation5 + $0x330] sm:$0xff]  ;;  %v789_v15 = vld [vmem:[#allocation5 + $0x318] sm:$0xff] }
 0x266   : > { %3557 = vmatprep.subr.bf16.mxu0 %v10766_v30  ;;  %3721 = vmatprep.subr.bf16.mxu1 %v10768_v31  ;;  %v10378_v30 = vcombine.high %v740_v22, %v744_v24  ;;  %v10380_v31 = vcombine.high %v741_v26, %v745_v27  ;;  %v793_v16 = vld [vmem:[#allocation5 + $0x338] sm:$0xff] }
 0x267   : > { %v801_v26 = vld [vmem:[#allocation5 + $0x378] sm:$0xff] }
 0x269   : > { %3558 = vmatpush1.bf16.msra.mxu0 %v10765_v37  ;;  %3722 = vmatpush1.bf16.msra.mxu1 %v10767_v40  ;;  %v10377_v37 = vcombine.low %v740_v22, %v744_v24  ;;  %v10386_v40 = vcombine.high %v748_v32, %v752_v33  ;;  %v800_v22 = vld [vmem:[#allocation5 + $0x370] sm:$0xff]  ;;  %v797_v24 = vld [vmem:[#allocation5 + $0x358] sm:$0xff] }
 0x26a   : > { %3748 = vmatprep.subr.bf16.mxu0 %v10330_v41  ;;  %3912 = vmatprep.subr.bf16.mxu1 %v10332_v42  ;;  %v10388_v41 = vcombine.high %v749_v35, %v753_v36  ;;  %v756_v42 = vld [vmem:[#allocation5 + $0x210] sm:$0xff]  ;;  %v805_v33 = vld [vmem:[#allocation5 + $0x398] sm:$0xff] }
 0x26b   : > { %v10393_v56 = vcombine.low %v756_v42, %v760_v43  ;;  %v808_v32 = vld [vmem:[#allocation5 + $0x3b0] sm:$0xff] }
 0x26c   : > { %3576 = vmatmul.mubr.bf16.vlgmr.msra.gmra.mrb[0].mxu0 %v13315_v45  ;;  %3740 = vmatmul.mubr.bf16.vlgmr.msra.gmra.mrb[0].mxu1 %v13315_v45 }
 0x26d   : > { %3749 = vmatpush1.bf16.msra.mxu0 %v10329_v48  ;;  %3913 = vmatpush1.bf16.msra.mxu1 %v10331_v49  ;;  %v10387_v48 = vcombine.low %v749_v35, %v753_v36  ;;  %v10394_v49 = vcombine.high %v756_v42, %v760_v43  ;;  %v809_v35 = vld [vmem:[#allocation5 + $0x3b8] sm:$0xff]  ;;  %v816_v42 = vld [vmem:[#allocation5 + $0x3f0] sm:$0xff] }
 0x26e   : > { %3750 = vmatprep.subr.bf16.mxu0 %v10338_v50  ;;  %3914 = vmatprep.subr.bf16.mxu1 %v10340_v51  ;;  %v10396_v50 = vcombine.high %v757_v44, %v761_v46  ;;  %v764_v51 = vld [vmem:[#allocation5 + $0x250] sm:$0xff]  ;;  %v813_v43 = vld [vmem:[#allocation5 + $0x3d8] sm:$0xff] }
 0x26f   : > { %3780 = vmatprep.mubr.bf16.mxu0 %v13283_v57  ;;  %3944 = vmatprep.mubr.bf16.mxu1 %v13283_v57  ;;  %v10364_v57 = vcombine.high %v725_v8, %v729_v9  ;;  %v10401_v1 = vcombine.low %v764_v51, %v768_v52  ;;  %v785_v8 = vld [vmem:[#allocation5 + $0x2f8] sm:$0xff] }
 0x271   : > { %3751 = vmatpush1.bf16.msra.mxu0 %v10337_v58  ;;  %3915 = vmatpush1.bf16.msra.mxu1 %v10339_v59  ;;  %v10395_v58 = vcombine.low %v757_v44, %v761_v46  ;;  %v10402_v59 = vcombine.high %v764_v51, %v768_v52  ;;  %v817_v44 = vld [vmem:[#allocation5 + $0x3f8] sm:$0xff]  ;;  %v824_v51 = vld [vmem:[#allocation5 + $0x430] sm:$0xff] }
 0x272   : > { %3752 = vmatprep.subr.bf16.mxu0 %v10346_v60  ;;  %3916 = vmatprep.subr.bf16.mxu1 %v10348_v61  ;;  %v10404_v60 = vcombine.high %v765_v53, %v769_v54  ;;  %v772_v61 = vld [vmem:[#allocation5 + $0x290] sm:$0xff]  ;;  %v821_v52 = vld [vmem:[#allocation5 + $0x418] sm:$0xff] }
 0x273   : > { %v10409_v9 = vcombine.low %v772_v61, %v776_v62 }
 0x275   : > { %3753 = vmatpush1.bf16.msra.mxu0 %v10345_v2  ;;  %3917 = vmatpush1.bf16.msra.mxu1 %v10347_v3  ;;  %v10403_v2 = vcombine.low %v765_v53, %v769_v54  ;;  %v10410_v3 = vcombine.high %v772_v61, %v776_v62  ;;  %v825_v53 = vld [vmem:[#allocation5 + $0x438] sm:$0xff]  ;;  %v832_v61 = vld [vmem:[#allocation5 + $0x470] sm:$0xff] }
 0x276   : > { %3754 = vmatprep.subr.bf16.mxu0 %v10354_v4  ;;  %3918 = vmatprep.subr.bf16.mxu1 %v10356_v5  ;;  %v10412_v4 = vcombine.high %v773_v63, %v777_v0  ;;  %v780_v5 = vld [vmem:[#allocation5 + $0x2d0] sm:$0xff]  ;;  %v829_v62 = vld [vmem:[#allocation5 + $0x458] sm:$0xff] }
 0x277   : > { %v10417_v17 = vcombine.low %v780_v5, %v784_v6 }
 0x279   : > { %3755 = vmatpush1.bf16.msra.mxu0 %v10353_v10  ;;  %3919 = vmatpush1.bf16.msra.mxu1 %v10355_v11  ;;  %v10411_v10 = vcombine.low %v773_v63, %v777_v0  ;;  %v10418_v11 = vcombine.high %v780_v5, %v784_v6  ;;  %v833_v63 = vld [vmem:[#allocation5 + $0x478] sm:$0xff]  ;;  %v840_v5 = vld [vmem:[#allocation5 + $0x4b0] sm:$0xff] }
 0x27a   : > { %3756 = vmatprep.subr.bf16.mxu0 %v10362_v13  ;;  %3920 = vmatprep.subr.bf16.mxu1 %v10364_v57  ;;  %v10420_v13 = vcombine.high %v781_v7, %v785_v8  ;;  %v788_v57 = vld [vmem:[#allocation5 + $0x310] sm:$0xff]  ;;  %v837_v6 = vld [vmem:[#allocation5 + $0x498] sm:$0xff] }
 0x27b   : > { %v10425_v27 = vcombine.low %v788_v57, %v792_v14 }
 0x27d   : > { %3757 = vmatpush1.bf16.msra.mxu0 %v10361_v18  ;;  %3921 = vmatpush1.bf16.msra.mxu1 %v10363_v19  ;;  %v10419_v18 = vcombine.low %v781_v7, %v785_v8  ;;  %v10426_v19 = vcombine.high %v788_v57, %v792_v14  ;;  %v841_v7 = vld [vmem:[#allocation5 + $0x4b8] sm:$0xff]  ;;  %v848_v57 = vld [vmem:[#allocation5 + $0x4f0] sm:$0xff] }
 0x27e   : > { %3758 = vmatprep.subr.bf16.mxu0 %v10370_v20  ;;  %3922 = vmatprep.subr.bf16.mxu1 %v10372_v21  ;;  %v10428_v20 = vcombine.high %v789_v15, %v793_v16  ;;  %v796_v21 = vld [vmem:[#allocation5 + $0x350] sm:$0xff]  ;;  %v845_v14 = vld [vmem:[#allocation5 + $0x4d8] sm:$0xff] }
 0x27f   : > { %v10433_v36 = vcombine.low %v796_v21, %v800_v22 }
 0x281   : > { %3759 = vmatpush1.bf16.msra.mxu0 %v10369_v28  ;;  %3923 = vmatpush1.bf16.msra.mxu1 %v10371_v29  ;;  %v10427_v28 = vcombine.low %v789_v15, %v793_v16  ;;  %v10434_v29 = vcombine.high %v796_v21, %v800_v22  ;;  %v849_v15 = vld [vmem:[#allocation5 + $0x4f8] sm:$0xff] }
 0x282   : > { %3760 = vmatprep.subr.bf16.mxu0 %v10378_v30  ;;  %3924 = vmatprep.subr.bf16.mxu1 %v10380_v31  ;;  %v10436_v30 = vcombine.high %v797_v24, %v801_v26  ;;  %v804_v31 = vld [vmem:[#allocation5 + $0x390] sm:$0xff]  ;;  %v853_v21 = vld [vmem:[#allocation5 + $0x518] sm:$0xff] }
 0x283   : > { %v10441_v46 = vcombine.low %v804_v31, %v808_v32  ;;  %v857_v22 = vld [vmem:[#allocation5 + $0x538] sm:$0xff] }
 0x285   : > { %3761 = vmatpush1.bf16.msra.mxu0 %v10377_v37  ;;  %3925 = vmatpush1.bf16.msra.mxu1 %v10379_v39  ;;  %v10435_v37 = vcombine.low %v797_v24, %v801_v26  ;;  %v10442_v39 = vcombine.high %v804_v31, %v808_v32  ;;  %v10483_v26 = vcombine.low %v845_v14, %v849_v15  ;;  %v865_v31 = vld [vmem:[#allocation5 + $0x578] sm:$0xff] }
 0x286   : > { %3762 = vmatprep.subr.bf16.mxu0 %v10386_v40  ;;  %3926 = vmatprep.subr.bf16.mxu1 %v10388_v41  ;;  %v10444_v40 = vcombine.high %v805_v33, %v809_v35  ;;  %v812_v41 = vld [vmem:[#allocation5 + $0x3d0] sm:$0xff] }
 0x287   : > { %v10449_v54 = vcombine.low %v812_v41, %v816_v42 }
 0x289   : > { %3763 = vmatpush1.bf16.msra.mxu0 %v10385_v47  ;;  %3927 = vmatpush1.bf16.msra.mxu1 %v10387_v48  ;;  %v10443_v47 = vcombine.low %v805_v33, %v809_v35  ;;  %v10450_v48 = vcombine.high %v812_v41, %v816_v42  ;;  %v10491_v33 = vcombine.low %v853_v21, %v857_v22  ;;  %v873_v41 = vld [vmem:[#allocation5 + $0x5b8] sm:$0xff] }
 0x28a   : > { %3764 = vmatprep.subr.bf16.mxu0 %v10394_v49  ;;  %3928 = vmatprep.subr.bf16.mxu1 %v10396_v50  ;;  %v10452_v49 = vcombine.high %v813_v43, %v817_v44  ;;  %v820_v50 = vld [vmem:[#allocation5 + $0x410] sm:$0xff] }
 0x28b   : > { %v10457_v0 = vcombine.low %v820_v50, %v824_v51 }
 0x28d   : > { %3765 = vmatpush1.bf16.msra.mxu0 %v10393_v56  ;;  %3929 = vmatpush1.bf16.msra.mxu1 %v10395_v58  ;;  %v10451_v56 = vcombine.low %v813_v43, %v817_v44  ;;  %v10458_v58 = vcombine.high %v820_v50, %v824_v51  ;;  %v881_v50 = vld [vmem:[#allocation5 + $0x5f8] sm:$0xff] }
 0x28e   : > { %3766 = vmatprep.subr.bf16.mxu0 %v10402_v59  ;;  %3930 = vmatprep.subr.bf16.mxu1 %v10404_v60  ;;  %v10460_v59 = vcombine.high %v821_v52, %v825_v53  ;;  %v828_v60 = vld [vmem:[#allocation5 + $0x450] sm:$0xff] }
 0x28f   : > { %v10465_v8 = vcombine.low %v828_v60, %v832_v61 }
 0x291   : > { %3767 = vmatpush1.bf16.msra.mxu0 %v10401_v1  ;;  %3931 = vmatpush1.bf16.msra.mxu1 %v10403_v2  ;;  %v10459_v1 = vcombine.low %v821_v52, %v825_v53  ;;  %v10466_v2 = vcombine.high %v828_v60, %v832_v61  ;;  %v889_v60 = vld [vmem:[#allocation5 + $0x638] sm:$0xff] }
 0x292   : > { %3768 = vmatprep.subr.bf16.mxu0 %v10410_v3  ;;  %3932 = vmatprep.subr.bf16.mxu1 %v10412_v4  ;;  %v10468_v3 = vcombine.high %v829_v62, %v833_v63  ;;  %v836_v4 = vld [vmem:[#allocation5 + $0x490] sm:$0xff] }
 0x293   : > { %v10473_v16 = vcombine.low %v836_v4, %v840_v5 }
 0x295   : > { %3769 = vmatpush1.bf16.msra.mxu0 %v10409_v9  ;;  %3933 = vmatpush1.bf16.msra.mxu1 %v10411_v10  ;;  %v10467_v9 = vcombine.low %v829_v62, %v833_v63  ;;  %v10474_v10 = vcombine.high %v836_v4, %v840_v5  ;;  %v897_v4 = vld [vmem:[#allocation5 + $0x678] sm:$0xff] }
 0x296   : > { %3770 = vmatprep.subr.bf16.mxu0 %v10418_v11  ;;  %3934 = vmatprep.subr.bf16.mxu1 %v10420_v13  ;;  %v10476_v11 = vcombine.high %v837_v6, %v841_v7  ;;  %v844_v13 = vld [vmem:[#allocation5 + $0x4d0] sm:$0xff] }
 0x297   : > { %v10481_v24 = vcombine.low %v844_v13, %v848_v57 }
 0x299   : > { %3771 = vmatpush1.bf16.msra.mxu0 %v10417_v17  ;;  %3935 = vmatpush1.bf16.msra.mxu1 %v10419_v18  ;;  %v10482_v17 = vcombine.high %v844_v13, %v848_v57  ;;  %v10484_v18 = vcombine.high %v845_v14, %v849_v15  ;;  %v905_v13 = vld [vmem:[#allocation5 + $0x6b8] sm:$0xff] }
 0x29a   : > { %3772 = vmatprep.subr.bf16.mxu0 %v10426_v19  ;;  %3936 = vmatprep.subr.bf16.mxu1 %v10428_v20  ;;  %v852_v19 = vld [vmem:[#allocation5 + $0x510] sm:$0xff] }
 0x29b   : > { %v856_v20 = vld [vmem:[#allocation5 + $0x530] sm:$0xff] }
 0x29c   : > { %v10489_v32 = vcombine.low %v852_v19, %v856_v20 }
 0x29d   : > { %3773 = vmatpush1.bf16.msra.mxu0 %v10425_v27  ;;  %3937 = vmatpush1.bf16.msra.mxu1 %v10427_v28  ;;  %v10490_v27 = vcombine.high %v852_v19, %v856_v20  ;;  %v860_v28 = vld [vmem:[#allocation5 + $0x550] sm:$0xff]  ;;  %v913_v19 = vld [vmem:[#allocation5 + $0x6f8] sm:$0xff] }
 0x29e   : > { %3774 = vmatprep.subr.bf16.mxu0 %v10434_v29  ;;  %3938 = vmatprep.subr.bf16.mxu1 %v10436_v30  ;;  %v864_v29 = vld [vmem:[#allocation5 + $0x570] sm:$0xff]  ;;  %v861_v30 = vld [vmem:[#allocation5 + $0x558] sm:$0xff] }
 0x29f   : > { %v10498_v35 = vcombine.high %v860_v28, %v864_v29  ;;  %v10497_v42 = vcombine.low %v860_v28, %v864_v29  ;;  %v10499_v43 = vcombine.low %v861_v30, %v865_v31  ;;  %v921_v28 = vld [vmem:[#allocation5 + $0x738] sm:$0xff] }
 0x2a1   : > { %3775 = vmatpush1.bf16.msra.mxu0 %v10433_v36  ;;  %3939 = vmatpush1.bf16.msra.mxu1 %v10435_v37  ;;  %v10500_v36 = vcombine.high %v861_v30, %v865_v31  ;;  %v868_v37 = vld [vmem:[#allocation5 + $0x590] sm:$0xff] }
 0x2a2   : > { %3776 = vmatprep.subr.bf16.mxu0 %v10442_v39  ;;  %3940 = vmatprep.subr.bf16.mxu1 %v10444_v40  ;;  %v872_v39 = vld [vmem:[#allocation5 + $0x5b0] sm:$0xff]  ;;  %v869_v40 = vld [vmem:[#allocation5 + $0x598] sm:$0xff] }
 0x2a3   : > { %v10506_v44 = vcombine.high %v868_v37, %v872_v39  ;;  %v10505_v51 = vcombine.low %v868_v37, %v872_v39  ;;  %v10507_v52 = vcombine.low %v869_v40, %v873_v41  ;;  %v929_v37 = vld [vmem:[#allocation5 + $0x778] sm:$0xff] }
 0x2a5   : > { %3777 = vmatpush1.bf16.msra.mxu0 %v10441_v46  ;;  %3941 = vmatpush1.bf16.msra.mxu1 %v10443_v47  ;;  %v10508_v46 = vcombine.high %v869_v40, %v873_v41  ;;  %v876_v47 = vld [vmem:[#allocation5 + $0x5d0] sm:$0xff] }
 0x2a6   : > { %3778 = vmatprep.subr.bf16.mxu0 %v10450_v48  ;;  %3942 = vmatprep.subr.bf16.mxu1 %v10452_v49  ;;  %v880_v48 = vld [vmem:[#allocation5 + $0x5f0] sm:$0xff]  ;;  %v877_v49 = vld [vmem:[#allocation5 + $0x5d8] sm:$0xff] }
 0x2a7   : > { %v10514_v53 = vcombine.high %v876_v47, %v880_v48  ;;  %v10513_v61 = vcombine.low %v876_v47, %v880_v48  ;;  %v10515_v62 = vcombine.low %v877_v49, %v881_v50  ;;  %v937_v47 = vld [vmem:[#allocation5 + $0x7b8] sm:$0xff] }
 0x2a9   : > { %3779 = vmatpush1.bf16.msra.mxu0 %v10449_v54  ;;  %3943 = vmatpush1.bf16.msra.mxu1 %v10451_v56  ;;  %v10516_v54 = vcombine.high %v877_v49, %v881_v50  ;;  %v884_v56 = vld [vmem:[#allocation5 + $0x610] sm:$0xff] }
 0x2aa   : > { %3789 = vmatprep.subr.bf16.mxu0 %v10458_v58  ;;  %3953 = vmatprep.subr.bf16.mxu1 %v10460_v59  ;;  %v888_v58 = vld [vmem:[#allocation5 + $0x630] sm:$0xff]  ;;  %v885_v59 = vld [vmem:[#allocation5 + $0x618] sm:$0xff] }
 0x2ab   : > { %v10522_v63 = vcombine.high %v884_v56, %v888_v58  ;;  %v10521_v5 = vcombine.low %v884_v56, %v888_v58  ;;  %v945_v56 = vld [vmem:[#allocation5 + $0x7f8] sm:$0xff] }
 0x2ac   : > { %3781 = vmatmul.mubr.bf16.vlgmr.msra.gmra.mrb[4].mxu0 %v13288_v12  ;;  %3945 = vmatmul.mubr.bf16.vlgmr.msra.gmra.mrb[4].mxu1 %v13288_v12  ;;  %v10475_v12 = vcombine.low %v837_v6, %v841_v7  ;;  %v10523_v6 = vcombine.low %v885_v59, %v889_v60 }
 0x2ad   : > { %3790 = vmatpush1.bf16.msra.mxu0 %v10457_v0  ;;  %3954 = vmatpush1.bf16.msra.mxu1 %v10459_v1  ;;  %v10524_v0 = vcombine.high %v885_v59, %v889_v60  ;;  %v892_v1 = vld [vmem:[#allocation5 + $0x650] sm:$0xff] }
 0x2ae   : > { %3791 = vmatprep.subr.bf16.mxu0 %v10466_v2  ;;  %3955 = vmatprep.subr.bf16.mxu1 %v10468_v3  ;;  %v896_v2 = vld [vmem:[#allocation5 + $0x670] sm:$0xff]  ;;  %v893_v3 = vld [vmem:[#allocation5 + $0x658] sm:$0xff] }
 0x2af   : > { %3821 = vmatprep.mubr.bf16.mxu0 %v13291_v23  ;;  %3985 = vmatprep.mubr.bf16.mxu1 %v13291_v23  ;;  %v10492_v23 = vcombine.high %v853_v21, %v857_v22  ;;  %v10530_v7 = vcombine.high %v892_v1, %v896_v2  ;;  %v10529_v57 = vcombine.low %v892_v1, %v896_v2  ;;  %v953_v1 = vld [vmem:[#allocation5 + $0x838] sm:$0xff] }
 0x2b0   : > { %v10531_v14 = vcombine.low %v893_v3, %v897_v4 }
 0x2b1   : > { %3792 = vmatpush1.bf16.msra.mxu0 %v10465_v8  ;;  %3956 = vmatpush1.bf16.msra.mxu1 %v10467_v9  ;;  %v10532_v8 = vcombine.high %v893_v3, %v897_v4  ;;  %v900_v9 = vld [vmem:[#allocation5 + $0x690] sm:$0xff] }
 0x2b2   : > { %3793 = vmatprep.subr.bf16.mxu0 %v10474_v10  ;;  %3957 = vmatprep.subr.bf16.mxu1 %v10476_v11  ;;  %v904_v10 = vld [vmem:[#allocation5 + $0x6b0] sm:$0xff]  ;;  %v901_v11 = vld [vmem:[#allocation5 + $0x698] sm:$0xff] }
 0x2b3   : > { %v10538_v15 = vcombine.high %v900_v9, %v904_v10  ;;  %v10537_v20 = vcombine.low %v900_v9, %v904_v10  ;;  %v10539_v21 = vcombine.low %v901_v11, %v905_v13  ;;  %v961_v9 = vld [vmem:[#allocation5 + $0x878] sm:$0xff] }
 0x2b5   : > { %3794 = vmatpush1.bf16.msra.mxu0 %v10473_v16  ;;  %3958 = vmatpush1.bf16.msra.mxu1 %v10475_v12  ;;  %v10540_v16 = vcombine.high %v901_v11, %v905_v13  ;;  %v908_v12 = vld [vmem:[#allocation5 + $0x6d0] sm:$0xff] }
 0x2b6   : > { %3795 = vmatprep.subr.bf16.mxu0 %v10482_v17  ;;  %3959 = vmatprep.subr.bf16.mxu1 %v10484_v18  ;;  %v912_v17 = vld [vmem:[#allocation5 + $0x6f0] sm:$0xff]  ;;  %v909_v18 = vld [vmem:[#allocation5 + $0x6d8] sm:$0xff] }
 0x2b7   : > { %v10546_v22 = vcombine.high %v908_v12, %v912_v17  ;;  %v10545_v29 = vcombine.low %v908_v12, %v912_v17  ;;  %v10547_v30 = vcombine.low %v909_v18, %v913_v19  ;;  %v969_v12 = vld [vmem:[#allocation5 + $0x8b8] sm:$0xff] }
 0x2b9   : > { %3796 = vmatpush1.bf16.msra.mxu0 %v10481_v24  ;;  %3960 = vmatpush1.bf16.msra.mxu1 %v10483_v26  ;;  %v10548_v24 = vcombine.high %v909_v18, %v913_v19  ;;  %v916_v26 = vld [vmem:[#allocation5 + $0x710] sm:$0xff] }
 0x2ba   : > { %3797 = vmatprep.subr.bf16.mxu0 %v10490_v27  ;;  %3961 = vmatprep.subr.bf16.mxu1 %v10492_v23  ;;  %v920_v27 = vld [vmem:[#allocation5 + $0x730] sm:$0xff]  ;;  %v917_v23 = vld [vmem:[#allocation5 + $0x718] sm:$0xff] }
 0x2bb   : > { %v10554_v31 = vcombine.high %v916_v26, %v920_v27  ;;  %v10553_v39 = vcombine.low %v916_v26, %v920_v27  ;;  %v10555_v40 = vcombine.low %v917_v23, %v921_v28  ;;  %v977_v26 = vld [vmem:[#allocation5 + $0x8f8] sm:$0xff] }
 0x2bd   : > { %3798 = vmatpush1.bf16.msra.mxu0 %v10489_v32  ;;  %3962 = vmatpush1.bf16.msra.mxu1 %v10491_v33  ;;  %v10556_v32 = vcombine.high %v917_v23, %v921_v28  ;;  %v924_v33 = vld [vmem:[#allocation5 + $0x750] sm:$0xff] }
 0x2be   : > { %3799 = vmatprep.subr.bf16.mxu0 %v10498_v35  ;;  %3963 = vmatprep.subr.bf16.mxu1 %v10500_v36  ;;  %v928_v35 = vld [vmem:[#allocation5 + $0x770] sm:$0xff]  ;;  %v925_v36 = vld [vmem:[#allocation5 + $0x758] sm:$0xff] }
 0x2bf   : > { %v10562_v41 = vcombine.high %v924_v33, %v928_v35  ;;  %v10561_v48 = vcombine.low %v924_v33, %v928_v35  ;;  %v10563_v49 = vcombine.low %v925_v36, %v929_v37 }
 0x2c1   : > { %3800 = vmatpush1.bf16.msra.mxu0 %v10497_v42  ;;  %3964 = vmatpush1.bf16.msra.mxu1 %v10499_v43  ;;  %v10564_v42 = vcombine.high %v925_v36, %v929_v37  ;;  %v932_v43 = vld [vmem:[#allocation5 + $0x790] sm:$0xff] }
 0x2c2   : > { %3801 = vmatprep.subr.bf16.mxu0 %v10506_v44  ;;  %3965 = vmatprep.subr.bf16.mxu1 %v10508_v46  ;;  %v936_v44 = vld [vmem:[#allocation5 + $0x7b0] sm:$0xff]  ;;  %v933_v46 = vld [vmem:[#allocation5 + $0x798] sm:$0xff] }
 0x2c3   : > { %v10570_v50 = vcombine.high %v932_v43, %v936_v44  ;;  %v10569_v58 = vcombine.low %v932_v43, %v936_v44  ;;  %v10571_v59 = vcombine.low %v933_v46, %v937_v47  ;;  %v988_v37 = vld [vmem:[#allocation5 + $0x950] sm:$0xff] }
 0x2c5   : > { %3802 = vmatpush1.bf16.msra.mxu0 %v10505_v51  ;;  %3966 = vmatpush1.bf16.msra.mxu1 %v10507_v52  ;;  %v10572_v51 = vcombine.high %v933_v46, %v937_v47  ;;  %v940_v52 = vld [vmem:[#allocation5 + $0x7d0] sm:$0xff] }
 0x2c6   : > { %3803 = vmatprep.subr.bf16.mxu0 %v10514_v53  ;;  %3967 = vmatprep.subr.bf16.mxu1 %v10516_v54  ;;  %v944_v53 = vld [vmem:[#allocation5 + $0x7f0] sm:$0xff]  ;;  %v941_v54 = vld [vmem:[#allocation5 + $0x7d8] sm:$0xff] }
 0x2c7   : > { %v10578_v60 = vcombine.high %v940_v52, %v944_v53  ;;  %v10577_v2 = vcombine.low %v940_v52, %v944_v53  ;;  %v10579_v3 = vcombine.low %v941_v54, %v945_v56  ;;  %v996_v47 = vld [vmem:[#allocation5 + $0x990] sm:$0xff] }
 0x2c9   : > { %3804 = vmatpush1.bf16.msra.mxu0 %v10513_v61  ;;  %3968 = vmatpush1.bf16.msra.mxu1 %v10515_v62  ;;  %v10580_v61 = vcombine.high %v941_v54, %v945_v56  ;;  %v948_v62 = vld [vmem:[#allocation5 + $0x810] sm:$0xff] }
 0x2ca   : > { %3805 = vmatprep.subr.bf16.mxu0 %v10522_v63  ;;  %3969 = vmatprep.subr.bf16.mxu1 %v10524_v0  ;;  %v952_v63 = vld [vmem:[#allocation5 + $0x830] sm:$0xff]  ;;  %v949_v0 = vld [vmem:[#allocation5 + $0x818] sm:$0xff] }
 0x2cb   : > { %v10586_v4 = vcombine.high %v948_v62, %v952_v63  ;;  %v10585_v10 = vcombine.low %v948_v62, %v952_v63  ;;  %v10587_v11 = vcombine.low %v949_v0, %v953_v1  ;;  %v1004_v56 = vld [vmem:[#allocation5 + $0x9d0] sm:$0xff] }
 0x2cd   : > { %3806 = vmatpush1.bf16.msra.mxu0 %v10521_v5  ;;  %3970 = vmatpush1.bf16.msra.mxu1 %v10523_v6  ;;  %v10588_v5 = vcombine.high %v949_v0, %v953_v1  ;;  %v956_v6 = vld [vmem:[#allocation5 + $0x850] sm:$0xff] }
 0x2ce   : > { %3807 = vmatprep.subr.bf16.mxu0 %v10530_v7  ;;  %3971 = vmatprep.subr.bf16.mxu1 %v10532_v8  ;;  %v960_v7 = vld [vmem:[#allocation5 + $0x870] sm:$0xff]  ;;  %v957_v8 = vld [vmem:[#allocation5 + $0x858] sm:$0xff] }
 0x2cf   : > { %v10594_v13 = vcombine.high %v956_v6, %v960_v7  ;;  %v10593_v17 = vcombine.low %v956_v6, %v960_v7  ;;  %v10595_v18 = vcombine.low %v957_v8, %v961_v9  ;;  %v1012_v1 = vld [vmem:[#allocation5 + $0xa10] sm:$0xff] }
 0x2d1   : > { %3808 = vmatpush1.bf16.msra.mxu0 %v10529_v57  ;;  %3972 = vmatpush1.bf16.msra.mxu1 %v10531_v14  ;;  %v10596_v57 = vcombine.high %v957_v8, %v961_v9  ;;  %v964_v14 = vld [vmem:[#allocation5 + $0x890] sm:$0xff] }
 0x2d2   : > { %3809 = vmatprep.subr.bf16.mxu0 %v10538_v15  ;;  %3973 = vmatprep.subr.bf16.mxu1 %v10540_v16  ;;  %v968_v15 = vld [vmem:[#allocation5 + $0x8b0] sm:$0xff]  ;;  %v965_v16 = vld [vmem:[#allocation5 + $0x898] sm:$0xff] }
 0x2d3   : > { %v10602_v19 = vcombine.high %v964_v14, %v968_v15  ;;  %v10601_v27 = vcombine.low %v964_v14, %v968_v15  ;;  %v1020_v9 = vld [vmem:[#allocation5 + $0xa50] sm:$0xff] }
 0x2d5   : > { %3810 = vmatpush1.bf16.msra.mxu0 %v10537_v20  ;;  %3974 = vmatpush1.bf16.msra.mxu1 %v10539_v21  ;;  %v10604_v20 = vcombine.high %v965_v16, %v969_v12  ;;  %v972_v21 = vld [vmem:[#allocation5 + $0x8d0] sm:$0xff] }
 0x2d6   : > { %3811 = vmatprep.subr.bf16.mxu0 %v10546_v22  ;;  %3975 = vmatprep.subr.bf16.mxu1 %v10548_v24  ;;  %v976_v22 = vld [vmem:[#allocation5 + $0x8f0] sm:$0xff]  ;;  %v973_v24 = vld [vmem:[#allocation5 + $0x8d8] sm:$0xff] }
 0x2d7   : > { %v10610_v23 = vcombine.high %v972_v21, %v976_v22  ;;  %v10612_v28 = vcombine.high %v973_v24, %v977_v26  ;;  %v10609_v33 = vcombine.low %v972_v21, %v976_v22  ;;  %v10611_v35 = vcombine.low %v973_v24, %v977_v26  ;;  %v1036_v26 = vld [vmem:[#allocation5 + $0xad0] sm:$0xff] }
 0x2d9   : > { %3812 = vmatpush1.bf16.msra.mxu0 %v10545_v29  ;;  %3976 = vmatpush1.bf16.msra.mxu1 %v10547_v30  ;;  %v980_v29 = vld [vmem:[#allocation5 + $0x910] sm:$0xff] }
 0x2da   : > { %3813 = vmatprep.subr.bf16.mxu0 %v10554_v31  ;;  %3977 = vmatprep.subr.bf16.mxu1 %v10556_v32  ;;  %v984_v30 = vld [vmem:[#allocation5 + $0x930] sm:$0xff]  ;;  %v981_v31 = vld [vmem:[#allocation5 + $0x918] sm:$0xff] }
 0x2db   : > { %v985_v32 = vld [vmem:[#allocation5 + $0x938] sm:$0xff]  ;;  %v10618_v36 = vcombine.high %v980_v29, %v984_v30 }
 0x2dc   : > { %v10619_v43 = vcombine.low %v981_v31, %v985_v32 }
 0x2dd   : > { %3814 = vmatpush1.bf16.msra.mxu0 %v10553_v39  ;;  %3978 = vmatpush1.bf16.msra.mxu1 %v10555_v40  ;;  %v992_v39 = vld [vmem:[#allocation5 + $0x970] sm:$0xff]  ;;  %v989_v40 = vld [vmem:[#allocation5 + $0x958] sm:$0xff] }
 0x2de   : > { %3815 = vmatprep.subr.bf16.mxu0 %v10562_v41  ;;  %3979 = vmatprep.subr.bf16.mxu1 %v10564_v42  ;;  %v993_v41 = vld [vmem:[#allocation5 + $0x978] sm:$0xff]  ;;  %v10617_v42 = vcombine.low %v980_v29, %v984_v30  ;;  %v10626_v44 = vcombine.high %v988_v37, %v992_v39 }
 0x2df   : > { %v10628_v46 = vcombine.high %v989_v40, %v993_v41  ;;  %v10627_v52 = vcombine.low %v989_v40, %v993_v41  ;;  %v1052_v41 = vld [vmem:[#allocation5 + $0xb50] sm:$0xff] }
 0x2e1   : > { %3816 = vmatpush1.bf16.msra.mxu0 %v10561_v48  ;;  %3980 = vmatpush1.bf16.msra.mxu1 %v10563_v49  ;;  %v1000_v48 = vld [vmem:[#allocation5 + $0x9b0] sm:$0xff]  ;;  %v997_v49 = vld [vmem:[#allocation5 + $0x998] sm:$0xff] }
 0x2e2   : > { %3817 = vmatprep.subr.bf16.mxu0 %v10570_v50  ;;  %3981 = vmatprep.subr.bf16.mxu1 %v10572_v51  ;;  %v1001_v50 = vld [vmem:[#allocation5 + $0x9b8] sm:$0xff]  ;;  %v10625_v51 = vcombine.low %v988_v37, %v992_v39  ;;  %v10634_v53 = vcombine.high %v996_v47, %v1000_v48 }
 0x2e3   : > { %v10636_v54 = vcombine.high %v997_v49, %v1001_v50  ;;  %v10635_v62 = vcombine.low %v997_v49, %v1001_v50  ;;  %v1060_v50 = vld [vmem:[#allocation5 + $0xb90] sm:$0xff] }
 0x2e5   : > { %3818 = vmatpush1.bf16.msra.mxu0 %v10569_v58  ;;  %3982 = vmatpush1.bf16.msra.mxu1 %v10571_v59  ;;  %v1008_v58 = vld [vmem:[#allocation5 + $0x9f0] sm:$0xff]  ;;  %v1005_v59 = vld [vmem:[#allocation5 + $0x9d8] sm:$0xff] }
 0x2e6   : > { %3819 = vmatprep.subr.bf16.mxu0 %v10578_v60  ;;  %3983 = vmatprep.subr.bf16.mxu1 %v10580_v61  ;;  %v1009_v60 = vld [vmem:[#allocation5 + $0x9f8] sm:$0xff]  ;;  %v10633_v61 = vcombine.low %v996_v47, %v1000_v48  ;;  %v10642_v63 = vcombine.high %v1004_v56, %v1008_v58 }
 0x2e7   : > { %v10644_v0 = vcombine.high %v1005_v59, %v1009_v60  ;;  %v10643_v6 = vcombine.low %v1005_v59, %v1009_v60  ;;  %v1068_v60 = vld [vmem:[#allocation5 + $0xbd0] sm:$0xff] }
 0x2e9   : > { %3820 = vmatpush1.bf16.msra.mxu0 %v10577_v2  ;;  %3984 = vmatpush1.bf16.msra.mxu1 %v10579_v3  ;;  %v1016_v2 = vld [vmem:[#allocation5 + $0xa30] sm:$0xff]  ;;  %v1013_v3 = vld [vmem:[#allocation5 + $0xa18] sm:$0xff] }
 0x2ea   : > { %3830 = vmatprep.subr.bf16.mxu0 %v10586_v4  ;;  %3994 = vmatprep.subr.bf16.mxu1 %v10588_v5  ;;  %v1017_v4 = vld [vmem:[#allocation5 + $0xa38] sm:$0xff]  ;;  %v10641_v5 = vcombine.low %v1004_v56, %v1008_v58  ;;  %v10650_v7 = vcombine.high %v1012_v1, %v1016_v2 }
 0x2eb   : > { %v10652_v8 = vcombine.high %v1013_v3, %v1017_v4  ;;  %v10651_v14 = vcombine.low %v1013_v3, %v1017_v4  ;;  %v1076_v4 = vld [vmem:[#allocation5 + $0xc10] sm:$0xff] }
 0x2ec   : > { %3822 = vmatmul.mubr.bf16.vlgmr.msra.gmra.mrb[4].mxu0 %v13299_v25  ;;  %3986 = vmatmul.mubr.bf16.vlgmr.msra.gmra.mrb[4].mxu1 %v13299_v25  ;;  %v10603_v25 = vcombine.low %v965_v16, %v969_v12  ;;  %v1028_v12 = vld [vmem:[#allocation5 + $0xa90] sm:$0xff] }
 0x2ed   : > { %3831 = vmatpush1.bf16.msra.mxu0 %v10585_v10  ;;  %3995 = vmatpush1.bf16.msra.mxu1 %v10587_v11  ;;  %v1024_v10 = vld [vmem:[#allocation5 + $0xa70] sm:$0xff]  ;;  %v1021_v11 = vld [vmem:[#allocation5 + $0xa58] sm:$0xff] }
 0x2ee   : > { %3832 = vmatprep.subr.bf16.mxu0 %v10594_v13  ;;  %3996 = vmatprep.subr.bf16.mxu1 %v10596_v57  ;;  %v1025_v13 = vld [vmem:[#allocation5 + $0xa78] sm:$0xff]  ;;  %v10649_v57 = vcombine.low %v1012_v1, %v1016_v2  ;;  %v10658_v15 = vcombine.high %v1020_v9, %v1024_v10 }
 0x2ef   : > { %3862 = vmatprep.mubr.bf16.mxu0 %v13301_v34  ;;  %4026 = vmatprep.mubr.bf16.mxu1 %v13301_v34  ;;  %v10620_v34 = vcombine.high %v981_v31, %v985_v32  ;;  %v10660_v16 = vcombine.high %v1021_v11, %v1025_v13  ;;  %v10659_v21 = vcombine.low %v1021_v11, %v1025_v13  ;;  %v1044_v32 = vld [vmem:[#allocation5 + $0xb10] sm:$0xff] }
 0x2f0   : > { %v1084_v13 = vld [vmem:[#allocation5 + $0xc50] sm:$0xff] }
 0x2f1   : > { %3833 = vmatpush1.bf16.msra.mxu0 %v10593_v17  ;;  %3997 = vmatpush1.bf16.msra.mxu1 %v10595_v18  ;;  %v1032_v17 = vld [vmem:[#allocation5 + $0xab0] sm:$0xff]  ;;  %v1029_v18 = vld [vmem:[#allocation5 + $0xa98] sm:$0xff] }
 0x2f2   : > { %3834 = vmatprep.subr.bf16.mxu0 %v10602_v19  ;;  %3998 = vmatprep.subr.bf16.mxu1 %v10604_v20  ;;  %v1033_v19 = vld [vmem:[#allocation5 + $0xab8] sm:$0xff]  ;;  %v10657_v20 = vcombine.low %v1020_v9, %v1024_v10  ;;  %v10666_v22 = vcombine.high %v1028_v12, %v1032_v17 }
 0x2f3   : > { %v10668_v24 = vcombine.high %v1029_v18, %v1033_v19  ;;  %v10667_v29 = vcombine.low %v1029_v18, %v1033_v19  ;;  %v1092_v19 = vld [vmem:[#allocation5 + $0xc90] sm:$0xff] }
 0x2f5   : > { %3835 = vmatpush1.bf16.msra.mxu0 %v10601_v27  ;;  %3999 = vmatpush1.bf16.msra.mxu1 %v10603_v25  ;;  %v1040_v27 = vld [vmem:[#allocation5 + $0xaf0] sm:$0xff]  ;;  %v1037_v25 = vld [vmem:[#allocation5 + $0xad8] sm:$0xff] }
 0x2f6   : > { %3836 = vmatprep.subr.bf16.mxu0 %v10610_v23  ;;  %4000 = vmatprep.subr.bf16.mxu1 %v10612_v28  ;;  %v1041_v23 = vld [vmem:[#allocation5 + $0xaf8] sm:$0xff]  ;;  %v10665_v28 = vcombine.low %v1028_v12, %v1032_v17  ;;  %v10674_v30 = vcombine.high %v1036_v26, %v1040_v27 }
 0x2f7   : > { %v10676_v31 = vcombine.high %v1037_v25, %v1041_v23  ;;  %v10675_v37 = vcombine.low %v1037_v25, %v1041_v23  ;;  %v1100_v23 = vld [vmem:[#allocation5 + $0xcd0] sm:$0xff] }
 0x2f9   : > { %3837 = vmatpush1.bf16.msra.mxu0 %v10609_v33  ;;  %4001 = vmatpush1.bf16.msra.mxu1 %v10611_v35  ;;  %v1048_v33 = vld [vmem:[#allocation5 + $0xb30] sm:$0xff]  ;;  %v1045_v35 = vld [vmem:[#allocation5 + $0xb18] sm:$0xff] }
 0x2fa   : > { %3838 = vmatprep.subr.bf16.mxu0 %v10618_v36  ;;  %4002 = vmatprep.subr.bf16.mxu1 %v10620_v34  ;;  %v1049_v36 = vld [vmem:[#allocation5 + $0xb38] sm:$0xff]  ;;  %v10673_v34 = vcombine.low %v1036_v26, %v1040_v27  ;;  %v10682_v39 = vcombine.high %v1044_v32, %v1048_v33 }
 0x2fb   : > { %v10684_v40 = vcombine.high %v1045_v35, %v1049_v36  ;;  %v10683_v47 = vcombine.low %v1045_v35, %v1049_v36  ;;  %v1108_v35 = vld [vmem:[#allocation5 + $0xd10] sm:$0xff] }
 0x2fc   : > { %v1112_v36 = vld [vmem:[#allocation5 + $0xd30] sm:$0xff] }
 0x2fd   : > { %3839 = vmatpush1.bf16.msra.mxu0 %v10617_v42  ;;  %4003 = vmatpush1.bf16.msra.mxu1 %v10619_v43  ;;  %v1056_v42 = vld [vmem:[#allocation5 + $0xb70] sm:$0xff]  ;;  %v1053_v43 = vld [vmem:[#allocation5 + $0xb58] sm:$0xff] }
 0x2fe   : > { %3840 = vmatprep.subr.bf16.mxu0 %v10626_v44  ;;  %4004 = vmatprep.subr.bf16.mxu1 %v10628_v46  ;;  %v1057_v44 = vld [vmem:[#allocation5 + $0xb78] sm:$0xff]  ;;  %v10681_v46 = vcombine.low %v1044_v32, %v1048_v33  ;;  %v10690_v48 = vcombine.high %v1052_v41, %v1056_v42 }
 0x2ff   : > { %v10692_v49 = vcombine.high %v1053_v43, %v1057_v44  ;;  %v10691_v56 = vcombine.low %v1053_v43, %v1057_v44  ;;  %v1116_v43 = vld [vmem:[#allocation5 + $0xd50] sm:$0xff] }
 0x300   : > { %v1120_v44 = vld [vmem:[#allocation5 + $0xd70] sm:$0xff] }
 0x301   : > { %3841 = vmatpush1.bf16.msra.mxu0 %v10625_v51  ;;  %4005 = vmatpush1.bf16.msra.mxu1 %v10627_v52  ;;  %v1064_v51 = vld [vmem:[#allocation5 + $0xbb0] sm:$0xff]  ;;  %v1061_v52 = vld [vmem:[#allocation5 + $0xb98] sm:$0xff] }
 0x302   : > { %3842 = vmatprep.subr.bf16.mxu0 %v10634_v53  ;;  %4006 = vmatprep.subr.bf16.mxu1 %v10636_v54  ;;  %v1065_v53 = vld [vmem:[#allocation5 + $0xbb8] sm:$0xff]  ;;  %v10689_v54 = vcombine.low %v1052_v41, %v1056_v42  ;;  %v10698_v58 = vcombine.high %v1060_v50, %v1064_v51  ;;  %v10746_v42 = vcombine.high %v1108_v35, %v1112_v36 }
 0x303   : > { %v10700_v59 = vcombine.high %v1061_v52, %v1065_v53  ;;  %v10699_v1 = vcombine.low %v1061_v52, %v1065_v53  ;;  %v1124_v53 = vld [vmem:[#allocation5 + $0xd90] sm:$0xff] }
 0x305   : > { %3843 = vmatpush1.bf16.msra.mxu0 %v10633_v61  ;;  %4007 = vmatpush1.bf16.msra.mxu1 %v10635_v62  ;;  %v1072_v61 = vld [vmem:[#allocation5 + $0xbf0] sm:$0xff]  ;;  %v1069_v62 = vld [vmem:[#allocation5 + $0xbd8] sm:$0xff] }
 0x306   : > { %3844 = vmatprep.subr.bf16.mxu0 %v10642_v63  ;;  %4008 = vmatprep.subr.bf16.mxu1 %v10644_v0  ;;  %v1073_v63 = vld [vmem:[#allocation5 + $0xbf8] sm:$0xff]  ;;  %v10697_v0 = vcombine.low %v1060_v50, %v1064_v51  ;;  %v10706_v2 = vcombine.high %v1068_v60, %v1072_v61  ;;  %v10754_v51 = vcombine.high %v1116_v43, %v1120_v44 }
 0x307   : > { %v10708_v3 = vcombine.high %v1069_v62, %v1073_v63  ;;  %v10707_v9 = vcombine.low %v1069_v62, %v1073_v63 }
 0x309   : > { %3845 = vmatpush1.bf16.msra.mxu0 %v10641_v5  ;;  %4009 = vmatpush1.bf16.msra.mxu1 %v10643_v6  ;;  %v1080_v5 = vld [vmem:[#allocation5 + $0xc30] sm:$0xff]  ;;  %v1077_v6 = vld [vmem:[#allocation5 + $0xc18] sm:$0xff] }
 0x30a   : > { %3846 = vmatprep.subr.bf16.mxu0 %v10650_v7  ;;  %4010 = vmatprep.subr.bf16.mxu1 %v10652_v8  ;;  %v1081_v7 = vld [vmem:[#allocation5 + $0xc38] sm:$0xff]  ;;  %v10705_v8 = vcombine.low %v1068_v60, %v1072_v61  ;;  %v10714_v10 = vcombine.high %v1076_v4, %v1080_v5  ;;  %v13338_v60 = vld [vmem:[#allocation7] sm:$0xff]  ;;  %v10753_v61 = vcombine.low %v1116_v43, %v1120_v44  ;;  %v4116_v43 = vld [vmem:[#allocation8 + $0xc0] sm:$0xff] }
 0x30b   : > { %v10716_v11 = vcombine.high %v1077_v6, %v1081_v7  ;;  %v10715_v12 = vcombine.low %v1077_v6, %v1081_v7  ;;  %v1133_v7 = vld [vmem:[#allocation5 + $0xdd8] sm:$0xff]  ;;  %v4120_v44 = vld [vmem:[#allocation8 + $0xe0] sm:$0xff] }
 0x30d   : > { %3847 = vmatpush1.bf16.msra.mxu0 %v10649_v57  ;;  %4011 = vmatpush1.bf16.msra.mxu1 %v10651_v14  ;;  %v1088_v57 = vld [vmem:[#allocation5 + $0xc70] sm:$0xff]  ;;  %v1085_v14 = vld [vmem:[#allocation5 + $0xc58] sm:$0xff] }
 0x30e   : > { %3848 = vmatprep.subr.bf16.mxu0 %v10658_v15  ;;  %4012 = vmatprep.subr.bf16.mxu1 %v10660_v16  ;;  %v1089_v15 = vld [vmem:[#allocation5 + $0xc78] sm:$0xff]  ;;  %v10713_v16 = vcombine.low %v1076_v4, %v1080_v5  ;;  %v10722_v17 = vcombine.high %v1084_v13, %v1088_v57 }
 0x30f   : > { %v10724_v18 = vcombine.high %v1085_v14, %v1089_v15  ;;  %v10723_v26 = vcombine.low %v1085_v14, %v1089_v15 }
 0x311   : > { %3849 = vmatpush1.bf16.msra.mxu0 %v10657_v20  ;;  %4013 = vmatpush1.bf16.msra.mxu1 %v10659_v21  ;;  %v1096_v20 = vld [vmem:[#allocation5 + $0xcb0] sm:$0xff]  ;;  %v1093_v21 = vld [vmem:[#allocation5 + $0xc98] sm:$0xff] }
 0x312   : > { %3850 = vmatprep.subr.bf16.mxu0 %v10666_v22  ;;  %4014 = vmatprep.subr.bf16.mxu1 %v10668_v24  ;;  %v1097_v22 = vld [vmem:[#allocation5 + $0xcb8] sm:$0xff]  ;;  %v10721_v24 = vcombine.low %v1084_v13, %v1088_v57  ;;  %v10730_v27 = vcombine.high %v1092_v19, %v1096_v20 }
 0x313   : > { %v10732_v25 = vcombine.high %v1093_v21, %v1097_v22 }
 0x315   : > { %3851 = vmatpush1.bf16.msra.mxu0 %v10665_v28  ;;  %4015 = vmatpush1.bf16.msra.mxu1 %v10667_v29  ;;  %v1104_v28 = vld [vmem:[#allocation5 + $0xcf0] sm:$0xff]  ;;  %v1101_v29 = vld [vmem:[#allocation5 + $0xcd8] sm:$0xff] }
 0x316   : > { %3852 = vmatprep.subr.bf16.mxu0 %v10674_v30  ;;  %4016 = vmatprep.subr.bf16.mxu1 %v10676_v31  ;;  %v1105_v30 = vld [vmem:[#allocation5 + $0xcf8] sm:$0xff]  ;;  %v10729_v31 = vcombine.low %v1092_v19, %v1096_v20  ;;  %v10738_v32 = vcombine.high %v1100_v23, %v1104_v28  ;;  %v4093_v20 = vld [vmem:[#allocation8 + $0x8] sm:$0xff] }
 0x317   : > { %v10740_v33 = vcombine.high %v1101_v29, %v1105_v30  ;;  %v10739_v41 = vcombine.low %v1101_v29, %v1105_v30  ;;  %v4101_v30 = vld [vmem:[#allocation8 + $0x48] sm:$0xff] }
 0x319   : > { %3853 = vmatpush1.bf16.msra.mxu0 %v10673_v34  ;;  %4017 = vmatpush1.bf16.msra.mxu1 %v10675_v37  ;;  %v1109_v34 = vld [vmem:[#allocation5 + $0xd18] sm:$0xff] }
 0x31a   : > { %3854 = vmatprep.subr.bf16.mxu0 %v10682_v39  ;;  %4018 = vmatprep.subr.bf16.mxu1 %v10684_v40  ;;  %v1113_v37 = vld [vmem:[#allocation5 + $0xd38] sm:$0xff]  ;;  %v1140_v39 = vlaneseq  ;;  %v10737_v40 = vcombine.low %v1100_v23, %v1104_v28  ;;  %v4100_v23 = vld [vmem:[#allocation8 + $0x40] sm:$0xff] }
 0x31b   : > { %v10747_v50 = vcombine.low %v1109_v34, %v1113_v37  ;;  %v4104_v28 = vld [vmem:[#allocation8 + $0x60] sm:$0xff] }
 0x31d   : > { %3855 = vmatpush1.bf16.msra.mxu0 %v10681_v46  ;;  %4019 = vmatpush1.bf16.msra.mxu1 %v10683_v47  ;;  %v13333_v46 = vshrl.u32 %v1140_v39, 7  ;;  %v1117_v47 = vld [vmem:[#allocation5 + $0xd58] sm:$0xff]  ;;  %v4113_v39 = vld [vmem:[#allocation8 + $0xa8] sm:$0xff] }
 0x31e   : > { %3856 = vmatprep.subr.bf16.mxu0 %v10690_v48  ;;  %4020 = vmatprep.subr.bf16.mxu1 %v10692_v49  ;;  %v1121_v48 = vld [vmem:[#allocation5 + $0xd78] sm:$0xff]  ;;  %v10745_v49 = vcombine.low %v1108_v35, %v1112_v36  ;;  %v4112_v35 = vld [vmem:[#allocation8 + $0xa0] sm:$0xff] }
 0x31f   : > { %v10756_v52 = vcombine.high %v1117_v47, %v1121_v48  ;;  %v10755_v62 = vcombine.low %v1117_v47, %v1121_v48  ;;  %v4117_v47 = vld [vmem:[#allocation8 + $0xc8] sm:$0xff] }
 0x320   : > { %v4121_v48 = vld [vmem:[#allocation8 + $0xe8] sm:$0xff] }
 0x321   : > { %3857 = vmatpush1.bf16.msra.mxu0 %v10689_v54  ;;  %4021 = vmatpush1.bf16.msra.mxu1 %v10691_v56  ;;  %v1128_v54 = vld [vmem:[#allocation5 + $0xdb0] sm:$0xff]  ;;  %v13336_v56 = vsub.s32 1, %v13333_v46 }
 0x322   : > { %3858 = vmatprep.subr.bf16.mxu0 %v10698_v58  ;;  %4022 = vmatprep.subr.bf16.mxu1 %v10700_v59  ;;  %v1125_v58 = vld [vmem:[#allocation5 + $0xd98] sm:$0xff]  ;;  %v10762_v63 = vcombine.high %v1124_v53, %v1128_v54 }
 0x323   : > { %v1129_v59 = vld [vmem:[#allocation5 + $0xdb8] sm:$0xff]  ;;  %v1147_v5 = vrot.slane %v13338_v60, %v13336_v56 }
 0x324   : > { %v10763_v14 = vcombine.low %v1125_v58, %v1129_v59 }
 0x325   : > { %3859 = vmatpush1.bf16.msra.mxu0 %v10697_v0  ;;  %4023 = vmatpush1.bf16.msra.mxu1 %v10699_v1  ;;  %v10764_v1 = vcombine.high %v1125_v58, %v1129_v59  ;;  %v4129_v58 = vld [vmem:[#allocation8 + $0x128] sm:$0xff]  ;;  %v10797_v59 = vcombine.low %v4116_v43, %v4120_v44 }
 0x326   : > { %3860 = vmatprep.subr.bf16.mxu0 %v10706_v2  ;;  %4024 = vmatprep.subr.bf16.mxu1 %v10708_v3  ;;  %v1132_v2 = vld [vmem:[#allocation5 + $0xdd0] sm:$0xff] }
 0x327   : > { %v1136_v3 = vld [vmem:[#allocation5 + $0xdf0] sm:$0xff] }
 0x328   : > { %v10770_v15 = vcombine.high %v1132_v2, %v1136_v3 }
 0x329   : > { %3861 = vmatpush1.bf16.msra.mxu0 %v10705_v8  ;;  %4025 = vmatpush1.bf16.msra.mxu1 %v10707_v9  ;;  %v1137_v8 = vld [vmem:[#allocation5 + $0xdf8] sm:$0xff] }
 0x32a   : > { %3871 = vmatprep.subr.bf16.mxu0 %v10714_v10  ;;  %4035 = vmatprep.subr.bf16.mxu1 %v10716_v11  ;;  %v10761_v11 = vcombine.low %v1124_v53, %v1128_v54  ;;  %v4128_v53 = vld [vmem:[#allocation8 + $0x120] sm:$0xff]  ;;  %v4125_v54 = vld [vmem:[#allocation8 + $0x108] sm:$0xff] }
 0x32c   : > { %3863 = vmatmul.mubr.bf16.vlgmr.msra.gmra.mrb[4].mxu0 %v13308_v38  ;;  %4027 = vmatmul.mubr.bf16.vlgmr.msra.gmra.mrb[4].mxu1 %v13308_v38  ;;  %v10731_v38 = vcombine.low %v1093_v21, %v1097_v22  ;;  %v4097_v21 = vld [vmem:[#allocation8 + $0x28] sm:$0xff]  ;;  %v10769_v22 = vcombine.low %v1132_v2, %v1136_v3  ;;  %v4136_v2 = vld [vmem:[#allocation8 + $0x160] sm:$0xff] }
 0x32d   : > { %3872 = vmatpush1.bf16.msra.mxu0 %v10713_v16  ;;  %4036 = vmatpush1.bf16.msra.mxu1 %v10715_v12  ;;  %v10772_v12 = vcombine.high %v1133_v7, %v1137_v8  ;;  %v4133_v3 = vld [vmem:[#allocation8 + $0x148] sm:$0xff] }
 0x32e   : > { %3873 = vmatprep.subr.bf16.mxu0 %v10722_v17  ;;  %4037 = vmatprep.subr.bf16.mxu1 %v10724_v18  ;;  %v4092_v17 = vld [vmem:[#allocation8] sm:$0xff] }
 0x32f   : > { %3903 = vmatprep.mubr.bf16.mxu0 %v12813_v55  ;;  %4067 = vmatprep.mubr.bf16.mxu1 %v12813_v55  ;;  %v10748_v55 = vcombine.high %v1109_v34, %v1113_v37  ;;  %v4096_v18 = vld [vmem:[#allocation8 + $0x20] sm:$0xff]  ;;  %v4109_v37 = vld [vmem:[#allocation8 + $0x88] sm:$0xff] }
 0x330   : > { %v10773_v29 = vcombine.low %v4092_v17, %v4096_v18 }
 0x331   : > { %3874 = vmatpush1.bf16.msra.mxu0 %v10721_v24  ;;  %4038 = vmatpush1.bf16.msra.mxu1 %v10723_v26  ;;  %v10771_v24 = vcombine.low %v1133_v7, %v1137_v8  ;;  %v10774_v26 = vcombine.high %v4092_v17, %v4096_v18  ;;  %v10807_v7 = vcombine.low %v4125_v54, %v4129_v58  ;;  %v4148_v18 = vld [vmem:[#allocation8 + $0x1c0] sm:$0xff] }
 0x332   : > { %3875 = vmatprep.subr.bf16.mxu0 %v10730_v27  ;;  %4039 = vmatprep.subr.bf16.mxu1 %v10732_v25  ;;  %v10776_v27 = vcombine.high %v4093_v20, %v4097_v21 }
 0x335   : > { %3876 = vmatpush1.bf16.msra.mxu0 %v10729_v31  ;;  %4040 = vmatpush1.bf16.msra.mxu1 %v10731_v38  ;;  %v4105_v31 = vld [vmem:[#allocation8 + $0x68] sm:$0xff]  ;;  %v10775_v38 = vcombine.low %v4093_v20, %v4097_v21 }
 0x336   : > { %3877 = vmatprep.subr.bf16.mxu0 %v10738_v32  ;;  %4041 = vmatprep.subr.bf16.mxu1 %v10740_v33  ;;  %v10782_v32 = vcombine.high %v4100_v23, %v4104_v28  ;;  %v4108_v33 = vld [vmem:[#allocation8 + $0x80] sm:$0xff]  ;;  %v10784_v34 = vcombine.high %v4101_v30, %v4105_v31  ;;  %v4149_v20 = vld [vmem:[#allocation8 + $0x1c8] sm:$0xff] }
 0x337   : > { %v4153_v21 = vld [vmem:[#allocation8 + $0x1e8] sm:$0xff] }
 0x339   : > { %3878 = vmatpush1.bf16.msra.mxu0 %v10737_v40  ;;  %4042 = vmatpush1.bf16.msra.mxu1 %v10739_v41  ;;  %v10781_v40 = vcombine.low %v4100_v23, %v4104_v28  ;;  %v10783_v41 = vcombine.low %v4101_v30, %v4105_v31  ;;  %v4160_v23 = vld [vmem:[#allocation8 + $0x220] sm:$0xff]  ;;  %v4157_v28 = vld [vmem:[#allocation8 + $0x208] sm:$0xff]  ;;  %v10831_v31 = vcombine.low %v4149_v20, %v4153_v21 }
 0x33a   : > { %3879 = vmatprep.subr.bf16.mxu0 %v10746_v42  ;;  %4043 = vmatprep.subr.bf16.mxu1 %v10748_v55  ;;  %v10790_v42 = vcombine.high %v4108_v33, %v4112_v35  ;;  %v10792_v55 = vcombine.high %v4109_v37, %v4113_v39 }
 0x33d   : > { %3880 = vmatpush1.bf16.msra.mxu0 %v10745_v49  ;;  %4044 = vmatpush1.bf16.msra.mxu1 %v10747_v50  ;;  %v10789_v49 = vcombine.low %v4108_v33, %v4112_v35  ;;  %v10798_v50 = vcombine.high %v4116_v43, %v4120_v44  ;;  %v4164_v33 = vld [vmem:[#allocation8 + $0x240] sm:$0xff]  ;;  %v4173_v44 = vld [vmem:[#allocation8 + $0x288] sm:$0xff] }
 0x33e   : > { %3881 = vmatprep.subr.bf16.mxu0 %v10754_v51  ;;  %4045 = vmatprep.subr.bf16.mxu1 %v10756_v52  ;;  %v10800_v51 = vcombine.high %v4117_v47, %v4121_v48  ;;  %v4124_v52 = vld [vmem:[#allocation8 + $0x100] sm:$0xff] }
 0x33f   : > { %v13340_v0 = vpop.f32.mrb[0].mxu0  ;;  %v13342_v4 = vpop.f32.mrb[0].mxu1  ;;  %v4168_v35 = vld [vmem:[#allocation8 + $0x260] sm:$0xff] }
 0x340   : > { %v3579_v6 = vpop.f32.mrb[1].mxu0  ;;  %v13346_v9 = vpop.f32.mrb[1].mxu1  ;;  %v4176_v43 = vld [vmem:[#allocation8 + $0x2a0] sm:$0xff] }
 0x341   : > { %v3581_v10 = vpop.f32.mrb[2].mxu0  ;;  %3882 = vmatpush1.bf16.msra.mxu0 %v10753_v61  ;;  %v3745_v13 = vpop.f32.mrb[2].mxu1  ;;  %4046 = vmatpush1.bf16.msra.mxu1 %v10755_v62  ;;  %v11596_v19 = vadd.f32 %v3579_v6, %v1147_v5  ;;  %v10799_v61 = vcombine.low %v4117_v47, %v4121_v48  ;;  %v10806_v62 = vcombine.high %v4124_v52, %v4128_v53  ;;  %v4137_v5 = vld [vmem:[#allocation8 + $0x168] sm:$0xff] }
 0x342   : > { %v3582_v57 = vpop.f32.mrb[3].mxu0  ;;  %3883 = vmatprep.subr.bf16.mxu0 %v10762_v63  ;;  %v3746_v16 = vpop.f32.mrb[3].mxu1  ;;  %4047 = vmatprep.subr.bf16.mxu1 %v10764_v1  ;;  %v10808_v63 = vcombine.high %v4125_v54, %v4129_v58  ;;  %v4132_v1 = vld [vmem:[#allocation8 + $0x140] sm:$0xff]  ;;  %v10805_v6 = vcombine.low %v4124_v52, %v4128_v53  ;;  %v10816_v10 = vcombine.high %v4133_v3, %v4137_v5  ;;  %v4177_v47 = vld [vmem:[#allocation8 + $0x2a8] sm:$0xff] }
 0x343   : > { %v4077_v25 = vmax.f32 %v11596_v19, 0.0  ;;  %v10814_v8 = vcombine.high %v4132_v1, %v4136_v2  ;;  %v4144_v13 = vld [vmem:[#allocation8 + $0x1a0] sm:$0xff]  ;;  %v4141_v57 = vld [vmem:[#allocation8 + $0x188] sm:$0xff]  ;;  %v10815_v16 = vcombine.low %v4133_v3, %v4137_v5  ;;  %v10845_v48 = vcombine.low %v4164_v33, %v4168_v35 }
 0x344   : > { %v4152_v19 = vld [vmem:[#allocation8 + $0x1e0] sm:$0xff]  ;;  %v4181_v53 = vld [vmem:[#allocation8 + $0x2c8] sm:$0xff] }
 0x345   : > { %3884 = vmatpush1.bf16.msra.mxu0 %v10761_v11  ;;  %4048 = vmatpush1.bf16.msra.mxu1 %v10763_v14  ;;  %v13348_v36 = vpack.c.bf16 %v4077_v25, %v4077_v25  ;;  %v4140_v11 = vld [vmem:[#allocation8 + $0x180] sm:$0xff]  ;;  %v4145_v14 = vld [vmem:[#allocation8 + $0x1a8] sm:$0xff]  ;;  %v10829_v30 = vcombine.low %v4148_v18, %v4152_v19 }
 0x346   : > { %3885 = vmatprep.subr.bf16.mxu0 %v10770_v15  ;;  %4049 = vmatprep.subr.bf16.mxu1 %v10772_v12  ;;  %v10813_v15 = vcombine.low %v4132_v1, %v4136_v2  ;;  %v10822_v12 = vcombine.high %v4140_v11, %v4144_v13  ;;  %v10824_v17 = vcombine.high %v4141_v57, %v4145_v14  ;;  %v4156_v25 = vld [vmem:[#allocation8 + $0x200] sm:$0xff]  ;;  %v4185_v54 = vld [vmem:[#allocation8 + $0x2e8] sm:$0xff] }
 0x347   : > { %v4184_v52 = vld [vmem:[#allocation8 + $0x2e0] sm:$0xff]  ;;  %v4189_v2 = vld [vmem:[#allocation8 + $0x308] sm:$0xff] }
 0x348   : > { %v4192_v1 = vld [vmem:[#allocation8 + $0x320] sm:$0xff]  ;;  %v4193_v3 = vld [vmem:[#allocation8 + $0x328] sm:$0xff] }
 0x349   : > { %3886 = vmatpush1.bf16.msra.mxu0 %v10769_v22  ;;  %4050 = vmatpush1.bf16.msra.mxu1 %v10771_v24  ;;  %v10821_v22 = vcombine.low %v4140_v11, %v4144_v13  ;;  %v10823_v24 = vcombine.low %v4141_v57, %v4145_v14  ;;  %v4200_v11 = vld [vmem:[#allocation8 + $0x360] sm:$0xff]  ;;  %v4197_v13 = vld [vmem:[#allocation8 + $0x348] sm:$0xff] }
 0x34a   : > { %7206 = vmatprep.subr.bf16.mxu0 %v10774_v26  ;;  %7370 = vmatprep.subr.bf16.mxu1 %v10776_v27  ;;  %v10830_v26 = vcombine.high %v4148_v18, %v4152_v19  ;;  %v10832_v27 = vcombine.high %v4149_v20, %v4153_v21  ;;  %v4201_v57 = vld [vmem:[#allocation8 + $0x368] sm:$0xff]  ;;  %v4204_v18 = vld [vmem:[#allocation8 + $0x380] sm:$0xff]  ;;  %v1154_v20 = vsub.s32 3, %v13333_v46 }
 0x34b   : > { %v4208_v19 = vld [vmem:[#allocation8 + $0x3a0] sm:$0xff]  ;;  %v4205_v21 = vld [vmem:[#allocation8 + $0x388] sm:$0xff] }
 0x34c   : > { %3904 = vmatmul.mubr.bf16.vlgmr.msra.gmra.mrb[4].mxu0 %v13315_v45  ;;  %4068 = vmatmul.mubr.bf16.vlgmr.msra.gmra.mrb[4].mxu1 %v13315_v45  ;;  %v10791_v45 = vcombine.low %v4109_v37, %v4113_v39  ;;  %v4169_v37 = vld [vmem:[#allocation8 + $0x268] sm:$0xff]  ;;  %v10837_v39 = vcombine.low %v4156_v25, %v4160_v23 }
 0x34d   : > { %7207 = vmatpush1.bf16.msra.mxu0 %v10773_v29  ;;  %7238 = vmatprep.mubr.bf16.mxu0 %v13348_v36  ;;  %v4161_v29 = vld [vmem:[#allocation8 + $0x228] sm:$0xff] }
 0x34e   : > { %7371 = vmatpush1.bf16.msra.mxu1 %v10775_v38  ;;  %7402 = vmatprep.mubr.bf16.mxu1 %v13348_v36  ;;  %v10838_v38 = vcombine.high %v4156_v25, %v4160_v23  ;;  %v10886_v25 = vcombine.high %v4204_v18, %v4208_v19 }
 0x34f   : > { %7208 = vmatprep.subr.bf16.mxu0 %v10782_v32  ;;  %7372 = vmatprep.subr.bf16.mxu1 %v10784_v34  ;;  %v10840_v32 = vcombine.high %v4157_v28, %v4161_v29  ;;  %v4165_v34 = vld [vmem:[#allocation8 + $0x248] sm:$0xff] }
 0x351   : > { %7209 = vmatpush1.bf16.msra.mxu0 %v10781_v40  ;;  %v10839_v40 = vcombine.low %v4157_v28, %v4161_v29  ;;  %v4212_v28 = vld [vmem:[#allocation8 + $0x3c0] sm:$0xff] }
 0x352   : > { %7373 = vmatpush1.bf16.msra.mxu1 %v10783_v41  ;;  %7210 = vmatprep.subr.bf16.mxu0 %v10790_v42  ;;  %v10846_v41 = vcombine.high %v4164_v33, %v4168_v35  ;;  %v10848_v42 = vcombine.high %v4165_v34, %v4169_v37  ;;  %v4216_v29 = vld [vmem:[#allocation8 + $0x3e0] sm:$0xff] }
 0x353   : > { %7374 = vmatprep.subr.bf16.mxu1 %v10792_v55  ;;  %v4172_v55 = vld [vmem:[#allocation8 + $0x280] sm:$0xff] }
 0x354   : > { %v10853_v58 = vcombine.low %v4172_v55, %v4176_v43 }
 0x355   : > { %7211 = vmatpush1.bf16.msra.mxu0 %v10789_v49  ;;  %v10847_v49 = vcombine.low %v4165_v34, %v4169_v37  ;;  %v10894_v34 = vcombine.high %v4212_v28, %v4216_v29 }
 0x356   : > { %7375 = vmatpush1.bf16.msra.mxu1 %v10791_v45  ;;  %7212 = vmatprep.subr.bf16.mxu0 %v10798_v50  ;;  %v10854_v45 = vcombine.high %v4172_v55, %v4176_v43  ;;  %v10856_v50 = vcombine.high %v4173_v44, %v4177_v47  ;;  %v4225_v55 = vld [vmem:[#allocation8 + $0x428] sm:$0xff]  ;;  %v10893_v43 = vcombine.low %v4212_v28, %v4216_v29 }
 0x357   : > { %7376 = vmatprep.subr.bf16.mxu1 %v10800_v51  ;;  %v4180_v51 = vld [vmem:[#allocation8 + $0x2c0] sm:$0xff]  ;;  %v4261_v28 = vld [vmem:[#allocation8 + $0x548] sm:$0xff] }
 0x358   : > { %v10861_v5 = vcombine.low %v4180_v51, %v4184_v52  ;;  %v4265_v29 = vld [vmem:[#allocation8 + $0x568] sm:$0xff] }
 0x359   : > { %7213 = vmatpush1.bf16.msra.mxu0 %v10797_v59  ;;  %v10855_v59 = vcombine.low %v4173_v44, %v4177_v47 }
 0x35a   : > { %7377 = vmatpush1.bf16.msra.mxu1 %v10799_v61  ;;  %7214 = vmatprep.subr.bf16.mxu0 %v10806_v62  ;;  %v10862_v61 = vcombine.high %v4180_v51, %v4184_v52  ;;  %v10864_v62 = vcombine.high %v4181_v53, %v4185_v54  ;;  %v4229_v52 = vld [vmem:[#allocation8 + $0x448] sm:$0xff] }
 0x35b   : > { %7378 = vmatprep.subr.bf16.mxu1 %v10808_v63  ;;  %v4188_v63 = vld [vmem:[#allocation8 + $0x300] sm:$0xff] }
 0x35c   : > { %v10869_v14 = vcombine.low %v4188_v63, %v4192_v1 }
 0x35d   : > { %7215 = vmatpush1.bf16.msra.mxu0 %v10805_v6  ;;  %v10863_v6 = vcombine.low %v4181_v53, %v4185_v54  ;;  %v4233_v53 = vld [vmem:[#allocation8 + $0x468] sm:$0xff] }
 0x35e   : > { %7379 = vmatpush1.bf16.msra.mxu1 %v10807_v7  ;;  %7216 = vmatprep.subr.bf16.mxu0 %v10814_v8  ;;  %v10870_v7 = vcombine.high %v4188_v63, %v4192_v1  ;;  %v10872_v8 = vcombine.high %v4189_v2, %v4193_v3  ;;  %v10912_v63 = vcombine.high %v4229_v52, %v4233_v53  ;;  %v4237_v1 = vld [vmem:[#allocation8 + $0x488] sm:$0xff] }
 0x35f   : > { %7380 = vmatprep.subr.bf16.mxu1 %v10816_v10  ;;  %v4196_v10 = vld [vmem:[#allocation8 + $0x340] sm:$0xff] }
 0x361   : > { %7217 = vmatpush1.bf16.msra.mxu0 %v10813_v15  ;;  %v13355_v15 = vsub.s32 0, %v13333_v46 }
 0x362   : > { %7381 = vmatpush1.bf16.msra.mxu1 %v10815_v16  ;;  %7218 = vmatprep.subr.bf16.mxu0 %v10822_v12  ;;  %v10871_v16 = vcombine.low %v4189_v2, %v4193_v3  ;;  %v10878_v12 = vcombine.high %v4196_v10, %v4200_v11  ;;  %v4241_v2 = vld [vmem:[#allocation8 + $0x4a8] sm:$0xff] }
 0x363   : > { %7382 = vmatprep.subr.bf16.mxu1 %v10824_v17  ;;  %v10880_v17 = vcombine.high %v4197_v13, %v4201_v57 }
 0x365   : > { %7219 = vmatpush1.bf16.msra.mxu0 %v10821_v22  ;;  %v4209_v22 = vld [vmem:[#allocation8 + $0x3a8] sm:$0xff] }
 0x366   : > { %7383 = vmatpush1.bf16.msra.mxu1 %v10823_v24  ;;  %7220 = vmatprep.subr.bf16.mxu0 %v10830_v26  ;;  %v10877_v24 = vcombine.low %v4196_v10, %v4200_v11  ;;  %v1143_v26 = vrot.slane %v13338_v60, %v13355_v15  ;;  %v10888_v23 = vcombine.high %v4205_v21, %v4209_v22  ;;  %v4248_v10 = vld [vmem:[#allocation8 + $0x4e0] sm:$0xff]  ;;  %v4245_v11 = vld [vmem:[#allocation8 + $0x4c8] sm:$0xff] }
 0x367   : > { %7384 = vmatprep.subr.bf16.mxu1 %v10832_v27  ;;  %v10879_v27 = vcombine.low %v4197_v13, %v4201_v57  ;;  %v10887_v35 = vcombine.low %v4205_v21, %v4209_v22  ;;  %v4249_v13 = vld [vmem:[#allocation8 + $0x4e8] sm:$0xff] }
 0x368   : > { %v11595_v33 = vadd.f32 %v13340_v0, %v1143_v26  ;;  %v4257_v21 = vld [vmem:[#allocation8 + $0x528] sm:$0xff] }
 0x369   : > { %7221 = vmatpush1.bf16.msra.mxu0 %v10829_v30  ;;  %v1155_v30 = vrot.slane %v13338_v60, %v1154_v20 }
 0x36a   : > { %7385 = vmatpush1.bf16.msra.mxu1 %v10831_v31  ;;  %7222 = vmatprep.subr.bf16.mxu0 %v10838_v38  ;;  %v4213_v31 = vld [vmem:[#allocation8 + $0x3c8] sm:$0xff]  ;;  %v4076_v44 = vmax.f32 %v11595_v33, 0.0  ;;  %v4268_v33 = vld [vmem:[#allocation8 + $0x580] sm:$0xff] }
 0x36b   : > { %7386 = vmatprep.subr.bf16.mxu1 %v10840_v32  ;;  %v4217_v38 = vld [vmem:[#allocation8 + $0x3e8] sm:$0xff]  ;;  %v10885_v32 = vcombine.low %v4204_v18, %v4208_v19  ;;  %v4256_v18 = vld [vmem:[#allocation8 + $0x520] sm:$0xff] }
 0x36c   : > { %v10896_v37 = vcombine.high %v4213_v31, %v4217_v38  ;;  %v10895_v47 = vcombine.low %v4213_v31, %v4217_v38  ;;  %v13365_v54 = vpack.c.bf16 %v4076_v44, %v4076_v44  ;;  %v4253_v19 = vld [vmem:[#allocation8 + $0x508] sm:$0xff] }
 0x36d   : > { %7223 = vmatpush1.bf16.msra.mxu0 %v10837_v39  ;;  %v4220_v39 = vld [vmem:[#allocation8 + $0x400] sm:$0xff]  ;;  %v10935_v31 = vcombine.low %v4253_v19, %v4257_v21  ;;  %v4277_v44 = vld [vmem:[#allocation8 + $0x5c8] sm:$0xff] }
 0x36e   : > { %7387 = vmatpush1.bf16.msra.mxu1 %v10839_v40  ;;  %7224 = vmatprep.subr.bf16.mxu0 %v10846_v41  ;;  %v4224_v40 = vld [vmem:[#allocation8 + $0x420] sm:$0xff]  ;;  %v11598_v41 = vadd.f32 %v13346_v9, %v1155_v30 }
 0x36f   : > { %7388 = vmatprep.subr.bf16.mxu1 %v10848_v42  ;;  %v4221_v42 = vld [vmem:[#allocation8 + $0x408] sm:$0xff]  ;;  %v10901_v51 = vcombine.low %v4220_v39, %v4224_v40 }
 0x370   : > { %v10904_v0 = vcombine.high %v4221_v42, %v4225_v55  ;;  %v10903_v9 = vcombine.low %v4221_v42, %v4225_v55  ;;  %v4276_v55 = vld [vmem:[#allocation8 + $0x5c0] sm:$0xff] }
 0x371   : > { %7225 = vmatpush1.bf16.msra.mxu0 %v10845_v48  ;;  %v10902_v48 = vcombine.high %v4220_v39, %v4224_v40  ;;  %v10943_v40 = vcombine.low %v4261_v28, %v4265_v29 }
 0x372   : > { %7389 = vmatpush1.bf16.msra.mxu1 %v10847_v49  ;;  %7226 = vmatprep.subr.bf16.mxu0 %v10854_v45  ;;  %v4079_v49 = vmax.f32 %v11598_v41, 0.0  ;;  %v4228_v45 = vld [vmem:[#allocation8 + $0x440] sm:$0xff] }
 0x373   : > { %7390 = vmatprep.subr.bf16.mxu1 %v10856_v50  ;;  %v4232_v50 = vld [vmem:[#allocation8 + $0x460] sm:$0xff] }
 0x374   : > { %v10909_v3 = vcombine.low %v4228_v45, %v4232_v50 }
 0x375   : > { %7227 = vmatpush1.bf16.msra.mxu0 %v10853_v58  ;;  %v10910_v58 = vcombine.high %v4228_v45, %v4232_v50  ;;  %v4284_v50 = vld [vmem:[#allocation8 + $0x600] sm:$0xff] }
 0x376   : > { %7391 = vmatpush1.bf16.msra.mxu1 %v10855_v59  ;;  %7228 = vmatprep.subr.bf16.mxu0 %v10862_v61  ;;  %v4236_v59 = vld [vmem:[#allocation8 + $0x480] sm:$0xff] }
 0x377   : > { %7392 = vmatprep.subr.bf16.mxu1 %v10864_v62  ;;  %v4240_v61 = vld [vmem:[#allocation8 + $0x4a0] sm:$0xff]  ;;  %v13367_v62 = vpack.c.bf16 %v4079_v49, %v4079_v49 }
 0x378   : > { %v10917_v57 = vcombine.low %v4236_v59, %v4240_v61 }
 0x379   : > { %7229 = vmatpush1.bf16.msra.mxu0 %v10861_v5  ;;  %v10911_v5 = vcombine.low %v4229_v52, %v4233_v53  ;;  %v4285_v52 = vld [vmem:[#allocation8 + $0x608] sm:$0xff] }
 0x37a   : > { %7393 = vmatpush1.bf16.msra.mxu1 %v10863_v6  ;;  %7230 = vmatprep.subr.bf16.mxu0 %v10870_v7  ;;  %v10918_v6 = vcombine.high %v4236_v59, %v4240_v61  ;;  %v10920_v7 = vcombine.high %v4237_v1, %v4241_v2  ;;  %v4289_v53 = vld [vmem:[#allocation8 + $0x628] sm:$0xff] }
 0x37b   : > { %7394 = vmatprep.subr.bf16.mxu1 %v10872_v8  ;;  %v4244_v8 = vld [vmem:[#allocation8 + $0x4c0] sm:$0xff]  ;;  %v10968_v61 = vcombine.high %v4285_v52, %v4289_v53 }
 0x37c   : > { %v10925_v22 = vcombine.low %v4244_v8, %v4248_v10 }
 0x37d   : > { %7231 = vmatpush1.bf16.msra.mxu0 %v10869_v14  ;;  %v10919_v14 = vcombine.low %v4237_v1, %v4241_v2  ;;  %v4296_v1 = vld [vmem:[#allocation8 + $0x660] sm:$0xff]  ;;  %v4293_v2 = vld [vmem:[#allocation8 + $0x648] sm:$0xff] }
 0x37e   : > { %7395 = vmatpush1.bf16.msra.mxu1 %v10871_v16  ;;  %7232 = vmatprep.subr.bf16.mxu0 %v10878_v12  ;;  %v10926_v16 = vcombine.high %v4244_v8, %v4248_v10  ;;  %v10928_v12 = vcombine.high %v4245_v11, %v4249_v13  ;;  %v4300_v10 = vld [vmem:[#allocation8 + $0x680] sm:$0xff] }
 0x37f   : > { %7396 = vmatprep.subr.bf16.mxu1 %v10880_v17  ;;  %v4252_v17 = vld [vmem:[#allocation8 + $0x500] sm:$0xff] }
 0x380   : > { %v10934_v26 = vcombine.high %v4252_v17, %v4256_v18  ;;  %v10933_v30 = vcombine.low %v4252_v17, %v4256_v18  ;;  %v4308_v18 = vld [vmem:[#allocation8 + $0x6c0] sm:$0xff] }
 0x381   : > { %7233 = vmatpush1.bf16.msra.mxu0 %v10877_v24  ;;  %v10927_v24 = vcombine.low %v4245_v11, %v4249_v13  ;;  %v4304_v11 = vld [vmem:[#allocation8 + $0x6a0] sm:$0xff]  ;;  %v4301_v13 = vld [vmem:[#allocation8 + $0x688] sm:$0xff] }
 0x382   : > { %7397 = vmatpush1.bf16.msra.mxu1 %v10879_v27  ;;  %7234 = vmatprep.subr.bf16.mxu0 %v10886_v25  ;;  %v10936_v27 = vcombine.high %v4253_v19, %v4257_v21  ;;  %v4260_v25 = vld [vmem:[#allocation8 + $0x540] sm:$0xff]  ;;  %v4309_v21 = vld [vmem:[#allocation8 + $0x6c8] sm:$0xff] }
 0x383   : > { %7398 = vmatprep.subr.bf16.mxu1 %v10888_v23  ;;  %v4264_v23 = vld [vmem:[#allocation8 + $0x560] sm:$0xff] }
 0x384   : > { %v10942_v38 = vcombine.high %v4260_v25, %v4264_v23  ;;  %v10941_v39 = vcombine.low %v4260_v25, %v4264_v23  ;;  %v4312_v19 = vld [vmem:[#allocation8 + $0x6e0] sm:$0xff] }
 0x385   : > { %7235 = vmatpush1.bf16.msra.mxu0 %v10885_v32  ;;  %v10944_v32 = vcombine.high %v4261_v28, %v4265_v29  ;;  %v4316_v23 = vld [vmem:[#allocation8 + $0x700] sm:$0xff]  ;;  %v4317_v29 = vld [vmem:[#allocation8 + $0x708] sm:$0xff] }
 0x386   : > { %7399 = vmatpush1.bf16.msra.mxu1 %v10887_v35  ;;  %7236 = vmatprep.subr.bf16.mxu0 %v10894_v34  ;;  %v4272_v35 = vld [vmem:[#allocation8 + $0x5a0] sm:$0xff]  ;;  %v4269_v34 = vld [vmem:[#allocation8 + $0x588] sm:$0xff] }
 0x387   : > { %7400 = vmatprep.subr.bf16.mxu1 %v10896_v37  ;;  %v4273_v37 = vld [vmem:[#allocation8 + $0x5a8] sm:$0xff]  ;;  %v10950_v41 = vcombine.high %v4268_v33, %v4272_v35  ;;  %v4320_v28 = vld [vmem:[#allocation8 + $0x720] sm:$0xff] }
 0x388   : > { %v10952_v42 = vcombine.high %v4269_v34, %v4273_v37 }
 0x389   : > { %7237 = vmatpush1.bf16.msra.mxu0 %v10893_v43  ;;  %v4280_v43 = vld [vmem:[#allocation8 + $0x5e0] sm:$0xff] }
 0x38a   : > { %7401 = vmatpush1.bf16.msra.mxu1 %v10895_v47  ;;  %7247 = vmatprep.subr.bf16.mxu0 %v10902_v48  ;;  %v4281_v47 = vld [vmem:[#allocation8 + $0x5e8] sm:$0xff]  ;;  %v10949_v48 = vcombine.low %v4268_v33, %v4272_v35  ;;  %v10958_v49 = vcombine.high %v4276_v55, %v4280_v43  ;;  %v4324_v35 = vld [vmem:[#allocation8 + $0x740] sm:$0xff] }
 0x38b   : > { %7411 = vmatprep.subr.bf16.mxu1 %v10904_v0  ;;  %v10951_v0 = vcombine.low %v4269_v34, %v4273_v37  ;;  %v10960_v45 = vcombine.high %v4277_v44, %v4281_v47  ;;  %v4328_v34 = vld [vmem:[#allocation8 + $0x760] sm:$0xff]  ;;  %v4325_v37 = vld [vmem:[#allocation8 + $0x748] sm:$0xff] }
 0x38c   : > { %7239 = vmatmul.mubr.bf16.vlgmr.msra.gmra.mrb[8].mxu0 %v13365_v54 }
 0x38d   : > { %7403 = vmatmul.mubr.bf16.vlgmr.msra.gmra.mrb[8].mxu1 %v13365_v54  ;;  %7248 = vmatpush1.bf16.msra.mxu0 %v10901_v51  ;;  %v4288_v51 = vld [vmem:[#allocation8 + $0x620] sm:$0xff] }
 0x38e   : > { %7279 = vmatprep.mubr.bf16.mxu0 %v13367_v62  ;;  %7412 = vmatpush1.bf16.msra.mxu1 %v10903_v9  ;;  %v10957_v9 = vcombine.low %v4276_v55, %v4280_v43  ;;  %v10966_v59 = vcombine.high %v4284_v50, %v4288_v51  ;;  %v11006_v55 = vcombine.high %v4324_v35, %v4328_v34 }
 0x38f   : > { %7443 = vmatprep.mubr.bf16.mxu1 %v13367_v62  ;;  %7249 = vmatprep.subr.bf16.mxu0 %v10910_v58  ;;  %v10959_v58 = vcombine.low %v4277_v44, %v4281_v47  ;;  %v4332_v44 = vld [vmem:[#allocation8 + $0x780] sm:$0xff] }
 0x390   : > { %7413 = vmatprep.subr.bf16.mxu1 %v10912_v63  ;;  %v4292_v63 = vld [vmem:[#allocation8 + $0x640] sm:$0xff] }
 0x391   : > { %7250 = vmatpush1.bf16.msra.mxu0 %v10909_v3  ;;  %v4297_v3 = vld [vmem:[#allocation8 + $0x668] sm:$0xff]  ;;  %v4336_v47 = vld [vmem:[#allocation8 + $0x7a0] sm:$0xff] }
 0x392   : > { %7414 = vmatpush1.bf16.msra.mxu1 %v10911_v5  ;;  %7251 = vmatprep.subr.bf16.mxu0 %v10918_v6  ;;  %v10965_v5 = vcombine.low %v4284_v50, %v4288_v51  ;;  %v10967_v6 = vcombine.low %v4285_v52, %v4289_v53  ;;  %v10976_v8 = vcombine.high %v4293_v2, %v4297_v3  ;;  %v4340_v53 = vld [vmem:[#allocation8 + $0x7c0] sm:$0xff] }
 0x393   : > { %7415 = vmatprep.subr.bf16.mxu1 %v10920_v7  ;;  %v10974_v7 = vcombine.high %v4292_v63, %v4296_v1  ;;  %v11014_v51 = vcombine.high %v4332_v44, %v4336_v47 }
 0x395   : > { %7252 = vmatpush1.bf16.msra.mxu0 %v10917_v57  ;;  %v4305_v57 = vld [vmem:[#allocation8 + $0x6a8] sm:$0xff] }
 0x396   : > { %7416 = vmatpush1.bf16.msra.mxu1 %v10919_v14  ;;  %7253 = vmatprep.subr.bf16.mxu0 %v10926_v16  ;;  %v10973_v14 = vcombine.low %v4292_v63, %v4296_v1  ;;  %v10975_v16 = vcombine.low %v4293_v2, %v4297_v3  ;;  %v10984_v17 = vcombine.high %v4301_v13, %v4305_v57  ;;  %v4348_v3 = vld [vmem:[#allocation8 + $0x800] sm:$0xff] }
 0x397   : > { %7417 = vmatprep.subr.bf16.mxu1 %v10928_v12  ;;  %v10982_v12 = vcombine.high %v4300_v10, %v4304_v11 }
 0x399   : > { %7254 = vmatpush1.bf16.msra.mxu0 %v10925_v22  ;;  %v4313_v22 = vld [vmem:[#allocation8 + $0x6e8] sm:$0xff] }
 0x39a   : > { %7418 = vmatpush1.bf16.msra.mxu1 %v10927_v24  ;;  %7255 = vmatprep.subr.bf16.mxu0 %v10934_v26  ;;  %v10981_v24 = vcombine.low %v4300_v10, %v4304_v11  ;;  %v10983_v26 = vcombine.low %v4301_v13, %v4305_v57  ;;  %v10992_v25 = vcombine.high %v4309_v21, %v4313_v22 }
 0x39b   : > { %7419 = vmatprep.subr.bf16.mxu1 %v10936_v27  ;;  %v10990_v27 = vcombine.high %v4308_v18, %v4312_v19 }
 0x39d   : > { %7256 = vmatpush1.bf16.msra.mxu0 %v10933_v30  ;;  %v4321_v30 = vld [vmem:[#allocation8 + $0x728] sm:$0xff] }
 0x39e   : > { %7420 = vmatpush1.bf16.msra.mxu1 %v10935_v31  ;;  %7257 = vmatprep.subr.bf16.mxu0 %v10942_v38  ;;  %v10989_v31 = vcombine.low %v4308_v18, %v4312_v19  ;;  %v10991_v38 = vcombine.low %v4309_v21, %v4313_v22  ;;  %v11000_v33 = vcombine.high %v4317_v29, %v4321_v30 }
 0x39f   : > { %7421 = vmatprep.subr.bf16.mxu1 %v10944_v32  ;;  %v10998_v32 = vcombine.high %v4316_v23, %v4320_v28 }
 0x3a1   : > { %7258 = vmatpush1.bf16.msra.mxu0 %v10941_v39  ;;  %v4329_v39 = vld [vmem:[#allocation8 + $0x768] sm:$0xff] }
 0x3a2   : > { %7422 = vmatpush1.bf16.msra.mxu1 %v10943_v40  ;;  %7259 = vmatprep.subr.bf16.mxu0 %v10950_v41  ;;  %v10997_v40 = vcombine.low %v4316_v23, %v4320_v28  ;;  %v1150_v41 = vsub.s32 2, %v13333_v46  ;;  %v11008_v43 = vcombine.high %v4325_v37, %v4329_v39  ;;  %v11007_v50 = vcombine.low %v4325_v37, %v4329_v39 }
 0x3a3   : > { %7423 = vmatprep.subr.bf16.mxu1 %v10952_v42  ;;  %v10999_v42 = vcombine.low %v4317_v29, %v4321_v30 }
 0x3a5   : > { %7260 = vmatpush1.bf16.msra.mxu0 %v10949_v48  ;;  %v4333_v48 = vld [vmem:[#allocation8 + $0x788] sm:$0xff] }
 0x3a6   : > { %7424 = vmatpush1.bf16.msra.mxu1 %v10951_v0  ;;  %7261 = vmatprep.subr.bf16.mxu0 %v10958_v49  ;;  %v4337_v0 = vld [vmem:[#allocation8 + $0x7a8] sm:$0xff]  ;;  %v11005_v49 = vcombine.low %v4324_v35, %v4328_v34 }
 0x3a7   : > { %7425 = vmatprep.subr.bf16.mxu1 %v10960_v45  ;;  %v1151_v45 = vrot.slane %v13338_v60, %v1150_v41  ;;  %v11016_v52 = vcombine.high %v4333_v48, %v4337_v0  ;;  %v11015_v1 = vcombine.low %v4333_v48, %v4337_v0 }
 0x3a9   : > { %7262 = vmatpush1.bf16.msra.mxu0 %v10957_v9  ;;  %v4344_v9 = vld [vmem:[#allocation8 + $0x7e0] sm:$0xff]  ;;  %v11597_v63 = vadd.f32 %v13342_v4, %v1151_v45 }
 0x3aa   : > { %7426 = vmatpush1.bf16.msra.mxu1 %v10959_v58  ;;  %7263 = vmatprep.subr.bf16.mxu0 %v10966_v59  ;;  %v4341_v58 = vld [vmem:[#allocation8 + $0x7c8] sm:$0xff]  ;;  %v11022_v2 = vcombine.high %v4340_v53, %v4344_v9  ;;  %v4356_v4 = vld [vmem:[#allocation8 + $0x840] sm:$0xff] }
 0x3ab   : > { %7427 = vmatprep.subr.bf16.mxu1 %v10968_v61  ;;  %v4345_v59 = vld [vmem:[#allocation8 + $0x7e8] sm:$0xff]  ;;  %v11013_v61 = vcombine.low %v4332_v44, %v4336_v47  ;;  %v4078_v10 = vmax.f32 %v11597_v63, 0.0  ;;  %v4392_v45 = vld [vmem:[#allocation8 + $0x960] sm:$0xff] }
 0x3ac   : > { %v11024_v60 = vcombine.high %v4341_v58, %v4345_v59  ;;  %v11023_v11 = vcombine.low %v4341_v58, %v4345_v59  ;;  %v4396_v59 = vld [vmem:[#allocation8 + $0x980] sm:$0xff]  ;;  %v4397_v63 = vld [vmem:[#allocation8 + $0x988] sm:$0xff] }
 0x3ad   : > { %7264 = vmatpush1.bf16.msra.mxu0 %v10965_v5  ;;  %v4352_v5 = vld [vmem:[#allocation8 + $0x820] sm:$0xff]  ;;  %v13378_v18 = vpack.c.bf16 %v4078_v10, %v4078_v10  ;;  %v4409_v10 = vld [vmem:[#allocation8 + $0x9e8] sm:$0xff] }
 0x3ae   : > { %7428 = vmatpush1.bf16.msra.mxu1 %v10967_v6  ;;  %7265 = vmatprep.subr.bf16.mxu0 %v10974_v7  ;;  %v4349_v6 = vld [vmem:[#allocation8 + $0x808] sm:$0xff]  ;;  %v11030_v13 = vcombine.high %v4348_v3, %v4352_v5 }
 0x3af   : > { %7429 = vmatprep.subr.bf16.mxu1 %v10976_v8  ;;  %v4353_v7 = vld [vmem:[#allocation8 + $0x828] sm:$0xff]  ;;  %v11021_v8 = vcombine.low %v4340_v53, %v4344_v9 }
 0x3b0   : > { %v11032_v57 = vcombine.high %v4349_v6, %v4353_v7  ;;  %v11031_v19 = vcombine.low %v4349_v6, %v4353_v7  ;;  %v4404_v6 = vld [vmem:[#allocation8 + $0x9c0] sm:$0xff] }
 0x3b1   : > { %7266 = vmatpush1.bf16.msra.mxu0 %v10973_v14  ;;  %v4360_v14 = vld [vmem:[#allocation8 + $0x860] sm:$0xff] }
 0x3b2   : > { %7430 = vmatpush1.bf16.msra.mxu1 %v10975_v16  ;;  %7267 = vmatprep.subr.bf16.mxu0 %v10982_v12  ;;  %v4357_v16 = vld [vmem:[#allocation8 + $0x848] sm:$0xff]  ;;  %v11038_v21 = vcombine.high %v4356_v4, %v4360_v14  ;;  %v11037_v23 = vcombine.low %v4356_v4, %v4360_v14  ;;  %v4408_v7 = vld [vmem:[#allocation8 + $0x9e0] sm:$0xff] }
 0x3b3   : > { %7431 = vmatprep.subr.bf16.mxu1 %v10984_v17  ;;  %v4361_v12 = vld [vmem:[#allocation8 + $0x868] sm:$0xff]  ;;  %v11029_v17 = vcombine.low %v4348_v3, %v4352_v5  ;;  %v4412_v14 = vld [vmem:[#allocation8 + $0xa00] sm:$0xff] }
 0x3b4   : > { %v11040_v22 = vcombine.high %v4357_v16, %v4361_v12  ;;  %v11039_v28 = vcombine.low %v4357_v16, %v4361_v12  ;;  %v4416_v16 = vld [vmem:[#allocation8 + $0xa20] sm:$0xff]  ;;  %v4413_v12 = vld [vmem:[#allocation8 + $0xa08] sm:$0xff] }
 0x3b5   : > { %7268 = vmatpush1.bf16.msra.mxu0 %v10981_v24  ;;  %v4364_v24 = vld [vmem:[#allocation8 + $0x880] sm:$0xff] }
 0x3b6   : > { %7432 = vmatpush1.bf16.msra.mxu1 %v10983_v26  ;;  %7269 = vmatprep.subr.bf16.mxu0 %v10990_v27  ;;  %v4368_v26 = vld [vmem:[#allocation8 + $0x8a0] sm:$0xff]  ;;  %v4365_v27 = vld [vmem:[#allocation8 + $0x888] sm:$0xff] }
 0x3b7   : > { %7433 = vmatprep.subr.bf16.mxu1 %v10992_v25  ;;  %v4369_v25 = vld [vmem:[#allocation8 + $0x8a8] sm:$0xff]  ;;  %v11046_v29 = vcombine.high %v4364_v24, %v4368_v26  ;;  %v11045_v35 = vcombine.low %v4364_v24, %v4368_v26  ;;  %v4420_v26 = vld [vmem:[#allocation8 + $0xa40] sm:$0xff] }
 0x3b8   : > { %v11048_v30 = vcombine.high %v4365_v27, %v4369_v25  ;;  %v11047_v34 = vcombine.low %v4365_v27, %v4369_v25  ;;  %v4424_v27 = vld [vmem:[#allocation8 + $0xa60] sm:$0xff]  ;;  %v4421_v25 = vld [vmem:[#allocation8 + $0xa48] sm:$0xff] }
 0x3b9   : > { %7270 = vmatpush1.bf16.msra.mxu0 %v10989_v31  ;;  %v4372_v31 = vld [vmem:[#allocation8 + $0x8c0] sm:$0xff] }
 0x3ba   : > { %7434 = vmatpush1.bf16.msra.mxu1 %v10991_v38  ;;  %7271 = vmatprep.subr.bf16.mxu0 %v10998_v32  ;;  %v4376_v38 = vld [vmem:[#allocation8 + $0x8e0] sm:$0xff]  ;;  %v4373_v32 = vld [vmem:[#allocation8 + $0x8c8] sm:$0xff] }
 0x3bb   : > { %7435 = vmatprep.subr.bf16.mxu1 %v11000_v33  ;;  %v4377_v33 = vld [vmem:[#allocation8 + $0x8e8] sm:$0xff]  ;;  %v11054_v37 = vcombine.high %v4372_v31, %v4376_v38  ;;  %v11053_v44 = vcombine.low %v4372_v31, %v4376_v38  ;;  %v4428_v38 = vld [vmem:[#allocation8 + $0xa80] sm:$0xff] }
 0x3bc   : > { %v11056_v39 = vcombine.high %v4373_v32, %v4377_v33  ;;  %v11055_v47 = vcombine.low %v4373_v32, %v4377_v33  ;;  %v4432_v32 = vld [vmem:[#allocation8 + $0xaa0] sm:$0xff]  ;;  %v4429_v33 = vld [vmem:[#allocation8 + $0xa88] sm:$0xff] }
 0x3bd   : > { %7272 = vmatpush1.bf16.msra.mxu0 %v10997_v40  ;;  %v4380_v40 = vld [vmem:[#allocation8 + $0x900] sm:$0xff] }
 0x3be   : > { %7436 = vmatpush1.bf16.msra.mxu1 %v10999_v42  ;;  %7273 = vmatprep.subr.bf16.mxu0 %v11006_v55  ;;  %v4384_v42 = vld [vmem:[#allocation8 + $0x920] sm:$0xff]  ;;  %v4381_v55 = vld [vmem:[#allocation8 + $0x908] sm:$0xff] }
 0x3bf   : > { %7437 = vmatprep.subr.bf16.mxu1 %v11008_v43  ;;  %v4385_v43 = vld [vmem:[#allocation8 + $0x928] sm:$0xff]  ;;  %v11062_v48 = vcombine.high %v4380_v40, %v4384_v42 }
 0x3c0   : > { %v11064_v0 = vcombine.high %v4381_v55, %v4385_v43  ;;  %v11063_v53 = vcombine.low %v4381_v55, %v4385_v43  ;;  %v4440_v55 = vld [vmem:[#allocation8 + $0xae0] sm:$0xff]  ;;  %v4437_v43 = vld [vmem:[#allocation8 + $0xac8] sm:$0xff] }
 0x3c1   : > { %7274 = vmatpush1.bf16.msra.mxu0 %v11005_v49  ;;  %v4388_v49 = vld [vmem:[#allocation8 + $0x940] sm:$0xff] }
 0x3c2   : > { %7438 = vmatpush1.bf16.msra.mxu1 %v11007_v50  ;;  %7275 = vmatprep.subr.bf16.mxu0 %v11014_v51  ;;  %v4389_v50 = vld [vmem:[#allocation8 + $0x948] sm:$0xff]  ;;  %v11070_v9 = vcombine.high %v4388_v49, %v4392_v45 }
 0x3c3   : > { %7439 = vmatprep.subr.bf16.mxu1 %v11016_v52  ;;  %v4393_v51 = vld [vmem:[#allocation8 + $0x968] sm:$0xff]  ;;  %v11061_v52 = vcombine.low %v4380_v40, %v4384_v42  ;;  %v4436_v42 = vld [vmem:[#allocation8 + $0xac0] sm:$0xff] }
 0x3c4   : > { %v11072_v58 = vcombine.high %v4389_v50, %v4393_v51 }
 0x3c5   : > { %7276 = vmatpush1.bf16.msra.mxu0 %v11013_v61  ;;  %v4400_v61 = vld [vmem:[#allocation8 + $0x9a0] sm:$0xff] }
 0x3c6   : > { %7440 = vmatpush1.bf16.msra.mxu1 %v11015_v1  ;;  %7277 = vmatprep.subr.bf16.mxu0 %v11022_v2  ;;  %v4401_v1 = vld [vmem:[#allocation8 + $0x9a8] sm:$0xff]  ;;  %v11069_v2 = vcombine.low %v4388_v49, %v4392_v45  ;;  %v11078_v3 = vcombine.high %v4396_v59, %v4400_v61  ;;  %v4444_v45 = vld [vmem:[#allocation8 + $0xb00] sm:$0xff] }
 0x3c7   : > { %7441 = vmatprep.subr.bf16.mxu1 %v11024_v60  ;;  %v11071_v60 = vcombine.low %v4389_v50, %v4393_v51  ;;  %v11080_v5 = vcombine.high %v4397_v63, %v4401_v1  ;;  %v4448_v50 = vld [vmem:[#allocation8 + $0xb20] sm:$0xff]  ;;  %v4445_v51 = vld [vmem:[#allocation8 + $0xb08] sm:$0xff] }
 0x3c9   : > { %7278 = vmatpush1.bf16.msra.mxu0 %v11021_v8  ;;  %v4405_v8 = vld [vmem:[#allocation8 + $0x9c8] sm:$0xff] }
 0x3ca   : > { %7442 = vmatpush1.bf16.msra.mxu1 %v11023_v11  ;;  %7288 = vmatprep.subr.bf16.mxu0 %v11030_v13  ;;  %v11077_v11 = vcombine.low %v4396_v59, %v4400_v61  ;;  %v11079_v13 = vcombine.low %v4397_v63, %v4401_v1  ;;  %v11088_v4 = vcombine.high %v4405_v8, %v4409_v10  ;;  %v4452_v61 = vld [vmem:[#allocation8 + $0xb40] sm:$0xff]  ;;  %v4453_v1 = vld [vmem:[#allocation8 + $0xb48] sm:$0xff] }
 0x3cb   : > { %7452 = vmatprep.subr.bf16.mxu1 %v11032_v57  ;;  %v11086_v57 = vcombine.high %v4404_v6, %v4408_v7  ;;  %v4456_v63 = vld [vmem:[#allocation8 + $0xb60] sm:$0xff] }
 0x3cc   : > { %7280 = vmatmul.mubr.bf16.vlgmr.msra.gmra.mrb[8].mxu0 %v13378_v18 }
 0x3cd   : > { %7444 = vmatmul.mubr.bf16.vlgmr.msra.gmra.mrb[8].mxu1 %v13378_v18  ;;  %7289 = vmatpush1.bf16.msra.mxu0 %v11029_v17  ;;  %v4417_v17 = vld [vmem:[#allocation8 + $0xa28] sm:$0xff] }
 0x3ce   : > { %7453 = vmatpush1.bf16.msra.mxu1 %v11031_v19  ;;  %7290 = vmatprep.subr.bf16.mxu0 %v11038_v21  ;;  %v11085_v19 = vcombine.low %v4404_v6, %v4408_v7  ;;  %v11087_v21 = vcombine.low %v4405_v8, %v4409_v10  ;;  %v11096_v24 = vcombine.high %v4413_v12, %v4417_v17  ;;  %v4460_v7 = vld [vmem:[#allocation8 + $0xb80] sm:$0xff]  ;;  %v4461_v10 = vld [vmem:[#allocation8 + $0xb88] sm:$0xff] }
 0x3cf   : > { %7454 = vmatprep.subr.bf16.mxu1 %v11040_v22  ;;  %v11094_v22 = vcombine.high %v4412_v14, %v4416_v16  ;;  %v4464_v8 = vld [vmem:[#allocation8 + $0xba0] sm:$0xff] }
 0x3d1   : > { %7291 = vmatpush1.bf16.msra.mxu0 %v11037_v23  ;;  %v4425_v23 = vld [vmem:[#allocation8 + $0xa68] sm:$0xff] }
 0x3d2   : > { %7455 = vmatpush1.bf16.msra.mxu1 %v11039_v28  ;;  %7292 = vmatprep.subr.bf16.mxu0 %v11046_v29  ;;  %v11093_v28 = vcombine.low %v4412_v14, %v4416_v16  ;;  %v11095_v29 = vcombine.low %v4413_v12, %v4417_v17  ;;  %v11104_v31 = vcombine.high %v4421_v25, %v4425_v23  ;;  %v4468_v16 = vld [vmem:[#allocation8 + $0xbc0] sm:$0xff]  ;;  %v4469_v17 = vld [vmem:[#allocation8 + $0xbc8] sm:$0xff] }
 0x3d3   : > { %7456 = vmatprep.subr.bf16.mxu1 %v11048_v30  ;;  %v11102_v30 = vcombine.high %v4420_v26, %v4424_v27  ;;  %v4472_v12 = vld [vmem:[#allocation8 + $0xbe0] sm:$0xff] }
 0x3d5   : > { %7293 = vmatpush1.bf16.msra.mxu0 %v11045_v35  ;;  %v4433_v35 = vld [vmem:[#allocation8 + $0xaa8] sm:$0xff] }
 0x3d6   : > { %7457 = vmatpush1.bf16.msra.mxu1 %v11047_v34  ;;  %7294 = vmatprep.subr.bf16.mxu0 %v11054_v37  ;;  %v11101_v34 = vcombine.low %v4420_v26, %v4424_v27  ;;  %v11103_v37 = vcombine.low %v4421_v25, %v4425_v23  ;;  %v11112_v40 = vcombine.high %v4429_v33, %v4433_v35  ;;  %v4476_v27 = vld [vmem:[#allocation8 + $0xc00] sm:$0xff]  ;;  %v4477_v23 = vld [vmem:[#allocation8 + $0xc08] sm:$0xff] }
 0x3d7   : > { %7458 = vmatprep.subr.bf16.mxu1 %v11056_v39  ;;  %v11110_v39 = vcombine.high %v4428_v38, %v4432_v32  ;;  %v4480_v25 = vld [vmem:[#allocation8 + $0xc20] sm:$0xff] }
 0x3d9   : > { %7295 = vmatpush1.bf16.msra.mxu0 %v11053_v44  ;;  %v4441_v44 = vld [vmem:[#allocation8 + $0xae8] sm:$0xff] }
 0x3da   : > { %7459 = vmatpush1.bf16.msra.mxu1 %v11055_v47  ;;  %7296 = vmatprep.subr.bf16.mxu0 %v11062_v48  ;;  %v11109_v47 = vcombine.low %v4428_v38, %v4432_v32  ;;  %v11111_v48 = vcombine.low %v4429_v33, %v4433_v35  ;;  %v11120_v49 = vcombine.high %v4437_v43, %v4441_v44  ;;  %v1158_v32 = vsub.s32 4, %v13333_v46 }
 0x3db   : > { %7460 = vmatprep.subr.bf16.mxu1 %v11064_v0  ;;  %v11118_v0 = vcombine.high %v4436_v42, %v4440_v55  ;;  %v1162_v33 = vsub.s32 5, %v13333_v46  ;;  %v1170_v35 = vsub.s32 7, %v13333_v46 }
 0x3dd   : > { %7297 = vmatpush1.bf16.msra.mxu0 %v11061_v52  ;;  %v4449_v52 = vld [vmem:[#allocation8 + $0xb28] sm:$0xff] }
 0x3de   : > { %7461 = vmatpush1.bf16.msra.mxu1 %v11063_v53  ;;  %7298 = vmatprep.subr.bf16.mxu0 %v11070_v9  ;;  %v11117_v53 = vcombine.low %v4436_v42, %v4440_v55  ;;  %v11119_v9 = vcombine.low %v4437_v43, %v4441_v44  ;;  %v11128_v59 = vcombine.high %v4445_v51, %v4449_v52 }
 0x3df   : > { %7462 = vmatprep.subr.bf16.mxu1 %v11072_v58  ;;  %v11126_v58 = vcombine.high %v4444_v45, %v4448_v50 }
 0x3e1   : > { %7299 = vmatpush1.bf16.msra.mxu0 %v11069_v2  ;;  %v4457_v2 = vld [vmem:[#allocation8 + $0xb68] sm:$0xff] }
 0x3e2   : > { %7463 = vmatpush1.bf16.msra.mxu1 %v11071_v60  ;;  %7300 = vmatprep.subr.bf16.mxu0 %v11078_v3  ;;  %v11125_v60 = vcombine.low %v4444_v45, %v4448_v50  ;;  %v11127_v3 = vcombine.low %v4445_v51, %v4449_v52  ;;  %v11136_v6 = vcombine.high %v4453_v1, %v4457_v2 }
 0x3e3   : > { %7464 = vmatprep.subr.bf16.mxu1 %v11080_v5  ;;  %v11134_v5 = vcombine.high %v4452_v61, %v4456_v63 }
 0x3e5   : > { %7301 = vmatpush1.bf16.msra.mxu0 %v11077_v11  ;;  %v4465_v11 = vld [vmem:[#allocation8 + $0xba8] sm:$0xff] }
 0x3e6   : > { %7465 = vmatpush1.bf16.msra.mxu1 %v11079_v13  ;;  %7302 = vmatprep.subr.bf16.mxu0 %v11086_v57  ;;  %v11133_v13 = vcombine.low %v4452_v61, %v4456_v63  ;;  %v11135_v57 = vcombine.low %v4453_v1, %v4457_v2  ;;  %v11144_v14 = vcombine.high %v4461_v10, %v4465_v11  ;;  %v4485_v61 = vld [vmem:[#allocation8 + $0xc48] sm:$0xff] }
 0x3e7   : > { %7466 = vmatprep.subr.bf16.mxu1 %v11088_v4  ;;  %v11142_v4 = vcombine.high %v4460_v7, %v4464_v8  ;;  %v4489_v63 = vld [vmem:[#allocation8 + $0xc68] sm:$0xff]  ;;  %v11157_v2 = vcombine.low %v4476_v27, %v4480_v25 }
 0x3e9   : > { %7303 = vmatpush1.bf16.msra.mxu0 %v11085_v19  ;;  %v4473_v19 = vld [vmem:[#allocation8 + $0xbe8] sm:$0xff] }
 0x3ea   : > { %7467 = vmatpush1.bf16.msra.mxu1 %v11087_v21  ;;  %7304 = vmatprep.subr.bf16.mxu0 %v11094_v22  ;;  %v11141_v21 = vcombine.low %v4460_v7, %v4464_v8  ;;  %v11143_v22 = vcombine.low %v4461_v10, %v4465_v11  ;;  %v11152_v26 = vcombine.high %v4469_v17, %v4473_v19  ;;  %v4496_v8 = vld [vmem:[#allocation8 + $0xca0] sm:$0xff]  ;;  %v4493_v10 = vld [vmem:[#allocation8 + $0xc88] sm:$0xff] }
 0x3eb   : > { %7468 = vmatprep.subr.bf16.mxu1 %v11096_v24  ;;  %v11150_v24 = vcombine.high %v4468_v16, %v4472_v12  ;;  %v11168_v7 = vcombine.high %v4485_v61, %v4489_v63  ;;  %v4497_v11 = vld [vmem:[#allocation8 + $0xca8] sm:$0xff] }
 0x3ed   : > { %7305 = vmatpush1.bf16.msra.mxu0 %v11093_v28  ;;  %v4481_v28 = vld [vmem:[#allocation8 + $0xc28] sm:$0xff] }
 0x3ee   : > { %7469 = vmatpush1.bf16.msra.mxu1 %v11095_v29  ;;  %7306 = vmatprep.subr.bf16.mxu0 %v11102_v30  ;;  %v11149_v29 = vcombine.low %v4468_v16, %v4472_v12  ;;  %v11151_v30 = vcombine.low %v4469_v17, %v4473_v19  ;;  %v11160_v38 = vcombine.high %v4477_v23, %v4481_v28  ;;  %v4500_v12 = vld [vmem:[#allocation8 + $0xcc0] sm:$0xff]  ;;  %v4501_v19 = vld [vmem:[#allocation8 + $0xcc8] sm:$0xff] }
 0x3ef   : > { %7470 = vmatprep.subr.bf16.mxu1 %v11104_v31  ;;  %v11158_v31 = vcombine.high %v4476_v27, %v4480_v25  ;;  %v11176_v16 = vcombine.high %v4493_v10, %v4497_v11  ;;  %v4504_v17 = vld [vmem:[#allocation8 + $0xce0] sm:$0xff] }
 0x3f0   : > { %v4508_v25 = vld [vmem:[#allocation8 + $0xd00] sm:$0xff] }
 0x3f1   : > { %7307 = vmatpush1.bf16.msra.mxu0 %v11101_v34  ;;  %v13385_v34 = vld [vmem:[#allocation7] sm:$0xff] }
 0x3f2   : > { %7471 = vmatpush1.bf16.msra.mxu1 %v11103_v37  ;;  %7308 = vmatprep.subr.bf16.mxu0 %v11110_v39  ;;  %v1159_v37 = vrot.slane %v13385_v34, %v1158_v32  ;;  %v1163_v39 = vrot.slane %v13385_v34, %v1162_v33 }
 0x3f3   : > { %7472 = vmatprep.subr.bf16.mxu1 %v11112_v40  ;;  %v1171_v40 = vrot.slane %v13385_v34, %v1170_v35 }
 0x3f5   : > { %7309 = vmatpush1.bf16.msra.mxu0 %v11109_v47 }
 0x3f6   : > { %7473 = vmatpush1.bf16.msra.mxu1 %v11111_v48  ;;  %7310 = vmatprep.subr.bf16.mxu0 %v11118_v0 }
 0x3f7   : > { %7474 = vmatprep.subr.bf16.mxu1 %v11120_v49 }
 0x3f9   : > { %7311 = vmatpush1.bf16.msra.mxu0 %v11117_v53 }
 0x3fa   : > { %7475 = vmatpush1.bf16.msra.mxu1 %v11119_v9  ;;  %7312 = vmatprep.subr.bf16.mxu0 %v11126_v58  ;;  %v4484_v9 = vld [vmem:[#allocation8 + $0xc40] sm:$0xff] }
 0x3fb   : > { %7476 = vmatprep.subr.bf16.mxu1 %v11128_v59  ;;  %v4488_v59 = vld [vmem:[#allocation8 + $0xc60] sm:$0xff] }
 0x3fd   : > { %7313 = vmatpush1.bf16.msra.mxu0 %v11125_v60  ;;  %v11159_v60 = vcombine.low %v4477_v23, %v4481_v28  ;;  %v4512_v23 = vld [vmem:[#allocation8 + $0xd20] sm:$0xff]  ;;  %v4509_v28 = vld [vmem:[#allocation8 + $0xd08] sm:$0xff] }
 0x3fe   : > { %7477 = vmatpush1.bf16.msra.mxu1 %v11127_v3  ;;  %7314 = vmatprep.subr.bf16.mxu0 %v11134_v5  ;;  %v4492_v5 = vld [vmem:[#allocation8 + $0xc80] sm:$0xff] }
 0x3ff   : > { %7478 = vmatprep.subr.bf16.mxu1 %v11136_v6  ;;  %v11166_v6 = vcombine.high %v4484_v9, %v4488_v59 }
 0x401   : > { %7315 = vmatpush1.bf16.msra.mxu0 %v11133_v13 }
 0x402   : > { %7479 = vmatpush1.bf16.msra.mxu1 %v11135_v57  ;;  %7316 = vmatprep.subr.bf16.mxu0 %v11142_v4  ;;  %v11165_v57 = vcombine.low %v4484_v9, %v4488_v59  ;;  %v11167_v4 = vcombine.low %v4485_v61, %v4489_v63  ;;  %v4532_v59 = vld [vmem:[#allocation8 + $0xdc0] sm:$0xff]  ;;  %v4533_v63 = vld [vmem:[#allocation8 + $0xdc8] sm:$0xff] }
 0x403   : > { %7480 = vmatprep.subr.bf16.mxu1 %v11144_v14  ;;  %v11174_v14 = vcombine.high %v4492_v5, %v4496_v8  ;;  %v4536_v61 = vld [vmem:[#allocation8 + $0xde0] sm:$0xff] }
 0x405   : > { %7317 = vmatpush1.bf16.msra.mxu0 %v11141_v21  ;;  %v4505_v21 = vld [vmem:[#allocation8 + $0xce8] sm:$0xff] }
 0x406   : > { %7481 = vmatpush1.bf16.msra.mxu1 %v11143_v22  ;;  %7318 = vmatprep.subr.bf16.mxu0 %v11150_v24  ;;  %v11173_v22 = vcombine.low %v4492_v5, %v4496_v8  ;;  %v11175_v24 = vcombine.low %v4493_v10, %v4497_v11  ;;  %v11184_v27 = vcombine.high %v4501_v19, %v4505_v21  ;;  %v4540_v8 = vld [vmem:[#allocation8 + $0xe00] sm:$0xff]  ;;  %v4541_v11 = vld [vmem:[#allocation8 + $0xe08] sm:$0xff] }
 0x407   : > { %7482 = vmatprep.subr.bf16.mxu1 %v11152_v26  ;;  %v11182_v26 = vcombine.high %v4500_v12, %v4504_v17  ;;  %v4544_v10 = vld [vmem:[#allocation8 + $0xe20] sm:$0xff] }
 0x409   : > { %7319 = vmatpush1.bf16.msra.mxu0 %v11149_v29  ;;  %v4513_v29 = vld [vmem:[#allocation8 + $0xd28] sm:$0xff] }
 0x40a   : > { %7483 = vmatpush1.bf16.msra.mxu1 %v11151_v30  ;;  %7329 = vmatprep.subr.bf16.mxu0 %v11158_v31  ;;  %v11181_v30 = vcombine.low %v4500_v12, %v4504_v17  ;;  %v11183_v31 = vcombine.low %v4501_v19, %v4505_v21  ;;  %v4548_v17 = vld [vmem:[#allocation8 + $0xe40] sm:$0xff]  ;;  %v4549_v21 = vld [vmem:[#allocation8 + $0xe48] sm:$0xff] }
 0x40b   : > { %7493 = vmatprep.subr.bf16.mxu1 %v11160_v38  ;;  %v11190_v38 = vcombine.high %v4508_v25, %v4512_v23  ;;  %v4552_v19 = vld [vmem:[#allocation8 + $0xe60] sm:$0xff] }
 0x41f   : > { %v3905_v42 = vpop.f32.mrb[4].mxu0  ;;  %v13396_v43 = vpop.f32.mrb[4].mxu1 }
 0x420   : > { %v11599_v55 = vadd.f32 %v3905_v42, %v1159_v37  ;;  %v3907_v44 = vpop.f32.mrb[5].mxu0  ;;  %v4071_v48 = vpop.f32.mrb[5].mxu1  ;;  %v11192_v37 = vcombine.high %v4509_v28, %v4513_v29  ;;  %v4517_v42 = vld [vmem:[#allocation8 + $0xd48] sm:$0xff] }
 0x421   : > { %v11600_v47 = vadd.f32 %v3907_v44, %v1163_v39  ;;  %v3909_v0 = vpop.f32.mrb[6].mxu0  ;;  %v11602_v45 = vadd.f32 %v4071_v48, %v1171_v40  ;;  %v4073_v50 = vpop.f32.mrb[6].mxu1  ;;  %v4516_v39 = vld [vmem:[#allocation8 + $0xd40] sm:$0xff]  ;;  %v11189_v44 = vcombine.low %v4508_v25, %v4512_v23 }
 0x422   : > { %v4080_v49 = vmax.f32 %v11599_v55, 0.0  ;;  %v3910_v51 = vpop.f32.mrb[7].mxu0  ;;  %v4074_v53 = vpop.f32.mrb[7].mxu1  ;;  %v4520_v40 = vld [vmem:[#allocation8 + $0xd60] sm:$0xff]  ;;  %v4521_v55 = vld [vmem:[#allocation8 + $0xd68] sm:$0xff] }
 0x423   : > { %v4081_v52 = vmax.f32 %v11600_v47, 0.0  ;;  %v4083_v58 = vmax.f32 %v11602_v45, 0.0  ;;  %v11191_v47 = vcombine.low %v4509_v28, %v4513_v29  ;;  %v11198_v48 = vcombine.high %v4516_v39, %v4520_v40  ;;  %v4528_v45 = vld [vmem:[#allocation8 + $0xda0] sm:$0xff]  ;;  %v4525_v50 = vld [vmem:[#allocation8 + $0xd88] sm:$0xff] }
 0x424   : > { %v13400_v3 = vpack.c.bf16 %v4080_v49, %v4080_v49  ;;  %v11200_v0 = vcombine.high %v4517_v42, %v4521_v55  ;;  %v4524_v49 = vld [vmem:[#allocation8 + $0xd80] sm:$0xff]  ;;  %v4529_v51 = vld [vmem:[#allocation8 + $0xda8] sm:$0xff]  ;;  %v11199_v53 = vcombine.low %v4517_v42, %v4521_v55 }
 0x425   : > { %v13398_v1 = vpack.c.bf16 %v4081_v52, %v4081_v52  ;;  %v13404_v13 = vpack.c.bf16 %v4083_v58, %v4083_v58  ;;  %v11197_v52 = vcombine.low %v4516_v39, %v4520_v40  ;;  %v11206_v9 = vcombine.high %v4524_v49, %v4528_v45  ;;  %v4556_v23 = vld [vmem:[#allocation8 + $0xe80] sm:$0xff]  ;;  %v4557_v29 = vld [vmem:[#allocation8 + $0xe88] sm:$0xff] }
 0x426   : > { %v11208_v58 = vcombine.high %v4525_v50, %v4529_v51  ;;  %v11207_v5 = vcombine.low %v4525_v50, %v4529_v51  ;;  %v4560_v28 = vld [vmem:[#allocation8 + $0xea0] sm:$0xff]  ;;  %v4565_v55 = vld [vmem:[#allocation8 + $0xec8] sm:$0xff] }
 0x427   : > { %7320 = vmatprep.mubr.bf16.mxu0 %v13398_v1  ;;  %7484 = vmatprep.mubr.bf16.mxu1 %v13398_v1  ;;  %v4564_v40 = vld [vmem:[#allocation8 + $0xec0] sm:$0xff]  ;;  %v4573_v51 = vld [vmem:[#allocation8 + $0xf08] sm:$0xff] }
 0x428   : > { %7321 = vmatmul.mubr.bf16.vlgmr.msra.gmra.mrb[8].mxu0 %v13400_v3  ;;  %7485 = vmatmul.mubr.bf16.vlgmr.msra.gmra.mrb[8].mxu1 %v13400_v3  ;;  %v4568_v42 = vld [vmem:[#allocation8 + $0xee0] sm:$0xff] }
 0x429   : > { %7330 = vmatpush1.bf16.msra.mxu0 %v11157_v2  ;;  %7494 = vmatpush1.bf16.msra.mxu1 %v11159_v60  ;;  %v4537_v2 = vld [vmem:[#allocation8 + $0xde8] sm:$0xff]  ;;  %v11205_v60 = vcombine.low %v4524_v49, %v4528_v45  ;;  %v4572_v45 = vld [vmem:[#allocation8 + $0xf00] sm:$0xff] }
 0x42a   : > { %7361 = vmatprep.mubr.bf16.mxu0 %v13404_v13  ;;  %7525 = vmatprep.mubr.bf16.mxu1 %v13404_v13  ;;  %v4576_v50 = vld [vmem:[#allocation8 + $0xf20] sm:$0xff] }
 0x42b   : > { %7331 = vmatprep.subr.bf16.mxu0 %v11166_v6  ;;  %7495 = vmatprep.subr.bf16.mxu1 %v11168_v7  ;;  %v11214_v6 = vcombine.high %v4532_v59, %v4536_v61  ;;  %v11216_v7 = vcombine.high %v4533_v63, %v4537_v2 }
 0x42d   : > { %7332 = vmatpush1.bf16.msra.mxu0 %v11165_v57  ;;  %7496 = vmatpush1.bf16.msra.mxu1 %v11167_v4  ;;  %v4545_v57 = vld [vmem:[#allocation8 + $0xe28] sm:$0xff]  ;;  %v11213_v4 = vcombine.low %v4532_v59, %v4536_v61  ;;  %v4580_v61 = vld [vmem:[#allocation8 + $0xf40] sm:$0xff] }
 0x42e   : > { %7333 = vmatprep.subr.bf16.mxu0 %v11174_v14  ;;  %7497 = vmatprep.subr.bf16.mxu1 %v11176_v16  ;;  %v11215_v14 = vcombine.low %v4533_v63, %v4537_v2  ;;  %v11222_v16 = vcombine.high %v4540_v8, %v4544_v10  ;;  %v11224_v12 = vcombine.high %v4541_v11, %v4545_v57  ;;  %v4584_v63 = vld [vmem:[#allocation8 + $0xf60] sm:$0xff]  ;;  %v4581_v2 = vld [vmem:[#allocation8 + $0xf48] sm:$0xff] }
 0x431   : > { %7334 = vmatpush1.bf16.msra.mxu0 %v11173_v22  ;;  %7498 = vmatpush1.bf16.msra.mxu1 %v11175_v24  ;;  %v4553_v22 = vld [vmem:[#allocation8 + $0xe68] sm:$0xff]  ;;  %v11221_v24 = vcombine.low %v4540_v8, %v4544_v10  ;;  %v11262_v8 = vcombine.high %v4580_v61, %v4584_v63 }
 0x432   : > { %7335 = vmatprep.subr.bf16.mxu0 %v11182_v26  ;;  %7499 = vmatprep.subr.bf16.mxu1 %v11184_v27  ;;  %v11223_v26 = vcombine.low %v4541_v11, %v4545_v57  ;;  %v11230_v27 = vcombine.high %v4548_v17, %v4552_v19  ;;  %v11232_v25 = vcombine.high %v4549_v21, %v4553_v22  ;;  %v4588_v11 = vld [vmem:[#allocation8 + $0xf80] sm:$0xff] }
 0x433   : > { %v4592_v57 = vld [vmem:[#allocation8 + $0xfa0] sm:$0xff] }
 0x435   : > { %7336 = vmatpush1.bf16.msra.mxu0 %v11181_v30  ;;  %7500 = vmatpush1.bf16.msra.mxu1 %v11183_v31  ;;  %v4561_v30 = vld [vmem:[#allocation8 + $0xea8] sm:$0xff]  ;;  %v11229_v31 = vcombine.low %v4548_v17, %v4552_v19  ;;  %v11270_v19 = vcombine.high %v4588_v11, %v4592_v57 }
 0x436   : > { %7337 = vmatprep.subr.bf16.mxu0 %v11190_v38  ;;  %7501 = vmatprep.subr.bf16.mxu1 %v11192_v37  ;;  %v11231_v38 = vcombine.low %v4549_v21, %v4553_v22  ;;  %v11238_v37 = vcombine.high %v4556_v23, %v4560_v28  ;;  %v11240_v39 = vcombine.high %v4557_v29, %v4561_v30  ;;  %v4596_v22 = vld [vmem:[#allocation8 + $0xfc0] sm:$0xff] }
 0x439   : > { %7338 = vmatpush1.bf16.msra.mxu0 %v11189_v44  ;;  %7502 = vmatpush1.bf16.msra.mxu1 %v11191_v47  ;;  %v4569_v44 = vld [vmem:[#allocation8 + $0xee8] sm:$0xff]  ;;  %v11237_v47 = vcombine.low %v4556_v23, %v4560_v28 }
 0x43a   : > { %7339 = vmatprep.subr.bf16.mxu0 %v11198_v48  ;;  %7503 = vmatprep.subr.bf16.mxu1 %v11200_v0  ;;  %v11239_v48 = vcombine.low %v4557_v29, %v4561_v30  ;;  %v11246_v0 = vcombine.high %v4564_v40, %v4568_v42  ;;  %v11248_v49 = vcombine.high %v4565_v55, %v4569_v44 }
 0x43d   : > { %7340 = vmatpush1.bf16.msra.mxu0 %v11197_v52  ;;  %7504 = vmatpush1.bf16.msra.mxu1 %v11199_v53  ;;  %v4577_v52 = vld [vmem:[#allocation8 + $0xf28] sm:$0xff]  ;;  %v11245_v53 = vcombine.low %v4564_v40, %v4568_v42 }
 0x43e   : > { %7341 = vmatprep.subr.bf16.mxu0 %v11206_v9  ;;  %7505 = vmatprep.subr.bf16.mxu1 %v11208_v58  ;;  %v11247_v9 = vcombine.low %v4565_v55, %v4569_v44  ;;  %v11254_v58 = vcombine.high %v4572_v45, %v4576_v50  ;;  %v11256_v59 = vcombine.high %v4573_v51, %v4577_v52 }
 0x441   : > { %7342 = vmatpush1.bf16.msra.mxu0 %v11205_v60  ;;  %7506 = vmatpush1.bf16.msra.mxu1 %v11207_v5  ;;  %v4585_v60 = vld [vmem:[#allocation8 + $0xf68] sm:$0xff]  ;;  %v11253_v5 = vcombine.low %v4572_v45, %v4576_v50 }
 0x442   : > { %7343 = vmatprep.subr.bf16.mxu0 %v11214_v6  ;;  %7507 = vmatprep.subr.bf16.mxu1 %v11216_v7  ;;  %v11255_v6 = vcombine.low %v4573_v51, %v4577_v52  ;;  %v1166_v7 = vsub.s32 6, %v13333_v46  ;;  %v11264_v10 = vcombine.high %v4581_v2, %v4585_v60  ;;  %v12271_v46 = vld [vmem:[#allocation11 + $0x3f0] ss:$8 sps:$4 sm:$0xff]  }
 0x444   : > { %v1167_v17 = vrot.slane %v13385_v34, %v1166_v7  ;;  %v4098_v34 = vld [vmem:[#allocation8 + $0x30] sm:$0xff] }
 0x445   : > { %7344 = vmatpush1.bf16.msra.mxu0 %v11213_v4  ;;  %7508 = vmatpush1.bf16.msra.mxu1 %v11215_v14  ;;  %v4589_v4 = vld [vmem:[#allocation8 + $0xf88] sm:$0xff] }
 0x446   : > { %7345 = vmatprep.subr.bf16.mxu0 %v11222_v16  ;;  %7509 = vmatprep.subr.bf16.mxu1 %v11224_v12  ;;  %v4593_v14 = vld [vmem:[#allocation8 + $0xfa8] sm:$0xff]  ;;  %v11261_v16 = vcombine.low %v4580_v61, %v4584_v63  ;;  %v11263_v12 = vcombine.low %v4581_v2, %v4585_v60  ;;  %v11601_v28 = vadd.f32 %v13396_v43, %v1167_v17  ;;  %v4103_v43 = vld [vmem:[#allocation8 + $0x58] sm:$0xff] }
 0x447   : > { %v11272_v21 = vcombine.high %v4589_v4, %v4593_v14  ;;  %v11271_v23 = vcombine.low %v4589_v4, %v4593_v14  ;;  %v4131_v17 = vld [vmem:[#allocation8 + $0x138] sm:$0xff] }
 0x448   : > { %v4082_v42 = vmax.f32 %v11601_v28, 0.0 }
 0x449   : > { %7346 = vmatpush1.bf16.msra.mxu0 %v11221_v24  ;;  %7510 = vmatpush1.bf16.msra.mxu1 %v11223_v26  ;;  %v4600_v24 = vld [vmem:[#allocation8 + $0xfe0] sm:$0xff]  ;;  %v4597_v26 = vld [vmem:[#allocation8 + $0xfc8] sm:$0xff] }
 0x44a   : > { %7347 = vmatprep.subr.bf16.mxu0 %v11230_v27  ;;  %7511 = vmatprep.subr.bf16.mxu1 %v11232_v25  ;;  %v4601_v27 = vld [vmem:[#allocation8 + $0xfe8] sm:$0xff]  ;;  %v11269_v25 = vcombine.low %v4588_v11, %v4592_v57  ;;  %v11278_v29 = vcombine.high %v4596_v22, %v4600_v24  ;;  %v13415_v45 = vpack.c.bf16 %v4082_v42, %v4082_v42 }
 0x44b   : > { %v11280_v30 = vcombine.high %v4597_v26, %v4601_v27  ;;  %v11279_v40 = vcombine.low %v4597_v26, %v4601_v27  ;;  %v4134_v26 = vld [vmem:[#allocation8 + $0x150] sm:$0xff] }
 0x44c   : > { %v4138_v27 = vld [vmem:[#allocation8 + $0x170] sm:$0xff] }
 0x44d   : > { %7348 = vmatpush1.bf16.msra.mxu0 %v11229_v31  ;;  %7512 = vmatpush1.bf16.msra.mxu1 %v11231_v38  ;;  %v4094_v31 = vld [vmem:[#allocation8 + $0x10] sm:$0xff]  ;;  %v4095_v38 = vld [vmem:[#allocation8 + $0x18] sm:$0xff] }
 0x44e   : > { %7349 = vmatprep.subr.bf16.mxu0 %v11238_v37  ;;  %7513 = vmatprep.subr.bf16.mxu1 %v11240_v39  ;;  %v4099_v37 = vld [vmem:[#allocation8 + $0x38] sm:$0xff]  ;;  %v11277_v39 = vcombine.low %v4596_v22, %v4600_v24  ;;  %v10778_v55 = vcombine.high %v4094_v31, %v4098_v34 }
 0x44f   : > { %v10780_v44 = vcombine.high %v4095_v38, %v4099_v37  ;;  %v10779_v50 = vcombine.low %v4095_v38, %v4099_v37  ;;  %v4146_v38 = vld [vmem:[#allocation8 + $0x1b0] sm:$0xff]  ;;  %v4143_v37 = vld [vmem:[#allocation8 + $0x198] sm:$0xff] }
 0x451   : > { %7350 = vmatpush1.bf16.msra.mxu0 %v11237_v47  ;;  %7514 = vmatpush1.bf16.msra.mxu1 %v11239_v48  ;;  %v4102_v47 = vld [vmem:[#allocation8 + $0x50] sm:$0xff] }
 0x452   : > { %7351 = vmatprep.subr.bf16.mxu0 %v11246_v0  ;;  %7515 = vmatprep.subr.bf16.mxu1 %v11248_v49  ;;  %v4106_v48 = vld [vmem:[#allocation8 + $0x70] sm:$0xff]  ;;  %v4107_v0 = vld [vmem:[#allocation8 + $0x78] sm:$0xff]  ;;  %v10777_v49 = vcombine.low %v4094_v31, %v4098_v34 }
 0x453   : > { %v10786_v51 = vcombine.high %v4102_v47, %v4106_v48  ;;  %v10788_v52 = vcombine.high %v4103_v43, %v4107_v0  ;;  %v10785_v61 = vcombine.low %v4102_v47, %v4106_v48  ;;  %v10787_v63 = vcombine.low %v4103_v43, %v4107_v0  ;;  %v4142_v34 = vld [vmem:[#allocation8 + $0x190] sm:$0xff]  ;;  %v4151_v43 = vld [vmem:[#allocation8 + $0x1d8] sm:$0xff] }
 0x454   : > { %v4150_v47 = vld [vmem:[#allocation8 + $0x1d0] sm:$0xff]  ;;  %v4155_v0 = vld [vmem:[#allocation8 + $0x1f8] sm:$0xff] }
 0x455   : > { %7352 = vmatpush1.bf16.msra.mxu0 %v11245_v53  ;;  %7516 = vmatpush1.bf16.msra.mxu1 %v11247_v9  ;;  %v4110_v53 = vld [vmem:[#allocation8 + $0x90] sm:$0xff] }
 0x456   : > { %7353 = vmatprep.subr.bf16.mxu0 %v11254_v58  ;;  %7517 = vmatprep.subr.bf16.mxu1 %v11256_v59  ;;  %v4114_v9 = vld [vmem:[#allocation8 + $0xb0] sm:$0xff]  ;;  %v4111_v58 = vld [vmem:[#allocation8 + $0x98] sm:$0xff] }
 0x457   : > { %v4115_v59 = vld [vmem:[#allocation8 + $0xb8] sm:$0xff]  ;;  %v10794_v2 = vcombine.high %v4110_v53, %v4114_v9  ;;  %v10793_v11 = vcombine.low %v4110_v53, %v4114_v9  ;;  %v4154_v48 = vld [vmem:[#allocation8 + $0x1f0] sm:$0xff] }
 0x458   : > { %v10796_v60 = vcombine.high %v4111_v58, %v4115_v59  ;;  %v10795_v57 = vcombine.low %v4111_v58, %v4115_v59  ;;  %v4158_v53 = vld [vmem:[#allocation8 + $0x210] sm:$0xff]  ;;  %v4159_v58 = vld [vmem:[#allocation8 + $0x218] sm:$0xff] }
 0x459   : > { %7354 = vmatpush1.bf16.msra.mxu0 %v11253_v5  ;;  %7518 = vmatpush1.bf16.msra.mxu1 %v11255_v6  ;;  %v4118_v5 = vld [vmem:[#allocation8 + $0xd0] sm:$0xff]  ;;  %v4163_v59 = vld [vmem:[#allocation8 + $0x238] sm:$0xff] }
 0x45a   : > { %7355 = vmatprep.subr.bf16.mxu0 %v11262_v8  ;;  %7519 = vmatprep.subr.bf16.mxu1 %v11264_v10  ;;  %v4122_v6 = vld [vmem:[#allocation8 + $0xf0] sm:$0xff]  ;;  %v4119_v8 = vld [vmem:[#allocation8 + $0xd8] sm:$0xff] }
 0x45b   : > { %v4123_v10 = vld [vmem:[#allocation8 + $0xf8] sm:$0xff]  ;;  %v10802_v4 = vcombine.high %v4118_v5, %v4122_v6  ;;  %v4162_v9 = vld [vmem:[#allocation8 + $0x230] sm:$0xff] }
 0x45c   : > { %v10804_v14 = vcombine.high %v4119_v8, %v4123_v10 }
 0x45d   : > { %7356 = vmatpush1.bf16.msra.mxu0 %v11261_v16  ;;  %7520 = vmatpush1.bf16.msra.mxu1 %v11263_v12  ;;  %v4126_v16 = vld [vmem:[#allocation8 + $0x110] sm:$0xff] }
 0x45e   : > { %7357 = vmatprep.subr.bf16.mxu0 %v11270_v19  ;;  %7521 = vmatprep.subr.bf16.mxu1 %v11272_v21  ;;  %v4130_v12 = vld [vmem:[#allocation8 + $0x130] sm:$0xff]  ;;  %v10801_v19 = vcombine.low %v4118_v5, %v4122_v6  ;;  %v10803_v21 = vcombine.low %v4119_v8, %v4123_v10  ;;  %v4167_v8 = vld [vmem:[#allocation8 + $0x258] sm:$0xff] }
 0x45f   : > { %v10810_v22 = vcombine.high %v4126_v16, %v4130_v12  ;;  %v10809_v28 = vcombine.low %v4126_v16, %v4130_v12  ;;  %v4166_v5 = vld [vmem:[#allocation8 + $0x250] sm:$0xff]  ;;  %v4171_v10 = vld [vmem:[#allocation8 + $0x278] sm:$0xff] }
 0x460   : > { %v4170_v6 = vld [vmem:[#allocation8 + $0x270] sm:$0xff] }
 0x461   : > { %7358 = vmatpush1.bf16.msra.mxu0 %v11269_v25  ;;  %7522 = vmatpush1.bf16.msra.mxu1 %v11271_v23  ;;  %v4135_v25 = vld [vmem:[#allocation8 + $0x158] sm:$0xff]  ;;  %v4174_v16 = vld [vmem:[#allocation8 + $0x290] sm:$0xff] }
 0x462   : > { %7359 = vmatprep.subr.bf16.mxu0 %v11278_v29  ;;  %7523 = vmatprep.subr.bf16.mxu1 %v11280_v30  ;;  %v4139_v23 = vld [vmem:[#allocation8 + $0x178] sm:$0xff]  ;;  %v10818_v30 = vcombine.high %v4134_v26, %v4138_v27  ;;  %v4178_v12 = vld [vmem:[#allocation8 + $0x2b0] sm:$0xff] }
 0x463   : > { %v10820_v31 = vcombine.high %v4135_v25, %v4139_v23  ;;  %v10819_v42 = vcombine.low %v4135_v25, %v4139_v23  ;;  %v4183_v25 = vld [vmem:[#allocation8 + $0x2d8] sm:$0xff] }
 0x464   : > { %v4187_v23 = vld [vmem:[#allocation8 + $0x2f8] sm:$0xff] }
 0x465   : > { %7360 = vmatpush1.bf16.msra.mxu0 %v11277_v39  ;;  %7524 = vmatpush1.bf16.msra.mxu1 %v11279_v40  ;;  %v4147_v39 = vld [vmem:[#allocation8 + $0x1b8] sm:$0xff]  ;;  %v10817_v40 = vcombine.low %v4134_v26, %v4138_v27  ;;  %v4182_v26 = vld [vmem:[#allocation8 + $0x2d0] sm:$0xff] }
 0x466   : > { %7534 = vmatprep.subr.bf16.mxu0 %v10778_v55  ;;  %7698 = vmatprep.subr.bf16.mxu1 %v10780_v44  ;;  %v10826_v55 = vcombine.high %v4142_v34, %v4146_v38  ;;  %v10828_v44 = vcombine.high %v4143_v37, %v4147_v39  ;;  %v4186_v27 = vld [vmem:[#allocation8 + $0x2f0] sm:$0xff] }
 0x468   : > { %7362 = vmatmul.mubr.bf16.vlgmr.msra.gmra.mrb[8].mxu0 %v13415_v45  ;;  %7526 = vmatmul.mubr.bf16.vlgmr.msra.gmra.mrb[8].mxu1 %v13415_v45 }
 0x469   : > { %7535 = vmatpush1.bf16.msra.mxu0 %v10777_v49  ;;  %7566 = vmatprep.mubr.bf16.mxu0 %v13348_v36  ;;  %v10825_v49 = vcombine.low %v4142_v34, %v4146_v38  ;;  %v4190_v34 = vld [vmem:[#allocation8 + $0x310] sm:$0xff] }
 0x46a   : > { %7699 = vmatpush1.bf16.msra.mxu1 %v10779_v50  ;;  %7730 = vmatprep.mubr.bf16.mxu1 %v13348_v36  ;;  %v4127_v36 = vld [vmem:[#allocation8 + $0x118] sm:$0xff]  ;;  %v10827_v50 = vcombine.low %v4143_v37, %v4147_v39  ;;  %v4194_v38 = vld [vmem:[#allocation8 + $0x330] sm:$0xff] }
 0x46b   : > { %7536 = vmatprep.subr.bf16.mxu0 %v10786_v51  ;;  %7700 = vmatprep.subr.bf16.mxu1 %v10788_v52  ;;  %v10812_v24 = vcombine.high %v4127_v36, %v4131_v17  ;;  %v10811_v29 = vcombine.low %v4127_v36, %v4131_v17  ;;  %v10834_v51 = vcombine.high %v4150_v47, %v4154_v48  ;;  %v4175_v36 = vld [vmem:[#allocation8 + $0x298] sm:$0xff] }
 0x46c   : > { %v10836_v52 = vcombine.high %v4151_v43, %v4155_v0  ;;  %v4179_v17 = vld [vmem:[#allocation8 + $0x2b8] sm:$0xff] }
 0x46d   : > { %7537 = vmatpush1.bf16.msra.mxu0 %v10785_v61  ;;  %v10833_v61 = vcombine.low %v4150_v47, %v4154_v48  ;;  %v4191_v37 = vld [vmem:[#allocation8 + $0x318] sm:$0xff]  ;;  %v4198_v47 = vld [vmem:[#allocation8 + $0x350] sm:$0xff] }
 0x46e   : > { %7701 = vmatpush1.bf16.msra.mxu1 %v10787_v63  ;;  %7538 = vmatprep.subr.bf16.mxu0 %v10794_v2  ;;  %v10835_v63 = vcombine.low %v4151_v43, %v4155_v0  ;;  %v10842_v2 = vcombine.high %v4158_v53, %v4162_v9  ;;  %v4195_v39 = vld [vmem:[#allocation8 + $0x338] sm:$0xff]  ;;  %v4202_v48 = vld [vmem:[#allocation8 + $0x370] sm:$0xff] }
 0x46f   : > { %7702 = vmatprep.subr.bf16.mxu1 %v10796_v60  ;;  %v10844_v60 = vcombine.high %v4159_v58, %v4163_v59  ;;  %v4199_v43 = vld [vmem:[#allocation8 + $0x358] sm:$0xff] }
 0x470   : > { %v4203_v0 = vld [vmem:[#allocation8 + $0x378] sm:$0xff] }
 0x471   : > { %7539 = vmatpush1.bf16.msra.mxu0 %v10793_v11  ;;  %v10841_v11 = vcombine.low %v4158_v53, %v4162_v9  ;;  %v4206_v53 = vld [vmem:[#allocation8 + $0x390] sm:$0xff] }
 0x472   : > { %7703 = vmatpush1.bf16.msra.mxu1 %v10795_v57  ;;  %7540 = vmatprep.subr.bf16.mxu0 %v10802_v4  ;;  %v10843_v57 = vcombine.low %v4159_v58, %v4163_v59  ;;  %v10850_v4 = vcombine.high %v4166_v5, %v4170_v6  ;;  %v4210_v9 = vld [vmem:[#allocation8 + $0x3b0] sm:$0xff]  ;;  %v4207_v58 = vld [vmem:[#allocation8 + $0x398] sm:$0xff] }
 0x473   : > { %7704 = vmatprep.subr.bf16.mxu1 %v10804_v14  ;;  %v10852_v14 = vcombine.high %v4167_v8, %v4171_v10  ;;  %v4211_v59 = vld [vmem:[#allocation8 + $0x3b8] sm:$0xff] }
 0x475   : > { %7541 = vmatpush1.bf16.msra.mxu0 %v10801_v19  ;;  %v10849_v19 = vcombine.low %v4166_v5, %v4170_v6  ;;  %v4214_v5 = vld [vmem:[#allocation8 + $0x3d0] sm:$0xff] }
 0x476   : > { %7705 = vmatpush1.bf16.msra.mxu1 %v10803_v21  ;;  %7542 = vmatprep.subr.bf16.mxu0 %v10810_v22  ;;  %v10851_v21 = vcombine.low %v4167_v8, %v4171_v10  ;;  %v10858_v22 = vcombine.high %v4174_v16, %v4178_v12  ;;  %v4218_v6 = vld [vmem:[#allocation8 + $0x3f0] sm:$0xff]  ;;  %v4215_v8 = vld [vmem:[#allocation8 + $0x3d8] sm:$0xff] }
 0x477   : > { %7706 = vmatprep.subr.bf16.mxu1 %v10812_v24  ;;  %v10860_v24 = vcombine.high %v4175_v36, %v4179_v17  ;;  %v4219_v10 = vld [vmem:[#allocation8 + $0x3f8] sm:$0xff] }
 0x479   : > { %7543 = vmatpush1.bf16.msra.mxu0 %v10809_v28  ;;  %v10857_v28 = vcombine.low %v4174_v16, %v4178_v12  ;;  %v4222_v16 = vld [vmem:[#allocation8 + $0x410] sm:$0xff] }
 0x47a   : > { %7707 = vmatpush1.bf16.msra.mxu1 %v10811_v29  ;;  %7544 = vmatprep.subr.bf16.mxu0 %v10818_v30  ;;  %v10859_v29 = vcombine.low %v4175_v36, %v4179_v17  ;;  %v10866_v30 = vcombine.high %v4182_v26, %v4186_v27  ;;  %v4226_v12 = vld [vmem:[#allocation8 + $0x430] sm:$0xff]  ;;  %v4223_v36 = vld [vmem:[#allocation8 + $0x418] sm:$0xff] }
 0x47b   : > { %7708 = vmatprep.subr.bf16.mxu1 %v10820_v31  ;;  %v10868_v31 = vcombine.high %v4183_v25, %v4187_v23  ;;  %v4227_v17 = vld [vmem:[#allocation8 + $0x438] sm:$0xff] }
 0x47d   : > { %7545 = vmatpush1.bf16.msra.mxu0 %v10817_v40  ;;  %v10865_v40 = vcombine.low %v4182_v26, %v4186_v27  ;;  %v4230_v26 = vld [vmem:[#allocation8 + $0x450] sm:$0xff] }
 0x47e   : > { %7709 = vmatpush1.bf16.msra.mxu1 %v10819_v42  ;;  %7546 = vmatprep.subr.bf16.mxu0 %v10826_v55  ;;  %v10867_v42 = vcombine.low %v4183_v25, %v4187_v23  ;;  %v10874_v55 = vcombine.high %v4190_v34, %v4194_v38  ;;  %v4234_v27 = vld [vmem:[#allocation8 + $0x470] sm:$0xff]  ;;  %v10905_v25 = vcombine.low %v4222_v16, %v4226_v12  ;;  %v4231_v23 = vld [vmem:[#allocation8 + $0x458] sm:$0xff] }
 0x47f   : > { %7710 = vmatprep.subr.bf16.mxu1 %v10828_v44  ;;  %v10876_v44 = vcombine.high %v4191_v37, %v4195_v39 }
 0x481   : > { %7547 = vmatpush1.bf16.msra.mxu0 %v10825_v49  ;;  %v10873_v49 = vcombine.low %v4190_v34, %v4194_v38  ;;  %v4242_v34 = vld [vmem:[#allocation8 + $0x4b0] sm:$0xff] }
 0x482   : > { %7711 = vmatpush1.bf16.msra.mxu1 %v10827_v50  ;;  %7548 = vmatprep.subr.bf16.mxu0 %v10834_v51  ;;  %v10875_v50 = vcombine.low %v4191_v37, %v4195_v39  ;;  %v10882_v51 = vcombine.high %v4198_v47, %v4202_v48  ;;  %v4239_v37 = vld [vmem:[#allocation8 + $0x498] sm:$0xff] }
 0x483   : > { %7712 = vmatprep.subr.bf16.mxu1 %v10836_v52  ;;  %v10884_v52 = vcombine.high %v4199_v43, %v4203_v0  ;;  %v4243_v39 = vld [vmem:[#allocation8 + $0x4b8] sm:$0xff] }
 0x485   : > { %7549 = vmatpush1.bf16.msra.mxu0 %v10833_v61  ;;  %v10881_v61 = vcombine.low %v4198_v47, %v4202_v48  ;;  %v4246_v47 = vld [vmem:[#allocation8 + $0x4d0] sm:$0xff] }
 0x486   : > { %7713 = vmatpush1.bf16.msra.mxu1 %v10835_v63  ;;  %7550 = vmatprep.subr.bf16.mxu0 %v10842_v2  ;;  %v10883_v63 = vcombine.low %v4199_v43, %v4203_v0  ;;  %v10890_v2 = vcombine.high %v4206_v53, %v4210_v9  ;;  %v4250_v48 = vld [vmem:[#allocation8 + $0x4f0] sm:$0xff]  ;;  %v4247_v43 = vld [vmem:[#allocation8 + $0x4d8] sm:$0xff] }
 0x487   : > { %7714 = vmatprep.subr.bf16.mxu1 %v10844_v60  ;;  %v10892_v60 = vcombine.high %v4207_v58, %v4211_v59  ;;  %v4251_v0 = vld [vmem:[#allocation8 + $0x4f8] sm:$0xff] }
 0x489   : > { %7551 = vmatpush1.bf16.msra.mxu0 %v10841_v11  ;;  %v10889_v11 = vcombine.low %v4206_v53, %v4210_v9  ;;  %v4258_v53 = vld [vmem:[#allocation8 + $0x530] sm:$0xff]  ;;  %v4255_v9 = vld [vmem:[#allocation8 + $0x518] sm:$0xff] }
 0x48a   : > { %7715 = vmatpush1.bf16.msra.mxu1 %v10843_v57  ;;  %7552 = vmatprep.subr.bf16.mxu0 %v10850_v4  ;;  %v10891_v57 = vcombine.low %v4207_v58, %v4211_v59  ;;  %v10898_v4 = vcombine.high %v4214_v5, %v4218_v6  ;;  %v4259_v58 = vld [vmem:[#allocation8 + $0x538] sm:$0xff]  ;;  %v10931_v59 = vcombine.low %v4247_v43, %v4251_v0 }
 0x48b   : > { %7716 = vmatprep.subr.bf16.mxu1 %v10852_v14  ;;  %v10900_v14 = vcombine.high %v4215_v8, %v4219_v10 }
 0x48d   : > { %7553 = vmatpush1.bf16.msra.mxu0 %v10849_v19  ;;  %v10897_v19 = vcombine.low %v4214_v5, %v4218_v6  ;;  %v4263_v5 = vld [vmem:[#allocation8 + $0x558] sm:$0xff] }
 0x48e   : > { %7717 = vmatpush1.bf16.msra.mxu1 %v10851_v21  ;;  %7554 = vmatprep.subr.bf16.mxu0 %v10858_v22  ;;  %v10899_v21 = vcombine.low %v4215_v8, %v4219_v10  ;;  %v10906_v22 = vcombine.high %v4222_v16, %v4226_v12  ;;  %v4267_v6 = vld [vmem:[#allocation8 + $0x578] sm:$0xff]  ;;  %v10939_v10 = vcombine.low %v4255_v9, %v4259_v58 }
 0x48f   : > { %7718 = vmatprep.subr.bf16.mxu1 %v10860_v24  ;;  %v10908_v24 = vcombine.high %v4223_v36, %v4227_v17  ;;  %v4271_v16 = vld [vmem:[#allocation8 + $0x598] sm:$0xff] }
 0x490   : > { %v4275_v12 = vld [vmem:[#allocation8 + $0x5b8] sm:$0xff] }
 0x491   : > { %7555 = vmatpush1.bf16.msra.mxu0 %v10857_v28  ;;  %v4235_v28 = vld [vmem:[#allocation8 + $0x478] sm:$0xff] }
 0x492   : > { %7719 = vmatpush1.bf16.msra.mxu1 %v10859_v29  ;;  %7556 = vmatprep.subr.bf16.mxu0 %v10866_v30  ;;  %v10907_v29 = vcombine.low %v4223_v36, %v4227_v17  ;;  %v10914_v30 = vcombine.high %v4230_v26, %v4234_v27  ;;  %v10916_v38 = vcombine.high %v4231_v23, %v4235_v28 }
 0x493   : > { %7720 = vmatprep.subr.bf16.mxu1 %v10868_v31  ;;  %v4238_v31 = vld [vmem:[#allocation8 + $0x490] sm:$0xff]  ;;  %v10947_v17 = vcombine.low %v4263_v5, %v4267_v6 }
 0x495   : > { %7557 = vmatpush1.bf16.msra.mxu0 %v10865_v40  ;;  %v10913_v40 = vcombine.low %v4230_v26, %v4234_v27  ;;  %v4279_v26 = vld [vmem:[#allocation8 + $0x5d8] sm:$0xff] }
 0x496   : > { %7721 = vmatpush1.bf16.msra.mxu1 %v10867_v42  ;;  %7558 = vmatprep.subr.bf16.mxu0 %v10874_v55  ;;  %v10915_v42 = vcombine.low %v4231_v23, %v4235_v28  ;;  %v10922_v55 = vcombine.high %v4238_v31, %v4242_v34  ;;  %v4283_v27 = vld [vmem:[#allocation8 + $0x5f8] sm:$0xff]  ;;  %v10955_v23 = vcombine.low %v4271_v16, %v4275_v12 }
 0x497   : > { %7722 = vmatprep.subr.bf16.mxu1 %v10876_v44  ;;  %v10924_v44 = vcombine.high %v4239_v37, %v4243_v39 }
 0x499   : > { %7559 = vmatpush1.bf16.msra.mxu0 %v10873_v49  ;;  %v10921_v49 = vcombine.low %v4238_v31, %v4242_v34  ;;  %v4290_v31 = vld [vmem:[#allocation8 + $0x630] sm:$0xff]  ;;  %v4287_v34 = vld [vmem:[#allocation8 + $0x618] sm:$0xff] }
 0x49a   : > { %7723 = vmatpush1.bf16.msra.mxu1 %v10875_v50  ;;  %7560 = vmatprep.subr.bf16.mxu0 %v10882_v51  ;;  %v10930_v50 = vcombine.high %v4246_v47, %v4250_v48  ;;  %v10932_v51 = vcombine.high %v4247_v43, %v4251_v0 }
 0x49b   : > { %7724 = vmatprep.subr.bf16.mxu1 %v10884_v52  ;;  %v4254_v52 = vld [vmem:[#allocation8 + $0x510] sm:$0xff] }
 0x49c   : > { %v10937_v8 = vcombine.low %v4254_v52, %v4258_v53 }
 0x49d   : > { %7561 = vmatpush1.bf16.msra.mxu0 %v10881_v61  ;;  %v10938_v61 = vcombine.high %v4254_v52, %v4258_v53  ;;  %v4303_v52 = vld [vmem:[#allocation8 + $0x698] sm:$0xff] }
 0x49e   : > { %7725 = vmatpush1.bf16.msra.mxu1 %v10883_v63  ;;  %7562 = vmatprep.subr.bf16.mxu0 %v10890_v2  ;;  %v10940_v63 = vcombine.high %v4255_v9, %v4259_v58  ;;  %v4262_v2 = vld [vmem:[#allocation8 + $0x550] sm:$0xff]  ;;  %v4307_v53 = vld [vmem:[#allocation8 + $0x6b8] sm:$0xff] }
 0x49f   : > { %7726 = vmatprep.subr.bf16.mxu1 %v10892_v60  ;;  %v4266_v60 = vld [vmem:[#allocation8 + $0x570] sm:$0xff] }
 0x4a0   : > { %v10945_v36 = vcombine.low %v4262_v2, %v4266_v60 }
 0x4a1   : > { %7563 = vmatpush1.bf16.msra.mxu0 %v10889_v11  ;;  %v10946_v11 = vcombine.high %v4262_v2, %v4266_v60  ;;  %v4311_v2 = vld [vmem:[#allocation8 + $0x6d8] sm:$0xff] }
 0x4a2   : > { %7727 = vmatpush1.bf16.msra.mxu1 %v10891_v57  ;;  %7564 = vmatprep.subr.bf16.mxu0 %v10898_v4  ;;  %v10948_v57 = vcombine.high %v4263_v5, %v4267_v6  ;;  %v4270_v4 = vld [vmem:[#allocation8 + $0x590] sm:$0xff]  ;;  %v4315_v60 = vld [vmem:[#allocation8 + $0x6f8] sm:$0xff]  ;;  %v10987_v6 = vcombine.low %v4303_v52, %v4307_v53 }
 0x4a3   : > { %7728 = vmatprep.subr.bf16.mxu1 %v10900_v14  ;;  %v4274_v14 = vld [vmem:[#allocation8 + $0x5b0] sm:$0xff] }
 0x4a5   : > { %7565 = vmatpush1.bf16.msra.mxu0 %v10897_v19  ;;  %v10954_v19 = vcombine.high %v4270_v4, %v4274_v14 }
 0x4a6   : > { %7729 = vmatpush1.bf16.msra.mxu1 %v10899_v21  ;;  %7575 = vmatprep.subr.bf16.mxu0 %v10906_v22  ;;  %v10956_v21 = vcombine.high %v4271_v16, %v4275_v12  ;;  %v4278_v22 = vld [vmem:[#allocation8 + $0x5d0] sm:$0xff]  ;;  %v10995_v12 = vcombine.low %v4311_v2, %v4315_v60 }
 0x4a7   : > { %7739 = vmatprep.subr.bf16.mxu1 %v10908_v24  ;;  %v4282_v24 = vld [vmem:[#allocation8 + $0x5f0] sm:$0xff] }
 0x4a8   : > { %7567 = vmatmul.mubr.bf16.vlgmr.msra.gmra.mrb[12].mxu0 %v13365_v54  ;;  %v10962_v28 = vcombine.high %v4278_v22, %v4282_v24 }
 0x4a9   : > { %7731 = vmatmul.mubr.bf16.vlgmr.msra.gmra.mrb[12].mxu1 %v13365_v54  ;;  %7576 = vmatpush1.bf16.msra.mxu0 %v10905_v25  ;;  %v10923_v54 = vcombine.low %v4239_v37, %v4243_v39  ;;  %v10953_v25 = vcombine.low %v4270_v4, %v4274_v14  ;;  %v10961_v37 = vcombine.low %v4278_v22, %v4282_v24  ;;  %v4319_v4 = vld [vmem:[#allocation8 + $0x718] sm:$0xff] }
 0x4aa   : > { %7607 = vmatprep.mubr.bf16.mxu0 %v13367_v62  ;;  %7740 = vmatpush1.bf16.msra.mxu1 %v10907_v29  ;;  %v10964_v29 = vcombine.high %v4279_v26, %v4283_v27  ;;  %v10963_v39 = vcombine.low %v4279_v26, %v4283_v27  ;;  %v4323_v14 = vld [vmem:[#allocation8 + $0x738] sm:$0xff] }
 0x4ab   : > { %7771 = vmatprep.mubr.bf16.mxu1 %v13367_v62  ;;  %7577 = vmatprep.subr.bf16.mxu0 %v10914_v30  ;;  %v10929_v62 = vcombine.low %v4246_v47, %v4250_v48  ;;  %v4286_v30 = vld [vmem:[#allocation8 + $0x610] sm:$0xff]  ;;  %v4295_v47 = vld [vmem:[#allocation8 + $0x658] sm:$0xff]  ;;  %v11003_v27 = vcombine.low %v4319_v4, %v4323_v14 }
 0x4ac   : > { %7741 = vmatprep.subr.bf16.mxu1 %v10916_v38  ;;  %v4291_v38 = vld [vmem:[#allocation8 + $0x638] sm:$0xff]  ;;  %v10969_v43 = vcombine.low %v4286_v30, %v4290_v31 }
 0x4ad   : > { %7578 = vmatpush1.bf16.msra.mxu0 %v10913_v40  ;;  %v10970_v40 = vcombine.high %v4286_v30, %v4290_v31  ;;  %v4299_v48 = vld [vmem:[#allocation8 + $0x678] sm:$0xff]  ;;  %v10971_v0 = vcombine.low %v4287_v34, %v4291_v38 }
 0x4ae   : > { %7742 = vmatpush1.bf16.msra.mxu1 %v10915_v42  ;;  %7579 = vmatprep.subr.bf16.mxu0 %v10922_v55  ;;  %v10972_v42 = vcombine.high %v4287_v34, %v4291_v38  ;;  %v4294_v55 = vld [vmem:[#allocation8 + $0x650] sm:$0xff]  ;;  %v10979_v58 = vcombine.low %v4295_v47, %v4299_v48  ;;  %v4327_v22 = vld [vmem:[#allocation8 + $0x758] sm:$0xff] }
 0x4af   : > { %7743 = vmatprep.subr.bf16.mxu1 %v10924_v44  ;;  %v4298_v44 = vld [vmem:[#allocation8 + $0x670] sm:$0xff]  ;;  %v4331_v24 = vld [vmem:[#allocation8 + $0x778] sm:$0xff] }
 0x4b0   : > { %v10977_v9 = vcombine.low %v4294_v55, %v4298_v44  ;;  %v4335_v30 = vld [vmem:[#allocation8 + $0x798] sm:$0xff]  ;;  %v11011_v38 = vcombine.low %v4327_v22, %v4331_v24 }
 0x4b1   : > { %7580 = vmatpush1.bf16.msra.mxu0 %v10921_v49  ;;  %v10978_v49 = vcombine.high %v4294_v55, %v4298_v44  ;;  %v4339_v31 = vld [vmem:[#allocation8 + $0x7b8] sm:$0xff] }
 0x4b2   : > { %7744 = vmatpush1.bf16.msra.mxu1 %v10923_v54  ;;  %7581 = vmatprep.subr.bf16.mxu0 %v10930_v50  ;;  %v10980_v54 = vcombine.high %v4295_v47, %v4299_v48  ;;  %v4302_v50 = vld [vmem:[#allocation8 + $0x690] sm:$0xff]  ;;  %v4343_v55 = vld [vmem:[#allocation8 + $0x7d8] sm:$0xff]  ;;  %v11019_v48 = vcombine.low %v4335_v30, %v4339_v31 }
 0x4b3   : > { %7745 = vmatprep.subr.bf16.mxu1 %v10932_v51  ;;  %v4306_v51 = vld [vmem:[#allocation8 + $0x6b0] sm:$0xff]  ;;  %v4347_v44 = vld [vmem:[#allocation8 + $0x7f8] sm:$0xff] }
 0x4b4   : > { %v10985_v5 = vcombine.low %v4302_v50, %v4306_v51 }
 0x4b5   : > { %7582 = vmatpush1.bf16.msra.mxu0 %v10929_v62  ;;  %v10986_v62 = vcombine.high %v4302_v50, %v4306_v51  ;;  %v4351_v50 = vld [vmem:[#allocation8 + $0x818] sm:$0xff] }
 0x4b6   : > { %7746 = vmatpush1.bf16.msra.mxu1 %v10931_v59  ;;  %7583 = vmatprep.subr.bf16.mxu0 %v10938_v61  ;;  %v10988_v59 = vcombine.high %v4303_v52, %v4307_v53  ;;  %v4310_v61 = vld [vmem:[#allocation8 + $0x6d0] sm:$0xff]  ;;  %v4355_v51 = vld [vmem:[#allocation8 + $0x838] sm:$0xff]  ;;  %v11027_v53 = vcombine.low %v4343_v55, %v4347_v44 }
 0x4b7   : > { %7747 = vmatprep.subr.bf16.mxu1 %v10940_v63  ;;  %v4314_v63 = vld [vmem:[#allocation8 + $0x6f0] sm:$0xff] }
 0x4b8   : > { %v10993_v16 = vcombine.low %v4310_v61, %v4314_v63 }
 0x4b9   : > { %7584 = vmatpush1.bf16.msra.mxu0 %v10937_v8  ;;  %v10994_v8 = vcombine.high %v4310_v61, %v4314_v63  ;;  %v4359_v63 = vld [vmem:[#allocation8 + $0x858] sm:$0xff] }
 0x4ba   : > { %7748 = vmatpush1.bf16.msra.mxu1 %v10939_v10  ;;  %7585 = vmatprep.subr.bf16.mxu0 %v10946_v11  ;;  %v10996_v10 = vcombine.high %v4311_v2, %v4315_v60  ;;  %v4318_v11 = vld [vmem:[#allocation8 + $0x710] sm:$0xff]  ;;  %v4363_v2 = vld [vmem:[#allocation8 + $0x878] sm:$0xff]  ;;  %v11035_v60 = vcombine.low %v4351_v50, %v4355_v51 }
 0x4bb   : > { %7749 = vmatprep.subr.bf16.mxu1 %v10948_v57  ;;  %v4322_v57 = vld [vmem:[#allocation8 + $0x730] sm:$0xff] }
 0x4bc   : > { %v11001_v26 = vcombine.low %v4318_v11, %v4322_v57 }
 0x4bd   : > { %7586 = vmatpush1.bf16.msra.mxu0 %v10945_v36  ;;  %v11002_v36 = vcombine.high %v4318_v11, %v4322_v57  ;;  %v4367_v11 = vld [vmem:[#allocation8 + $0x898] sm:$0xff] }
 0x4be   : > { %7750 = vmatpush1.bf16.msra.mxu1 %v10947_v17  ;;  %7587 = vmatprep.subr.bf16.mxu0 %v10954_v19  ;;  %v11004_v17 = vcombine.high %v4319_v4, %v4323_v14  ;;  %v4326_v19 = vld [vmem:[#allocation8 + $0x750] sm:$0xff]  ;;  %v4371_v57 = vld [vmem:[#allocation8 + $0x8b8] sm:$0xff]  ;;  %v11043_v14 = vcombine.low %v4359_v63, %v4363_v2 }
 0x4bf   : > { %7751 = vmatprep.subr.bf16.mxu1 %v10956_v21  ;;  %v4330_v21 = vld [vmem:[#allocation8 + $0x770] sm:$0xff] }
 0x4c0   : > { %v11009_v34 = vcombine.low %v4326_v19, %v4330_v21 }
 0x4c1   : > { %7588 = vmatpush1.bf16.msra.mxu0 %v10953_v25  ;;  %v11010_v25 = vcombine.high %v4326_v19, %v4330_v21  ;;  %v4375_v19 = vld [vmem:[#allocation8 + $0x8d8] sm:$0xff] }
 0x4c2   : > { %7752 = vmatpush1.bf16.msra.mxu1 %v10955_v23  ;;  %7589 = vmatprep.subr.bf16.mxu0 %v10962_v28  ;;  %v11012_v23 = vcombine.high %v4327_v22, %v4331_v24  ;;  %v4334_v28 = vld [vmem:[#allocation8 + $0x790] sm:$0xff]  ;;  %v4379_v21 = vld [vmem:[#allocation8 + $0x8f8] sm:$0xff] }
 0x4c3   : > { %7753 = vmatprep.subr.bf16.mxu1 %v10964_v29  ;;  %v4338_v29 = vld [vmem:[#allocation8 + $0x7b0] sm:$0xff] }
 0x4c4   : > { %v11017_v47 = vcombine.low %v4334_v28, %v4338_v29 }
 0x4c5   : > { %7590 = vmatpush1.bf16.msra.mxu0 %v10961_v37  ;;  %v11018_v37 = vcombine.high %v4334_v28, %v4338_v29  ;;  %v4387_v28 = vld [vmem:[#allocation8 + $0x938] sm:$0xff]  ;;  %v11059_v29 = vcombine.low %v4375_v19, %v4379_v21 }
 0x4c6   : > { %7754 = vmatpush1.bf16.msra.mxu1 %v10963_v39  ;;  %7591 = vmatprep.subr.bf16.mxu0 %v10970_v40  ;;  %v11020_v39 = vcombine.high %v4335_v30, %v4339_v31  ;;  %v4342_v40 = vld [vmem:[#allocation8 + $0x7d0] sm:$0xff] }
 0x4c7   : > { %7755 = vmatprep.subr.bf16.mxu1 %v10972_v42  ;;  %v4346_v42 = vld [vmem:[#allocation8 + $0x7f0] sm:$0xff] }
 0x4c8   : > { %v11025_v52 = vcombine.low %v4342_v40, %v4346_v42 }
 0x4c9   : > { %7592 = vmatpush1.bf16.msra.mxu0 %v10969_v43  ;;  %v11026_v43 = vcombine.high %v4342_v40, %v4346_v42 }
 0x4ca   : > { %7756 = vmatpush1.bf16.msra.mxu1 %v10971_v0  ;;  %7593 = vmatprep.subr.bf16.mxu0 %v10978_v49  ;;  %v11028_v0 = vcombine.high %v4343_v55, %v4347_v44  ;;  %v4350_v49 = vld [vmem:[#allocation8 + $0x810] sm:$0xff] }
 0x4cb   : > { %7757 = vmatprep.subr.bf16.mxu1 %v10980_v54  ;;  %v4354_v54 = vld [vmem:[#allocation8 + $0x830] sm:$0xff] }
 0x4cc   : > { %v11033_v61 = vcombine.low %v4350_v49, %v4354_v54 }
 0x4cd   : > { %7594 = vmatpush1.bf16.msra.mxu0 %v10977_v9  ;;  %v11034_v9 = vcombine.high %v4350_v49, %v4354_v54 }
 0x4ce   : > { %7758 = vmatpush1.bf16.msra.mxu1 %v10979_v58  ;;  %7595 = vmatprep.subr.bf16.mxu0 %v10986_v62  ;;  %v11036_v58 = vcombine.high %v4351_v50, %v4355_v51  ;;  %v4358_v62 = vld [vmem:[#allocation8 + $0x850] sm:$0xff] }
 0x4cf   : > { %7759 = vmatprep.subr.bf16.mxu1 %v10988_v59  ;;  %v4362_v59 = vld [vmem:[#allocation8 + $0x870] sm:$0xff] }
 0x4d0   : > { %v11041_v4 = vcombine.low %v4358_v62, %v4362_v59 }
 0x4d1   : > { %7596 = vmatpush1.bf16.msra.mxu0 %v10985_v5  ;;  %v11042_v5 = vcombine.high %v4358_v62, %v4362_v59 }
 0x4d2   : > { %7760 = vmatpush1.bf16.msra.mxu1 %v10987_v6  ;;  %7597 = vmatprep.subr.bf16.mxu0 %v10994_v8  ;;  %v4366_v6 = vld [vmem:[#allocation8 + $0x890] sm:$0xff] }
 0x4d3   : > { %7761 = vmatprep.subr.bf16.mxu1 %v10996_v10  ;;  %v4370_v8 = vld [vmem:[#allocation8 + $0x8b0] sm:$0xff]  ;;  %v11044_v10 = vcombine.high %v4359_v63, %v4363_v2 }
 0x4d4   : > { %v11049_v22 = vcombine.low %v4366_v6, %v4370_v8  ;;  %v4414_v2 = vld [vmem:[#allocation8 + $0xa10] sm:$0xff] }
 0x4d5   : > { %7598 = vmatpush1.bf16.msra.mxu0 %v10993_v16  ;;  %v11050_v16 = vcombine.high %v4366_v6, %v4370_v8  ;;  %v4419_v6 = vld [vmem:[#allocation8 + $0xa38] sm:$0xff] }
 0x4d6   : > { %7762 = vmatpush1.bf16.msra.mxu1 %v10995_v12  ;;  %7599 = vmatprep.subr.bf16.mxu0 %v11002_v36  ;;  %v11052_v12 = vcombine.high %v4367_v11, %v4371_v57  ;;  %v4374_v36 = vld [vmem:[#allocation8 + $0x8d0] sm:$0xff] }
 0x4d7   : > { %7763 = vmatprep.subr.bf16.mxu1 %v11004_v17  ;;  %v4378_v17 = vld [vmem:[#allocation8 + $0x8f0] sm:$0xff] }
 0x4d8   : > { %v11058_v24 = vcombine.high %v4374_v36, %v4378_v17 }
 0x4d9   : > { %7600 = vmatpush1.bf16.msra.mxu0 %v11001_v26  ;;  %v11060_v26 = vcombine.high %v4375_v19, %v4379_v21 }
 0x4da   : > { %7764 = vmatpush1.bf16.msra.mxu1 %v11003_v27  ;;  %7601 = vmatprep.subr.bf16.mxu0 %v11010_v25  ;;  %v4382_v27 = vld [vmem:[#allocation8 + $0x910] sm:$0xff] }
 0x4db   : > { %7765 = vmatprep.subr.bf16.mxu1 %v11012_v23  ;;  %v4386_v25 = vld [vmem:[#allocation8 + $0x930] sm:$0xff]  ;;  %v4383_v23 = vld [vmem:[#allocation8 + $0x918] sm:$0xff] }
 0x4dc   : > { %v11066_v30 = vcombine.high %v4382_v27, %v4386_v25  ;;  %v11068_v31 = vcombine.high %v4383_v23, %v4387_v28  ;;  %v11065_v40 = vcombine.low %v4382_v27, %v4386_v25  ;;  %v11067_v42 = vcombine.low %v4383_v23, %v4387_v28 }
 0x4dd   : > { %7602 = vmatpush1.bf16.msra.mxu0 %v11009_v34  ;;  %v4390_v34 = vld [vmem:[#allocation8 + $0x950] sm:$0xff] }
 0x4de   : > { %7766 = vmatpush1.bf16.msra.mxu1 %v11011_v38  ;;  %7603 = vmatprep.subr.bf16.mxu0 %v11018_v37  ;;  %v4394_v38 = vld [vmem:[#allocation8 + $0x970] sm:$0xff]  ;;  %v4391_v37 = vld [vmem:[#allocation8 + $0x958] sm:$0xff] }
 0x4df   : > { %7767 = vmatprep.subr.bf16.mxu1 %v11020_v39  ;;  %v4395_v39 = vld [vmem:[#allocation8 + $0x978] sm:$0xff]  ;;  %v11074_v55 = vcombine.high %v4390_v34, %v4394_v38  ;;  %v11073_v49 = vcombine.low %v4390_v34, %v4394_v38 }
 0x4e0   : > { %v11076_v44 = vcombine.high %v4391_v37, %v4395_v39  ;;  %v11075_v54 = vcombine.low %v4391_v37, %v4395_v39 }
 0x4e1   : > { %7604 = vmatpush1.bf16.msra.mxu0 %v11017_v47  ;;  %v4398_v47 = vld [vmem:[#allocation8 + $0x990] sm:$0xff] }
 0x4e2   : > { %7768 = vmatpush1.bf16.msra.mxu1 %v11019_v48  ;;  %7605 = vmatprep.subr.bf16.mxu0 %v11026_v43  ;;  %v4402_v48 = vld [vmem:[#allocation8 + $0x9b0] sm:$0xff]  ;;  %v4399_v43 = vld [vmem:[#allocation8 + $0x998] sm:$0xff] }
 0x4e3   : > { %7769 = vmatprep.subr.bf16.mxu1 %v11028_v0  ;;  %v4403_v0 = vld [vmem:[#allocation8 + $0x9b8] sm:$0xff]  ;;  %v11082_v50 = vcombine.high %v4398_v47, %v4402_v48  ;;  %v11081_v62 = vcombine.low %v4398_v47, %v4402_v48 }
 0x4e4   : > { %v11084_v51 = vcombine.high %v4399_v43, %v4403_v0  ;;  %v11083_v59 = vcombine.low %v4399_v43, %v4403_v0 }
 0x4e5   : > { %7606 = vmatpush1.bf16.msra.mxu0 %v11025_v52  ;;  %v4406_v52 = vld [vmem:[#allocation8 + $0x9d0] sm:$0xff] }
 0x4e6   : > { %7770 = vmatpush1.bf16.msra.mxu1 %v11027_v53  ;;  %7616 = vmatprep.subr.bf16.mxu0 %v11034_v9  ;;  %v4410_v53 = vld [vmem:[#allocation8 + $0x9f0] sm:$0xff]  ;;  %v4407_v9 = vld [vmem:[#allocation8 + $0x9d8] sm:$0xff] }
 0x4e7   : > { %7780 = vmatprep.subr.bf16.mxu1 %v11036_v58  ;;  %v4411_v58 = vld [vmem:[#allocation8 + $0x9f8] sm:$0xff]  ;;  %v11089_v8 = vcombine.low %v4406_v52, %v4410_v53 }
 0x4e8   : > { %7608 = vmatmul.mubr.bf16.vlgmr.msra.gmra.mrb[12].mxu0 %v13378_v18  ;;  %v11092_v63 = vcombine.high %v4407_v9, %v4411_v58 }
 0x4e9   : > { %7772 = vmatmul.mubr.bf16.vlgmr.msra.gmra.mrb[12].mxu1 %v13378_v18  ;;  %7617 = vmatpush1.bf16.msra.mxu0 %v11033_v61  ;;  %v11051_v18 = vcombine.low %v4367_v11, %v4371_v57  ;;  %v11090_v61 = vcombine.high %v4406_v52, %v4410_v53 }
 0x4ea   : > { %7648 = vmatprep.mubr.bf16.mxu0 %v13398_v1  ;;  %7781 = vmatpush1.bf16.msra.mxu1 %v11035_v60  ;;  %v4418_v60 = vld [vmem:[#allocation8 + $0xa30] sm:$0xff] }
 0x4eb   : > { %7812 = vmatprep.mubr.bf16.mxu1 %v13398_v1  ;;  %7618 = vmatprep.subr.bf16.mxu0 %v11042_v5  ;;  %v11057_v1 = vcombine.low %v4374_v36, %v4378_v17  ;;  %v4415_v5 = vld [vmem:[#allocation8 + $0xa18] sm:$0xff]  ;;  %v11098_v11 = vcombine.high %v4414_v2, %v4418_v60  ;;  %v11097_v36 = vcombine.low %v4414_v2, %v4418_v60 }
 0x4ec   : > { %7782 = vmatprep.subr.bf16.mxu1 %v11044_v10  ;;  %v11091_v10 = vcombine.low %v4407_v9, %v4411_v58  ;;  %v11100_v57 = vcombine.high %v4415_v5, %v4419_v6  ;;  %v11099_v17 = vcombine.low %v4415_v5, %v4419_v6 }
 0x4ed   : > { %7619 = vmatpush1.bf16.msra.mxu0 %v11041_v4  ;;  %v4422_v4 = vld [vmem:[#allocation8 + $0xa50] sm:$0xff] }
 0x4ee   : > { %7783 = vmatpush1.bf16.msra.mxu1 %v11043_v14  ;;  %7620 = vmatprep.subr.bf16.mxu0 %v11050_v16  ;;  %v4426_v14 = vld [vmem:[#allocation8 + $0xa70] sm:$0xff]  ;;  %v4423_v16 = vld [vmem:[#allocation8 + $0xa58] sm:$0xff] }
 0x4ef   : > { %7784 = vmatprep.subr.bf16.mxu1 %v11052_v12  ;;  %v4427_v12 = vld [vmem:[#allocation8 + $0xa78] sm:$0xff]  ;;  %v11106_v19 = vcombine.high %v4422_v4, %v4426_v14  ;;  %v11105_v27 = vcombine.low %v4422_v4, %v4426_v14 }
 0x4f0   : > { %v11108_v21 = vcombine.high %v4423_v16, %v4427_v12  ;;  %v11107_v25 = vcombine.low %v4423_v16, %v4427_v12 }
 0x4f1   : > { %7621 = vmatpush1.bf16.msra.mxu0 %v11049_v22  ;;  %v4430_v22 = vld [vmem:[#allocation8 + $0xa90] sm:$0xff] }
 0x4f2   : > { %7785 = vmatpush1.bf16.msra.mxu1 %v11051_v18  ;;  %7622 = vmatprep.subr.bf16.mxu0 %v11058_v24  ;;  %v4434_v18 = vld [vmem:[#allocation8 + $0xab0] sm:$0xff]  ;;  %v4431_v24 = vld [vmem:[#allocation8 + $0xa98] sm:$0xff] }
 0x4f3   : > { %7786 = vmatprep.subr.bf16.mxu1 %v11060_v26  ;;  %v4435_v26 = vld [vmem:[#allocation8 + $0xab8] sm:$0xff]  ;;  %v11114_v23 = vcombine.high %v4430_v22, %v4434_v18  ;;  %v11113_v34 = vcombine.low %v4430_v22, %v4434_v18 }
 0x4f4   : > { %v11116_v28 = vcombine.high %v4431_v24, %v4435_v26  ;;  %v11115_v38 = vcombine.low %v4431_v24, %v4435_v26 }
 0x4f5   : > { %7623 = vmatpush1.bf16.msra.mxu0 %v11057_v1  ;;  %v4438_v1 = vld [vmem:[#allocation8 + $0xad0] sm:$0xff] }
 0x4f6   : > { %7787 = vmatpush1.bf16.msra.mxu1 %v11059_v29  ;;  %7624 = vmatprep.subr.bf16.mxu0 %v11066_v30  ;;  %v4442_v29 = vld [vmem:[#allocation8 + $0xaf0] sm:$0xff]  ;;  %v4439_v30 = vld [vmem:[#allocation8 + $0xad8] sm:$0xff] }
 0x4f7   : > { %7788 = vmatprep.subr.bf16.mxu1 %v11068_v31  ;;  %v4443_v31 = vld [vmem:[#allocation8 + $0xaf8] sm:$0xff]  ;;  %v11122_v37 = vcombine.high %v4438_v1, %v4442_v29  ;;  %v11121_v47 = vcombine.low %v4438_v1, %v4442_v29 }
 0x4f8   : > { %v11124_v39 = vcombine.high %v4439_v30, %v4443_v31  ;;  %v11123_v48 = vcombine.low %v4439_v30, %v4443_v31  ;;  %v4491_v1 = vld [vmem:[#allocation8 + $0xc78] sm:$0xff]  ;;  %v4494_v31 = vld [vmem:[#allocation8 + $0xc90] sm:$0xff] }
 0x4f9   : > { %7625 = vmatpush1.bf16.msra.mxu0 %v11065_v40  ;;  %v4446_v40 = vld [vmem:[#allocation8 + $0xb10] sm:$0xff] }
 0x4fa   : > { %7789 = vmatpush1.bf16.msra.mxu1 %v11067_v42  ;;  %7626 = vmatprep.subr.bf16.mxu0 %v11074_v55  ;;  %v4450_v42 = vld [vmem:[#allocation8 + $0xb30] sm:$0xff]  ;;  %v4447_v55 = vld [vmem:[#allocation8 + $0xb18] sm:$0xff] }
 0x4fb   : > { %7790 = vmatprep.subr.bf16.mxu1 %v11076_v44  ;;  %v4451_v44 = vld [vmem:[#allocation8 + $0xb38] sm:$0xff]  ;;  %v11130_v43 = vcombine.high %v4446_v40, %v4450_v42  ;;  %v11129_v52 = vcombine.low %v4446_v40, %v4450_v42 }
 0x4fc   : > { %v11132_v0 = vcombine.high %v4447_v55, %v4451_v44  ;;  %v11131_v53 = vcombine.low %v4447_v55, %v4451_v44 }
 0x4fd   : > { %7627 = vmatpush1.bf16.msra.mxu0 %v11073_v49  ;;  %v4454_v49 = vld [vmem:[#allocation8 + $0xb50] sm:$0xff] }
 0x4fe   : > { %7791 = vmatpush1.bf16.msra.mxu1 %v11075_v54  ;;  %7628 = vmatprep.subr.bf16.mxu0 %v11082_v50  ;;  %v4458_v54 = vld [vmem:[#allocation8 + $0xb70] sm:$0xff]  ;;  %v4455_v50 = vld [vmem:[#allocation8 + $0xb58] sm:$0xff] }
 0x4ff   : > { %7792 = vmatprep.subr.bf16.mxu1 %v11084_v51  ;;  %v4459_v51 = vld [vmem:[#allocation8 + $0xb78] sm:$0xff]  ;;  %v11138_v9 = vcombine.high %v4454_v49, %v4458_v54  ;;  %v11137_v2 = vcombine.low %v4454_v49, %v4458_v54 }
 0x500   : > { %v11140_v58 = vcombine.high %v4455_v50, %v4459_v51  ;;  %v11139_v60 = vcombine.low %v4455_v50, %v4459_v51  ;;  %v4510_v51 = vld [vmem:[#allocation8 + $0xd10] sm:$0xff] }
 0x501   : > { %7629 = vmatpush1.bf16.msra.mxu0 %v11081_v62  ;;  %v4462_v62 = vld [vmem:[#allocation8 + $0xb90] sm:$0xff] }
 0x502   : > { %7793 = vmatpush1.bf16.msra.mxu1 %v11083_v59  ;;  %7630 = vmatprep.subr.bf16.mxu0 %v11090_v61  ;;  %v4466_v59 = vld [vmem:[#allocation8 + $0xbb0] sm:$0xff]  ;;  %v4463_v61 = vld [vmem:[#allocation8 + $0xb98] sm:$0xff] }
 0x503   : > { %7794 = vmatprep.subr.bf16.mxu1 %v11092_v63  ;;  %v4467_v63 = vld [vmem:[#allocation8 + $0xbb8] sm:$0xff]  ;;  %v11146_v5 = vcombine.high %v4462_v62, %v4466_v59  ;;  %v11145_v4 = vcombine.low %v4462_v62, %v4466_v59 }
 0x504   : > { %v11148_v6 = vcombine.high %v4463_v61, %v4467_v63  ;;  %v11147_v14 = vcombine.low %v4463_v61, %v4467_v63  ;;  %v4518_v61 = vld [vmem:[#allocation8 + $0xd50] sm:$0xff] }
 0x505   : > { %7631 = vmatpush1.bf16.msra.mxu0 %v11089_v8  ;;  %v4470_v8 = vld [vmem:[#allocation8 + $0xbd0] sm:$0xff] }
 0x506   : > { %7795 = vmatpush1.bf16.msra.mxu1 %v11091_v10  ;;  %7632 = vmatprep.subr.bf16.mxu0 %v11098_v11  ;;  %v4474_v10 = vld [vmem:[#allocation8 + $0xbf0] sm:$0xff]  ;;  %v4471_v11 = vld [vmem:[#allocation8 + $0xbd8] sm:$0xff] }
 0x507   : > { %7796 = vmatprep.subr.bf16.mxu1 %v11100_v57  ;;  %v4475_v57 = vld [vmem:[#allocation8 + $0xbf8] sm:$0xff]  ;;  %v11154_v16 = vcombine.high %v4470_v8, %v4474_v10  ;;  %v11153_v22 = vcombine.low %v4470_v8, %v4474_v10  ;;  %v4522_v63 = vld [vmem:[#allocation8 + $0xd70] sm:$0xff] }
 0x508   : > { %v11156_v12 = vcombine.high %v4471_v11, %v4475_v57  ;;  %v11155_v18 = vcombine.low %v4471_v11, %v4475_v57  ;;  %v11202_v8 = vcombine.high %v4518_v61, %v4522_v63  ;;  %v4526_v11 = vld [vmem:[#allocation8 + $0xd90] sm:$0xff] }
 0x509   : > { %7633 = vmatpush1.bf16.msra.mxu0 %v11097_v36  ;;  %v4478_v36 = vld [vmem:[#allocation8 + $0xc10] sm:$0xff] }
 0x50a   : > { %7797 = vmatpush1.bf16.msra.mxu1 %v11099_v17  ;;  %7634 = vmatprep.subr.bf16.mxu0 %v11106_v19  ;;  %v4482_v17 = vld [vmem:[#allocation8 + $0xc30] sm:$0xff]  ;;  %v4479_v19 = vld [vmem:[#allocation8 + $0xc18] sm:$0xff] }
 0x50b   : > { %7798 = vmatprep.subr.bf16.mxu1 %v11108_v21  ;;  %v4483_v21 = vld [vmem:[#allocation8 + $0xc38] sm:$0xff]  ;;  %v11162_v24 = vcombine.high %v4478_v36, %v4482_v17  ;;  %v4530_v57 = vld [vmem:[#allocation8 + $0xdb0] sm:$0xff] }
 0x50c   : > { %v11164_v26 = vcombine.high %v4479_v19, %v4483_v21  ;;  %v11163_v29 = vcombine.low %v4479_v19, %v4483_v21 }
 0x50d   : > { %7635 = vmatpush1.bf16.msra.mxu0 %v11105_v27  ;;  %v4486_v27 = vld [vmem:[#allocation8 + $0xc50] sm:$0xff] }
 0x50e   : > { %7799 = vmatpush1.bf16.msra.mxu1 %v11107_v25  ;;  %7636 = vmatprep.subr.bf16.mxu0 %v11114_v23  ;;  %v4490_v25 = vld [vmem:[#allocation8 + $0xc70] sm:$0xff]  ;;  %v11161_v23 = vcombine.low %v4478_v36, %v4482_v17  ;;  %v11210_v36 = vcombine.high %v4526_v11, %v4530_v57 }
 0x50f   : > { %7800 = vmatprep.subr.bf16.mxu1 %v11116_v28  ;;  %v4487_v28 = vld [vmem:[#allocation8 + $0xc58] sm:$0xff]  ;;  %v11170_v30 = vcombine.high %v4486_v27, %v4490_v25  ;;  %v11169_v40 = vcombine.low %v4486_v27, %v4490_v25 }
 0x510   : > { %v11171_v42 = vcombine.low %v4487_v28, %v4491_v1  ;;  %v4535_v27 = vld [vmem:[#allocation8 + $0xdd8] sm:$0xff] }
 0x511   : > { %7637 = vmatpush1.bf16.msra.mxu0 %v11113_v34  ;;  %v4498_v34 = vld [vmem:[#allocation8 + $0xcb0] sm:$0xff]  ;;  %v4539_v25 = vld [vmem:[#allocation8 + $0xdf8] sm:$0xff] }
 0x512   : > { %7801 = vmatpush1.bf16.msra.mxu1 %v11115_v38  ;;  %7638 = vmatprep.subr.bf16.mxu0 %v11122_v37  ;;  %v11172_v38 = vcombine.high %v4487_v28, %v4491_v1  ;;  %v4495_v37 = vld [vmem:[#allocation8 + $0xc98] sm:$0xff]  ;;  %v11178_v55 = vcombine.high %v4494_v31, %v4498_v34  ;;  %v11177_v49 = vcombine.low %v4494_v31, %v4498_v34 }
 0x513   : > { %7802 = vmatprep.subr.bf16.mxu1 %v11124_v39  ;;  %v4499_v39 = vld [vmem:[#allocation8 + $0xcb8] sm:$0xff]  ;;  %v11209_v1 = vcombine.low %v4526_v11, %v4530_v57 }
 0x514   : > { %v11180_v44 = vcombine.high %v4495_v37, %v4499_v39 }
 0x515   : > { %7639 = vmatpush1.bf16.msra.mxu0 %v11121_v47  ;;  %v4502_v47 = vld [vmem:[#allocation8 + $0xcd0] sm:$0xff] }
 0x516   : > { %7803 = vmatpush1.bf16.msra.mxu1 %v11123_v48  ;;  %7640 = vmatprep.subr.bf16.mxu0 %v11130_v43  ;;  %v4506_v48 = vld [vmem:[#allocation8 + $0xcf0] sm:$0xff]  ;;  %v4503_v43 = vld [vmem:[#allocation8 + $0xcd8] sm:$0xff] }
 0x517   : > { %7804 = vmatprep.subr.bf16.mxu1 %v11132_v0  ;;  %v4507_v0 = vld [vmem:[#allocation8 + $0xcf8] sm:$0xff]  ;;  %v11186_v54 = vcombine.high %v4502_v47, %v4506_v48 }
 0x518   : > { %v11188_v50 = vcombine.high %v4503_v43, %v4507_v0 }
 0x519   : > { %7641 = vmatpush1.bf16.msra.mxu0 %v11129_v52  ;;  %v4514_v52 = vld [vmem:[#allocation8 + $0xd30] sm:$0xff] }
 0x51a   : > { %7805 = vmatpush1.bf16.msra.mxu1 %v11131_v53  ;;  %7642 = vmatprep.subr.bf16.mxu0 %v11138_v9  ;;  %v4511_v53 = vld [vmem:[#allocation8 + $0xd18] sm:$0xff]  ;;  %v11194_v62 = vcombine.high %v4510_v51, %v4514_v52 }
 0x51b   : > { %7806 = vmatprep.subr.bf16.mxu1 %v11140_v58  ;;  %v4515_v9 = vld [vmem:[#allocation8 + $0xd38] sm:$0xff]  ;;  %v11187_v58 = vcombine.low %v4503_v43, %v4507_v0  ;;  %v4550_v43 = vld [vmem:[#allocation8 + $0xe50] sm:$0xff] }
 0x51c   : > { %v11196_v59 = vcombine.high %v4511_v53, %v4515_v9  ;;  %v4554_v0 = vld [vmem:[#allocation8 + $0xe70] sm:$0xff] }
 0x51d   : > { %7643 = vmatpush1.bf16.msra.mxu0 %v11137_v2  ;;  %v4519_v2 = vld [vmem:[#allocation8 + $0xd58] sm:$0xff] }
 0x51e   : > { %7807 = vmatpush1.bf16.msra.mxu1 %v11139_v60  ;;  %7644 = vmatprep.subr.bf16.mxu0 %v11146_v5  ;;  %v4523_v60 = vld [vmem:[#allocation8 + $0xd78] sm:$0xff]  ;;  %v11193_v5 = vcombine.low %v4510_v51, %v4514_v52  ;;  %v11234_v51 = vcombine.high %v4550_v43, %v4554_v0 }
 0x51f   : > { %7808 = vmatprep.subr.bf16.mxu1 %v11148_v6  ;;  %v11195_v6 = vcombine.low %v4511_v53, %v4515_v9  ;;  %v11204_v10 = vcombine.high %v4519_v2, %v4523_v60  ;;  %v4558_v53 = vld [vmem:[#allocation8 + $0xe90] sm:$0xff] }
 0x520   : > { %v4562_v9 = vld [vmem:[#allocation8 + $0xeb0] sm:$0xff] }
 0x521   : > { %7645 = vmatpush1.bf16.msra.mxu0 %v11145_v4  ;;  %v4527_v4 = vld [vmem:[#allocation8 + $0xd98] sm:$0xff] }
 0x522   : > { %7809 = vmatpush1.bf16.msra.mxu1 %v11147_v14  ;;  %7646 = vmatprep.subr.bf16.mxu0 %v11154_v16  ;;  %v4531_v14 = vld [vmem:[#allocation8 + $0xdb8] sm:$0xff]  ;;  %v11201_v16 = vcombine.low %v4518_v61, %v4522_v63  ;;  %v11242_v61 = vcombine.high %v4558_v53, %v4562_v9 }
 0x523   : > { %7810 = vmatprep.subr.bf16.mxu1 %v11156_v12  ;;  %v11203_v12 = vcombine.low %v4519_v2, %v4523_v60  ;;  %v11212_v21 = vcombine.high %v4527_v4, %v4531_v14  ;;  %v11211_v31 = vcombine.low %v4527_v4, %v4531_v14  ;;  %v4566_v2 = vld [vmem:[#allocation8 + $0xed0] sm:$0xff] }
 0x524   : > { %v4570_v60 = vld [vmem:[#allocation8 + $0xef0] sm:$0xff] }
 0x525   : > { %7647 = vmatpush1.bf16.msra.mxu0 %v11153_v22  ;;  %v4534_v22 = vld [vmem:[#allocation8 + $0xdd0] sm:$0xff]  ;;  %v11250_v11 = vcombine.high %v4566_v2, %v4570_v60 }
 0x526   : > { %7811 = vmatpush1.bf16.msra.mxu1 %v11155_v18  ;;  %7657 = vmatprep.subr.bf16.mxu0 %v11162_v24  ;;  %v4538_v18 = vld [vmem:[#allocation8 + $0xdf0] sm:$0xff] }
 0x527   : > { %7821 = vmatprep.subr.bf16.mxu1 %v11164_v26  ;;  %v11218_v34 = vcombine.high %v4534_v22, %v4538_v18  ;;  %v4574_v4 = vld [vmem:[#allocation8 + $0xf10] sm:$0xff] }
 0x528   : > { %7649 = vmatmul.mubr.bf16.vlgmr.msra.gmra.mrb[12].mxu0 %v13400_v3  ;;  %v4578_v14 = vld [vmem:[#allocation8 + $0xf30] sm:$0xff] }
 0x529   : > { %7813 = vmatmul.mubr.bf16.vlgmr.msra.gmra.mrb[12].mxu1 %v13400_v3  ;;  %7658 = vmatpush1.bf16.msra.mxu0 %v11161_v23  ;;  %v11179_v3 = vcombine.low %v4495_v37, %v4499_v39  ;;  %v4542_v37 = vld [vmem:[#allocation8 + $0xe10] sm:$0xff] }
 0x52a   : > { %7689 = vmatprep.mubr.bf16.mxu0 %v13404_v13  ;;  %7822 = vmatpush1.bf16.msra.mxu1 %v11163_v29  ;;  %v4546_v39 = vld [vmem:[#allocation8 + $0xe30] sm:$0xff] }
 0x52b   : > { %7853 = vmatprep.mubr.bf16.mxu1 %v13404_v13  ;;  %7659 = vmatprep.subr.bf16.mxu0 %v11170_v30  ;;  %v11185_v13 = vcombine.low %v4502_v47, %v4506_v48  ;;  %v11226_v47 = vcombine.high %v4542_v37, %v4546_v39 }
 0x52c   : > { %7823 = vmatprep.subr.bf16.mxu1 %v11172_v38  ;;  %v11220_v38 = vcombine.high %v4535_v27, %v4539_v25 }
 0x52d   : > { %7660 = vmatpush1.bf16.msra.mxu0 %v11169_v40  ;;  %v4543_v40 = vld [vmem:[#allocation8 + $0xe18] sm:$0xff] }
 0x52e   : > { %7824 = vmatpush1.bf16.msra.mxu1 %v11171_v42  ;;  %7661 = vmatprep.subr.bf16.mxu0 %v11178_v55  ;;  %v4547_v42 = vld [vmem:[#allocation8 + $0xe38] sm:$0xff]  ;;  %v11217_v55 = vcombine.low %v4534_v22, %v4538_v18  ;;  %v11258_v22 = vcombine.high %v4574_v4, %v4578_v14 }
 0x52f   : > { %7825 = vmatprep.subr.bf16.mxu1 %v11180_v44  ;;  %v11219_v44 = vcombine.low %v4535_v27, %v4539_v25  ;;  %v11228_v48 = vcombine.high %v4543_v40, %v4547_v42  ;;  %v4582_v27 = vld [vmem:[#allocation8 + $0xf50] sm:$0xff] }
 0x530   : > { %v4586_v25 = vld [vmem:[#allocation8 + $0xf70] sm:$0xff] }
 0x531   : > { %7662 = vmatpush1.bf16.msra.mxu0 %v11177_v49  ;;  %v4551_v49 = vld [vmem:[#allocation8 + $0xe58] sm:$0xff] }
 0x532   : > { %7826 = vmatpush1.bf16.msra.mxu1 %v11179_v3  ;;  %7663 = vmatprep.subr.bf16.mxu0 %v11186_v54  ;;  %v4555_v3 = vld [vmem:[#allocation8 + $0xe78] sm:$0xff]  ;;  %v11225_v54 = vcombine.low %v4542_v37, %v4546_v39 }
 0x533   : > { %7827 = vmatprep.subr.bf16.mxu1 %v11188_v50  ;;  %v11227_v50 = vcombine.low %v4543_v40, %v4547_v42  ;;  %v11236_v52 = vcombine.high %v4551_v49, %v4555_v3  ;;  %v4591_v37 = vld [vmem:[#allocation8 + $0xf98] sm:$0xff]  ;;  %v13441_v40 = vld [vmem:[#allocation10] sm:$0xff]  ;;  %v11265_v42 = vcombine.low %v4582_v27, %v4586_v25 }
 0x534   : > { %v4595_v39 = vld [vmem:[#allocation8 + $0xfb8] sm:$0xff] }
 0x535   : > { %7664 = vmatpush1.bf16.msra.mxu0 %v11185_v13  ;;  %v4559_v13 = vld [vmem:[#allocation8 + $0xe98] sm:$0xff] }
 0x536   : > { %7828 = vmatpush1.bf16.msra.mxu1 %v11187_v58  ;;  %7665 = vmatprep.subr.bf16.mxu0 %v11194_v62  ;;  %v4563_v58 = vld [vmem:[#allocation8 + $0xeb8] sm:$0xff]  ;;  %v11233_v62 = vcombine.low %v4550_v43, %v4554_v0  ;;  %v4602_v43 = vld [vmem:[#allocation8 + $0xff0] sm:$0xff]  ;;  %v4613_v0 = vrot.slane %v13441_v40, %v13336_v56 }
 0x537   : > { %7829 = vmatprep.subr.bf16.mxu1 %v11196_v59  ;;  %v11235_v59 = vcombine.low %v4551_v49, %v4555_v3  ;;  %v11244_v63 = vcombine.high %v4559_v13, %v4563_v58  ;;  %v4599_v49 = vld [vmem:[#allocation8 + $0xfd8] sm:$0xff] }
 0x538   : > { %v4603_v3 = vld [vmem:[#allocation8 + $0xff8] sm:$0xff] }
 0x539   : > { %7666 = vmatpush1.bf16.msra.mxu0 %v11193_v5  ;;  %v4567_v5 = vld [vmem:[#allocation8 + $0xed8] sm:$0xff] }
 0x53a   : > { %7830 = vmatpush1.bf16.msra.mxu1 %v11195_v6  ;;  %7667 = vmatprep.subr.bf16.mxu0 %v11202_v8  ;;  %v4571_v6 = vld [vmem:[#allocation8 + $0xef8] sm:$0xff]  ;;  %v11241_v8 = vcombine.low %v4558_v53, %v4562_v9 }
 0x53b   : > { %v13433_v17 = vpop.f32.mrb[8].mxu0  ;;  %v13435_v19 = vpop.f32.mrb[8].mxu1  ;;  %7831 = vmatprep.subr.bf16.mxu1 %v11204_v10  ;;  %v11243_v10 = vcombine.low %v4559_v13, %v4563_v58  ;;  %v11252_v57 = vcombine.high %v4567_v5, %v4571_v6  ;;  %v11283_v13 = vcombine.low %v4599_v49, %v4603_v3  ;;  %v11895_v58 = vld [vmem:[#allocation11 + $0x4] ss:$8 sps:$4 sm:$0xff]  }
 0x53c   : > { %v13437_v24 = vpop.f32.mrb[9].mxu0  ;;  %v13439_v26 = vpop.f32.mrb[9].mxu1 }
 0x53d   : > { %v7367_v23 = vpop.f32.mrb[10].mxu0  ;;  %v7531_v28 = vpop.f32.mrb[10].mxu1  ;;  %7668 = vmatpush1.bf16.msra.mxu0 %v11201_v16  ;;  %v4575_v16 = vld [vmem:[#allocation8 + $0xf18] sm:$0xff]  ;;  %v11604_v53 = vadd.f32 %v13437_v24, %v4613_v0 }
 0x53e   : > { %7832 = vmatpush1.bf16.msra.mxu1 %v11203_v12  ;;  %v7368_v29 = vpop.f32.mrb[11].mxu0  ;;  %v7532_v30 = vpop.f32.mrb[11].mxu1  ;;  %7669 = vmatprep.subr.bf16.mxu0 %v11210_v36  ;;  %v4579_v12 = vld [vmem:[#allocation8 + $0xf38] sm:$0xff]  ;;  %v11249_v36 = vcombine.low %v4566_v2, %v4570_v60 }
 0x53f   : > { %7833 = vmatprep.subr.bf16.mxu1 %v11212_v21  ;;  %v11251_v21 = vcombine.low %v4567_v5, %v4571_v6  ;;  %v11260_v18 = vcombine.high %v4575_v16, %v4579_v12  ;;  %v4583_v23 = vld [vmem:[#allocation8 + $0xf58] sm:$0xff]  ;;  %v11259_v29 = vcombine.low %v4575_v16, %v4579_v12  ;;  %v11266_v30 = vcombine.high %v4582_v27, %v4586_v25  ;;  %v11919_v12 = vld [vmem:[#allocation11 + $0x44] ss:$8 sps:$4 sm:$0xff]  }
 0x540   : > { %v4587_v28 = vld [vmem:[#allocation8 + $0xf78] sm:$0xff] }
 0x541   : > { %7670 = vmatpush1.bf16.msra.mxu0 %v11209_v1  ;;  %v11257_v1 = vcombine.low %v4574_v4, %v4578_v14  ;;  %v11901_v2 = vld [vmem:[#allocation11 + $0x14] ss:$8 sps:$4 sm:$0xff]   ;;  %v11899_v5 = vld [vmem:[#allocation11 + $0x10] ss:$8 sps:$4 sm:$0xff]  }
 0x542   : > { %7834 = vmatpush1.bf16.msra.mxu1 %v11211_v31  ;;  %7671 = vmatprep.subr.bf16.mxu0 %v11218_v34  ;;  %v11268_v31 = vcombine.high %v4583_v23, %v4587_v28  ;;  %v4590_v34 = vld [vmem:[#allocation8 + $0xf90] sm:$0xff]  ;;  %v11904_v24 = vld [vmem:[#allocation14 + $0x14] ss:$8 sps:$4 sm:$0xff]   ;;  %v11902_v6 = vld [vmem:[#allocation14 + $0x10] ss:$8 sps:$4 sm:$0xff]  }
 0x543   : > { %7835 = vmatprep.subr.bf16.mxu1 %v11220_v38  ;;  %v4594_v38 = vld [vmem:[#allocation8 + $0xfb0] sm:$0xff]  ;;  %v11913_v4 = vld [vmem:[#allocation11 + $0x34] ss:$8 sps:$4 sm:$0xff]   ;;  %v11923_v25 = vld [vmem:[#allocation11 + $0x50] ss:$8 sps:$4 sm:$0xff]  }
 0x544   : > { %v11916_v14 = vld [vmem:[#allocation14 + $0x34] ss:$8 sps:$4 sm:$0xff]   ;;  %v11914_v16 = vld [vmem:[#allocation14 + $0x30] ss:$8 sps:$4 sm:$0xff]  }
 0x545   : > { %7672 = vmatpush1.bf16.msra.mxu0 %v11217_v55  ;;  %v11267_v55 = vcombine.low %v4583_v23, %v4587_v28  ;;  %v11928_v27 = vld [vmem:[#allocation14 + $0x54] ss:$8 sps:$4 sm:$0xff]   ;;  %v11926_v23 = vld [vmem:[#allocation14 + $0x50] ss:$8 sps:$4 sm:$0xff]   ;;  %v11931_v28 = vld [vmem:[#allocation11 + $0x64] ss:$8 sps:$4 sm:$0xff]  }
 0x546   : > { %7836 = vmatpush1.bf16.msra.mxu1 %v11219_v44  ;;  %7673 = vmatprep.subr.bf16.mxu0 %v11226_v47  ;;  %v11274_v44 = vcombine.high %v4590_v34, %v4594_v38  ;;  %v11276_v47 = vcombine.high %v4591_v37, %v4595_v39  ;;  %v11950_v0 = vld [vmem:[#allocation14 + $0x90] ss:$8 sps:$4 sm:$0xff]  }
 0x547   : > { %7837 = vmatprep.subr.bf16.mxu1 %v11228_v48  ;;  %v4598_v48 = vld [vmem:[#allocation8 + $0xfd0] sm:$0xff] }
 0x548   : > { %v11281_v9 = vcombine.low %v4598_v48, %v4602_v43 }
 0x549   : > { %7674 = vmatpush1.bf16.msra.mxu0 %v11225_v54  ;;  %v11273_v54 = vcombine.low %v4590_v34, %v4594_v38  ;;  %v11940_v34 = vld [vmem:[#allocation14 + $0x74] ss:$8 sps:$4 sm:$0xff]  }
 0x54a   : > { %7838 = vmatpush1.bf16.msra.mxu1 %v11227_v50  ;;  %7675 = vmatprep.subr.bf16.mxu0 %v11234_v51  ;;  %v11275_v50 = vcombine.low %v4591_v37, %v4595_v39  ;;  %v11282_v51 = vcombine.high %v4598_v48, %v4602_v43  ;;  %v11935_v38 = vld [vmem:[#allocation11 + $0x70] ss:$8 sps:$4 sm:$0xff]   ;;  %v11943_v39 = vld [vmem:[#allocation11 + $0x84] ss:$8 sps:$4 sm:$0xff]  }
 0x54b   : > { %7839 = vmatprep.subr.bf16.mxu1 %v11236_v52  ;;  %v11284_v52 = vcombine.high %v4599_v49, %v4603_v3  ;;  %v11938_v37 = vld [vmem:[#allocation14 + $0x70] ss:$8 sps:$4 sm:$0xff]   ;;  %v11952_v48 = vld [vmem:[#allocation14 + $0x94] ss:$8 sps:$4 sm:$0xff]   ;;  %v11955_v49 = vld [vmem:[#allocation11 + $0xa4] ss:$8 sps:$4 sm:$0xff]  }
 0x54c   : > { %v11947_v43 = vld [vmem:[#allocation11 + $0x90] ss:$8 sps:$4 sm:$0xff]  }
 0x54d   : > { %7676 = vmatpush1.bf16.msra.mxu0 %v11233_v62  ;;  %v11898_v62 = vld [vmem:[#allocation14 + $0x4] ss:$8 sps:$4 sm:$0xff]  }
 0x54e   : > { %7840 = vmatpush1.bf16.msra.mxu1 %v11235_v59  ;;  %7677 = vmatprep.subr.bf16.mxu0 %v11242_v61  ;;  %v7863_v59 = vmax.f32 %v11604_v53, 0.0  ;;  %v11893_v61 = vld [vmem:[#allocation11] ss:$8 sps:$4 sm:$0xff]   ;;  %v11959_v53 = vld [vmem:[#allocation11 + $0xb0] ss:$8 sps:$4 sm:$0xff]  }
 0x54f   : > { %7841 = vmatprep.subr.bf16.mxu1 %v11244_v63  ;;  %v11896_v63 = vld [vmem:[#allocation14] ss:$8 sps:$4 sm:$0xff]   ;;  %v11958_v3 = vld [vmem:[#allocation14 + $0xa4] ss:$8 sps:$4 sm:$0xff]  }
 0x550   : > { %v7871_v60 = vpack.c.bf16 %v7863_v59, %v7863_v59  ;;  %v11968_v59 = vld [vmem:[#allocation14 + $0xc0] ss:$8 sps:$4 sm:$0xff]  }
 0x551   : > { %7678 = vmatpush1.bf16.msra.mxu0 %v11241_v8  ;;  %v11907_v8 = vld [vmem:[#allocation11 + $0x24] ss:$8 sps:$4 sm:$0xff]  }
 0x552   : > { %7842 = vmatpush1.bf16.msra.mxu1 %v11243_v10  ;;  %7679 = vmatprep.subr.bf16.mxu0 %v11250_v11  ;;  %v11910_v10 = vld [vmem:[#allocation14 + $0x24] ss:$8 sps:$4 sm:$0xff]  }
 0x553   : > { %7843 = vmatprep.subr.bf16.mxu1 %v11252_v57  ;;  %v11905_v11 = vld [vmem:[#allocation11 + $0x20] ss:$8 sps:$4 sm:$0xff]  }
 0x554   : > { %v11908_v57 = vld [vmem:[#allocation14 + $0x20] ss:$8 sps:$4 sm:$0xff]  }
 0x555   : > { %7680 = vmatpush1.bf16.msra.mxu0 %v11249_v36  ;;  %v11922_v36 = vld [vmem:[#allocation14 + $0x44] ss:$8 sps:$4 sm:$0xff]  }
 0x556   : > { %7844 = vmatpush1.bf16.msra.mxu1 %v11251_v21  ;;  %7681 = vmatprep.subr.bf16.mxu0 %v11258_v22  ;;  %v11917_v21 = vld [vmem:[#allocation11 + $0x40] ss:$8 sps:$4 sm:$0xff]  }
 0x557   : > { %7845 = vmatprep.subr.bf16.mxu1 %v11260_v18  ;;  %v11920_v22 = vld [vmem:[#allocation14 + $0x40] ss:$8 sps:$4 sm:$0xff]   ;;  %v11925_v18 = vld [vmem:[#allocation11 + $0x54] ss:$8 sps:$4 sm:$0xff]  }
 0x559   : > { %7682 = vmatpush1.bf16.msra.mxu0 %v11257_v1  ;;  %v11934_v1 = vld [vmem:[#allocation14 + $0x64] ss:$8 sps:$4 sm:$0xff]  }
 0x55a   : > { %7846 = vmatpush1.bf16.msra.mxu1 %v11259_v29  ;;  %7683 = vmatprep.subr.bf16.mxu0 %v11266_v30  ;;  %v11929_v29 = vld [vmem:[#allocation11 + $0x60] ss:$8 sps:$4 sm:$0xff]  }
 0x55b   : > { %7847 = vmatprep.subr.bf16.mxu1 %v11268_v31  ;;  %v11932_v30 = vld [vmem:[#allocation14 + $0x60] ss:$8 sps:$4 sm:$0xff]   ;;  %v11937_v31 = vld [vmem:[#allocation11 + $0x74] ss:$8 sps:$4 sm:$0xff]  }
 0x55d   : > { %7684 = vmatpush1.bf16.msra.mxu0 %v11265_v42  ;;  %v11946_v42 = vld [vmem:[#allocation14 + $0x84] ss:$8 sps:$4 sm:$0xff]  }
 0x55e   : > { %7848 = vmatpush1.bf16.msra.mxu1 %v11267_v55  ;;  %7685 = vmatprep.subr.bf16.mxu0 %v11274_v44  ;;  %v11941_v55 = vld [vmem:[#allocation11 + $0x80] ss:$8 sps:$4 sm:$0xff]  }
 0x55f   : > { %7849 = vmatprep.subr.bf16.mxu1 %v11276_v47  ;;  %v11944_v44 = vld [vmem:[#allocation14 + $0x80] ss:$8 sps:$4 sm:$0xff]   ;;  %v11949_v47 = vld [vmem:[#allocation11 + $0x94] ss:$8 sps:$4 sm:$0xff]  }
 0x561   : > { %7686 = vmatpush1.bf16.msra.mxu0 %v11273_v54  ;;  %v11953_v54 = vld [vmem:[#allocation11 + $0xa0] ss:$8 sps:$4 sm:$0xff]  }
 0x562   : > { %7850 = vmatpush1.bf16.msra.mxu1 %v11275_v50  ;;  %7687 = vmatprep.subr.bf16.mxu0 %v11282_v51  ;;  %v11956_v50 = vld [vmem:[#allocation14 + $0xa0] ss:$8 sps:$4 sm:$0xff]   ;;  %v11961_v51 = vld [vmem:[#allocation11 + $0xb4] ss:$8 sps:$4 sm:$0xff]  }
 0x563   : > { %7851 = vmatprep.subr.bf16.mxu1 %v11284_v52  ;;  %v11964_v52 = vld [vmem:[#allocation14 + $0xb4] ss:$8 sps:$4 sm:$0xff]  }
 0x565   : > { %7688 = vmatpush1.bf16.msra.mxu0 %v11281_v9  ;;  %v11962_v9 = vld [vmem:[#allocation14 + $0xb0] ss:$8 sps:$4 sm:$0xff]  }
 0x566   : > { %7852 = vmatpush1.bf16.msra.mxu1 %v11283_v13  ;;  %8658 = vmatprep.subr.bf16.mxu0 %v11895_v58  ;;  %v11967_v13 = vld [vmem:[#allocation11 + $0xc4] ss:$8 sps:$4 sm:$0xff]  }
 0x567   : > { %9602 = vmatprep.subr.bf16.mxu1 %v11898_v62  ;;  %v11970_v58 = vld [vmem:[#allocation14 + $0xc4] ss:$8 sps:$4 sm:$0xff]  }
 0x568   : > { %7690 = vmatmul.mubr.bf16.vlgmr.msra.gmra.mrb[12].mxu0 %v13415_v45  ;;  %v11965_v62 = vld [vmem:[#allocation11 + $0xc0] ss:$8 sps:$4 sm:$0xff]  }
 0x569   : > { %7854 = vmatmul.mubr.bf16.vlgmr.msra.gmra.mrb[12].mxu1 %v13415_v45  ;;  %8659 = vmatpush1.bf16.msra.mxu0 %v11893_v61  ;;  %v11911_v45 = vld [vmem:[#allocation11 + $0x30] ss:$8 sps:$4 sm:$0xff]   ;;  %v11973_v61 = vld [vmem:[#allocation11 + $0xd4] ss:$8 sps:$4 sm:$0xff]  }
 0x56a   : > { %8690 = vmatprep.mubr.bf16.mxu0 %v7871_v60  ;;  %9603 = vmatpush1.bf16.msra.mxu1 %v11896_v63  ;;  %v11976_v63 = vld [vmem:[#allocation14 + $0xd4] ss:$8 sps:$4 sm:$0xff]  }
 0x56b   : > { %9634 = vmatprep.mubr.bf16.mxu1 %v7871_v60  ;;  %8660 = vmatprep.subr.bf16.mxu0 %v11901_v2  ;;  %v11971_v2 = vld [vmem:[#allocation11 + $0xd0] ss:$8 sps:$4 sm:$0xff]   ;;  %v4609_v60 = vrot.slane %v13441_v40, %v13355_v15 }
 0x56c   : > { %9604 = vmatprep.subr.bf16.mxu1 %v11904_v24  ;;  %v11974_v24 = vld [vmem:[#allocation14 + $0xd0] ss:$8 sps:$4 sm:$0xff]  }
 0x56d   : > { %8661 = vmatpush1.bf16.msra.mxu0 %v11899_v5  ;;  %v11979_v5 = vld [vmem:[#allocation11 + $0xe4] ss:$8 sps:$4 sm:$0xff]  }
 0x56e   : > { %9605 = vmatpush1.bf16.msra.mxu1 %v11902_v6  ;;  %8662 = vmatprep.subr.bf16.mxu0 %v11907_v8  ;;  %v11982_v6 = vld [vmem:[#allocation14 + $0xe4] ss:$8 sps:$4 sm:$0xff]   ;;  %v4621_v8 = vrot.slane %v13441_v40, %v1154_v20 }
 0x56f   : > { %9606 = vmatprep.subr.bf16.mxu1 %v11910_v10  ;;  %v11977_v10 = vld [vmem:[#allocation11 + $0xe0] ss:$8 sps:$4 sm:$0xff]  }
 0x570   : > { %v11994_v20 = vld [vmem:[#allocation14 + $0x104] ss:$8 sps:$4 sm:$0xff]  }
 0x571   : > { %8663 = vmatpush1.bf16.msra.mxu0 %v11905_v11  ;;  %v11603_v11 = vadd.f32 %v13433_v17, %v4609_v60  ;;  %v11989_v17 = vld [vmem:[#allocation11 + $0x100] ss:$8 sps:$4 sm:$0xff]  }
 0x572   : > { %9607 = vmatpush1.bf16.msra.mxu1 %v11908_v57  ;;  %8664 = vmatprep.subr.bf16.mxu0 %v11913_v4  ;;  %v11980_v57 = vld [vmem:[#allocation14 + $0xe0] ss:$8 sps:$4 sm:$0xff]   ;;  %v11985_v4 = vld [vmem:[#allocation11 + $0xf4] ss:$8 sps:$4 sm:$0xff]  }
 0x573   : > { %9608 = vmatprep.subr.bf16.mxu1 %v11916_v14  ;;  %v11988_v14 = vld [vmem:[#allocation14 + $0xf4] ss:$8 sps:$4 sm:$0xff]  }
 0x574   : > { %v12048_v60 = vld [vmem:[#allocation14 + $0x194] ss:$8 sps:$4 sm:$0xff]  }
 0x575   : > { %8665 = vmatpush1.bf16.msra.mxu0 %v11911_v45  ;;  %v11606_v45 = vadd.f32 %v13439_v26, %v4621_v8  ;;  %v12000_v26 = vld [vmem:[#allocation14 + $0x114] ss:$8 sps:$4 sm:$0xff]   ;;  %v12054_v8 = vld [vmem:[#allocation14 + $0x1a4] ss:$8 sps:$4 sm:$0xff]  }
 0x576   : > { %9609 = vmatpush1.bf16.msra.mxu1 %v11914_v16  ;;  %8666 = vmatprep.subr.bf16.mxu0 %v11919_v12  ;;  %v11983_v16 = vld [vmem:[#allocation11 + $0xf0] ss:$8 sps:$4 sm:$0xff]   ;;  %v7862_v12 = vmax.f32 %v11603_v11, 0.0  ;;  %v12052_v11 = vld [vmem:[#allocation14 + $0x1a0] ss:$8 sps:$4 sm:$0xff]  }
 0x577   : > { %9610 = vmatprep.subr.bf16.mxu1 %v11922_v36  ;;  %v11986_v36 = vld [vmem:[#allocation14 + $0xf0] ss:$8 sps:$4 sm:$0xff]  }
 0x579   : > { %8667 = vmatpush1.bf16.msra.mxu0 %v11917_v21  ;;  %v11991_v21 = vld [vmem:[#allocation11 + $0x104] ss:$8 sps:$4 sm:$0xff]  }
 0x57a   : > { %9611 = vmatpush1.bf16.msra.mxu1 %v11920_v22  ;;  %8668 = vmatprep.subr.bf16.mxu0 %v11925_v18  ;;  %v7865_v22 = vmax.f32 %v11606_v45, 0.0  ;;  %v7870_v18 = vpack.c.bf16 %v7862_v12, %v7862_v12  ;;  %v12058_v45 = vld [vmem:[#allocation14 + $0x1b0] ss:$8 sps:$4 sm:$0xff]   ;;  %v12066_v12 = vld [vmem:[#allocation14 + $0x1c4] ss:$8 sps:$4 sm:$0xff]  }
 0x57b   : > { %9612 = vmatprep.subr.bf16.mxu1 %v11928_v27  ;;  %v11992_v27 = vld [vmem:[#allocation14 + $0x100] ss:$8 sps:$4 sm:$0xff]  }
 0x57d   : > { %8669 = vmatpush1.bf16.msra.mxu0 %v11923_v25  ;;  %v11997_v25 = vld [vmem:[#allocation11 + $0x114] ss:$8 sps:$4 sm:$0xff]  }
 0x57e   : > { %9613 = vmatpush1.bf16.msra.mxu1 %v11926_v23  ;;  %8670 = vmatprep.subr.bf16.mxu0 %v11931_v28  ;;  %v7873_v23 = vpack.c.bf16 %v7865_v22, %v7865_v22  ;;  %v11995_v28 = vld [vmem:[#allocation11 + $0x110] ss:$8 sps:$4 sm:$0xff]  }
 0x57f   : > { %9614 = vmatprep.subr.bf16.mxu1 %v11934_v1  ;;  %v11998_v1 = vld [vmem:[#allocation14 + $0x110] ss:$8 sps:$4 sm:$0xff]   ;;  %v12072_v22 = vld [vmem:[#allocation14 + $0x1d4] ss:$8 sps:$4 sm:$0xff]  }
 0x581   : > { %8671 = vmatpush1.bf16.msra.mxu0 %v11929_v29  ;;  %v12003_v29 = vld [vmem:[#allocation11 + $0x124] ss:$8 sps:$4 sm:$0xff]  }
 0x582   : > { %9615 = vmatpush1.bf16.msra.mxu1 %v11932_v30  ;;  %8672 = vmatprep.subr.bf16.mxu0 %v11937_v31  ;;  %v12006_v30 = vld [vmem:[#allocation14 + $0x124] ss:$8 sps:$4 sm:$0xff]  }
 0x583   : > { %9616 = vmatprep.subr.bf16.mxu1 %v11940_v34  ;;  %v12001_v31 = vld [vmem:[#allocation11 + $0x120] ss:$8 sps:$4 sm:$0xff]  }
 0x584   : > { %v12004_v34 = vld [vmem:[#allocation14 + $0x120] ss:$8 sps:$4 sm:$0xff]  }
 0x585   : > { %8673 = vmatpush1.bf16.msra.mxu0 %v11935_v38  ;;  %v12009_v38 = vld [vmem:[#allocation11 + $0x134] ss:$8 sps:$4 sm:$0xff]  }
 0x586   : > { %9617 = vmatpush1.bf16.msra.mxu1 %v11938_v37  ;;  %8674 = vmatprep.subr.bf16.mxu0 %v11943_v39  ;;  %v12012_v37 = vld [vmem:[#allocation14 + $0x134] ss:$8 sps:$4 sm:$0xff]  }
 0x587   : > { %9618 = vmatprep.subr.bf16.mxu1 %v11946_v42  ;;  %v12007_v39 = vld [vmem:[#allocation11 + $0x130] ss:$8 sps:$4 sm:$0xff]  }
 0x588   : > { %v12010_v42 = vld [vmem:[#allocation14 + $0x130] ss:$8 sps:$4 sm:$0xff]  }
 0x589   : > { %8675 = vmatpush1.bf16.msra.mxu0 %v11941_v55  ;;  %v12015_v55 = vld [vmem:[#allocation11 + $0x144] ss:$8 sps:$4 sm:$0xff]  }
 0x58a   : > { %9619 = vmatpush1.bf16.msra.mxu1 %v11944_v44  ;;  %8676 = vmatprep.subr.bf16.mxu0 %v11949_v47  ;;  %v12018_v44 = vld [vmem:[#allocation14 + $0x144] ss:$8 sps:$4 sm:$0xff]  }
 0x58b   : > { %9620 = vmatprep.subr.bf16.mxu1 %v11952_v48  ;;  %v12013_v47 = vld [vmem:[#allocation11 + $0x140] ss:$8 sps:$4 sm:$0xff]  }
 0x58c   : > { %v12016_v48 = vld [vmem:[#allocation14 + $0x140] ss:$8 sps:$4 sm:$0xff]  }
 0x58d   : > { %8677 = vmatpush1.bf16.msra.mxu0 %v11947_v43  ;;  %v12021_v43 = vld [vmem:[#allocation11 + $0x154] ss:$8 sps:$4 sm:$0xff]  }
 0x58e   : > { %9621 = vmatpush1.bf16.msra.mxu1 %v11950_v0  ;;  %8678 = vmatprep.subr.bf16.mxu0 %v11955_v49  ;;  %v12024_v0 = vld [vmem:[#allocation14 + $0x154] ss:$8 sps:$4 sm:$0xff]  }
 0x58f   : > { %9622 = vmatprep.subr.bf16.mxu1 %v11958_v3  ;;  %v12019_v49 = vld [vmem:[#allocation11 + $0x150] ss:$8 sps:$4 sm:$0xff]  }
 0x590   : > { %v12022_v3 = vld [vmem:[#allocation14 + $0x150] ss:$8 sps:$4 sm:$0xff]  }
 0x591   : > { %8679 = vmatpush1.bf16.msra.mxu0 %v11953_v54  ;;  %v12027_v54 = vld [vmem:[#allocation11 + $0x164] ss:$8 sps:$4 sm:$0xff]  }
 0x592   : > { %9623 = vmatpush1.bf16.msra.mxu1 %v11956_v50  ;;  %8680 = vmatprep.subr.bf16.mxu0 %v11961_v51  ;;  %v12030_v50 = vld [vmem:[#allocation14 + $0x164] ss:$8 sps:$4 sm:$0xff]  }
 0x593   : > { %9624 = vmatprep.subr.bf16.mxu1 %v11964_v52  ;;  %v12025_v51 = vld [vmem:[#allocation11 + $0x160] ss:$8 sps:$4 sm:$0xff]  }
 0x594   : > { %v12028_v52 = vld [vmem:[#allocation14 + $0x160] ss:$8 sps:$4 sm:$0xff]  }
 0x595   : > { %8681 = vmatpush1.bf16.msra.mxu0 %v11959_v53  ;;  %v12033_v53 = vld [vmem:[#allocation11 + $0x174] ss:$8 sps:$4 sm:$0xff]  }
 0x596   : > { %9625 = vmatpush1.bf16.msra.mxu1 %v11962_v9  ;;  %8682 = vmatprep.subr.bf16.mxu0 %v11967_v13  ;;  %v12036_v9 = vld [vmem:[#allocation14 + $0x174] ss:$8 sps:$4 sm:$0xff]  }
 0x597   : > { %9626 = vmatprep.subr.bf16.mxu1 %v11970_v58  ;;  %v12031_v13 = vld [vmem:[#allocation11 + $0x170] ss:$8 sps:$4 sm:$0xff]  }
 0x598   : > { %v12034_v58 = vld [vmem:[#allocation14 + $0x170] ss:$8 sps:$4 sm:$0xff]  }
 0x599   : > { %8683 = vmatpush1.bf16.msra.mxu0 %v11965_v62  ;;  %v12039_v62 = vld [vmem:[#allocation11 + $0x184] ss:$8 sps:$4 sm:$0xff]  }
 0x59a   : > { %9627 = vmatpush1.bf16.msra.mxu1 %v11968_v59  ;;  %8684 = vmatprep.subr.bf16.mxu0 %v11973_v61  ;;  %v12042_v59 = vld [vmem:[#allocation14 + $0x184] ss:$8 sps:$4 sm:$0xff]  }
 0x59b   : > { %9628 = vmatprep.subr.bf16.mxu1 %v11976_v63  ;;  %v12037_v61 = vld [vmem:[#allocation11 + $0x180] ss:$8 sps:$4 sm:$0xff]  }
 0x59c   : > { %v12040_v63 = vld [vmem:[#allocation14 + $0x180] ss:$8 sps:$4 sm:$0xff]  }
 0x59d   : > { %8685 = vmatpush1.bf16.msra.mxu0 %v11971_v2  ;;  %v12045_v2 = vld [vmem:[#allocation11 + $0x194] ss:$8 sps:$4 sm:$0xff]  }
 0x59e   : > { %9629 = vmatpush1.bf16.msra.mxu1 %v11974_v24  ;;  %8686 = vmatprep.subr.bf16.mxu0 %v11979_v5  ;;  %v12043_v24 = vld [vmem:[#allocation11 + $0x190] ss:$8 sps:$4 sm:$0xff]  }
 0x59f   : > { %9630 = vmatprep.subr.bf16.mxu1 %v11982_v6  ;;  %v12046_v5 = vld [vmem:[#allocation14 + $0x190] ss:$8 sps:$4 sm:$0xff]   ;;  %v12051_v6 = vld [vmem:[#allocation11 + $0x1a4] ss:$8 sps:$4 sm:$0xff]  }
 0x5a1   : > { %8687 = vmatpush1.bf16.msra.mxu0 %v11977_v10  ;;  %v12049_v10 = vld [vmem:[#allocation11 + $0x1a0] ss:$8 sps:$4 sm:$0xff]  }
 0x5a2   : > { %9631 = vmatpush1.bf16.msra.mxu1 %v11980_v57  ;;  %8688 = vmatprep.subr.bf16.mxu0 %v11985_v4  ;;  %v12057_v57 = vld [vmem:[#allocation11 + $0x1b4] ss:$8 sps:$4 sm:$0xff]  }
 0x5a3   : > { %9632 = vmatprep.subr.bf16.mxu1 %v11988_v14  ;;  %v12060_v4 = vld [vmem:[#allocation14 + $0x1b4] ss:$8 sps:$4 sm:$0xff]  }
 0x5a4   : > { %v12055_v14 = vld [vmem:[#allocation11 + $0x1b0] ss:$8 sps:$4 sm:$0xff]  }
 0x5a5   : > { %8689 = vmatpush1.bf16.msra.mxu0 %v11983_v16  ;;  %v12063_v16 = vld [vmem:[#allocation11 + $0x1c4] ss:$8 sps:$4 sm:$0xff]  }
 0x5a6   : > { %9633 = vmatpush1.bf16.msra.mxu1 %v11986_v36  ;;  %8699 = vmatprep.subr.bf16.mxu0 %v11991_v21  ;;  %v12061_v36 = vld [vmem:[#allocation11 + $0x1c0] ss:$8 sps:$4 sm:$0xff]  }
 0x5a7   : > { %9643 = vmatprep.subr.bf16.mxu1 %v11994_v20  ;;  %v12064_v21 = vld [vmem:[#allocation14 + $0x1c0] ss:$8 sps:$4 sm:$0xff]   ;;  %v12069_v20 = vld [vmem:[#allocation11 + $0x1d4] ss:$8 sps:$4 sm:$0xff]  }
 0x5a8   : > { %8691 = vmatmul.mubr.bf16.vlgmr.msra.gmra.mrb[16].mxu0 %v7870_v18 }
 0x5a9   : > { %9635 = vmatmul.mubr.bf16.vlgmr.msra.gmra.mrb[16].mxu1 %v7870_v18  ;;  %8700 = vmatpush1.bf16.msra.mxu0 %v11989_v17  ;;  %v12067_v17 = vld [vmem:[#allocation11 + $0x1d0] ss:$8 sps:$4 sm:$0xff]   ;;  %v4617_v18 = vrot.slane %v13441_v40, %v1150_v41 }
 0x5aa   : > { %8731 = vmatprep.mubr.bf16.mxu0 %v7873_v23  ;;  %9644 = vmatpush1.bf16.msra.mxu1 %v11992_v27  ;;  %v12070_v27 = vld [vmem:[#allocation14 + $0x1d0] ss:$8 sps:$4 sm:$0xff]  }
 0x5ab   : > { %9675 = vmatprep.mubr.bf16.mxu1 %v7873_v23  ;;  %8701 = vmatprep.subr.bf16.mxu0 %v11997_v25  ;;  %v12075_v25 = vld [vmem:[#allocation11 + $0x1e4] ss:$8 sps:$4 sm:$0xff]   ;;  %v12082_v41 = vld [vmem:[#allocation14 + $0x1f0] ss:$8 sps:$4 sm:$0xff]  }
 0x5ac   : > { %9645 = vmatprep.subr.bf16.mxu1 %v12000_v26  ;;  %v12078_v23 = vld [vmem:[#allocation14 + $0x1e4] ss:$8 sps:$4 sm:$0xff]  }
 0x5ad   : > { %8702 = vmatpush1.bf16.msra.mxu0 %v11995_v28  ;;  %v12073_v26 = vld [vmem:[#allocation11 + $0x1e0] ss:$8 sps:$4 sm:$0xff]   ;;  %v11605_v28 = vadd.f32 %v13435_v19, %v4617_v18 }
 0x5ae   : > { %9646 = vmatpush1.bf16.msra.mxu1 %v11998_v1  ;;  %8703 = vmatprep.subr.bf16.mxu0 %v12003_v29  ;;  %v12076_v1 = vld [vmem:[#allocation14 + $0x1e0] ss:$8 sps:$4 sm:$0xff]   ;;  %v12081_v29 = vld [vmem:[#allocation11 + $0x1f4] ss:$8 sps:$4 sm:$0xff]  }
 0x5af   : > { %9647 = vmatprep.subr.bf16.mxu1 %v12006_v30  ;;  %v12084_v30 = vld [vmem:[#allocation14 + $0x1f4] ss:$8 sps:$4 sm:$0xff]   ;;  %v12088_v19 = vld [vmem:[#allocation14 + $0x200] ss:$8 sps:$4 sm:$0xff]  }
 0x5b0   : > { %v12148_v18 = vld [vmem:[#allocation14 + $0x2a0] ss:$8 sps:$4 sm:$0xff]  }
 0x5b1   : > { %8704 = vmatpush1.bf16.msra.mxu0 %v12001_v31  ;;  %v12079_v31 = vld [vmem:[#allocation11 + $0x1f0] ss:$8 sps:$4 sm:$0xff]  }
 0x5b2   : > { %9648 = vmatpush1.bf16.msra.mxu1 %v12004_v34  ;;  %8705 = vmatprep.subr.bf16.mxu0 %v12009_v38  ;;  %v7864_v34 = vmax.f32 %v11605_v28, 0.0  ;;  %v12087_v38 = vld [vmem:[#allocation11 + $0x204] ss:$8 sps:$4 sm:$0xff]  }
 0x5b3   : > { %9649 = vmatprep.subr.bf16.mxu1 %v12012_v37  ;;  %v12090_v37 = vld [vmem:[#allocation14 + $0x204] ss:$8 sps:$4 sm:$0xff]  }
 0x5b4   : > { %v12159_v28 = vld [vmem:[#allocation11 + $0x2c4] ss:$8 sps:$4 sm:$0xff]  }
 0x5b5   : > { %8706 = vmatpush1.bf16.msra.mxu0 %v12007_v39  ;;  %v12085_v39 = vld [vmem:[#allocation11 + $0x200] ss:$8 sps:$4 sm:$0xff]  }
 0x5b6   : > { %9650 = vmatpush1.bf16.msra.mxu1 %v12010_v42  ;;  %8707 = vmatprep.subr.bf16.mxu0 %v12015_v55  ;;  %v7872_v42 = vpack.c.bf16 %v7864_v34, %v7864_v34  ;;  %v12093_v55 = vld [vmem:[#allocation11 + $0x214] ss:$8 sps:$4 sm:$0xff]  }
 0x5b7   : > { %9651 = vmatprep.subr.bf16.mxu1 %v12018_v44  ;;  %v12096_v44 = vld [vmem:[#allocation14 + $0x214] ss:$8 sps:$4 sm:$0xff]  }
 0x5b8   : > { %v12168_v34 = vld [vmem:[#allocation14 + $0x2d4] ss:$8 sps:$4 sm:$0xff]  }
 0x5b9   : > { %8708 = vmatpush1.bf16.msra.mxu0 %v12013_v47  ;;  %v12091_v47 = vld [vmem:[#allocation11 + $0x210] ss:$8 sps:$4 sm:$0xff]  }
 0x5ba   : > { %9652 = vmatpush1.bf16.msra.mxu1 %v12016_v48  ;;  %8709 = vmatprep.subr.bf16.mxu0 %v12021_v43  ;;  %v12094_v48 = vld [vmem:[#allocation14 + $0x210] ss:$8 sps:$4 sm:$0xff]   ;;  %v12099_v43 = vld [vmem:[#allocation11 + $0x224] ss:$8 sps:$4 sm:$0xff]  }
 0x5bb   : > { %9653 = vmatprep.subr.bf16.mxu1 %v12024_v0  ;;  %v12102_v0 = vld [vmem:[#allocation14 + $0x224] ss:$8 sps:$4 sm:$0xff]  }
 0x5bd   : > { %8710 = vmatpush1.bf16.msra.mxu0 %v12019_v49  ;;  %v12097_v49 = vld [vmem:[#allocation11 + $0x220] ss:$8 sps:$4 sm:$0xff]  }
 0x5be   : > { %9654 = vmatpush1.bf16.msra.mxu1 %v12022_v3  ;;  %8711 = vmatprep.subr.bf16.mxu0 %v12027_v54  ;;  %v12100_v3 = vld [vmem:[#allocation14 + $0x220] ss:$8 sps:$4 sm:$0xff]   ;;  %v12105_v54 = vld [vmem:[#allocation11 + $0x234] ss:$8 sps:$4 sm:$0xff]  }
 0x5bf   : > { %9655 = vmatprep.subr.bf16.mxu1 %v12030_v50  ;;  %v12108_v50 = vld [vmem:[#allocation14 + $0x234] ss:$8 sps:$4 sm:$0xff]  }
 0x5c1   : > { %8712 = vmatpush1.bf16.msra.mxu0 %v12025_v51  ;;  %v12103_v51 = vld [vmem:[#allocation11 + $0x230] ss:$8 sps:$4 sm:$0xff]  }
 0x5c2   : > { %9656 = vmatpush1.bf16.msra.mxu1 %v12028_v52  ;;  %8713 = vmatprep.subr.bf16.mxu0 %v12033_v53  ;;  %v12106_v52 = vld [vmem:[#allocation14 + $0x230] ss:$8 sps:$4 sm:$0xff]   ;;  %v12111_v53 = vld [vmem:[#allocation11 + $0x244] ss:$8 sps:$4 sm:$0xff]  }
 0x5c3   : > { %9657 = vmatprep.subr.bf16.mxu1 %v12036_v9  ;;  %v12114_v9 = vld [vmem:[#allocation14 + $0x244] ss:$8 sps:$4 sm:$0xff]  }
 0x5c5   : > { %8714 = vmatpush1.bf16.msra.mxu0 %v12031_v13  ;;  %v12109_v13 = vld [vmem:[#allocation11 + $0x240] ss:$8 sps:$4 sm:$0xff]  }
 0x5c6   : > { %9658 = vmatpush1.bf16.msra.mxu1 %v12034_v58  ;;  %8715 = vmatprep.subr.bf16.mxu0 %v12039_v62  ;;  %v12112_v58 = vld [vmem:[#allocation14 + $0x240] ss:$8 sps:$4 sm:$0xff]   ;;  %v12117_v62 = vld [vmem:[#allocation11 + $0x254] ss:$8 sps:$4 sm:$0xff]  }
 0x5c7   : > { %9659 = vmatprep.subr.bf16.mxu1 %v12042_v59  ;;  %v12120_v59 = vld [vmem:[#allocation14 + $0x254] ss:$8 sps:$4 sm:$0xff]  }
 0x5c9   : > { %8716 = vmatpush1.bf16.msra.mxu0 %v12037_v61  ;;  %v12115_v61 = vld [vmem:[#allocation11 + $0x250] ss:$8 sps:$4 sm:$0xff]  }
 0x5ca   : > { %9660 = vmatpush1.bf16.msra.mxu1 %v12040_v63  ;;  %8717 = vmatprep.subr.bf16.mxu0 %v12045_v2  ;;  %v12118_v63 = vld [vmem:[#allocation14 + $0x250] ss:$8 sps:$4 sm:$0xff]   ;;  %v12123_v2 = vld [vmem:[#allocation11 + $0x264] ss:$8 sps:$4 sm:$0xff]  }
 0x5cb   : > { %9661 = vmatprep.subr.bf16.mxu1 %v12048_v60  ;;  %v12126_v60 = vld [vmem:[#allocation14 + $0x264] ss:$8 sps:$4 sm:$0xff]  }
 0x5cd   : > { %8718 = vmatpush1.bf16.msra.mxu0 %v12043_v24  ;;  %v12121_v24 = vld [vmem:[#allocation11 + $0x260] ss:$8 sps:$4 sm:$0xff]  }
 0x5ce   : > { %9662 = vmatpush1.bf16.msra.mxu1 %v12046_v5  ;;  %8719 = vmatprep.subr.bf16.mxu0 %v12051_v6  ;;  %v12124_v5 = vld [vmem:[#allocation14 + $0x260] ss:$8 sps:$4 sm:$0xff]   ;;  %v12129_v6 = vld [vmem:[#allocation11 + $0x274] ss:$8 sps:$4 sm:$0xff]  }
 0x5cf   : > { %9663 = vmatprep.subr.bf16.mxu1 %v12054_v8  ;;  %v12132_v8 = vld [vmem:[#allocation14 + $0x274] ss:$8 sps:$4 sm:$0xff]  }
 0x5d1   : > { %8720 = vmatpush1.bf16.msra.mxu0 %v12049_v10  ;;  %v12127_v10 = vld [vmem:[#allocation11 + $0x270] ss:$8 sps:$4 sm:$0xff]  }
 0x5d2   : > { %9664 = vmatpush1.bf16.msra.mxu1 %v12052_v11  ;;  %8721 = vmatprep.subr.bf16.mxu0 %v12057_v57  ;;  %v12130_v11 = vld [vmem:[#allocation14 + $0x270] ss:$8 sps:$4 sm:$0xff]   ;;  %v12135_v57 = vld [vmem:[#allocation11 + $0x284] ss:$8 sps:$4 sm:$0xff]  }
 0x5d3   : > { %9665 = vmatprep.subr.bf16.mxu1 %v12060_v4  ;;  %v12138_v4 = vld [vmem:[#allocation14 + $0x284] ss:$8 sps:$4 sm:$0xff]  }
 0x5d5   : > { %8722 = vmatpush1.bf16.msra.mxu0 %v12055_v14  ;;  %v12133_v14 = vld [vmem:[#allocation11 + $0x280] ss:$8 sps:$4 sm:$0xff]  }
 0x5d6   : > { %9666 = vmatpush1.bf16.msra.mxu1 %v12058_v45  ;;  %8723 = vmatprep.subr.bf16.mxu0 %v12063_v16  ;;  %v12136_v45 = vld [vmem:[#allocation14 + $0x280] ss:$8 sps:$4 sm:$0xff]   ;;  %v12141_v16 = vld [vmem:[#allocation11 + $0x294] ss:$8 sps:$4 sm:$0xff]  }
 0x5d7   : > { %9667 = vmatprep.subr.bf16.mxu1 %v12066_v12  ;;  %v12144_v12 = vld [vmem:[#allocation14 + $0x294] ss:$8 sps:$4 sm:$0xff]  }
 0x5d9   : > { %8724 = vmatpush1.bf16.msra.mxu0 %v12061_v36  ;;  %v12139_v36 = vld [vmem:[#allocation11 + $0x290] ss:$8 sps:$4 sm:$0xff]  }
 0x5da   : > { %9668 = vmatpush1.bf16.msra.mxu1 %v12064_v21  ;;  %8725 = vmatprep.subr.bf16.mxu0 %v12069_v20  ;;  %v12142_v21 = vld [vmem:[#allocation14 + $0x290] ss:$8 sps:$4 sm:$0xff]   ;;  %v12147_v20 = vld [vmem:[#allocation11 + $0x2a4] ss:$8 sps:$4 sm:$0xff]  }
 0x5db   : > { %9669 = vmatprep.subr.bf16.mxu1 %v12072_v22  ;;  %v12150_v22 = vld [vmem:[#allocation14 + $0x2a4] ss:$8 sps:$4 sm:$0xff]  }
 0x5dd   : > { %8726 = vmatpush1.bf16.msra.mxu0 %v12067_v17  ;;  %v12145_v17 = vld [vmem:[#allocation11 + $0x2a0] ss:$8 sps:$4 sm:$0xff]  }
 0x5de   : > { %9670 = vmatpush1.bf16.msra.mxu1 %v12070_v27  ;;  %8727 = vmatprep.subr.bf16.mxu0 %v12075_v25  ;;  %v12153_v27 = vld [vmem:[#allocation11 + $0x2b4] ss:$8 sps:$4 sm:$0xff]  }
 0x5df   : > { %9671 = vmatprep.subr.bf16.mxu1 %v12078_v23  ;;  %v12156_v25 = vld [vmem:[#allocation14 + $0x2b4] ss:$8 sps:$4 sm:$0xff]  }
 0x5e0   : > { %v12151_v23 = vld [vmem:[#allocation11 + $0x2b0] ss:$8 sps:$4 sm:$0xff]  }
 0x5e1   : > { %8728 = vmatpush1.bf16.msra.mxu0 %v12073_v26  ;;  %v12154_v26 = vld [vmem:[#allocation14 + $0x2b0] ss:$8 sps:$4 sm:$0xff]  }
 0x5e2   : > { %9672 = vmatpush1.bf16.msra.mxu1 %v12076_v1  ;;  %8729 = vmatprep.subr.bf16.mxu0 %v12081_v29  ;;  %v12162_v1 = vld [vmem:[#allocation14 + $0x2c4] ss:$8 sps:$4 sm:$0xff]  }
 0x5e3   : > { %9673 = vmatprep.subr.bf16.mxu1 %v12084_v30  ;;  %v12157_v29 = vld [vmem:[#allocation11 + $0x2c0] ss:$8 sps:$4 sm:$0xff]  }
 0x5e4   : > { %v12160_v30 = vld [vmem:[#allocation14 + $0x2c0] ss:$8 sps:$4 sm:$0xff]  }
 0x5e5   : > { %8730 = vmatpush1.bf16.msra.mxu0 %v12079_v31  ;;  %v12165_v31 = vld [vmem:[#allocation11 + $0x2d4] ss:$8 sps:$4 sm:$0xff]  }
 0x5e6   : > { %9674 = vmatpush1.bf16.msra.mxu1 %v12082_v41  ;;  %8740 = vmatprep.subr.bf16.mxu0 %v12087_v38  ;;  %v12163_v41 = vld [vmem:[#allocation11 + $0x2d0] ss:$8 sps:$4 sm:$0xff]  }
 0x5e7   : > { %9684 = vmatprep.subr.bf16.mxu1 %v12090_v37  ;;  %v12166_v38 = vld [vmem:[#allocation14 + $0x2d0] ss:$8 sps:$4 sm:$0xff]   ;;  %v12171_v37 = vld [vmem:[#allocation11 + $0x2e4] ss:$8 sps:$4 sm:$0xff]  }
 0x5e8   : > { %8732 = vmatmul.mubr.bf16.vlgmr.msra.gmra.mrb[16].mxu0 %v7872_v42 }
 0x5e9   : > { %9676 = vmatmul.mubr.bf16.vlgmr.msra.gmra.mrb[20].mxu1 %v7872_v42  ;;  %8741 = vmatpush1.bf16.msra.mxu0 %v12085_v39  ;;  %v12174_v39 = vld [vmem:[#allocation14 + $0x2e4] ss:$8 sps:$4 sm:$0xff]  }
 0x5ea   : > { %9685 = vmatpush1.bf16.msra.mxu1 %v12088_v19  ;;  %8742 = vmatprep.subr.bf16.mxu0 %v12093_v55  ;;  %v12169_v42 = vld [vmem:[#allocation11 + $0x2e0] ss:$8 sps:$4 sm:$0xff]   ;;  %v12177_v55 = vld [vmem:[#allocation11 + $0x2f4] ss:$8 sps:$4 sm:$0xff]  }
 0x5eb   : > { %9686 = vmatprep.subr.bf16.mxu1 %v12096_v44  ;;  %v12172_v19 = vld [vmem:[#allocation14 + $0x2e0] ss:$8 sps:$4 sm:$0xff]   ;;  %v12180_v44 = vld [vmem:[#allocation14 + $0x2f4] ss:$8 sps:$4 sm:$0xff]  }
 0x5ed   : > { %8743 = vmatpush1.bf16.msra.mxu0 %v12091_v47  ;;  %v12175_v47 = vld [vmem:[#allocation11 + $0x2f0] ss:$8 sps:$4 sm:$0xff]  }
 0x5ee   : > { %9687 = vmatpush1.bf16.msra.mxu1 %v12094_v48  ;;  %8744 = vmatprep.subr.bf16.mxu0 %v12099_v43  ;;  %v12178_v48 = vld [vmem:[#allocation14 + $0x2f0] ss:$8 sps:$4 sm:$0xff]   ;;  %v12183_v43 = vld [vmem:[#allocation11 + $0x304] ss:$8 sps:$4 sm:$0xff]  }
 0x5ef   : > { %9688 = vmatprep.subr.bf16.mxu1 %v12102_v0  ;;  %v12186_v0 = vld [vmem:[#allocation14 + $0x304] ss:$8 sps:$4 sm:$0xff]  }
 0x5f1   : > { %8745 = vmatpush1.bf16.msra.mxu0 %v12097_v49  ;;  %v4625_v49 = vrot.slane %v13441_v40, %v1158_v32 }
 0x5f2   : > { %9689 = vmatpush1.bf16.msra.mxu1 %v12100_v3  ;;  %8746 = vmatprep.subr.bf16.mxu0 %v12105_v54  ;;  %v4629_v3 = vrot.slane %v13441_v40, %v1162_v33  ;;  %v4637_v54 = vrot.slane %v13441_v40, %v1170_v35  ;;  %v12189_v35 = vld [vmem:[#allocation11 + $0x314] ss:$8 sps:$4 sm:$0xff]  }
 0x5f3   : > { %9690 = vmatprep.subr.bf16.mxu1 %v12108_v50  ;;  %v12192_v40 = vld [vmem:[#allocation14 + $0x314] ss:$8 sps:$4 sm:$0xff]  }
 0x5f5   : > { %8747 = vmatpush1.bf16.msra.mxu0 %v12103_v51 }
 0x5f6   : > { %9691 = vmatpush1.bf16.msra.mxu1 %v12106_v52  ;;  %8748 = vmatprep.subr.bf16.mxu0 %v12111_v53 }
 0x5f7   : > { %9692 = vmatprep.subr.bf16.mxu1 %v12114_v9 }
 0x5f9   : > { %8749 = vmatpush1.bf16.msra.mxu0 %v12109_v13 }
 0x5fa   : > { %9693 = vmatpush1.bf16.msra.mxu1 %v12112_v58  ;;  %8750 = vmatprep.subr.bf16.mxu0 %v12117_v62 }
 0x5fb   : > { %9694 = vmatprep.subr.bf16.mxu1 %v12120_v59 }
 0x5fd   : > { %8751 = vmatpush1.bf16.msra.mxu0 %v12115_v61 }
 0x5fe   : > { %9695 = vmatpush1.bf16.msra.mxu1 %v12118_v63  ;;  %8752 = vmatprep.subr.bf16.mxu0 %v12123_v2 }
 0x5ff   : > { %9696 = vmatprep.subr.bf16.mxu1 %v12126_v60 }
 0x601   : > { %8753 = vmatpush1.bf16.msra.mxu0 %v12121_v24  ;;  %v12181_v24 = vld [vmem:[#allocation11 + $0x300] ss:$8 sps:$4 sm:$0xff]  }
 0x602   : > { %9697 = vmatpush1.bf16.msra.mxu1 %v12124_v5  ;;  %8754 = vmatprep.subr.bf16.mxu0 %v12129_v6  ;;  %v12184_v5 = vld [vmem:[#allocation14 + $0x300] ss:$8 sps:$4 sm:$0xff]  }
 0x603   : > { %9698 = vmatprep.subr.bf16.mxu1 %v12132_v8 }
 0x605   : > { %8755 = vmatpush1.bf16.msra.mxu0 %v12127_v10  ;;  %v12187_v10 = vld [vmem:[#allocation11 + $0x310] ss:$8 sps:$4 sm:$0xff]  }
 0x606   : > { %9699 = vmatpush1.bf16.msra.mxu1 %v12130_v11  ;;  %8756 = vmatprep.subr.bf16.mxu0 %v12135_v57  ;;  %v12190_v11 = vld [vmem:[#allocation14 + $0x310] ss:$8 sps:$4 sm:$0xff]   ;;  %v12195_v57 = vld [vmem:[#allocation11 + $0x324] ss:$8 sps:$4 sm:$0xff]  }
 0x607   : > { %9700 = vmatprep.subr.bf16.mxu1 %v12138_v4  ;;  %v12198_v4 = vld [vmem:[#allocation14 + $0x324] ss:$8 sps:$4 sm:$0xff]  }
 0x609   : > { %8757 = vmatpush1.bf16.msra.mxu0 %v12133_v14  ;;  %v12193_v14 = vld [vmem:[#allocation11 + $0x320] ss:$8 sps:$4 sm:$0xff]  }
 0x60a   : > { %9701 = vmatpush1.bf16.msra.mxu1 %v12136_v45  ;;  %8758 = vmatprep.subr.bf16.mxu0 %v12141_v16  ;;  %v12196_v45 = vld [vmem:[#allocation14 + $0x320] ss:$8 sps:$4 sm:$0xff]   ;;  %v12201_v16 = vld [vmem:[#allocation11 + $0x334] ss:$8 sps:$4 sm:$0xff]  }
 0x60b   : > { %9702 = vmatprep.subr.bf16.mxu1 %v12144_v12  ;;  %v12204_v12 = vld [vmem:[#allocation14 + $0x334] ss:$8 sps:$4 sm:$0xff]  }
 0x60d   : > { %8759 = vmatpush1.bf16.msra.mxu0 %v12139_v36  ;;  %v12199_v36 = vld [vmem:[#allocation11 + $0x330] ss:$8 sps:$4 sm:$0xff]  }
 0x60e   : > { %9703 = vmatpush1.bf16.msra.mxu1 %v12142_v21  ;;  %8760 = vmatprep.subr.bf16.mxu0 %v12147_v20  ;;  %v12202_v21 = vld [vmem:[#allocation14 + $0x330] ss:$8 sps:$4 sm:$0xff]   ;;  %v12207_v20 = vld [vmem:[#allocation11 + $0x344] ss:$8 sps:$4 sm:$0xff]  }
 0x60f   : > { %9704 = vmatprep.subr.bf16.mxu1 %v12150_v22  ;;  %v12210_v22 = vld [vmem:[#allocation14 + $0x344] ss:$8 sps:$4 sm:$0xff]  }
 0x611   : > { %8761 = vmatpush1.bf16.msra.mxu0 %v12145_v17  ;;  %v12205_v17 = vld [vmem:[#allocation11 + $0x340] ss:$8 sps:$4 sm:$0xff]  }
 0x612   : > { %9705 = vmatpush1.bf16.msra.mxu1 %v12148_v18  ;;  %8762 = vmatprep.subr.bf16.mxu0 %v12153_v27  ;;  %v12208_v18 = vld [vmem:[#allocation14 + $0x340] ss:$8 sps:$4 sm:$0xff]   ;;  %v12213_v27 = vld [vmem:[#allocation11 + $0x354] ss:$8 sps:$4 sm:$0xff]  }
 0x613   : > { %9706 = vmatprep.subr.bf16.mxu1 %v12156_v25  ;;  %v12216_v25 = vld [vmem:[#allocation14 + $0x354] ss:$8 sps:$4 sm:$0xff]  }
 0x615   : > { %8763 = vmatpush1.bf16.msra.mxu0 %v12151_v23  ;;  %v12211_v23 = vld [vmem:[#allocation11 + $0x350] ss:$8 sps:$4 sm:$0xff]  }
 0x616   : > { %9707 = vmatpush1.bf16.msra.mxu1 %v12154_v26  ;;  %8764 = vmatprep.subr.bf16.mxu0 %v12159_v28  ;;  %v12214_v26 = vld [vmem:[#allocation14 + $0x350] ss:$8 sps:$4 sm:$0xff]   ;;  %v12219_v28 = vld [vmem:[#allocation11 + $0x364] ss:$8 sps:$4 sm:$0xff]  }
 0x617   : > { %9708 = vmatprep.subr.bf16.mxu1 %v12162_v1  ;;  %v12222_v1 = vld [vmem:[#allocation14 + $0x364] ss:$8 sps:$4 sm:$0xff]  }
 0x619   : > { %8765 = vmatpush1.bf16.msra.mxu0 %v12157_v29  ;;  %v12217_v29 = vld [vmem:[#allocation11 + $0x360] ss:$8 sps:$4 sm:$0xff]  }
 0x61a   : > { %9709 = vmatpush1.bf16.msra.mxu1 %v12160_v30  ;;  %8766 = vmatprep.subr.bf16.mxu0 %v12165_v31  ;;  %v12220_v30 = vld [vmem:[#allocation14 + $0x360] ss:$8 sps:$4 sm:$0xff]   ;;  %v12225_v31 = vld [vmem:[#allocation11 + $0x374] ss:$8 sps:$4 sm:$0xff]  }
 0x61b   : > { %9710 = vmatprep.subr.bf16.mxu1 %v12168_v34  ;;  %v12228_v34 = vld [vmem:[#allocation14 + $0x374] ss:$8 sps:$4 sm:$0xff]  }
 0x61d   : > { %8767 = vmatpush1.bf16.msra.mxu0 %v12163_v41  ;;  %v12223_v41 = vld [vmem:[#allocation11 + $0x370] ss:$8 sps:$4 sm:$0xff]  }
 0x61e   : > { %9711 = vmatpush1.bf16.msra.mxu1 %v12166_v38  ;;  %8768 = vmatprep.subr.bf16.mxu0 %v12171_v37  ;;  %v12226_v38 = vld [vmem:[#allocation14 + $0x370] ss:$8 sps:$4 sm:$0xff]   ;;  %v12231_v37 = vld [vmem:[#allocation11 + $0x384] ss:$8 sps:$4 sm:$0xff]  }
 0x61f   : > { %9712 = vmatprep.subr.bf16.mxu1 %v12174_v39  ;;  %v12234_v39 = vld [vmem:[#allocation14 + $0x384] ss:$8 sps:$4 sm:$0xff]  }
 0x621   : > { %8769 = vmatpush1.bf16.msra.mxu0 %v12169_v42  ;;  %v12229_v42 = vld [vmem:[#allocation11 + $0x380] ss:$8 sps:$4 sm:$0xff]  }
 0x622   : > { %9713 = vmatpush1.bf16.msra.mxu1 %v12172_v19  ;;  %8770 = vmatprep.subr.bf16.mxu0 %v12177_v55  ;;  %v12232_v19 = vld [vmem:[#allocation14 + $0x380] ss:$8 sps:$4 sm:$0xff]   ;;  %v12237_v55 = vld [vmem:[#allocation11 + $0x394] ss:$8 sps:$4 sm:$0xff]  }
 0x623   : > { %9714 = vmatprep.subr.bf16.mxu1 %v12180_v44  ;;  %v12240_v44 = vld [vmem:[#allocation14 + $0x394] ss:$8 sps:$4 sm:$0xff]  }
 0x625   : > { %8771 = vmatpush1.bf16.msra.mxu0 %v12175_v47  ;;  %v12235_v47 = vld [vmem:[#allocation11 + $0x390] ss:$8 sps:$4 sm:$0xff]  }
 0x626   : > { %9715 = vmatpush1.bf16.msra.mxu1 %v12178_v48  ;;  %8781 = vmatprep.subr.bf16.mxu0 %v12183_v43  ;;  %v12238_v48 = vld [vmem:[#allocation14 + $0x390] ss:$8 sps:$4 sm:$0xff]   ;;  %v12243_v43 = vld [vmem:[#allocation11 + $0x3a4] ss:$8 sps:$4 sm:$0xff]  }
 0x627   : > { %9725 = vmatprep.subr.bf16.mxu1 %v12186_v0  ;;  %v12246_v0 = vld [vmem:[#allocation14 + $0x3a4] ss:$8 sps:$4 sm:$0xff]  }
 0x63b   : > { %v7691_v50 = vpop.f32.mrb[12].mxu0 }
 0x63c   : > { %v11607_v51 = vadd.f32 %v7691_v50, %v4625_v49  ;;  %v13468_v52 = vpop.f32.mrb[12].mxu1  ;;  %v7693_v53 = vpop.f32.mrb[13].mxu0  ;;  %v12241_v49 = vld [vmem:[#allocation11 + $0x3a0] ss:$8 sps:$4 sm:$0xff]  }
 0x63d   : > { %v11608_v9 = vadd.f32 %v7693_v53, %v4629_v3  ;;  %v7857_v13 = vpop.f32.mrb[13].mxu1  ;;  %v7695_v58 = vpop.f32.mrb[14].mxu0  ;;  %v12244_v3 = vld [vmem:[#allocation14 + $0x3a0] ss:$8 sps:$4 sm:$0xff]   ;;  %v12252_v50 = vld [vmem:[#allocation14 + $0x3b4] ss:$8 sps:$4 sm:$0xff]  }
 0x63e   : > { %v7866_v62 = vmax.f32 %v11607_v51, 0.0  ;;  %v11610_v59 = vadd.f32 %v7857_v13, %v4637_v54  ;;  %v7859_v61 = vpop.f32.mrb[14].mxu1  ;;  %v7696_v32 = vpop.f32.mrb[15].mxu0  ;;  %v12249_v54 = vld [vmem:[#allocation11 + $0x3b4] ss:$8 sps:$4 sm:$0xff]  }
 0x63f   : > { %v7867_v63 = vmax.f32 %v11608_v9, 0.0  ;;  %v7860_v2 = vpop.f32.mrb[15].mxu1  ;;  %v12247_v51 = vld [vmem:[#allocation11 + $0x3b0] ss:$8 sps:$4 sm:$0xff]   ;;  %v12255_v9 = vld [vmem:[#allocation11 + $0x3c4] ss:$8 sps:$4 sm:$0xff]  }
 0x640   : > { %v7869_v60 = vmax.f32 %v11610_v59, 0.0  ;;  %v7874_v6 = vpack.c.bf16 %v7866_v62, %v7866_v62  ;;  %v12250_v53 = vld [vmem:[#allocation14 + $0x3b0] ss:$8 sps:$4 sm:$0xff]   ;;  %v12258_v13 = vld [vmem:[#allocation14 + $0x3c4] ss:$8 sps:$4 sm:$0xff]  }
 0x641   : > { %v7875_v33 = vpack.c.bf16 %v7867_v63, %v7867_v63  ;;  %v12253_v58 = vld [vmem:[#allocation11 + $0x3c0] ss:$8 sps:$4 sm:$0xff]   ;;  %v12261_v59 = vld [vmem:[#allocation11 + $0x3d4] ss:$8 sps:$4 sm:$0xff]   ;;  %v12259_v32 = vld [vmem:[#allocation11 + $0x3d0] ss:$8 sps:$4 sm:$0xff]  }
 0x642   : > { %v7877_v8 = vpack.c.bf16 %v7869_v60, %v7869_v60  ;;  %v12256_v62 = vld [vmem:[#allocation14 + $0x3c0] ss:$8 sps:$4 sm:$0xff]   ;;  %v12264_v61 = vld [vmem:[#allocation14 + $0x3d4] ss:$8 sps:$4 sm:$0xff]   ;;  %v12262_v63 = vld [vmem:[#allocation14 + $0x3d0] ss:$8 sps:$4 sm:$0xff]  }
 0x643   : > { %8772 = vmatprep.mubr.bf16.mxu0 %v7875_v33  ;;  %9716 = vmatprep.mubr.bf16.mxu1 %v7875_v33  ;;  %v12302_v2 = vld [vmem:[#allocation10] sm:$0xff]  ;;  %v12267_v33 = vld [vmem:[#allocation11 + $0x3e4] ss:$8 sps:$4 sm:$0xff]  }
 0x644   : > { %8773 = vmatmul.mubr.bf16.vlgmr.msra.gmra.mrb[16].mxu0 %v7874_v6  ;;  %9717 = vmatmul.mubr.bf16.vlgmr.msra.gmra.mrb[24].mxu1 %v7874_v6  ;;  %v4633_v60 = vrot.slane %v12302_v2, %v1166_v7  ;;  %v12268_v6 = vld [vmem:[#allocation14 + $0x3e0] ss:$8 sps:$4 sm:$0xff]   ;;  %v12274_v7 = vld [vmem:[#allocation14 + $0x3f0] ss:$8 sps:$4 sm:$0xff]  }
 0x645   : > { %8782 = vmatpush1.bf16.msra.mxu0 %v12181_v24  ;;  %9726 = vmatpush1.bf16.msra.mxu1 %v12184_v5  ;;  %v12270_v24 = vld [vmem:[#allocation14 + $0x3e4] ss:$8 sps:$4 sm:$0xff]  }
 0x646   : > { %8813 = vmatprep.mubr.bf16.mxu0 %v7877_v8  ;;  %9757 = vmatprep.mubr.bf16.mxu1 %v7877_v8  ;;  %v12265_v5 = vld [vmem:[#allocation11 + $0x3e0] ss:$8 sps:$4 sm:$0xff]  }
 0x647   : > { %8783 = vmatprep.subr.bf16.mxu0 %v12189_v35  ;;  %9727 = vmatprep.subr.bf16.mxu1 %v12192_v40  ;;  %v11609_v35 = vadd.f32 %v13468_v52, %v4633_v60  ;;  %v12273_v40 = vld [vmem:[#allocation11 + $0x3f4] ss:$8 sps:$4 sm:$0xff]   ;;  %v8950_v52 = vld [vmem:[#allocation16] sm:$0x3] }
 0x648   : > { %v12276_v8 = vld [vmem:[#allocation14 + $0x3f4] ss:$8 sps:$4 sm:$0xff]  }
 0x649   : > { %8784 = vmatpush1.bf16.msra.mxu0 %v12187_v10  ;;  %9728 = vmatpush1.bf16.msra.mxu1 %v12190_v11 }
 0x64a   : > { %8785 = vmatprep.subr.bf16.mxu0 %v12195_v57  ;;  %9729 = vmatprep.subr.bf16.mxu1 %v12198_v4  ;;  %v7868_v57 = vmax.f32 %v11609_v35, 0.0 }
 0x64d   : > { %8786 = vmatpush1.bf16.msra.mxu0 %v12193_v14  ;;  %9730 = vmatpush1.bf16.msra.mxu1 %v12196_v45  ;;  %v7876_v45 = vpack.c.bf16 %v7868_v57, %v7868_v57 }
 0x64e   : > { %8787 = vmatprep.subr.bf16.mxu0 %v12201_v16  ;;  %9731 = vmatprep.subr.bf16.mxu1 %v12204_v12  ;;  %v8955_v16 = vrot.slane %v8950_v52, %v13355_v15  ;;  %v8959_v12 = vrot.slane %v8950_v52, %v13336_v56 }
 0x651   : > { %8788 = vmatpush1.bf16.msra.mxu0 %v12199_v36  ;;  %9732 = vmatpush1.bf16.msra.mxu1 %v12202_v21 }
 0x652   : > { %8789 = vmatprep.subr.bf16.mxu0 %v12207_v20  ;;  %9733 = vmatprep.subr.bf16.mxu1 %v12210_v22 }
 0x655   : > { %8790 = vmatpush1.bf16.msra.mxu0 %v12205_v17  ;;  %9734 = vmatpush1.bf16.msra.mxu1 %v12208_v18 }
 0x656   : > { %8791 = vmatprep.subr.bf16.mxu0 %v12213_v27  ;;  %9735 = vmatprep.subr.bf16.mxu1 %v12216_v25 }
 0x659   : > { %8792 = vmatpush1.bf16.msra.mxu0 %v12211_v23  ;;  %9736 = vmatpush1.bf16.msra.mxu1 %v12214_v26  ;;  %v12277_v23 = vld [vmem:[#allocation17 + $0x40] sm:$0xff]  }
 0x65a   : > { %8793 = vmatprep.subr.bf16.mxu0 %v12219_v28  ;;  %9737 = vmatprep.subr.bf16.mxu1 %v12222_v1  ;;  %v12278_v26 = vld [vmem:[#allocation17] sm:$0xff]   ;;  %v12279_v28 = vld [vmem:[#allocation17 + $0x48] sm:$0xff]  }
 0x65b   : > { %v12280_v1 = vld [vmem:[#allocation17 + $0x8] sm:$0xff]  }
 0x65d   : > { %8794 = vmatpush1.bf16.msra.mxu0 %v12217_v29  ;;  %9738 = vmatpush1.bf16.msra.mxu1 %v12220_v30  ;;  %v12281_v29 = vld [vmem:[#allocation17 + $0x50] sm:$0xff]  }
 0x65e   : > { %8795 = vmatprep.subr.bf16.mxu0 %v12225_v31  ;;  %9739 = vmatprep.subr.bf16.mxu1 %v12228_v34  ;;  %v12282_v30 = vld [vmem:[#allocation17 + $0x10] sm:$0xff]   ;;  %v12283_v31 = vld [vmem:[#allocation17 + $0x58] sm:$0xff]  }
 0x65f   : > { %v12284_v34 = vld [vmem:[#allocation17 + $0x18] sm:$0xff]  }
 0x661   : > { %8796 = vmatpush1.bf16.msra.mxu0 %v12223_v41  ;;  %9740 = vmatpush1.bf16.msra.mxu1 %v12226_v38  ;;  %v12285_v41 = vld [vmem:[#allocation17 + $0x60] sm:$0xff]  }
 0x662   : > { %8797 = vmatprep.subr.bf16.mxu0 %v12231_v37  ;;  %9741 = vmatprep.subr.bf16.mxu1 %v12234_v39  ;;  %v12286_v38 = vld [vmem:[#allocation17 + $0x20] sm:$0xff]   ;;  %v12287_v37 = vld [vmem:[#allocation17 + $0x68] sm:$0xff]  }
 0x663   : > { %v12288_v39 = vld [vmem:[#allocation17 + $0x28] sm:$0xff]  }
 0x665   : > { %8798 = vmatpush1.bf16.msra.mxu0 %v12229_v42  ;;  %9742 = vmatpush1.bf16.msra.mxu1 %v12232_v19  ;;  %v12289_v42 = vld [vmem:[#allocation17 + $0x70] sm:$0xff]  }
 0x666   : > { %8799 = vmatprep.subr.bf16.mxu0 %v12237_v55  ;;  %9743 = vmatprep.subr.bf16.mxu1 %v12240_v44  ;;  %v12290_v19 = vld [vmem:[#allocation17 + $0x30] sm:$0xff]   ;;  %v12291_v55 = vld [vmem:[#allocation17 + $0x78] sm:$0xff]  }
 0x667   : > { %v12292_v44 = vld [vmem:[#allocation17 + $0x38] sm:$0xff]  }
 0x669   : > { %8800 = vmatpush1.bf16.msra.mxu0 %v12235_v47  ;;  %9744 = vmatpush1.bf16.msra.mxu1 %v12238_v48 }
 0x66a   : > { %8801 = vmatprep.subr.bf16.mxu0 %v12243_v43  ;;  %9745 = vmatprep.subr.bf16.mxu1 %v12246_v0 }
 0x66d   : > { %8802 = vmatpush1.bf16.msra.mxu0 %v12241_v49  ;;  %9746 = vmatpush1.bf16.msra.mxu1 %v12244_v3 }
 0x66e   : > { %8803 = vmatprep.subr.bf16.mxu0 %v12249_v54  ;;  %9747 = vmatprep.subr.bf16.mxu1 %v12252_v50  ;;  %v8006_v54 = vld [vmem:[#allocation13] sm:$0x3] }
 0x66f   : > { %v8011_v50 = vrot.slane %v8006_v54, %v13355_v15 }
 0x671   : > { %8804 = vmatpush1.bf16.msra.mxu0 %v12247_v51  ;;  %9748 = vmatpush1.bf16.msra.mxu1 %v12250_v53  ;;  %v8015_v51 = vrot.slane %v8006_v54, %v13336_v56 }
 0x672   : > { %8805 = vmatprep.subr.bf16.mxu0 %v12255_v9  ;;  %9749 = vmatprep.subr.bf16.mxu1 %v12258_v13 }
 0x675   : > { %8806 = vmatpush1.bf16.msra.mxu0 %v12253_v58  ;;  %9750 = vmatpush1.bf16.msra.mxu1 %v12256_v62 }
 0x676   : > { %8807 = vmatprep.subr.bf16.mxu0 %v12261_v59  ;;  %9751 = vmatprep.subr.bf16.mxu1 %v12264_v61 }
 0x679   : > { %8808 = vmatpush1.bf16.msra.mxu0 %v12259_v32  ;;  %9752 = vmatpush1.bf16.msra.mxu1 %v12262_v63 }
 0x67a   : > { %8809 = vmatprep.subr.bf16.mxu0 %v12267_v33  ;;  %9753 = vmatprep.subr.bf16.mxu1 %v12270_v24 }
 0x67c   : > { %v9636_v10 = vpop.f32.mrb[16].mxu1 }
 0x67d   : > { %8810 = vmatpush1.bf16.msra.mxu0 %v12265_v5  ;;  %v9638_v11 = vpop.f32.mrb[17].mxu1  ;;  %9754 = vmatpush1.bf16.msra.mxu1 %v12268_v6  ;;  %v9637_v36 = vadd.f32 %v9636_v10, %v8955_v16 }
 0x67e   : > { %v9640_v4 = vpop.f32.mrb[18].mxu1  ;;  %8811 = vmatprep.subr.bf16.mxu0 %v12273_v40  ;;  %9755 = vmatprep.subr.bf16.mxu1 %v12276_v8  ;;  %v9639_v21 = vadd.f32 %v9638_v11, %v8959_v12 }
 0x67f   : > { %v9641_v14 = vpop.f32.mrb[19].mxu1 }
 0x681   : > { %8812 = vmatpush1.bf16.msra.mxu0 %v12271_v46  ;;  %9756 = vmatpush1.bf16.msra.mxu1 %v12274_v7 }
 0x682   : > { %11573 = vmatprep.subr.bf16.mxu0 %v12277_v23 }
 0x684   : > { %8814 = vmatmul.mubr.bf16.vlgmr.msra.gmra.mrb[16].mxu0 %v7876_v45  ;;  %9758 = vmatmul.mubr.bf16.vlgmr.msra.gmra.mrb[28].mxu1 %v7876_v45 }
 0x685   : > { %11574 = vmatpush3.bf16.msra.mxu0 %v12278_v26 }
 0x686   : > { %11575 = vmatprep.subr.bf16.mxu0 %v12279_v28  ;;  %v9804_v28 = vld [vmem:[%s615_s24] sm:$0xff] }
 0x689   : > { %11576 = vmatpush3.bf16.msra.mxu0 %v12280_v1 }
 0x68a   : > { %11577 = vmatprep.subr.bf16.mxu0 %v12281_v29  ;;  %v9805_v29 = vld [vmem:[%s615_s24 + $0x8] sm:$0xff]  ;;  %s13501_s24 = scalar_lea.sflag [#allocation24], %s9997_s18 }
 0x68d   : > { %11578 = vmatpush3.bf16.msra.mxu0 %v12282_v30 }
 0x68e   : > { %11579 = vmatprep.subr.bf16.mxu0 %v12283_v31 }
 0x691   : > { %11580 = vmatpush3.bf16.msra.mxu0 %v12284_v34 }
 0x692   : > { %11581 = vmatprep.subr.bf16.mxu0 %v12285_v41 }
 0x695   : > { %11582 = vmatpush3.bf16.msra.mxu0 %v12286_v38 }
 0x696   : > { %11583 = vmatprep.subr.bf16.mxu0 %v12287_v37 }
 0x699   : > { %11584 = vmatpush3.bf16.msra.mxu0 %v12288_v39 }
 0x69a   : > { %11585 = vmatprep.subr.bf16.mxu0 %v12289_v42 }
 0x69d   : > { %11586 = vmatpush3.bf16.msra.mxu0 %v12290_v19 }
 0x69e   : > { %11587 = vmatprep.subr.bf16.mxu0 %v12291_v55 }
 0x6a1   : > { %11588 = vmatpush3.bf16.msra.mxu0 %v12292_v44 }
 0x6bc   : > { %v9677_v20 = vpop.f32.mrb[20].mxu1 }
 0x6bd   : > { %v9678_v22 = vadd.f32 %v9677_v20, %v9637_v36  ;;  %v9679_v17 = vpop.f32.mrb[21].mxu1 }
 0x6be   : > { %v9680_v18 = vadd.f32 %v9679_v17, %v9639_v21  ;;  %v9681_v27 = vpop.f32.mrb[22].mxu1 }
 0x6bf   : > { %v9682_v25 = vpop.f32.mrb[23].mxu1 }
 0x717   : > { %v9718_v47 = vpop.f32.mrb[24].mxu1 }
 0x718   : > { %v9719_v48 = vadd.f32 %v9718_v47, %v9678_v22  ;;  %v9720_v43 = vpop.f32.mrb[25].mxu1 }
 0x719   : > { %v9721_v0 = vadd.f32 %v9720_v43, %v9680_v18  ;;  %v9722_v49 = vpop.f32.mrb[26].mxu1 }
 0x71a   : > { %v9723_v3 = vpop.f32.mrb[27].mxu1 }
 0x757   : > { %v8815_v53 = vpop.f32.mrb[16].mxu0  ;;  %v9759_v9 = vpop.f32.mrb[28].mxu1 }
 0x758   : > { %v11611_v13 = vadd.f32 %v8815_v53, %v8011_v50  ;;  %v9760_v58 = vadd.f32 %v9759_v9, %v9719_v48  ;;  %v8817_v62 = vpop.f32.mrb[17].mxu0  ;;  %v9761_v59 = vpop.f32.mrb[29].mxu1 }
 0x759   : > { %v11612_v61 = vadd.f32 %v8817_v62, %v8015_v51  ;;  %v9762_v32 = vadd.f32 %v9761_v59, %v9721_v0  ;;  %v8819_v63 = vpop.f32.mrb[18].mxu0  ;;  %v9763_v2 = vpop.f32.mrb[30].mxu1 }
 0x75a   : > { %9987 = vst [vmem:[%s13478_s3] sm:$0xff] %v11611_v13  ;;  %v11541_v60 = vadd.f32 -5.0, %v9760_v58  ;;  %v8820_v33 = vpop.f32.mrb[19].mxu0  ;;  %v9764_v15 = vpop.f32.mrb[31].mxu1 }
 0x75b   : > { %9988 = vst [vmem:[%s13478_s3 + $0x8] sm:$0xff] %v11612_v61  ;;  %v11542_v56 = vadd.f32 -5.0, %v9762_v32 }
 0x75c   : > { %v9774_v24 = vand.u32 2147483647, %v11541_v60  ;;  %v9768_v22 = vmax.f32 %v11541_v60, 0.0  ;;  %vm9770_vm2 = vcmp.ne.f32.partialorder %v11541_v60, %v11541_v60 }
 0x75d   : > { %v9775_v5 = vand.u32 2147483647, %v11542_v56  ;;  %v9769_v25 = vmax.f32 %v11542_v56, 0.0  ;;  %vm9771_vm3 = vcmp.ne.f32.partialorder %v11542_v56, %v11542_v56 }
 0x75e   : > { %v9776_v6 = vsub.f32 0.0, %v9774_v24 }
 0x75f   : > { %v9777_v35 = vsub.f32 0.0, %v9775_v5 }
 0x760   : > { %v9778_v40 = vmul.f32 1.442695, %v9776_v6 }
 0x761   : > { %v9780_v8 = vmul.f32 1.442695, %v9777_v35 }
 0x762   : > { %12293 = vpow2.f32 %v9778_v40 }
 0x763   : > { %12295 = vpow2.f32 %v9780_v8 }
 0x76c   : > { %v12294_v10 = vpop.eup %12293 }
 0x76d   : > { %v12296_v11 = vpop.eup %12295  ;;  %v9782_v46 = vadd.f32 1.0, %v12294_v10  ;;  %v9785_v57 = vmul.f32 -0.5, %v12294_v10  ;;  %v9788_v45 = vand.u32 2147483647, %v12294_v10 }
 0x76e   : > { %v9791_v7 = vadd.f32 1.0, %v12296_v11  ;;  %v9794_v4 = vmul.f32 -0.5, %v12296_v11  ;;  %v9797_v16 = vand.u32 2147483647, %v12296_v11 }
 0x76f   : > { %12297 = vlog2.f32 %v9782_v46  ;;  %v9786_v14 = vadd.f32 1.0, %v9785_v57  ;;  %vm9789_vm0 = vcmp.lt.f32.partialorder %v9788_v45, 0.0004427343 }
 0x770   : > { %12299 = vlog2.f32 %v9791_v7  ;;  %v9795_v52 = vadd.f32 1.0, %v9794_v4  ;;  %vm9798_vm1 = vcmp.lt.f32.partialorder %v9797_v16, 0.0004427343 }
 0x771   : > { %v9787_v20 = vmul.f32 %v12294_v10, %v9786_v14 }
 0x772   : > { %v9796_v18 = vmul.f32 %v12296_v11, %v9795_v52 }
 0x779   : > { %v12298_v12 = vpop.eup %12297 }
 0x77a   : > { %v12300_v36 = vpop.eup %12299  ;;  %v9784_v21 = vmul.f32 0.6931472, %v12298_v12 }
 0x77b   : > { %v9793_v17 = vmul.f32 0.6931472, %v12300_v36 }
 0x77c   : > { %v9790_v27 = vsel %vm9789_vm0, %v9787_v20, %v9784_v21 }
 0x77d   : > { %v9800_v23 = vadd.f32 %v9790_v27, %v9768_v22  ;;  %v9799_v26 = vsel %vm9798_vm1, %v9796_v18, %v9793_v17 }
 0x77e   : > { %v9801_v1 = vadd.f32 %v9799_v26, %v9769_v25 }
 0x77f   : > { %v9802_v30 = vsel %vm9770_vm2, %v11541_v60, %v9800_v23 }
 0x780   : > { %v9803_v31 = vsel %vm9771_vm3, %v11542_v56, %v9801_v1  ;;  %v9806_v34 = vmul.f32 %v9804_v28, %v9802_v30  ;;  %9989 = vst [vmem:[%s667_s2] sm:$0xff] %v9802_v30 }
 0x781   : > { %v9807_v41 = vmul.f32 %v9805_v29, %v9803_v31  ;;  %9990 = vst [vmem:[%s667_s2 + $0x8] sm:$0xff] %v9803_v31  ;;  %s12649_s2 = scalar_lea.vmem %s12648_s27, 512 }
 0x782   : > { %v9808_v38 = vadd.f32 %v11611_v13, %v9806_v34  ;;  %p12651_p8 = scmp.lt.s32.totalorder %s12649_s2, %s12643_s6 }
 0x783   : > { %v9809_v37 = vadd.f32 %v11612_v61, %v9807_v41 }
 0x784   : > { %v9810_v42 = vpack.c.bf16 %v9808_v38, %v9808_v38  ;;  %p12652_p9 = por %p12651_p8, %p12650_p11 }
 0x785   : > { %v9811_v39 = vpack.c.bf16 %v9809_v37, %v9809_v37 }
 0x786   : > { %p12653_p12 = pnand %p12652_p9, %p12646_p5 }
 0x787   : > { %9979 = vmatprep.mubr.bf16.mxu0 %v9811_v39 }
 0x788   : > { %9980 = vmatmul.mubr.bf16.vlgmr.msra.gmra.mrb[20].mxu0 %v9810_v42 }
 0x789   : > { %12656 = shalt.err (!%p12653_p12)
}
 0x78a   : > { %s12657_s18 = scalar_lea.hbm %s13492_s5, 256  ;;  %s12661_s14 = scalar_lea.hbm %s13656_s28, 512 }
 0x78b   : > { %p12658_p13 = scmp.ne.s32.totalorder %s13492_s5, %s12657_s18  ;;  %p12662_p2 = scmp.lt.u32.totalorder %s13492_s5, %s13656_s28 }
 0x78c   : > { %p12663_p4 = scmp.lt.u32.totalorder %s12661_s14, %s12657_s18  ;;  %p12665_p6 = scmp.lt.u32.totalorder %s12657_s18, %s13492_s5 }
 0x78d   : > { %p12659_p1 = pnand %p12658_p13, %p13658_p7 }
 0x78e   : > { %p12664_p10 = por %p12663_p4, %p12662_p2 }
 0x78f   : > { %p12660_p3 = pneg %p12659_p1 }
 0x790   : > { %p12666_p0 = por %p12665_p6, %p12664_p10 }
 0x792   : > { %p12667_p5 = pnand %p12666_p0, %p12660_p3 }
 0x794   : > { %12670 = shalt.err (!%p12667_p5)
}
 0x795   : > { %11769 = dma.vmem_to_hbm [thread:$0]  (%p13658_p7), %s13494_s22, 256, %s13492_s5, %s13501_s24  }
 0x796   : > { %s10017_s6 = sshll.u32 %s13478_s3, 4  ;;  %s9993_s2 = scalar_lea.sflag [#allocation4], %s13243_s12  ;;  %s10018_s6 = int_to_ptr.vmem [resolvable:$true] %s10017_s6 }
 0x797   : > { %s12671_s11 = scalar_lea.vmem %s10018_s6, 256  ;;  %s12815_s18 = smov [#allocation22]  }
 0x798   : > { %p12672_p11 = scmp.ne.s32.totalorder %s10018_s6, %s12671_s11  ;;  %s12675_s25 = sshll.u32 %s12815_s18, 4  ;;  %s12676_s25 = int_to_ptr.vmem [resolvable:$false] %s12675_s25 }
 0x799   : > { %s12677_s14 = scalar_lea.vmem %s12676_s25, 512  ;;  %p12678_p12 = scmp.lt.s32.totalorder %s10018_s6, %s12676_s25 }
 0x79a   : > { %p12673_p8 = pnand %p12672_p11, %p13658_p7  ;;  %p12679_p13 = scmp.lt.s32.totalorder %s12677_s14, %s12671_s11 }
 0x79c   : > { %p12674_p9 = pneg %p12673_p8  ;;  %p12680_p1 = por %p12679_p13, %p12678_p12 }
 0x79e   : > { %p12681_p3 = pnand %p12680_p1, %p12674_p9 }
 0x7a0   : > { %12684 = shalt.err (!%p12681_p3)
}
 0x7a1   : > { %s12685_s3 = scalar_lea.hbm %s13499_s17, 256  ;;  %s12689_s23 = scalar_lea.hbm %s13657_s4, 512 }
 0x7a2   : > { %p12686_p2 = scmp.ne.s32.totalorder %s13499_s17, %s12685_s3  ;;  %p12690_p6 = scmp.lt.u32.totalorder %s13499_s17, %s13657_s4 }
 0x7a3   : > { %p12691_p0 = scmp.lt.u32.totalorder %s12689_s23, %s12685_s3  ;;  %p12693_p11 = scmp.lt.u32.totalorder %s12685_s3, %s13499_s17 }
 0x7a4   : > { %p12687_p4 = pnand %p12686_p2, %p13658_p7 }
 0x7a5   : > { %p12692_p5 = por %p12691_p0, %p12690_p6 }
 0x7a6   : > { %p12688_p10 = pneg %p12687_p4 }
 0x7a7   : > { %p12694_p8 = por %p12693_p11, %p12692_p5 }
 0x7a9   : > { %p12695_p9 = pnand %p12694_p8, %p12688_p10 }
 0x7ab   : > { %12698 = shalt.err (!%p12695_p9)
}
 0x7ac   : > { %11768 = dma.vmem_to_hbm [thread:$0]  (%p13658_p7), %s10018_s6, 256, %s13499_s17, %s9993_s2   ;;  %v11543_v55 = vld [vmem:[#allocation19] ss:$0 sm:$0xff] }
 0x7ad   : > { %s10324_s11 = sshll.u32 %s13243_s12, 3  ;;  %s11567_s25 = sshll.u32 %s12913_s19, 7 }
 0x7ae   : > { %s674_s14 = scalar_lea.vmem [#allocation25], %s10324_s11  ;;  %s13659_s23 = sld [smem:[#allocation46_spill]] }
 0x7af   : > { %s10044_s5 = sshll.u32 %s674_s14, 4  ;;  %s12816_s12 = smov [#allocation25]   ;;  %s10045_s5 = int_to_ptr.vmem [resolvable:$true] %s10044_s5 }
 0x7b0   : > { %s12699_s17 = scalar_lea.vmem %s10045_s5, 128  ;;  %s12703_s19 = sshll.u32 %s12816_s12, 4  ;;  %s12704_s19 = int_to_ptr.vmem [resolvable:$false] %s12703_s19 }
 0x7b1   : > { %p12700_p12 = scmp.ne.s32.totalorder %s10045_s5, %s12699_s17  ;;  %s12705_s6 = scalar_lea.vmem %s12704_s19, 256 }
 0x7b2   : > { %p12706_p3 = scmp.lt.s32.totalorder %s10045_s5, %s12704_s19  ;;  %p12707_p2 = scmp.lt.s32.totalorder %s12705_s6, %s12699_s17 }
 0x7b3   : > { %p12701_p13 = pnand %p12700_p12, %p13658_p7 }
 0x7b4   : > { %s13549_s27 = scalar_lea.hbm %s13659_s23, %s11567_s25  ;;  %p12708_p4 = por %p12707_p2, %p12706_p3 }
 0x7b5   : > { %p12702_p1 = pneg %p12701_p13 }
 0x7b7   : > { %p12709_p10 = pnand %p12708_p4, %p12702_p1 }
 0x85b   : > { %v11589_v19 = vpop.f32.mrb[20].mxu0 }
 0x85c   : > { %v11590_v44 = vpop.f32.mrb[21].mxu0 }
 0x85d   : > { %v11591_v47 = vadd.f32 %v11590_v44, %v11589_v19  ;;  %v11592_v48 = vpop.f32.mrb[22].mxu0 }
 0x85e   : > { %v11593_v43 = vpop.f32.mrb[23].mxu0 }
 0x85f   : > { %v9982_v0 = vadd.f32 %v11591_v47, %v11543_v55 }
 0x861   : > { %9991 = vst [vmem:[%s674_s14] sm:$0xff] %v9982_v0 }
 0x862   : > { %12712 = shalt.err (!%p12709_p10)
}
 0x863   : > { %s12713_s2 = scalar_lea.hbm %s13549_s27, 128  ;;  %s12717_s25 = scalar_lea.hbm %s13659_s23, 256 }
 0x864   : > { %p12714_p6 = scmp.ne.s32.totalorder %s13549_s27, %s12713_s2  ;;  %p12718_p11 = scmp.lt.u32.totalorder %s13549_s27, %s13659_s23 }
 0x865   : > { %p12719_p8 = scmp.lt.u32.totalorder %s12717_s25, %s12713_s2  ;;  %p12721_p12 = scmp.lt.u32.totalorder %s12713_s2, %s13549_s27 }
 0x866   : > { %p12715_p0 = pnand %p12714_p6, %p13658_p7 }
 0x867   : > { %p12720_p9 = por %p12719_p8, %p12718_p11 }
 0x868   : > { %p12716_p5 = pneg %p12715_p0 }
 0x869   : > { %p12722_p13 = por %p12721_p12, %p12720_p9 }
 0x86b   : > { %p12723_p1 = pnand %p12722_p13, %p12716_p5 }
 0x86d   : > { %12726 = shalt.err (!%p12723_p1)
}
 0x86e   : > { %11770 = dma.vmem_to_hbm [thread:$0]  (%p13658_p7), %s10045_s5, 128, %s13549_s27, %s13501_s24  }
 0x86f PF: > { %s10056_s22 = sand.u32 1, %s12781_s29   ;;  %p13660_p3 = scmp.ne.s32.totalorder %s13639_s20, 0 }
 0x870   : > { %p13661_p2 = scmp.ge.s32.totalorder %s12793_s16, 2  ;;  %s10057_s17 = scalar_lea.sflag [#allocation4], %s10056_s22 }
 0x872   : > { %p11813_p4 = pnand %p13661_p2, %p13660_p3 }
 0x874   : > { %12772 = dma.done.wait (!%p11813_p4), %s10057_s17, 256  }
 0x875   : > { %12774 = vsyncadd (!%p11813_p4), %s10057_s17, 4294967040  ;;  %s13662_s12 = sadd.s32 4294967294, %s12793_s16  }
 0x876   : > { %s10065_s19 = sand.u32 1, %s13662_s12  }
 0x877   : > { %s10066_s6 = scalar_lea.sflag [#allocation24], %s10065_s19 }
 0x878   : > { %12776 = dma.done.wait (!%p11813_p4), %s10066_s6, 384  }
 0x879   : > { %12778 = vsyncadd (!%p11813_p4), %s10066_s6, 4294966912  ;;  %p39_p7 = scmp.ge.s32.totalorder %s13140_s21, 4   ;;  %s13663_s29 = smov %s12785_s30 }
 0x87a   : > { %s13664_s30 = smov %s12789_s15  ;;  %s13665_s15 = smov %s13151_s0 }
 0x87b   : > { %s13666_s16 = smov %s13140_s21  ;;  %41 = sbr.rel (!%p39_p7) target bundleno = 26 (0x1a), region = 198 }
 0x882   :  { %10080 = vsyncpa [#allocation3], 1 }
 0x883   :  { %10082 = vsyncpa [#allocation3 + $0x1], 1 }
 0x884   :  { %10083 = vsyncpa [#allocation6], 1 }
 0x885   :  { %10084 = vsyncpa [#allocation9], 1 }
 0x886   :  { %10085 = vsyncpa [#allocation12], 1 }
 0x887   :  { %10086 = vsyncpa [#allocation15], 1 }
 0x888   :  { %10087 = vsyncpa [#allocation18], 1 }
 0x889   :  { %10088 = vsyncpa [#allocation21], 1 }
 0x88a   :  { %10090 = vsyncpa [#allocation21 + $0x1], 1 }
 0x88b   :  { %10091 = vsyncpa [#allocation4], 1 }
 0x88c   :  { %10093 = vsyncpa [#allocation4 + $0x1], 1 }
 0x88d   :  { %10094 = vsyncpa [#allocation24], 1 }
 0x88e   :  { %10096 = vsyncpa [#allocation24 + $0x1], 1 }

</bundles_post_ra>
